<compile_context>
chip_gen: v5e
topology: v5e:2x2
jax: 0.10.0
libtpu: 0.0.40
codegen_flags: <defaults>
</compile_context>

<pallas_src>
import math
import functools

import jax
import jax.numpy as jnp
from jax.experimental import pallas as pl
from jax.experimental.pallas import tpu as pltpu


def _round_up(x, m):
    return ((x + m - 1) // m) * m


def _pick_row_tile(Mp, cap):
    """Row tile: multiple of 8, divides Mp, and gives >=2 grid steps when possible
    so dimension_semantics=('parallel',) can use both v7x TensorCores."""
    assert Mp % 8 == 0
    target = min(cap, Mp)
    if target >= Mp and Mp >= 16:
        target = Mp // 2
    tm = max(8, (target // 8) * 8)
    while Mp % tm:
        tm -= 8
    return tm


# ----------------------------------------------------------------------------------
# Pallas kernels
# ----------------------------------------------------------------------------------
def _backbone_kernel(C, x_ref, xw_ref, xb_ref, fw_ref, fb_ref, xo_ref, fo_ref):
    # Fused elementwise backbone stand-in (Cin == 1):
    #   x_out = sigmoid(x * xw + xb)            [rows, 512]
    #   feat  = relu(x * fw_c + fb_c) per chan  [C, rows, 512]
    # Scalar / per-channel params live in SMEM (no degenerate VMEM tiles).
    x = x_ref[...]
    xo_ref[...] = jax.nn.sigmoid(x * xw_ref[0] + xb_ref[0])
    for c in range(C):
        fo_ref[c] = jnp.maximum(x * fw_ref[c] + fb_ref[c], 0.0)


def pallas_backbone(flat, xw, xb, fw, fb):
    """flat: [M] f32 (B*T*H*W flattened single-channel input)."""
    # TODO(synk): feature is a module output, so it is kept f32; writing it bf16 would
    #   further halve the dominant store stream on v5e at the cost of output dtype.
    M = flat.shape[0]
    C = fw.shape[0]
    L = 512
    r0 = -(-M // L)
    if r0 < 8:
        R, tr = r0, r0                      # single full-array block (legal: block == array dims)
    else:
        R = _round_up(r0, 8)
        tr = _pick_row_tile(R, 512)
    Mp = R * L
    x2 = jnp.pad(flat, (0, Mp - M)).reshape(R, L)
    xo, fo = pl.pallas_call(
        functools.partial(_backbone_kernel, C),
        out_shape=(jax.ShapeDtypeStruct((R, L), jnp.float32),
                   jax.ShapeDtypeStruct((C, R, L), jnp.float32)),
        grid=(R // tr,),
        in_specs=[
            pl.BlockSpec((tr, L), lambda i: (i, 0)),
            pl.BlockSpec(memory_space=pltpu.MemorySpace.SMEM),
            pl.BlockSpec(memory_space=pltpu.MemorySpace.SMEM),
            pl.BlockSpec(memory_space=pltpu.MemorySpace.SMEM),
            pl.BlockSpec(memory_space=pltpu.MemorySpace.SMEM),
        ],
        out_specs=(pl.BlockSpec((tr, L), lambda i: (i, 0)),
                   pl.BlockSpec((C, tr, L), lambda i: (0, i, 0))),
        compiler_params=pltpu.CompilerParams(dimension_semantics=("parallel",)),
    )(x2, xw, xb, fw, fb)
    x_map = xo.reshape(Mp)[:M]
    feat = fo.reshape(C, Mp)[:, :M]
    return x_map, feat


def _linear_kernel(act, x_ref, w_ref, b_ref, o_ref):
    y = jnp.dot(x_ref[...].astype(jnp.bfloat16), w_ref[...],
                preferred_element_type=jnp.float32) + b_ref[...]
    if act == "relu":
        y = jnp.maximum(y, 0.0)
    o_ref[...] = y


def pallas_linear(x, w, b, act=None, tm_cap=256):
    """act(x @ w + b); bf16 operands, f32 accumulation; row-tiled."""
    M, K = x.shape
    N = w.shape[1]
    Mp = _round_up(max(M, 8), 8)
    tm = _pick_row_tile(Mp, tm_cap)
    xp = x if Mp == M else jnp.pad(x, ((0, Mp - M), (0, 0)))
    out = pl.pallas_call(
        functools.partial(_linear_kernel, act),
        out_shape=jax.ShapeDtypeStruct((Mp, N), jnp.float32),
        grid=(Mp // tm,),
        in_specs=[
            pl.BlockSpec((tm, K), lambda i: (i, 0)),
            pl.BlockSpec((K, N), lambda i: (0, 0)),
            pl.BlockSpec((1, N), lambda i: (0, 0)),
        ],
        out_specs=pl.BlockSpec((tm, N), lambda i: (i, 0)),
        compiler_params=pltpu.CompilerParams(dimension_semantics=("parallel",)),
    )(xp, w, b)
    return out if Mp == M else out[:M]


def _qkv_kernel(src_ref, pos_ref, wqk_ref, bqk_ref, wv_ref, bv_ref, q_ref, k_ref, v_ref):
    # Fused (src+pos)@[Wq|Wk] and src@Wv.  1/sqrt(Dh) is pre-folded into Wq/bq.
    s = src_ref[...]
    sp = (s + pos_ref[...]).astype(jnp.bfloat16)
    D = q_ref.shape[1]
    qk = jnp.dot(sp, wqk_ref[...], preferred_element_type=jnp.float32) + bqk_ref[...]
    q_ref[...] = qk[:, :D].astype(jnp.bfloat16)
    k_ref[...] = qk[:, D:].astype(jnp.bfloat16)
    v_ref[...] = (jnp.dot(s.astype(jnp.bfloat16), wv_ref[...],
                          preferred_element_type=jnp.float32) + bv_ref[...]).astype(jnp.bfloat16)


def pallas_qkv(src, pos, lp, tm):
    Mp, D = src.shape
    assert Mp % tm == 0
    q, k, v = pl.pallas_call(
        _qkv_kernel,
        out_shape=(jax.ShapeDtypeStruct((Mp, D), jnp.bfloat16),) * 3,
        grid=(Mp // tm,),
        in_specs=[
            pl.BlockSpec((tm, D), lambda i: (i, 0)),
            pl.BlockSpec((tm, D), lambda i: (i, 0)),
            pl.BlockSpec((D, 2 * D), lambda i: (0, 0)),
            pl.BlockSpec((1, 2 * D), lambda i: (0, 0)),
            pl.BlockSpec((D, D), lambda i: (0, 0)),
            pl.BlockSpec((1, D), lambda i: (0, 0)),
        ],
        out_specs=(pl.BlockSpec((tm, D), lambda i: (i, 0)),) * 3,
        compiler_params=pltpu.CompilerParams(dimension_semantics=("parallel",)),
    )(src, pos, lp["wqk"], lp["bqk"], lp["wv"], lp["bv"])
    return q, k, v


def _attn_kernel(nhead, q_ref, k_ref, v_ref, bias_ref, o_ref):
    # One batch element per block, q/k/v stored lane-dense as [S, D]; head split is
    # done in-kernel with static lane slices so no XLA transposes are needed outside.
    S, D = q_ref.shape[1], q_ref.shape[2]
    Dh = D // nhead
    q = q_ref[0]
    k = k_ref[0]
    v = v_ref[0]
    bias = bias_ref[0]                                   # (1, S) f32 key-padding bias
    outs = []
    for h in range(nhead):
        sl = slice(h * Dh, (h + 1) * Dh)
        qh, kh, vh = q[:, sl], k[:, sl], v[:, sl]
        s = jax.lax.dot_general(qh, kh, (((1,), (1,)), ((), ())),
                                preferred_element_type=jnp.float32)      # (S, S)
        s = s + bias
        s = s - jnp.max(s, axis=-1, keepdims=True)
        p = jnp.exp(s)
        inv = pl.reciprocal(jnp.sum(p, axis=-1, keepdims=True), approx=True)
        p = (p * inv).astype(vh.dtype)
        outs.append(jnp.dot(p, vh, preferred_element_type=jnp.float32))  # (S, Dh)
    o_ref[0] = jnp.concatenate(outs, axis=-1).astype(o_ref.dtype)        # (S, D) bf16


def pallas_attention(q, k, v, bias, nhead):
    """q,k,v: [B, S, D] bf16; bias: [B, 1, S] f32 -> [B, S, D] bf16."""
    B, S, D = q.shape
    return pl.pallas_call(
        functools.partial(_attn_kernel, nhead),
        out_shape=jax.ShapeDtypeStruct((B, S, D), jnp.bfloat16),
        grid=(B,),
        in_specs=[
            pl.BlockSpec((1, S, D), lambda i: (i, 0, 0)),
            pl.BlockSpec((1, S, D), lambda i: (i, 0, 0)),
            pl.BlockSpec((1, S, D), lambda i: (i, 0, 0)),
            pl.BlockSpec((1, 1, S), lambda i: (i, 0, 0)),
        ],
        out_specs=pl.BlockSpec((1, S, D), lambda i: (i, 0, 0)),
        compiler_params=pltpu.CompilerParams(dimension_semantics=("parallel",)),
    )(q, k, v, bias)


def _proj_add_ln_kernel(eps, x_ref, w_ref, b_ref, r_ref, g_ref, be_ref, o_ref):
    y = jnp.dot(x_ref[...], w_ref[...], preferred_element_type=jnp.float32) + b_ref[...]
    y = y + r_ref[...]
    mu = jnp.mean(y, axis=-1, keepdims=True)
    var = jnp.mean(jnp.square(y - mu), axis=-1, keepdims=True)
    o_ref[...] = (y - mu) * jax.lax.rsqrt(var + eps) * g_ref[...] + be_ref[...]


def pallas_proj_add_ln(x, w, b, res, g, be, tm, eps=1e-5):
    """LayerNorm(res + x @ w + b) in one kernel; x is bf16, res f32."""
    Mp, D = res.shape
    assert Mp % tm == 0
    return pl.pallas_call(
        functools.partial(_proj_add_ln_kernel, eps),
        out_shape=jax.ShapeDtypeStruct((Mp, D), jnp.float32),
        grid=(Mp // tm,),
        in_specs=[
            pl.BlockSpec((tm, D), lambda i: (i, 0)),
            pl.BlockSpec((D, D), lambda i: (0, 0)),
            pl.BlockSpec((1, D), lambda i: (0, 0)),
            pl.BlockSpec((tm, D), lambda i: (i, 0)),
            pl.BlockSpec((1, D), lambda i: (0, 0)),
            pl.BlockSpec((1, D), lambda i: (0, 0)),
        ],
        out_specs=pl.BlockSpec((tm, D), lambda i: (i, 0)),
        compiler_params=pltpu.CompilerParams(dimension_semantics=("parallel",)),
    )(x, w, b, res, g, be)


def _ffn_add_ln_kernel(eps, fc, x_ref, w1_ref, b1_ref, w2_ref, b2_ref, g_ref, be_ref, o_ref):
    # LayerNorm(x + relu(x@w1+b1)@w2 + b2), chunked over the FFN width so the
    # (tm, F) f32 intermediate never materializes.
    x = x_ref[...]
    xb = x.astype(jnp.bfloat16)
    F = w1_ref.shape[1]
    y = x + b2_ref[...]
    for c0 in range(0, F, fc):
        w1c = w1_ref[:, c0:c0 + fc]
        b1c = b1_ref[:, c0:c0 + fc]
        w2c = w2_ref[c0:c0 + fc, :]
        h = jnp.dot(xb, w1c, preferred_element_type=jnp.float32) + b1c
        h = jnp.maximum(h, 0.0).astype(jnp.bfloat16)
        y = y + jnp.dot(h, w2c, preferred_element_type=jnp.float32)
    mu = jnp.mean(y, axis=-1, keepdims=True)
    var = jnp.mean(jnp.square(y - mu), axis=-1, keepdims=True)
    o_ref[...] = (y - mu) * jax.lax.rsqrt(var + eps) * g_ref[...] + be_ref[...]


def pallas_ffn_add_ln(x, w1, b1, w2, b2, g, be, tm, eps=1e-5):
    Mp, D = x.shape
    F = w1.shape[1]
    fc = 512 if F % 512 == 0 else F
    assert Mp % tm == 0
    # TODO(synk): for very large Mp/D, single-buffer the constant w1/w2 blocks
    #   (pipeline_mode) and set vmem_limit_bytes explicitly for the v7x 64 MiB budget.
    return pl.pallas_call(
        functools.partial(_ffn_add_ln_kernel, eps, fc),
        out_shape=jax.ShapeDtypeStruct((Mp, D), jnp.float32),
        grid=(Mp // tm,),
        in_specs=[
            pl.BlockSpec((tm, D), lambda i: (i, 0)),
            pl.BlockSpec((D, F), lambda i: (0, 0)),
            pl.BlockSpec((1, F), lambda i: (0, 0)),
            pl.BlockSpec((F, D), lambda i: (0, 0)),
            pl.BlockSpec((1, D), lambda i: (0, 0)),
            pl.BlockSpec((1, D), lambda i: (0, 0)),
            pl.BlockSpec((1, D), lambda i: (0, 0)),
        ],
        out_specs=pl.BlockSpec((tm, D), lambda i: (i, 0)),
        compiler_params=pltpu.CompilerParams(dimension_semantics=("parallel",)),
    )(x, w1, b1, w2, b2, g, be)


def _head_kernel(eps, x_ref, w1, b1, g1, be1, w2, b2, g2, be2, w3, b3, o_ref):
    # head = (1x1 conv + BN + ReLU) x2 + 1x1 conv + sigmoid.
    # BN uses batch statistics over ALL rows (training-mode forward of a fresh
    # nn.BatchNorm2d) — so this kernel intentionally processes the whole array.
    # TODO(synk): inference-mode BN (running stats) would allow a row-tiled grid;
    #   at production B*T*N this single block should be replaced by a two-pass BN.
    def bn_relu(h, g, be):
        mu = jnp.mean(h, axis=0, keepdims=True)
        var = jnp.mean(jnp.square(h - mu), axis=0, keepdims=True)
        return jnp.maximum((h - mu) * jax.lax.rsqrt(var + eps) * g[...] + be[...], 0.0)

    h = jnp.dot(x_ref[...].astype(jnp.bfloat16), w1[...],
                preferred_element_type=jnp.float32) + b1[...]
    h = bn_relu(h, g1, be1)
    h = jnp.dot(h.astype(jnp.bfloat16), w2[...], preferred_element_type=jnp.float32) + b2[...]
    h = bn_relu(h, g2, be2)
    h = jnp.dot(h.astype(jnp.bfloat16), w3[...], preferred_element_type=jnp.float32) + b3[...]
    o_ref[...] = jax.nn.sigmoid(h)


def pallas_head(x, hp, eps=1e-5):
    M, D = x.shape
    No = hp["w3"].shape[1]                     # 128 (lane-dense, padded); real outputs = 2
    args = [x,
            hp["w1"], hp["b1"], hp["g1"], hp["be1"],
            hp["w2"], hp["b2"], hp["g2"], hp["be2"],
            hp["w3"], hp["b3"]]
    out = pl.pallas_call(
        functools.partial(_head_kernel, eps),
        out_shape=jax.ShapeDtypeStruct((M, No), jnp.float32),
        in_specs=[pl.BlockSpec(memory_space=pltpu.MemorySpace.VMEM)] * len(args),
        out_specs=pl.BlockSpec(memory_space=pltpu.MemorySpace.VMEM),
    )(*args)
    return out[:, :2]


# ----------------------------------------------------------------------------------
# Plain-JAX glue
# ----------------------------------------------------------------------------------
def grid_sample_3d(feature, grid):
    """F.grid_sample for 5-D input, align_corners=True, padding_mode='zeros'.
    feature: [B,C,D,H,W]; grid: [B,Do,Ho,Wo,3] with (x,y,z) in [-1,1]."""
    # TODO(synk): gather stays in plain JAX; the 8-corner trilinear sample has no clean
    #   rectangular BlockSpec form (a scalar-prefetch DMA gather would be possible).
    B, C, D, H, W = feature.shape
    gx, gy, gz = grid[..., 0], grid[..., 1], grid[..., 2]
    ix = (gx + 1.0) * 0.5 * (W - 1)
    iy = (gy + 1.0) * 0.5 * (H - 1)
    iz = (gz + 1.0) * 0.5 * (D - 1)

    def sample_one(feat_b, ix, iy, iz):
        x0, y0, z0 = jnp.floor(ix), jnp.floor(iy), jnp.floor(iz)
        flat = feat_b.reshape(C, -1)
        out = jnp.zeros((C,) + ix.shape, jnp.float32)
        for dz in (0, 1):
            for dy in (0, 1):
                for dx in (0, 1):
                    xc, yc, zc = x0 + dx, y0 + dy, z0 + dz
                    w = (1.0 - jnp.abs(ix - xc)) * (1.0 - jnp.abs(iy - yc)) * (1.0 - jnp.abs(iz - zc))
                    valid = ((xc >= 0) & (xc <= W - 1) & (yc >= 0) & (yc <= H - 1)
                             & (zc >= 0) & (zc <= D - 1))
                    xi = jnp.clip(xc, 0, W - 1).astype(jnp.int32)
                    yi = jnp.clip(yc, 0, H - 1).astype(jnp.int32)
                    zi = jnp.clip(zc, 0, D - 1).astype(jnp.int32)
                    idx = (zi * H + yi) * W + xi
                    vals = jnp.take(flat, idx.reshape(-1), axis=1).reshape((C,) + ix.shape)
                    out = out + vals * (w * valid)[None]
        return out

    return jax.vmap(sample_one)(feature, ix, iy, iz)


def sine_positional_encoding(coord, hw, d_model, temperature=10000.0):
    # TODO(synk): Sine_Positional_Encoding source unavailable; DETR-style 2D sine PE.
    Hf, Wf = hw
    x = coord[..., 0] / Wf * 2.0 * math.pi
    y = coord[..., 1] / Hf * 2.0 * math.pi
    half = d_model // 2
    dim_t = temperature ** (2.0 * (jnp.arange(half) // 2).astype(jnp.float32) / half)
    px = x[..., None] / dim_t
    py = y[..., None] / dim_t

    def interleave(p):
        return jnp.stack([jnp.sin(p[..., 0::2]), jnp.cos(p[..., 1::2])], axis=-1).reshape(p.shape)

    return jnp.concatenate([interleave(py), interleave(px)], axis=-1)


def feature_embedding(params, feature, coordinate):
    B, C, D, Hf, Wf = feature.shape
    coord = coordinate.astype(jnp.float32)
    # Mirrors the module exactly: normalize by H/W/T and sample with align_corners=True.
    ny = 2.0 * coord[..., 1] / Hf - 1.0
    nx = 2.0 * coord[..., 0] / Wf - 1.0
    Bc, Tc, Nc, _ = coord.shape
    length_idx = jnp.broadcast_to(jnp.arange(Tc, dtype=jnp.float32)[None, :, None], (Bc, Tc, Nc))
    length_idx = 2.0 * length_idx / Tc - 1.0
    coord_take = jnp.stack([length_idx, ny, nx], axis=-1)          # [B,T,N,3]
    grid = coord_take[:, :, :, None, :]                            # [B,T,N,1,3]
    sampled = grid_sample_3d(feature, grid)[..., 0]                # [B,C,T,N]

    # vector_embedding: Conv2d(C -> d_model, 1) + ReLU  (Pallas matmul kernel)
    v = sampled.transpose(0, 2, 3, 1).reshape(-1, C)
    v = pallas_linear(v, params["ve_w"], params["ve_b"], act="relu")
    d_model = v.shape[-1]
    vector = v.reshape(B, Tc, Nc, d_model)
    vector = jnp.where((coord_take[..., -1] < 0)[..., None], 0.0, vector)
    mask = coord[..., 0] < 0
    pos = sine_positional_encoding(coord, (Hf, Wf), d_model)
    return vector, pos, mask, coordinate


def transformer_encoder(params, vector, pos, mask, nhead=8, row_cap=512):
    # TODO(synk): Transformer_3D_encoder source unavailable; standard post-norm
    #   encoder stack with DETR-style pos added to q/k and key_padding_mask.
    B, T, N, D = vector.shape
    S = T * N
    S_pad = _round_up(S, 8)
    Mp = B * S_pad
    tm = _pick_row_tile(Mp, row_cap)

    # Pad once for the whole 6-layer stack; slice once at the end.
    pad_s = ((0, 0), (0, S_pad - S), (0, 0))
    src = jnp.pad(vector.reshape(B, S, D), pad_s).reshape(Mp, D)
    pos2 = jnp.pad(pos.reshape(B, S, D).astype(jnp.float32), pad_s).reshape(Mp, D)
    kpm = jnp.pad(mask.reshape(B, S), ((0, 0), (0, S_pad - S)), constant_values=True)
    bias = jnp.where(kpm, -1e9, 0.0).astype(jnp.float32)[:, None, :]     # [B,1,S_pad]

    for lp in params["layers"]:
        q, k, v = pallas_qkv(src, pos2, lp, tm)                          # [Mp, D] bf16 x3
        attn = pallas_attention(q.reshape(B, S_pad, D),
                                k.reshape(B, S_pad, D),
                                v.reshape(B, S_pad, D), bias, nhead)     # [B,S_pad,D] bf16
        src1 = pallas_proj_add_ln(attn.reshape(Mp, D), lp["wo"], lp["bo"],
                                  src, lp["ln1_g"], lp["ln1_b"], tm)
        src = pallas_ffn_add_ln(src1, lp["w1"], lp["b1"], lp["w2"], lp["b2"],
                                lp["ln2_g"], lp["ln2_b"], tm)
    return src.reshape(B, S_pad, D)[:, :S].reshape(B, T, N, D)


def mtr2_forward(params, inputs, point):
    """inputs: [B,1,T,H,W]; point: [B,T,N,2] (x,y)."""
    B, Cin, T, H, W = inputs.shape

    # ---- backbone (stand-in for UNet_3D: fused elementwise 1x1x1 convs, Cin=1) ----
    flat = inputs[:, 0].reshape(-1)                                 # [B*T*H*W]
    x_map, feat = pallas_backbone(flat, params["bb_xw"], params["bb_xb"],
                                  params["bb_fw"], params["bb_fb"])
    x_out = x_map.reshape(B, T, H, W)[:, None]                      # [B,1,T,H,W]
    C = params["bb_fw"].shape[0]
    feature = feat.reshape(C, B, T, H, W).transpose(1, 0, 2, 3, 4)  # [B,C,T,H,W]

    # ---- feature embedding ----
    vector, pos, mask, point = feature_embedding(params, feature, point)

    # ---- transformer ----
    vec = transformer_encoder(params, vector, pos, mask)            # [B,T,N,d_model]

    # ---- head ----
    Bv, Tv, Nv, D = vec.shape
    move = pallas_head(vec.reshape(-1, D), params["head"]).reshape(Bv, Tv, Nv, 2)
    move = move[:, :, :, None, :]                                   # [B,T,N,1,2]
    move = 2.0 * move - 1.0
    # move_limit[None, None, None:, None] -> shape (1,1,3,1), broadcast to [B,T,N,3,2]
    move = move * params["move_limit"].reshape(1, 1, 1, 3, 1)
    return x_out, feature, move, point


# ----------------------------------------------------------------------------------
# Deterministic parameter init (PyTorch-style uniform(+-1/sqrt(fan_in)));
# matmul weights stored in bf16 ONCE, biases/LN params as (1,N) f32, attention scale
# folded into Wq/bq, head w3 padded to 128 output lanes.
# ----------------------------------------------------------------------------------
def _init_linear(key, fan_in, fan_out):
    kw, kb = jax.random.split(key)
    bound = 1.0 / math.sqrt(fan_in)
    w = jax.random.uniform(kw, (fan_in, fan_out), jnp.float32, -bound, bound)
    b = jax.random.uniform(kb, (fan_out,), jnp.float32, -bound, bound)
    return w, b


def init_params(key, channel, d_model, nhead=8, n_layers=6, ffn=2048):
    keys = iter(jax.random.split(key, 64))
    p = {}
    fw, fb = _init_linear(next(keys), 1, channel)
    p["bb_fw"], p["bb_fb"] = fw.reshape(channel), fb                # (C,), (C,)
    xw, xb = _init_linear(next(keys), 1, 1)
    p["bb_xw"], p["bb_xb"] = xw.reshape(1), xb                      # (1,), (1,)
    vew, veb = _init_linear(next(keys), channel, d_model)
    p["ve_w"], p["ve_b"] = vew.astype(jnp.bfloat16), veb.reshape(1, d_model)

    scale = 1.0 / math.sqrt(d_model // nhead)
    layers = []
    for _ in range(n_layers):
        lp = {}
        wq, bq = _init_linear(next(keys), d_model, d_model)
        wk, bk = _init_linear(next(keys), d_model, d_model)
        lp["wqk"] = jnp.concatenate([wq * scale, wk], axis=1).astype(jnp.bfloat16)   # (D,2D)
        lp["bqk"] = jnp.concatenate([bq * scale, bk], axis=0).reshape(1, 2 * d_model)
        wv, bv = _init_linear(next(keys), d_model, d_model)
        lp["wv"], lp["bv"] = wv.astype(jnp.bfloat16), bv.reshape(1, d_model)
        wo, bo = _init_linear(next(keys), d_model, d_model)
        lp["wo"], lp["bo"] = wo.astype(jnp.bfloat16), bo.reshape(1, d_model)
        lp["ln1_g"] = jnp.ones((1, d_model), jnp.float32)
        lp["ln1_b"] = jnp.zeros((1, d_model), jnp.float32)
        w1, b1 = _init_linear(next(keys), d_model, ffn)
        lp["w1"], lp["b1"] = w1.astype(jnp.bfloat16), b1.reshape(1, ffn)
        w2, b2 = _init_linear(next(keys), ffn, d_model)
        lp["w2"], lp["b2"] = w2.astype(jnp.bfloat16), b2.reshape(1, d_model)
        lp["ln2_g"] = jnp.ones((1, d_model), jnp.float32)
        lp["ln2_b"] = jnp.zeros((1, d_model), jnp.float32)
        layers.append(lp)
    p["layers"] = layers

    head = {}
    hw1, hb1 = _init_linear(next(keys), d_model, d_model)
    head["w1"], head["b1"] = hw1.astype(jnp.bfloat16), hb1.reshape(1, d_model)
    head["g1"] = jnp.ones((1, d_model), jnp.float32)
    head["be1"] = jnp.zeros((1, d_model), jnp.float32)
    hw2, hb2 = _init_linear(next(keys), d_model, d_model)
    head["w2"], head["b2"] = hw2.astype(jnp.bfloat16), hb2.reshape(1, d_model)
    head["g2"] = jnp.ones((1, d_model), jnp.float32)
    head["be2"] = jnp.zeros((1, d_model), jnp.float32)
    hw3, hb3 = _init_linear(next(keys), d_model, 2)
    head["w3"] = jnp.pad(hw3, ((0, 0), (0, 126))).astype(jnp.bfloat16)   # lane-dense (D,128)
    head["b3"] = jnp.pad(hb3, (0, 126)).reshape(1, 128)
    p["head"] = head

    p["move_limit"] = jnp.array([25.0, 30.0, 35.0], jnp.float32)
    return p


# ----------------------------------------------------------------------------------
if __name__ == "__main__":
    key = jax.random.PRNGKey(0)
    B, T, H, W = 2, 4, 16, 16
    channel = 16
    d_model = channel * 8      # 128 -> lane-dense model dimension
    N = 8                      # tracked points per frame

    k_in, k_pt, k_par = jax.random.split(key, 3)
    inputs = jax.random.normal(k_in, (B, 1, T, H, W), jnp.float32)
    px = jax.random.uniform(k_pt, (B, T, N, 1), jnp.float32, 0.0, W - 1)
    py = jax.random.uniform(jax.random.fold_in(k_pt, 1), (B, T, N, 1), jnp.float32, 0.0, H - 1)
    point = jnp.concatenate([px, py], axis=-1)                     # [B,T,N,2] (x,y)

    params = init_params(k_par, channel, d_model)

    x, feature, move, coord = jax.jit(mtr2_forward)(params, inputs, point)
    jax.block_until_ready((x, feature, move, coord))

    assert x.shape == (B, 1, T, H, W)
    assert feature.shape == (B, channel, T, H, W)
    assert move.shape == (B, T, N, 3, 2)
    assert coord.shape == (B, T, N, 2)
    print("KERNEL_OK")
</pallas_src>

<mosaic_0001>
module attributes {stable_mosaic.version = 11 : i64} {
  func.func @_backbone_kernel(%arg0: i32, %arg1: memref<4x512xf32, #tpu.memory_space<vmem>>, %arg2: memref<1xf32, #tpu.memory_space<smem>>, %arg3: memref<1xf32, #tpu.memory_space<smem>>, %arg4: memref<16xf32, #tpu.memory_space<smem>>, %arg5: memref<16xf32, #tpu.memory_space<smem>>, %arg6: memref<4x512xf32, #tpu.memory_space<vmem>>, %arg7: memref<16x4x512xf32, #tpu.memory_space<vmem>>) attributes {dimension_semantics = [#tpu.dimension_semantics<parallel>], iteration_bounds = array<i64: 1>, scalar_prefetch = 0 : i64, scratch_operands = 0 : i64, tpu.core_type = #tpu.core_type<tc>, window_params = [{transform_indices = @transform_0, window_bounds = array<i64: 4, 512>}, {transform_indices = @transform_1, window_bounds = array<i64: 1>}, {transform_indices = @transform_2, window_bounds = array<i64: 1>}, {transform_indices = @transform_3, window_bounds = array<i64: 16>}, {transform_indices = @transform_4, window_bounds = array<i64: 16>}, {transform_indices = @transform_5, window_bounds = array<i64: 4, 512>}, {transform_indices = @transform_6, window_bounds = array<i64: 16, 4, 512>}]} {
    %c0 = arith.constant 0 : index
    %c0_0 = arith.constant 0 : index
    %0 = vector.load %arg1[%c0, %c0_0] : memref<4x512xf32, #tpu.memory_space<vmem>>, vector<4x512xf32>
    %c0_1 = arith.constant 0 : index
    %1 = memref.load %arg2[%c0_1] : memref<1xf32, #tpu.memory_space<smem>>
    %2 = vector.broadcast %1 : f32 to vector<4x512xf32>
    %3 = arith.mulf %0, %2 : vector<4x512xf32>
    %c0_2 = arith.constant 0 : index
    %4 = memref.load %arg3[%c0_2] : memref<1xf32, #tpu.memory_space<smem>>
    %5 = vector.broadcast %4 : f32 to vector<4x512xf32>
    %6 = arith.addf %3, %5 : vector<4x512xf32>
    %7 = arith.negf %6 : vector<4x512xf32>
    %8 = math.exp %7 : vector<4x512xf32>
    %cst = arith.constant 1.000000e+00 : f32
    %9 = vector.broadcast %cst : f32 to vector<4x512xf32>
    %10 = arith.addf %9, %8 : vector<4x512xf32>
    %11 = arith.divf %9, %10 : vector<4x512xf32>
    %c0_3 = arith.constant 0 : index
    %c0_4 = arith.constant 0 : index
    %12 = vector.load %arg6[%c0_3, %c0_4] : memref<4x512xf32, #tpu.memory_space<vmem>>, vector<4x512xf32>
    tpu.vector_store %arg6[%c0_3, %c0_4], %11 {strides = array<i32>} : memref<4x512xf32, #tpu.memory_space<vmem>>, vector<4x512xf32>,
    %c0_5 = arith.constant 0 : index
    %13 = memref.load %arg4[%c0_5] : memref<16xf32, #tpu.memory_space<smem>>
    %14 = vector.broadcast %13 : f32 to vector<4x512xf32>
    %15 = arith.mulf %0, %14 : vector<4x512xf32>
    %c0_6 = arith.constant 0 : index
    %16 = memref.load %arg5[%c0_6] : memref<16xf32, #tpu.memory_space<smem>>
    %17 = vector.broadcast %16 : f32 to vector<4x512xf32>
    %18 = arith.addf %15, %17 : vector<4x512xf32>
    %cst_7 = arith.constant 0.000000e+00 : f32
    %19 = vector.broadcast %cst_7 : f32 to vector<4x512xf32>
    %20 = arith.maximumf %18, %19 : vector<4x512xf32>
    %c0_8 = arith.constant 0 : index
    %c0_9 = arith.constant 0 : index
    %c0_10 = arith.constant 0 : index
    %21 = vector.load %arg7[%c0_8, %c0_9, %c0_10] : memref<16x4x512xf32, #tpu.memory_space<vmem>>, vector<1x4x512xf32>
    %22 = vector.shape_cast %21 : vector<1x4x512xf32> to vector<4x512xf32>
    %23 = vector.shape_cast %20 : vector<4x512xf32> to vector<1x4x512xf32>
    tpu.vector_store %arg7[%c0_8, %c0_9, %c0_10], %23 {strides = array<i32>} : memref<16x4x512xf32, #tpu.memory_space<vmem>>, vector<1x4x512xf32>,
    %c1 = arith.constant 1 : index
    %24 = memref.load %arg4[%c1] : memref<16xf32, #tpu.memory_space<smem>>
    %25 = vector.broadcast %24 : f32 to vector<4x512xf32>
    %26 = arith.mulf %0, %25 : vector<4x512xf32>
    %c1_11 = arith.constant 1 : index
    %27 = memref.load %arg5[%c1_11] : memref<16xf32, #tpu.memory_space<smem>>
    %28 = vector.broadcast %27 : f32 to vector<4x512xf32>
    %29 = arith.addf %26, %28 : vector<4x512xf32>
    %cst_12 = arith.constant 0.000000e+00 : f32
    %30 = vector.broadcast %cst_12 : f32 to vector<4x512xf32>
    %31 = arith.maximumf %29, %30 : vector<4x512xf32>
    %c1_13 = arith.constant 1 : index
    %c0_14 = arith.constant 0 : index
    %c0_15 = arith.constant 0 : index
    %32 = vector.load %arg7[%c1_13, %c0_14, %c0_15] : memref<16x4x512xf32, #tpu.memory_space<vmem>>, vector<1x4x512xf32>
    %33 = vector.shape_cast %32 : vector<1x4x512xf32> to vector<4x512xf32>
    %34 = vector.shape_cast %31 : vector<4x512xf32> to vector<1x4x512xf32>
    tpu.vector_store %arg7[%c1_13, %c0_14, %c0_15], %34 {strides = array<i32>} : memref<16x4x512xf32, #tpu.memory_space<vmem>>, vector<1x4x512xf32>,
    %c2 = arith.constant 2 : index
    %35 = memref.load %arg4[%c2] : memref<16xf32, #tpu.memory_space<smem>>
    %36 = vector.broadcast %35 : f32 to vector<4x512xf32>
    %37 = arith.mulf %0, %36 : vector<4x512xf32>
    %c2_16 = arith.constant 2 : index
    %38 = memref.load %arg5[%c2_16] : memref<16xf32, #tpu.memory_space<smem>>
    %39 = vector.broadcast %38 : f32 to vector<4x512xf32>
    %40 = arith.addf %37, %39 : vector<4x512xf32>
    %cst_17 = arith.constant 0.000000e+00 : f32
    %41 = vector.broadcast %cst_17 : f32 to vector<4x512xf32>
    %42 = arith.maximumf %40, %41 : vector<4x512xf32>
    %c2_18 = arith.constant 2 : index
    %c0_19 = arith.constant 0 : index
    %c0_20 = arith.constant 0 : index
    %43 = vector.load %arg7[%c2_18, %c0_19, %c0_20] : memref<16x4x512xf32, #tpu.memory_space<vmem>>, vector<1x4x512xf32>
    %44 = vector.shape_cast %43 : vector<1x4x512xf32> to vector<4x512xf32>
    %45 = vector.shape_cast %42 : vector<4x512xf32> to vector<1x4x512xf32>
    tpu.vector_store %arg7[%c2_18, %c0_19, %c0_20], %45 {strides = array<i32>} : memref<16x4x512xf32, #tpu.memory_space<vmem>>, vector<1x4x512xf32>,
    %c3 = arith.constant 3 : index
    %46 = memref.load %arg4[%c3] : memref<16xf32, #tpu.memory_space<smem>>
    %47 = vector.broadcast %46 : f32 to vector<4x512xf32>
    %48 = arith.mulf %0, %47 : vector<4x512xf32>
    %c3_21 = arith.constant 3 : index
    %49 = memref.load %arg5[%c3_21] : memref<16xf32, #tpu.memory_space<smem>>
    %50 = vector.broadcast %49 : f32 to vector<4x512xf32>
    %51 = arith.addf %48, %50 : vector<4x512xf32>
    %cst_22 = arith.constant 0.000000e+00 : f32
    %52 = vector.broadcast %cst_22 : f32 to vector<4x512xf32>
    %53 = arith.maximumf %51, %52 : vector<4x512xf32>
    %c3_23 = arith.constant 3 : index
    %c0_24 = arith.constant 0 : index
    %c0_25 = arith.constant 0 : index
    %54 = vector.load %arg7[%c3_23, %c0_24, %c0_25] : memref<16x4x512xf32, #tpu.memory_space<vmem>>, vector<1x4x512xf32>
    %55 = vector.shape_cast %54 : vector<1x4x512xf32> to vector<4x512xf32>
    %56 = vector.shape_cast %53 : vector<4x512xf32> to vector<1x4x512xf32>
    tpu.vector_store %arg7[%c3_23, %c0_24, %c0_25], %56 {strides = array<i32>} : memref<16x4x512xf32, #tpu.memory_space<vmem>>, vector<1x4x512xf32>,
    %c4 = arith.constant 4 : index
    %57 = memref.load %arg4[%c4] : memref<16xf32, #tpu.memory_space<smem>>
    %58 = vector.broadcast %57 : f32 to vector<4x512xf32>
    %59 = arith.mulf %0, %58 : vector<4x512xf32>
    %c4_26 = arith.constant 4 : index
    %60 = memref.load %arg5[%c4_26] : memref<16xf32, #tpu.memory_space<smem>>
    %61 = vector.broadcast %60 : f32 to vector<4x512xf32>
    %62 = arith.addf %59, %61 : vector<4x512xf32>
    %cst_27 = arith.constant 0.000000e+00 : f32
    %63 = vector.broadcast %cst_27 : f32 to vector<4x512xf32>
    %64 = arith.maximumf %62, %63 : vector<4x512xf32>
    %c4_28 = arith.constant 4 : index
    %c0_29 = arith.constant 0 : index
    %c0_30 = arith.constant 0 : index
    %65 = vector.load %arg7[%c4_28, %c0_29, %c0_30] : memref<16x4x512xf32, #tpu.memory_space<vmem>>, vector<1x4x512xf32>
    %66 = vector.shape_cast %65 : vector<1x4x512xf32> to vector<4x512xf32>
    %67 = vector.shape_cast %64 : vector<4x512xf32> to vector<1x4x512xf32>
    tpu.vector_store %arg7[%c4_28, %c0_29, %c0_30], %67 {strides = array<i32>} : memref<16x4x512xf32, #tpu.memory_space<vmem>>, vector<1x4x512xf32>,
    %c5 = arith.constant 5 : index
    %68 = memref.load %arg4[%c5] : memref<16xf32, #tpu.memory_space<smem>>
    %69 = vector.broadcast %68 : f32 to vector<4x512xf32>
    %70 = arith.mulf %0, %69 : vector<4x512xf32>
    %c5_31 = arith.constant 5 : index
    %71 = memref.load %arg5[%c5_31] : memref<16xf32, #tpu.memory_space<smem>>
    %72 = vector.broadcast %71 : f32 to vector<4x512xf32>
    %73 = arith.addf %70, %72 : vector<4x512xf32>
    %cst_32 = arith.constant 0.000000e+00 : f32
    %74 = vector.broadcast %cst_32 : f32 to vector<4x512xf32>
    %75 = arith.maximumf %73, %74 : vector<4x512xf32>
    %c5_33 = arith.constant 5 : index
    %c0_34 = arith.constant 0 : index
    %c0_35 = arith.constant 0 : index
    %76 = vector.load %arg7[%c5_33, %c0_34, %c0_35] : memref<16x4x512xf32, #tpu.memory_space<vmem>>, vector<1x4x512xf32>
    %77 = vector.shape_cast %76 : vector<1x4x512xf32> to vector<4x512xf32>
    %78 = vector.shape_cast %75 : vector<4x512xf32> to vector<1x4x512xf32>
    tpu.vector_store %arg7[%c5_33, %c0_34, %c0_35], %78 {strides = array<i32>} : memref<16x4x512xf32, #tpu.memory_space<vmem>>, vector<1x4x512xf32>,
    %c6 = arith.constant 6 : index
    %79 = memref.load %arg4[%c6] : memref<16xf32, #tpu.memory_space<smem>>
    %80 = vector.broadcast %79 : f32 to vector<4x512xf32>
    %81 = arith.mulf %0, %80 : vector<4x512xf32>
    %c6_36 = arith.constant 6 : index
    %82 = memref.load %arg5[%c6_36] : memref<16xf32, #tpu.memory_space<smem>>
    %83 = vector.broadcast %82 : f32 to vector<4x512xf32>
    %84 = arith.addf %81, %83 : vector<4x512xf32>
    %cst_37 = arith.constant 0.000000e+00 : f32
    %85 = vector.broadcast %cst_37 : f32 to vector<4x512xf32>
    %86 = arith.maximumf %84, %85 : vector<4x512xf32>
    %c6_38 = arith.constant 6 : index
    %c0_39 = arith.constant 0 : index
    %c0_40 = arith.constant 0 : index
    %87 = vector.load %arg7[%c6_38, %c0_39, %c0_40] : memref<16x4x512xf32, #tpu.memory_space<vmem>>, vector<1x4x512xf32>
    %88 = vector.shape_cast %87 : vector<1x4x512xf32> to vector<4x512xf32>
    %89 = vector.shape_cast %86 : vector<4x512xf32> to vector<1x4x512xf32>
    tpu.vector_store %arg7[%c6_38, %c0_39, %c0_40], %89 {strides = array<i32>} : memref<16x4x512xf32, #tpu.memory_space<vmem>>, vector<1x4x512xf32>,
    %c7 = arith.constant 7 : index
    %90 = memref.load %arg4[%c7] : memref<16xf32, #tpu.memory_space<smem>>
    %91 = vector.broadcast %90 : f32 to vector<4x512xf32>
    %92 = arith.mulf %0, %91 : vector<4x512xf32>
    %c7_41 = arith.constant 7 : index
    %93 = memref.load %arg5[%c7_41] : memref<16xf32, #tpu.memory_space<smem>>
    %94 = vector.broadcast %93 : f32 to vector<4x512xf32>
    %95 = arith.addf %92, %94 : vector<4x512xf32>
    %cst_42 = arith.constant 0.000000e+00 : f32
    %96 = vector.broadcast %cst_42 : f32 to vector<4x512xf32>
    %97 = arith.maximumf %95, %96 : vector<4x512xf32>
    %c7_43 = arith.constant 7 : index
    %c0_44 = arith.constant 0 : index
    %c0_45 = arith.constant 0 : index
    %98 = vector.load %arg7[%c7_43, %c0_44, %c0_45] : memref<16x4x512xf32, #tpu.memory_space<vmem>>, vector<1x4x512xf32>
    %99 = vector.shape_cast %98 : vector<1x4x512xf32> to vector<4x512xf32>
    %100 = vector.shape_cast %97 : vector<4x512xf32> to vector<1x4x512xf32>
    tpu.vector_store %arg7[%c7_43, %c0_44, %c0_45], %100 {strides = array<i32>} : memref<16x4x512xf32, #tpu.memory_space<vmem>>, vector<1x4x512xf32>,
    %c8 = arith.constant 8 : index
    %101 = memref.load %arg4[%c8] : memref<16xf32, #tpu.memory_space<smem>>
    %102 = vector.broadcast %101 : f32 to vector<4x512xf32>
    %103 = arith.mulf %0, %102 : vector<4x512xf32>
    %c8_46 = arith.constant 8 : index
    %104 = memref.load %arg5[%c8_46] : memref<16xf32, #tpu.memory_space<smem>>
    %105 = vector.broadcast %104 : f32 to vector<4x512xf32>
    %106 = arith.addf %103, %105 : vector<4x512xf32>
    %cst_47 = arith.constant 0.000000e+00 : f32
    %107 = vector.broadcast %cst_47 : f32 to vector<4x512xf32>
    %108 = arith.maximumf %106, %107 : vector<4x512xf32>
    %c8_48 = arith.constant 8 : index
    %c0_49 = arith.constant 0 : index
    %c0_50 = arith.constant 0 : index
    %109 = vector.load %arg7[%c8_48, %c0_49, %c0_50] : memref<16x4x512xf32, #tpu.memory_space<vmem>>, vector<1x4x512xf32>
    %110 = vector.shape_cast %109 : vector<1x4x512xf32> to vector<4x512xf32>
    %111 = vector.shape_cast %108 : vector<4x512xf32> to vector<1x4x512xf32>
    tpu.vector_store %arg7[%c8_48, %c0_49, %c0_50], %111 {strides = array<i32>} : memref<16x4x512xf32, #tpu.memory_space<vmem>>, vector<1x4x512xf32>,
    %c9 = arith.constant 9 : index
    %112 = memref.load %arg4[%c9] : memref<16xf32, #tpu.memory_space<smem>>
    %113 = vector.broadcast %112 : f32 to vector<4x512xf32>
    %114 = arith.mulf %0, %113 : vector<4x512xf32>
    %c9_51 = arith.constant 9 : index
    %115 = memref.load %arg5[%c9_51] : memref<16xf32, #tpu.memory_space<smem>>
    %116 = vector.broadcast %115 : f32 to vector<4x512xf32>
    %117 = arith.addf %114, %116 : vector<4x512xf32>
    %cst_52 = arith.constant 0.000000e+00 : f32
    %118 = vector.broadcast %cst_52 : f32 to vector<4x512xf32>
    %119 = arith.maximumf %117, %118 : vector<4x512xf32>
    %c9_53 = arith.constant 9 : index
    %c0_54 = arith.constant 0 : index
    %c0_55 = arith.constant 0 : index
    %120 = vector.load %arg7[%c9_53, %c0_54, %c0_55] : memref<16x4x512xf32, #tpu.memory_space<vmem>>, vector<1x4x512xf32>
    %121 = vector.shape_cast %120 : vector<1x4x512xf32> to vector<4x512xf32>
    %122 = vector.shape_cast %119 : vector<4x512xf32> to vector<1x4x512xf32>
    tpu.vector_store %arg7[%c9_53, %c0_54, %c0_55], %122 {strides = array<i32>} : memref<16x4x512xf32, #tpu.memory_space<vmem>>, vector<1x4x512xf32>,
    %c10 = arith.constant 10 : index
    %123 = memref.load %arg4[%c10] : memref<16xf32, #tpu.memory_space<smem>>
    %124 = vector.broadcast %123 : f32 to vector<4x512xf32>
    %125 = arith.mulf %0, %124 : vector<4x512xf32>
    %c10_56 = arith.constant 10 : index
    %126 = memref.load %arg5[%c10_56] : memref<16xf32, #tpu.memory_space<smem>>
    %127 = vector.broadcast %126 : f32 to vector<4x512xf32>
    %128 = arith.addf %125, %127 : vector<4x512xf32>
    %cst_57 = arith.constant 0.000000e+00 : f32
    %129 = vector.broadcast %cst_57 : f32 to vector<4x512xf32>
    %130 = arith.maximumf %128, %129 : vector<4x512xf32>
    %c10_58 = arith.constant 10 : index
    %c0_59 = arith.constant 0 : index
    %c0_60 = arith.constant 0 : index
    %131 = vector.load %arg7[%c10_58, %c0_59, %c0_60] : memref<16x4x512xf32, #tpu.memory_space<vmem>>, vector<1x4x512xf32>
    %132 = vector.shape_cast %131 : vector<1x4x512xf32> to vector<4x512xf32>
    %133 = vector.shape_cast %130 : vector<4x512xf32> to vector<1x4x512xf32>
    tpu.vector_store %arg7[%c10_58, %c0_59, %c0_60], %133 {strides = array<i32>} : memref<16x4x512xf32, #tpu.memory_space<vmem>>, vector<1x4x512xf32>,
    %c11 = arith.constant 11 : index
    %134 = memref.load %arg4[%c11] : memref<16xf32, #tpu.memory_space<smem>>
    %135 = vector.broadcast %134 : f32 to vector<4x512xf32>
    %136 = arith.mulf %0, %135 : vector<4x512xf32>
    %c11_61 = arith.constant 11 : index
    %137 = memref.load %arg5[%c11_61] : memref<16xf32, #tpu.memory_space<smem>>
    %138 = vector.broadcast %137 : f32 to vector<4x512xf32>
    %139 = arith.addf %136, %138 : vector<4x512xf32>
    %cst_62 = arith.constant 0.000000e+00 : f32
    %140 = vector.broadcast %cst_62 : f32 to vector<4x512xf32>
    %141 = arith.maximumf %139, %140 : vector<4x512xf32>
    %c11_63 = arith.constant 11 : index
    %c0_64 = arith.constant 0 : index
    %c0_65 = arith.constant 0 : index
    %142 = vector.load %arg7[%c11_63, %c0_64, %c0_65] : memref<16x4x512xf32, #tpu.memory_space<vmem>>, vector<1x4x512xf32>
    %143 = vector.shape_cast %142 : vector<1x4x512xf32> to vector<4x512xf32>
    %144 = vector.shape_cast %141 : vector<4x512xf32> to vector<1x4x512xf32>
    tpu.vector_store %arg7[%c11_63, %c0_64, %c0_65], %144 {strides = array<i32>} : memref<16x4x512xf32, #tpu.memory_space<vmem>>, vector<1x4x512xf32>,
    %c12 = arith.constant 12 : index
    %145 = memref.load %arg4[%c12] : memref<16xf32, #tpu.memory_space<smem>>
    %146 = vector.broadcast %145 : f32 to vector<4x512xf32>
    %147 = arith.mulf %0, %146 : vector<4x512xf32>
    %c12_66 = arith.constant 12 : index
    %148 = memref.load %arg5[%c12_66] : memref<16xf32, #tpu.memory_space<smem>>
    %149 = vector.broadcast %148 : f32 to vector<4x512xf32>
    %150 = arith.addf %147, %149 : vector<4x512xf32>
    %cst_67 = arith.constant 0.000000e+00 : f32
    %151 = vector.broadcast %cst_67 : f32 to vector<4x512xf32>
    %152 = arith.maximumf %150, %151 : vector<4x512xf32>
    %c12_68 = arith.constant 12 : index
    %c0_69 = arith.constant 0 : index
    %c0_70 = arith.constant 0 : index
    %153 = vector.load %arg7[%c12_68, %c0_69, %c0_70] : memref<16x4x512xf32, #tpu.memory_space<vmem>>, vector<1x4x512xf32>
    %154 = vector.shape_cast %153 : vector<1x4x512xf32> to vector<4x512xf32>
    %155 = vector.shape_cast %152 : vector<4x512xf32> to vector<1x4x512xf32>
    tpu.vector_store %arg7[%c12_68, %c0_69, %c0_70], %155 {strides = array<i32>} : memref<16x4x512xf32, #tpu.memory_space<vmem>>, vector<1x4x512xf32>,
    %c13 = arith.constant 13 : index
    %156 = memref.load %arg4[%c13] : memref<16xf32, #tpu.memory_space<smem>>
    %157 = vector.broadcast %156 : f32 to vector<4x512xf32>
    %158 = arith.mulf %0, %157 : vector<4x512xf32>
    %c13_71 = arith.constant 13 : index
    %159 = memref.load %arg5[%c13_71] : memref<16xf32, #tpu.memory_space<smem>>
    %160 = vector.broadcast %159 : f32 to vector<4x512xf32>
    %161 = arith.addf %158, %160 : vector<4x512xf32>
    %cst_72 = arith.constant 0.000000e+00 : f32
    %162 = vector.broadcast %cst_72 : f32 to vector<4x512xf32>
    %163 = arith.maximumf %161, %162 : vector<4x512xf32>
    %c13_73 = arith.constant 13 : index
    %c0_74 = arith.constant 0 : index
    %c0_75 = arith.constant 0 : index
    %164 = vector.load %arg7[%c13_73, %c0_74, %c0_75] : memref<16x4x512xf32, #tpu.memory_space<vmem>>, vector<1x4x512xf32>
    %165 = vector.shape_cast %164 : vector<1x4x512xf32> to vector<4x512xf32>
    %166 = vector.shape_cast %163 : vector<4x512xf32> to vector<1x4x512xf32>
    tpu.vector_store %arg7[%c13_73, %c0_74, %c0_75], %166 {strides = array<i32>} : memref<16x4x512xf32, #tpu.memory_space<vmem>>, vector<1x4x512xf32>,
    %c14 = arith.constant 14 : index
    %167 = memref.load %arg4[%c14] : memref<16xf32, #tpu.memory_space<smem>>
    %168 = vector.broadcast %167 : f32 to vector<4x512xf32>
    %169 = arith.mulf %0, %168 : vector<4x512xf32>
    %c14_76 = arith.constant 14 : index
    %170 = memref.load %arg5[%c14_76] : memref<16xf32, #tpu.memory_space<smem>>
    %171 = vector.broadcast %170 : f32 to vector<4x512xf32>
    %172 = arith.addf %169, %171 : vector<4x512xf32>
    %cst_77 = arith.constant 0.000000e+00 : f32
    %173 = vector.broadcast %cst_77 : f32 to vector<4x512xf32>
    %174 = arith.maximumf %172, %173 : vector<4x512xf32>
    %c14_78 = arith.constant 14 : index
    %c0_79 = arith.constant 0 : index
    %c0_80 = arith.constant 0 : index
    %175 = vector.load %arg7[%c14_78, %c0_79, %c0_80] : memref<16x4x512xf32, #tpu.memory_space<vmem>>, vector<1x4x512xf32>
    %176 = vector.shape_cast %175 : vector<1x4x512xf32> to vector<4x512xf32>
    %177 = vector.shape_cast %174 : vector<4x512xf32> to vector<1x4x512xf32>
    tpu.vector_store %arg7[%c14_78, %c0_79, %c0_80], %177 {strides = array<i32>} : memref<16x4x512xf32, #tpu.memory_space<vmem>>, vector<1x4x512xf32>,
    %c15 = arith.constant 15 : index
    %178 = memref.load %arg4[%c15] : memref<16xf32, #tpu.memory_space<smem>>
    %179 = vector.broadcast %178 : f32 to vector<4x512xf32>
    %180 = arith.mulf %0, %179 : vector<4x512xf32>
    %c15_81 = arith.constant 15 : index
    %181 = memref.load %arg5[%c15_81] : memref<16xf32, #tpu.memory_space<smem>>
    %182 = vector.broadcast %181 : f32 to vector<4x512xf32>
    %183 = arith.addf %180, %182 : vector<4x512xf32>
    %cst_82 = arith.constant 0.000000e+00 : f32
    %184 = vector.broadcast %cst_82 : f32 to vector<4x512xf32>
    %185 = arith.maximumf %183, %184 : vector<4x512xf32>
    %c15_83 = arith.constant 15 : index
    %c0_84 = arith.constant 0 : index
    %c0_85 = arith.constant 0 : index
    %186 = vector.load %arg7[%c15_83, %c0_84, %c0_85] : memref<16x4x512xf32, #tpu.memory_space<vmem>>, vector<1x4x512xf32>
    %187 = vector.shape_cast %186 : vector<1x4x512xf32> to vector<4x512xf32>
    %188 = vector.shape_cast %185 : vector<4x512xf32> to vector<1x4x512xf32>
    tpu.vector_store %arg7[%c15_83, %c0_84, %c0_85], %188 {strides = array<i32>} : memref<16x4x512xf32, #tpu.memory_space<vmem>>, vector<1x4x512xf32>,
    return
  }
  func.func @transform_0(%arg0: i32) -> (i32, i32) {
    %c0_i32 = arith.constant 0 : i32
    %c0_i32_0 = arith.constant 0 : i32
    return %arg0, %c0_i32 : i32, i32
  }
  func.func @transform_1(%arg0: i32) -> i32 {
    %c0_i32 = arith.constant 0 : i32
    %c0_i32_0 = arith.constant 0 : i32
    return %c0_i32 : i32
  }
  func.func @transform_2(%arg0: i32) -> i32 {
    %c0_i32 = arith.constant 0 : i32
    %c0_i32_0 = arith.constant 0 : i32
    return %c0_i32 : i32
  }
  func.func @transform_3(%arg0: i32) -> i32 {
    %c0_i32 = arith.constant 0 : i32
    %c0_i32_0 = arith.constant 0 : i32
    return %c0_i32 : i32
  }
  func.func @transform_4(%arg0: i32) -> i32 {
    %c0_i32 = arith.constant 0 : i32
    %c0_i32_0 = arith.constant 0 : i32
    return %c0_i32 : i32
  }
  func.func @transform_5(%arg0: i32) -> (i32, i32) {
    %c0_i32 = arith.constant 0 : i32
    %c0_i32_0 = arith.constant 0 : i32
    return %arg0, %c0_i32 : i32, i32
  }
  func.func @transform_6(%arg0: i32) -> (i32, i32, i32) {
    %c0_i32 = arith.constant 0 : i32
    %c0_i32_0 = arith.constant 0 : i32
    %c0_i32_1 = arith.constant 0 : i32
    return %c0_i32, %arg0, %c0_i32_0 : i32, i32, i32
  }
}

module attributes {stable_mosaic.version = 11 : i64} {
  func.func @_linear_kernel(%arg0: i32, %arg1: memref<32x16xf32, #tpu.memory_space<vmem>>, %arg2: memref<16x128xbf16, #tpu.memory_space<vmem>>, %arg3: memref<1x128xf32, #tpu.memory_space<vmem>>, %arg4: memref<32x128xf32, #tpu.memory_space<vmem>>) attributes {dimension_semantics = [#tpu.dimension_semantics<parallel>], iteration_bounds = array<i64: 2>, scalar_prefetch = 0 : i64, scratch_operands = 0 : i64, tpu.core_type = #tpu.core_type<tc>, window_params = [{transform_indices = @transform_0, window_bounds = array<i64: 32, 16>}, {pipeline_mode = #tpu.pipeline_mode<synchronous>, transform_indices = @transform_1, window_bounds = array<i64: 16, 128>}, {pipeline_mode = #tpu.pipeline_mode<synchronous>, transform_indices = @transform_2, window_bounds = array<i64: 1, 128>}, {transform_indices = @transform_3, window_bounds = array<i64: 32, 128>}]} {
    %c0 = arith.constant 0 : index
    %c0_0 = arith.constant 0 : index
    %0 = vector.load %arg1[%c0, %c0_0] : memref<32x16xf32, #tpu.memory_space<vmem>>, vector<32x16xf32>
    %1 = arith.truncf %0 : vector<32x16xf32> to vector<32x16xbf16>
    %c0_1 = arith.constant 0 : index
    %c0_2 = arith.constant 0 : index
    %2 = vector.load %arg2[%c0_1, %c0_2] : memref<16x128xbf16, #tpu.memory_space<vmem>>, vector<16x128xbf16>
    %cst = arith.constant dense<0.000000e+00> : vector<32x128xf32>
    %3 = tpu.matmul %1, %2, %cst {dimension_numbers = #tpu.dot_dimension_numbers<[1], [0], [0], [1], [0, 0, 1, 1], [], []>} : vector<32x16xbf16>, vector<16x128xbf16>, vector<32x128xf32> -> vector<32x128xf32>
    %c0_3 = arith.constant 0 : index
    %c0_4 = arith.constant 0 : index
    %4 = vector.load %arg3[%c0_3, %c0_4] : memref<1x128xf32, #tpu.memory_space<vmem>>, vector<1x128xf32>
    %5 = vector.broadcast %4 : vector<1x128xf32> to vector<32x128xf32>
    %6 = arith.addf %3, %5 : vector<32x128xf32>
    %cst_5 = arith.constant 0.000000e+00 : f32
    %7 = vector.broadcast %cst_5 : f32 to vector<32x128xf32>
    %8 = arith.maximumf %6, %7 : vector<32x128xf32>
    %c0_6 = arith.constant 0 : index
    %c0_7 = arith.constant 0 : index
    %9 = vector.load %arg4[%c0_6, %c0_7] : memref<32x128xf32, #tpu.memory_space<vmem>>, vector<32x128xf32>
    tpu.vector_store %arg4[%c0_6, %c0_7], %8 {strides = array<i32>} : memref<32x128xf32, #tpu.memory_space<vmem>>, vector<32x128xf32>,
    return
  }
  func.func @transform_0(%arg0: i32) -> (i32, i32) {
    %c0_i32 = arith.constant 0 : i32
    %c0_i32_0 = arith.constant 0 : i32
    return %arg0, %c0_i32 : i32, i32
  }
  func.func @transform_1(%arg0: i32) -> (i32, i32) {
    %c0_i32 = arith.constant 0 : i32
    %c0_i32_0 = arith.constant 0 : i32
    %c0_i32_1 = arith.constant 0 : i32
    return %c0_i32, %c0_i32_0 : i32, i32
  }
  func.func @transform_2(%arg0: i32) -> (i32, i32) {
    %c0_i32 = arith.constant 0 : i32
    %c0_i32_0 = arith.constant 0 : i32
    %c0_i32_1 = arith.constant 0 : i32
    return %c0_i32, %c0_i32_0 : i32, i32
  }
  func.func @transform_3(%arg0: i32) -> (i32, i32) {
    %c0_i32 = arith.constant 0 : i32
    %c0_i32_0 = arith.constant 0 : i32
    return %arg0, %c0_i32 : i32, i32
  }
}

module attributes {stable_mosaic.version = 11 : i64} {
  func.func @_qkv_kernel(%arg0: i32, %arg1: memref<32x128xf32, #tpu.memory_space<vmem>>, %arg2: memref<32x128xf32, #tpu.memory_space<vmem>>, %arg3: memref<128x256xbf16, #tpu.memory_space<vmem>>, %arg4: memref<1x256xf32, #tpu.memory_space<vmem>>, %arg5: memref<128x128xbf16, #tpu.memory_space<vmem>>, %arg6: memref<1x128xf32, #tpu.memory_space<vmem>>, %arg7: memref<32x128xbf16, #tpu.memory_space<vmem>>, %arg8: memref<32x128xbf16, #tpu.memory_space<vmem>>, %arg9: memref<32x128xbf16, #tpu.memory_space<vmem>>) attributes {dimension_semantics = [#tpu.dimension_semantics<parallel>], iteration_bounds = array<i64: 2>, scalar_prefetch = 0 : i64, scratch_operands = 0 : i64, tpu.core_type = #tpu.core_type<tc>, window_params = [{transform_indices = @transform_0, window_bounds = array<i64: 32, 128>}, {transform_indices = @transform_1, window_bounds = array<i64: 32, 128>}, {pipeline_mode = #tpu.pipeline_mode<synchronous>, transform_indices = @transform_2, window_bounds = array<i64: 128, 256>}, {pipeline_mode = #tpu.pipeline_mode<synchronous>, transform_indices = @transform_3, window_bounds = array<i64: 1, 256>}, {pipeline_mode = #tpu.pipeline_mode<synchronous>, transform_indices = @transform_4, window_bounds = array<i64: 128, 128>}, {pipeline_mode = #tpu.pipeline_mode<synchronous>, transform_indices = @transform_5, window_bounds = array<i64: 1, 128>}, {transform_indices = @transform_6, window_bounds = array<i64: 32, 128>}, {transform_indices = @transform_7, window_bounds = array<i64: 32, 128>}, {transform_indices = @transform_8, window_bounds = array<i64: 32, 128>}]} {
    %c0 = arith.constant 0 : index
    %c0_0 = arith.constant 0 : index
    %0 = vector.load %arg1[%c0, %c0_0] : memref<32x128xf32, #tpu.memory_space<vmem>>, vector<32x128xf32>
    %c0_1 = arith.constant 0 : index
    %c0_2 = arith.constant 0 : index
    %1 = vector.load %arg2[%c0_1, %c0_2] : memref<32x128xf32, #tpu.memory_space<vmem>>, vector<32x128xf32>
    %2 = arith.addf %0, %1 : vector<32x128xf32>
    %3 = arith.truncf %2 : vector<32x128xf32> to vector<32x128xbf16>
    %c0_3 = arith.constant 0 : index
    %c0_4 = arith.constant 0 : index
    %4 = vector.load %arg3[%c0_3, %c0_4] : memref<128x256xbf16, #tpu.memory_space<vmem>>, vector<128x256xbf16>
    %cst = arith.constant dense<0.000000e+00> : vector<32x256xf32>
    %5 = tpu.matmul %3, %4, %cst {dimension_numbers = #tpu.dot_dimension_numbers<[1], [0], [0], [1], [0, 0, 1, 1], [], []>} : vector<32x128xbf16>, vector<128x256xbf16>, vector<32x256xf32> -> vector<32x256xf32>
    %c0_5 = arith.constant 0 : index
    %c0_6 = arith.constant 0 : index
    %6 = vector.load %arg4[%c0_5, %c0_6] : memref<1x256xf32, #tpu.memory_space<vmem>>, vector<1x256xf32>
    %7 = vector.broadcast %6 : vector<1x256xf32> to vector<32x256xf32>
    %8 = arith.addf %5, %7 : vector<32x256xf32>
    %9 = vector.extract_strided_slice %8 {offsets = [0, 0], sizes = [32, 128], strides = [1, 1]} : vector<32x256xf32> to vector<32x128xf32>
    %10 = arith.truncf %9 : vector<32x128xf32> to vector<32x128xbf16>
    %c0_7 = arith.constant 0 : index
    %c0_8 = arith.constant 0 : index
    %11 = vector.load %arg7[%c0_7, %c0_8] : memref<32x128xbf16, #tpu.memory_space<vmem>>, vector<32x128xbf16>
    tpu.vector_store %arg7[%c0_7, %c0_8], %10 {strides = array<i32>} : memref<32x128xbf16, #tpu.memory_space<vmem>>, vector<32x128xbf16>,
    %12 = vector.extract_strided_slice %8 {offsets = [0, 128], sizes = [32, 128], strides = [1, 1]} : vector<32x256xf32> to vector<32x128xf32>
    %13 = arith.truncf %12 : vector<32x128xf32> to vector<32x128xbf16>
    %c0_9 = arith.constant 0 : index
    %c0_10 = arith.constant 0 : index
    %14 = vector.load %arg8[%c0_9, %c0_10] : memref<32x128xbf16, #tpu.memory_space<vmem>>, vector<32x128xbf16>
    tpu.vector_store %arg8[%c0_9, %c0_10], %13 {strides = array<i32>} : memref<32x128xbf16, #tpu.memory_space<vmem>>, vector<32x128xbf16>,
    %15 = arith.truncf %0 : vector<32x128xf32> to vector<32x128xbf16>
    %c0_11 = arith.constant 0 : index
    %c0_12 = arith.constant 0 : index
    %16 = vector.load %arg5[%c0_11, %c0_12] : memref<128x128xbf16, #tpu.memory_space<vmem>>, vector<128x128xbf16>
    %cst_13 = arith.constant dense<0.000000e+00> : vector<32x128xf32>
    %17 = tpu.matmul %15, %16, %cst_13 {dimension_numbers = #tpu.dot_dimension_numbers<[1], [0], [0], [1], [0, 0, 1, 1], [], []>} : vector<32x128xbf16>, vector<128x128xbf16>, vector<32x128xf32> -> vector<32x128xf32>
    %c0_14 = arith.constant 0 : index
    %c0_15 = arith.constant 0 : index
    %18 = vector.load %arg6[%c0_14, %c0_15] : memref<1x128xf32, #tpu.memory_space<vmem>>, vector<1x128xf32>
    %19 = vector.broadcast %18 : vector<1x128xf32> to vector<32x128xf32>
    %20 = arith.addf %17, %19 : vector<32x128xf32>
    %21 = arith.truncf %20 : vector<32x128xf32> to vector<32x128xbf16>
    %c0_16 = arith.constant 0 : index
    %c0_17 = arith.constant 0 : index
    %22 = vector.load %arg9[%c0_16, %c0_17] : memref<32x128xbf16, #tpu.memory_space<vmem>>, vector<32x128xbf16>
    tpu.vector_store %arg9[%c0_16, %c0_17], %21 {strides = array<i32>} : memref<32x128xbf16, #tpu.memory_space<vmem>>, vector<32x128xbf16>,
    return
  }
  func.func @transform_0(%arg0: i32) -> (i32, i32) {
    %c0_i32 = arith.constant 0 : i32
    %c0_i32_0 = arith.constant 0 : i32
    return %arg0, %c0_i32 : i32, i32
  }
  func.func @transform_1(%arg0: i32) -> (i32, i32) {
    %c0_i32 = arith.constant 0 : i32
    %c0_i32_0 = arith.constant 0 : i32
    return %arg0, %c0_i32 : i32, i32
  }
  func.func @transform_2(%arg0: i32) -> (i32, i32) {
    %c0_i32 = arith.constant 0 : i32
    %c0_i32_0 = arith.constant 0 : i32
    %c0_i32_1 = arith.constant 0 : i32
    return %c0_i32, %c0_i32_0 : i32, i32
  }
  func.func @transform_3(%arg0: i32) -> (i32, i32) {
    %c0_i32 = arith.constant 0 : i32
    %c0_i32_0 = arith.constant 0 : i32
    %c0_i32_1 = arith.constant 0 : i32
    return %c0_i32, %c0_i32_0 : i32, i32
  }
  func.func @transform_4(%arg0: i32) -> (i32, i32) {
    %c0_i32 = arith.constant 0 : i32
    %c0_i32_0 = arith.constant 0 : i32
    %c0_i32_1 = arith.constant 0 : i32
    return %c0_i32, %c0_i32_0 : i32, i32
  }
  func.func @transform_5(%arg0: i32) -> (i32, i32) {
    %c0_i32 = arith.constant 0 : i32
    %c0_i32_0 = arith.constant 0 : i32
    %c0_i32_1 = arith.constant 0 : i32
    return %c0_i32, %c0_i32_0 : i32, i32
  }
  func.func @transform_6(%arg0: i32) -> (i32, i32) {
    %c0_i32 = arith.constant 0 : i32
    %c0_i32_0 = arith.constant 0 : i32
    return %arg0, %c0_i32 : i32, i32
  }
  func.func @transform_7(%arg0: i32) -> (i32, i32) {
    %c0_i32 = arith.constant 0 : i32
    %c0_i32_0 = arith.constant 0 : i32
    return %arg0, %c0_i32 : i32, i32
  }
  func.func @transform_8(%arg0: i32) -> (i32, i32) {
    %c0_i32 = arith.constant 0 : i32
    %c0_i32_0 = arith.constant 0 : i32
    return %arg0, %c0_i32 : i32, i32
  }
}

module attributes {stable_mosaic.version = 11 : i64} {
  func.func @_attn_kernel(%arg0: i32, %arg1: memref<1x32x128xbf16, #tpu.memory_space<vmem>>, %arg2: memref<1x32x128xbf16, #tpu.memory_space<vmem>>, %arg3: memref<1x32x128xbf16, #tpu.memory_space<vmem>>, %arg4: memref<1x1x32xf32, #tpu.memory_space<vmem>>, %arg5: memref<1x32x128xbf16, #tpu.memory_space<vmem>>) attributes {dimension_semantics = [#tpu.dimension_semantics<parallel>], iteration_bounds = array<i64: 2>, scalar_prefetch = 0 : i64, scratch_operands = 0 : i64, tpu.core_type = #tpu.core_type<tc>, window_params = [{transform_indices = @transform_0, window_bounds = array<i64: 1, 32, 128>}, {transform_indices = @transform_1, window_bounds = array<i64: 1, 32, 128>}, {transform_indices = @transform_2, window_bounds = array<i64: 1, 32, 128>}, {transform_indices = @transform_3, window_bounds = array<i64: 1, 1, 32>}, {transform_indices = @transform_4, window_bounds = array<i64: 1, 32, 128>}]} {
    %c0 = arith.constant 0 : index
    %c0_0 = arith.constant 0 : index
    %c0_1 = arith.constant 0 : index
    %0 = vector.load %arg1[%c0, %c0_0, %c0_1] : memref<1x32x128xbf16, #tpu.memory_space<vmem>>, vector<1x32x128xbf16>
    %1 = vector.shape_cast %0 : vector<1x32x128xbf16> to vector<32x128xbf16>
    %c0_2 = arith.constant 0 : index
    %c0_3 = arith.constant 0 : index
    %c0_4 = arith.constant 0 : index
    %2 = vector.load %arg2[%c0_2, %c0_3, %c0_4] : memref<1x32x128xbf16, #tpu.memory_space<vmem>>, vector<1x32x128xbf16>
    %3 = vector.shape_cast %2 : vector<1x32x128xbf16> to vector<32x128xbf16>
    %c0_5 = arith.constant 0 : index
    %c0_6 = arith.constant 0 : index
    %c0_7 = arith.constant 0 : index
    %4 = vector.load %arg3[%c0_5, %c0_6, %c0_7] : memref<1x32x128xbf16, #tpu.memory_space<vmem>>, vector<1x32x128xbf16>
    %5 = vector.shape_cast %4 : vector<1x32x128xbf16> to vector<32x128xbf16>
    %c0_8 = arith.constant 0 : index
    %c0_9 = arith.constant 0 : index
    %c0_10 = arith.constant 0 : index
    %6 = vector.load %arg4[%c0_8, %c0_9, %c0_10] : memref<1x1x32xf32, #tpu.memory_space<vmem>>, vector<1x1x32xf32>
    %7 = vector.shape_cast %6 : vector<1x1x32xf32> to vector<1x32xf32>
    %8 = vector.extract_strided_slice %1 {offsets = [0, 0], sizes = [32, 16], strides = [1, 1]} : vector<32x128xbf16> to vector<32x16xbf16>
    %9 = vector.extract_strided_slice %3 {offsets = [0, 0], sizes = [32, 16], strides = [1, 1]} : vector<32x128xbf16> to vector<32x16xbf16>
    %10 = vector.extract_strided_slice %5 {offsets = [0, 0], sizes = [32, 16], strides = [1, 1]} : vector<32x128xbf16> to vector<32x16xbf16>
    %cst = arith.constant dense<0.000000e+00> : vector<32x32xf32>
    %11 = tpu.matmul %8, %9, %cst {dimension_numbers = #tpu.dot_dimension_numbers<[1], [1], [0], [0], [0, 0, 1, 0], [], []>} : vector<32x16xbf16>, vector<32x16xbf16>, vector<32x32xf32> -> vector<32x32xf32>
    %12 = vector.broadcast %7 : vector<1x32xf32> to vector<32x32xf32>
    %13 = arith.addf %11, %12 : vector<32x32xf32>
    %cst_11 = arith.constant dense<0xFF800000> : vector<32xf32>
    %14 = vector.multi_reduction <maximumf>, %13, %cst_11 [1] : vector<32x32xf32> to vector<32xf32>
    %15 = vector.shape_cast %14 : vector<32xf32> to vector<32x1xf32>
    %16 = vector.broadcast %15 : vector<32x1xf32> to vector<32x32xf32>
    %17 = arith.subf %13, %16 : vector<32x32xf32>
    %18 = math.exp %17 : vector<32x32xf32>
    %cst_12 = arith.constant dense<0.000000e+00> : vector<32xf32>
    %19 = vector.multi_reduction <add>, %18, %cst_12 [1] : vector<32x32xf32> to vector<32xf32>
    %20 = vector.shape_cast %19 : vector<32xf32> to vector<32x1xf32>
    %21 = tpu.reciprocal %20 {approx = true} : vector<32x1xf32> -> vector<32x1xf32>
    %22 = vector.broadcast %21 : vector<32x1xf32> to vector<32x32xf32>
    %23 = arith.mulf %18, %22 : vector<32x32xf32>
    %24 = arith.truncf %23 : vector<32x32xf32> to vector<32x32xbf16>
    %cst_13 = arith.constant dense<0.000000e+00> : vector<32x16xf32>
    %25 = tpu.matmul %24, %10, %cst_13 {dimension_numbers = #tpu.dot_dimension_numbers<[1], [0], [0], [1], [0, 0, 1, 1], [], []>} : vector<32x32xbf16>, vector<32x16xbf16>, vector<32x16xf32> -> vector<32x16xf32>
    %26 = vector.extract_strided_slice %1 {offsets = [0, 16], sizes = [32, 16], strides = [1, 1]} : vector<32x128xbf16> to vector<32x16xbf16>
    %27 = vector.extract_strided_slice %3 {offsets = [0, 16], sizes = [32, 16], strides = [1, 1]} : vector<32x128xbf16> to vector<32x16xbf16>
    %28 = vector.extract_strided_slice %5 {offsets = [0, 16], sizes = [32, 16], strides = [1, 1]} : vector<32x128xbf16> to vector<32x16xbf16>
    %cst_14 = arith.constant dense<0.000000e+00> : vector<32x32xf32>
    %29 = tpu.matmul %26, %27, %cst_14 {dimension_numbers = #tpu.dot_dimension_numbers<[1], [1], [0], [0], [0, 0, 1, 0], [], []>} : vector<32x16xbf16>, vector<32x16xbf16>, vector<32x32xf32> -> vector<32x32xf32>
    %30 = vector.broadcast %7 : vector<1x32xf32> to vector<32x32xf32>
    %31 = arith.addf %29, %30 : vector<32x32xf32>
    %cst_15 = arith.constant dense<0xFF800000> : vector<32xf32>
    %32 = vector.multi_reduction <maximumf>, %31, %cst_15 [1] : vector<32x32xf32> to vector<32xf32>
    %33 = vector.shape_cast %32 : vector<32xf32> to vector<32x1xf32>
    %34 = vector.broadcast %33 : vector<32x1xf32> to vector<32x32xf32>
    %35 = arith.subf %31, %34 : vector<32x32xf32>
    %36 = math.exp %35 : vector<32x32xf32>
    %cst_16 = arith.constant dense<0.000000e+00> : vector<32xf32>
    %37 = vector.multi_reduction <add>, %36, %cst_16 [1] : vector<32x32xf32> to vector<32xf32>
    %38 = vector.shape_cast %37 : vector<32xf32> to vector<32x1xf32>
    %39 = tpu.reciprocal %38 {approx = true} : vector<32x1xf32> -> vector<32x1xf32>
    %40 = vector.broadcast %39 : vector<32x1xf32> to vector<32x32xf32>
    %41 = arith.mulf %36, %40 : vector<32x32xf32>
    %42 = arith.truncf %41 : vector<32x32xf32> to vector<32x32xbf16>
    %cst_17 = arith.constant dense<0.000000e+00> : vector<32x16xf32>
    %43 = tpu.matmul %42, %28, %cst_17 {dimension_numbers = #tpu.dot_dimension_numbers<[1], [0], [0], [1], [0, 0, 1, 1], [], []>} : vector<32x32xbf16>, vector<32x16xbf16>, vector<32x16xf32> -> vector<32x16xf32>
    %44 = vector.extract_strided_slice %1 {offsets = [0, 32], sizes = [32, 16], strides = [1, 1]} : vector<32x128xbf16> to vector<32x16xbf16>
    %45 = vector.extract_strided_slice %3 {offsets = [0, 32], sizes = [32, 16], strides = [1, 1]} : vector<32x128xbf16> to vector<32x16xbf16>
    %46 = vector.extract_strided_slice %5 {offsets = [0, 32], sizes = [32, 16], strides = [1, 1]} : vector<32x128xbf16> to vector<32x16xbf16>
    %cst_18 = arith.constant dense<0.000000e+00> : vector<32x32xf32>
    %47 = tpu.matmul %44, %45, %cst_18 {dimension_numbers = #tpu.dot_dimension_numbers<[1], [1], [0], [0], [0, 0, 1, 0], [], []>} : vector<32x16xbf16>, vector<32x16xbf16>, vector<32x32xf32> -> vector<32x32xf32>
    %48 = vector.broadcast %7 : vector<1x32xf32> to vector<32x32xf32>
    %49 = arith.addf %47, %48 : vector<32x32xf32>
    %cst_19 = arith.constant dense<0xFF800000> : vector<32xf32>
    %50 = vector.multi_reduction <maximumf>, %49, %cst_19 [1] : vector<32x32xf32> to vector<32xf32>
    %51 = vector.shape_cast %50 : vector<32xf32> to vector<32x1xf32>
    %52 = vector.broadcast %51 : vector<32x1xf32> to vector<32x32xf32>
    %53 = arith.subf %49, %52 : vector<32x32xf32>
    %54 = math.exp %53 : vector<32x32xf32>
    %cst_20 = arith.constant dense<0.000000e+00> : vector<32xf32>
    %55 = vector.multi_reduction <add>, %54, %cst_20 [1] : vector<32x32xf32> to vector<32xf32>
    %56 = vector.shape_cast %55 : vector<32xf32> to vector<32x1xf32>
    %57 = tpu.reciprocal %56 {approx = true} : vector<32x1xf32> -> vector<32x1xf32>
    %58 = vector.broadcast %57 : vector<32x1xf32> to vector<32x32xf32>
    %59 = arith.mulf %54, %58 : vector<32x32xf32>
    %60 = arith.truncf %59 : vector<32x32xf32> to vector<32x32xbf16>
    %cst_21 = arith.constant dense<0.000000e+00> : vector<32x16xf32>
    %61 = tpu.matmul %60, %46, %cst_21 {dimension_numbers = #tpu.dot_dimension_numbers<[1], [0], [0], [1], [0, 0, 1, 1], [], []>} : vector<32x32xbf16>, vector<32x16xbf16>, vector<32x16xf32> -> vector<32x16xf32>
    %62 = vector.extract_strided_slice %1 {offsets = [0, 48], sizes = [32, 16], strides = [1, 1]} : vector<32x128xbf16> to vector<32x16xbf16>
    %63 = vector.extract_strided_slice %3 {offsets = [0, 48], sizes = [32, 16], strides = [1, 1]} : vector<32x128xbf16> to vector<32x16xbf16>
    %64 = vector.extract_strided_slice %5 {offsets = [0, 48], sizes = [32, 16], strides = [1, 1]} : vector<32x128xbf16> to vector<32x16xbf16>
    %cst_22 = arith.constant dense<0.000000e+00> : vector<32x32xf32>
    %65 = tpu.matmul %62, %63, %cst_22 {dimension_numbers = #tpu.dot_dimension_numbers<[1], [1], [0], [0], [0, 0, 1, 0], [], []>} : vector<32x16xbf16>, vector<32x16xbf16>, vector<32x32xf32> -> vector<32x32xf32>
    %66 = vector.broadcast %7 : vector<1x32xf32> to vector<32x32xf32>
    %67 = arith.addf %65, %66 : vector<32x32xf32>
    %cst_23 = arith.constant dense<0xFF800000> : vector<32xf32>
    %68 = vector.multi_reduction <maximumf>, %67, %cst_23 [1] : vector<32x32xf32> to vector<32xf32>
    %69 = vector.shape_cast %68 : vector<32xf32> to vector<32x1xf32>
    %70 = vector.broadcast %69 : vector<32x1xf32> to vector<32x32xf32>
    %71 = arith.subf %67, %70 : vector<32x32xf32>
    %72 = math.exp %71 : vector<32x32xf32>
    %cst_24 = arith.constant dense<0.000000e+00> : vector<32xf32>
    %73 = vector.multi_reduction <add>, %72, %cst_24 [1] : vector<32x32xf32> to vector<32xf32>
    %74 = vector.shape_cast %73 : vector<32xf32> to vector<32x1xf32>
    %75 = tpu.reciprocal %74 {approx = true} : vector<32x1xf32> -> vector<32x1xf32>
    %76 = vector.broadcast %75 : vector<32x1xf32> to vector<32x32xf32>
    %77 = arith.mulf %72, %76 : vector<32x32xf32>
    %78 = arith.truncf %77 : vector<32x32xf32> to vector<32x32xbf16>
    %cst_25 = arith.constant dense<0.000000e+00> : vector<32x16xf32>
    %79 = tpu.matmul %78, %64, %cst_25 {dimension_numbers = #tpu.dot_dimension_numbers<[1], [0], [0], [1], [0, 0, 1, 1], [], []>} : vector<32x32xbf16>, vector<32x16xbf16>, vector<32x16xf32> -> vector<32x16xf32>
    %80 = vector.extract_strided_slice %1 {offsets = [0, 64], sizes = [32, 16], strides = [1, 1]} : vector<32x128xbf16> to vector<32x16xbf16>
    %81 = vector.extract_strided_slice %3 {offsets = [0, 64], sizes = [32, 16], strides = [1, 1]} : vector<32x128xbf16> to vector<32x16xbf16>
    %82 = vector.extract_strided_slice %5 {offsets = [0, 64], sizes = [32, 16], strides = [1, 1]} : vector<32x128xbf16> to vector<32x16xbf16>
    %cst_26 = arith.constant dense<0.000000e+00> : vector<32x32xf32>
    %83 = tpu.matmul %80, %81, %cst_26 {dimension_numbers = #tpu.dot_dimension_numbers<[1], [1], [0], [0], [0, 0, 1, 0], [], []>} : vector<32x16xbf16>, vector<32x16xbf16>, vector<32x32xf32> -> vector<32x32xf32>
    %84 = vector.broadcast %7 : vector<1x32xf32> to vector<32x32xf32>
    %85 = arith.addf %83, %84 : vector<32x32xf32>
    %cst_27 = arith.constant dense<0xFF800000> : vector<32xf32>
    %86 = vector.multi_reduction <maximumf>, %85, %cst_27 [1] : vector<32x32xf32> to vector<32xf32>
    %87 = vector.shape_cast %86 : vector<32xf32> to vector<32x1xf32>
    %88 = vector.broadcast %87 : vector<32x1xf32> to vector<32x32xf32>
    %89 = arith.subf %85, %88 : vector<32x32xf32>
    %90 = math.exp %89 : vector<32x32xf32>
    %cst_28 = arith.constant dense<0.000000e+00> : vector<32xf32>
    %91 = vector.multi_reduction <add>, %90, %cst_28 [1] : vector<32x32xf32> to vector<32xf32>
    %92 = vector.shape_cast %91 : vector<32xf32> to vector<32x1xf32>
    %93 = tpu.reciprocal %92 {approx = true} : vector<32x1xf32> -> vector<32x1xf32>
    %94 = vector.broadcast %93 : vector<32x1xf32> to vector<32x32xf32>
    %95 = arith.mulf %90, %94 : vector<32x32xf32>
    %96 = arith.truncf %95 : vector<32x32xf32> to vector<32x32xbf16>
    %cst_29 = arith.constant dense<0.000000e+00> : vector<32x16xf32>
    %97 = tpu.matmul %96, %82, %cst_29 {dimension_numbers = #tpu.dot_dimension_numbers<[1], [0], [0], [1], [0, 0, 1, 1], [], []>} : vector<32x32xbf16>, vector<32x16xbf16>, vector<32x16xf32> -> vector<32x16xf32>
    %98 = vector.extract_strided_slice %1 {offsets = [0, 80], sizes = [32, 16], strides = [1, 1]} : vector<32x128xbf16> to vector<32x16xbf16>
    %99 = vector.extract_strided_slice %3 {offsets = [0, 80], sizes = [32, 16], strides = [1, 1]} : vector<32x128xbf16> to vector<32x16xbf16>
    %100 = vector.extract_strided_slice %5 {offsets = [0, 80], sizes = [32, 16], strides = [1, 1]} : vector<32x128xbf16> to vector<32x16xbf16>
    %cst_30 = arith.constant dense<0.000000e+00> : vector<32x32xf32>
    %101 = tpu.matmul %98, %99, %cst_30 {dimension_numbers = #tpu.dot_dimension_numbers<[1], [1], [0], [0], [0, 0, 1, 0], [], []>} : vector<32x16xbf16>, vector<32x16xbf16>, vector<32x32xf32> -> vector<32x32xf32>
    %102 = vector.broadcast %7 : vector<1x32xf32> to vector<32x32xf32>
    %103 = arith.addf %101, %102 : vector<32x32xf32>
    %cst_31 = arith.constant dense<0xFF800000> : vector<32xf32>
    %104 = vector.multi_reduction <maximumf>, %103, %cst_31 [1] : vector<32x32xf32> to vector<32xf32>
    %105 = vector.shape_cast %104 : vector<32xf32> to vector<32x1xf32>
    %106 = vector.broadcast %105 : vector<32x1xf32> to vector<32x32xf32>
    %107 = arith.subf %103, %106 : vector<32x32xf32>
    %108 = math.exp %107 : vector<32x32xf32>
    %cst_32 = arith.constant dense<0.000000e+00> : vector<32xf32>
    %109 = vector.multi_reduction <add>, %108, %cst_32 [1] : vector<32x32xf32> to vector<32xf32>
    %110 = vector.shape_cast %109 : vector<32xf32> to vector<32x1xf32>
    %111 = tpu.reciprocal %110 {approx = true} : vector<32x1xf32> -> vector<32x1xf32>
    %112 = vector.broadcast %111 : vector<32x1xf32> to vector<32x32xf32>
    %113 = arith.mulf %108, %112 : vector<32x32xf32>
    %114 = arith.truncf %113 : vector<32x32xf32> to vector<32x32xbf16>
    %cst_33 = arith.constant dense<0.000000e+00> : vector<32x16xf32>
    %115 = tpu.matmul %114, %100, %cst_33 {dimension_numbers = #tpu.dot_dimension_numbers<[1], [0], [0], [1], [0, 0, 1, 1], [], []>} : vector<32x32xbf16>, vector<32x16xbf16>, vector<32x16xf32> -> vector<32x16xf32>
    %116 = vector.extract_strided_slice %1 {offsets = [0, 96], sizes = [32, 16], strides = [1, 1]} : vector<32x128xbf16> to vector<32x16xbf16>
    %117 = vector.extract_strided_slice %3 {offsets = [0, 96], sizes = [32, 16], strides = [1, 1]} : vector<32x128xbf16> to vector<32x16xbf16>
    %118 = vector.extract_strided_slice %5 {offsets = [0, 96], sizes = [32, 16], strides = [1, 1]} : vector<32x128xbf16> to vector<32x16xbf16>
    %cst_34 = arith.constant dense<0.000000e+00> : vector<32x32xf32>
    %119 = tpu.matmul %116, %117, %cst_34 {dimension_numbers = #tpu.dot_dimension_numbers<[1], [1], [0], [0], [0, 0, 1, 0], [], []>} : vector<32x16xbf16>, vector<32x16xbf16>, vector<32x32xf32> -> vector<32x32xf32>
    %120 = vector.broadcast %7 : vector<1x32xf32> to vector<32x32xf32>
    %121 = arith.addf %119, %120 : vector<32x32xf32>
    %cst_35 = arith.constant dense<0xFF800000> : vector<32xf32>
    %122 = vector.multi_reduction <maximumf>, %121, %cst_35 [1] : vector<32x32xf32> to vector<32xf32>
    %123 = vector.shape_cast %122 : vector<32xf32> to vector<32x1xf32>
    %124 = vector.broadcast %123 : vector<32x1xf32> to vector<32x32xf32>
    %125 = arith.subf %121, %124 : vector<32x32xf32>
    %126 = math.exp %125 : vector<32x32xf32>
    %cst_36 = arith.constant dense<0.000000e+00> : vector<32xf32>
    %127 = vector.multi_reduction <add>, %126, %cst_36 [1] : vector<32x32xf32> to vector<32xf32>
    %128 = vector.shape_cast %127 : vector<32xf32> to vector<32x1xf32>
    %129 = tpu.reciprocal %128 {approx = true} : vector<32x1xf32> -> vector<32x1xf32>
    %130 = vector.broadcast %129 : vector<32x1xf32> to vector<32x32xf32>
    %131 = arith.mulf %126, %130 : vector<32x32xf32>
    %132 = arith.truncf %131 : vector<32x32xf32> to vector<32x32xbf16>
    %cst_37 = arith.constant dense<0.000000e+00> : vector<32x16xf32>
    %133 = tpu.matmul %132, %118, %cst_37 {dimension_numbers = #tpu.dot_dimension_numbers<[1], [0], [0], [1], [0, 0, 1, 1], [], []>} : vector<32x32xbf16>, vector<32x16xbf16>, vector<32x16xf32> -> vector<32x16xf32>
    %134 = vector.extract_strided_slice %1 {offsets = [0, 112], sizes = [32, 16], strides = [1, 1]} : vector<32x128xbf16> to vector<32x16xbf16>
    %135 = vector.extract_strided_slice %3 {offsets = [0, 112], sizes = [32, 16], strides = [1, 1]} : vector<32x128xbf16> to vector<32x16xbf16>
    %136 = vector.extract_strided_slice %5 {offsets = [0, 112], sizes = [32, 16], strides = [1, 1]} : vector<32x128xbf16> to vector<32x16xbf16>
    %cst_38 = arith.constant dense<0.000000e+00> : vector<32x32xf32>
    %137 = tpu.matmul %134, %135, %cst_38 {dimension_numbers = #tpu.dot_dimension_numbers<[1], [1], [0], [0], [0, 0, 1, 0], [], []>} : vector<32x16xbf16>, vector<32x16xbf16>, vector<32x32xf32> -> vector<32x32xf32>
    %138 = vector.broadcast %7 : vector<1x32xf32> to vector<32x32xf32>
    %139 = arith.addf %137, %138 : vector<32x32xf32>
    %cst_39 = arith.constant dense<0xFF800000> : vector<32xf32>
    %140 = vector.multi_reduction <maximumf>, %139, %cst_39 [1] : vector<32x32xf32> to vector<32xf32>
    %141 = vector.shape_cast %140 : vector<32xf32> to vector<32x1xf32>
    %142 = vector.broadcast %141 : vector<32x1xf32> to vector<32x32xf32>
    %143 = arith.subf %139, %142 : vector<32x32xf32>
    %144 = math.exp %143 : vector<32x32xf32>
    %cst_40 = arith.constant dense<0.000000e+00> : vector<32xf32>
    %145 = vector.multi_reduction <add>, %144, %cst_40 [1] : vector<32x32xf32> to vector<32xf32>
    %146 = vector.shape_cast %145 : vector<32xf32> to vector<32x1xf32>
    %147 = tpu.reciprocal %146 {approx = true} : vector<32x1xf32> -> vector<32x1xf32>
    %148 = vector.broadcast %147 : vector<32x1xf32> to vector<32x32xf32>
    %149 = arith.mulf %144, %148 : vector<32x32xf32>
    %150 = arith.truncf %149 : vector<32x32xf32> to vector<32x32xbf16>
    %cst_41 = arith.constant dense<0.000000e+00> : vector<32x16xf32>
    %151 = tpu.matmul %150, %136, %cst_41 {dimension_numbers = #tpu.dot_dimension_numbers<[1], [0], [0], [1], [0, 0, 1, 1], [], []>} : vector<32x32xbf16>, vector<32x16xbf16>, vector<32x16xf32> -> vector<32x16xf32>
    %152 = tpu.concatenate %25, %43, %61, %79, %97, %115, %133, %151 in 1 : vector<32x16xf32>, vector<32x16xf32>, vector<32x16xf32>, vector<32x16xf32>, vector<32x16xf32>, vector<32x16xf32>, vector<32x16xf32>, vector<32x16xf32> -> vector<32x128xf32>
    %153 = arith.truncf %152 : vector<32x128xf32> to vector<32x128xbf16>
    %c0_42 = arith.constant 0 : index
    %c0_43 = arith.constant 0 : index
    %c0_44 = arith.constant 0 : index
    %154 = vector.load %arg5[%c0_42, %c0_43, %c0_44] : memref<1x32x128xbf16, #tpu.memory_space<vmem>>, vector<1x32x128xbf16>
    %155 = vector.shape_cast %154 : vector<1x32x128xbf16> to vector<32x128xbf16>
    %156 = vector.shape_cast %153 : vector<32x128xbf16> to vector<1x32x128xbf16>
    tpu.vector_store %arg5[%c0_42, %c0_43, %c0_44], %156 {strides = array<i32>} : memref<1x32x128xbf16, #tpu.memory_space<vmem>>, vector<1x32x128xbf16>,
    return
  }
  func.func @transform_0(%arg0: i32) -> (i32, i32, i32) {
    %c0_i32 = arith.constant 0 : i32
    %c0_i32_0 = arith.constant 0 : i32
    %c0_i32_1 = arith.constant 0 : i32
    return %arg0, %c0_i32, %c0_i32_0 : i32, i32, i32
  }
  func.func @transform_1(%arg0: i32) -> (i32, i32, i32) {
    %c0_i32 = arith.constant 0 : i32
    %c0_i32_0 = arith.constant 0 : i32
    %c0_i32_1 = arith.constant 0 : i32
    return %arg0, %c0_i32, %c0_i32_0 : i32, i32, i32
  }
  func.func @transform_2(%arg0: i32) -> (i32, i32, i32) {
    %c0_i32 = arith.constant 0 : i32
    %c0_i32_0 = arith.constant 0 : i32
    %c0_i32_1 = arith.constant 0 : i32
    return %arg0, %c0_i32, %c0_i32_0 : i32, i32, i32
  }
  func.func @transform_3(%arg0: i32) -> (i32, i32, i32) {
    %c0_i32 = arith.constant 0 : i32
    %c0_i32_0 = arith.constant 0 : i32
    %c0_i32_1 = arith.constant 0 : i32
    return %arg0, %c0_i32, %c0_i32_0 : i32, i32, i32
  }
  func.func @transform_4(%arg0: i32) -> (i32, i32, i32) {
    %c0_i32 = arith.constant 0 : i32
    %c0_i32_0 = arith.constant 0 : i32
    %c0_i32_1 = arith.constant 0 : i32
    return %arg0, %c0_i32, %c0_i32_0 : i32, i32, i32
  }
}

module attributes {stable_mosaic.version = 11 : i64} {
  func.func @_proj_add_ln_kernel(%arg0: i32, %arg1: memref<32x128xbf16, #tpu.memory_space<vmem>>, %arg2: memref<128x128xbf16, #tpu.memory_space<vmem>>, %arg3: memref<1x128xf32, #tpu.memory_space<vmem>>, %arg4: memref<32x128xf32, #tpu.memory_space<vmem>>, %arg5: memref<1x128xf32, #tpu.memory_space<vmem>>, %arg6: memref<1x128xf32, #tpu.memory_space<vmem>>, %arg7: memref<32x128xf32, #tpu.memory_space<vmem>>) attributes {dimension_semantics = [#tpu.dimension_semantics<parallel>], iteration_bounds = array<i64: 2>, scalar_prefetch = 0 : i64, scratch_operands = 0 : i64, tpu.core_type = #tpu.core_type<tc>, window_params = [{transform_indices = @transform_0, window_bounds = array<i64: 32, 128>}, {pipeline_mode = #tpu.pipeline_mode<synchronous>, transform_indices = @transform_1, window_bounds = array<i64: 128, 128>}, {pipeline_mode = #tpu.pipeline_mode<synchronous>, transform_indices = @transform_2, window_bounds = array<i64: 1, 128>}, {transform_indices = @transform_3, window_bounds = array<i64: 32, 128>}, {pipeline_mode = #tpu.pipeline_mode<synchronous>, transform_indices = @transform_4, window_bounds = array<i64: 1, 128>}, {pipeline_mode = #tpu.pipeline_mode<synchronous>, transform_indices = @transform_5, window_bounds = array<i64: 1, 128>}, {transform_indices = @transform_6, window_bounds = array<i64: 32, 128>}]} {
    %c0 = arith.constant 0 : index
    %c0_0 = arith.constant 0 : index
    %0 = vector.load %arg1[%c0, %c0_0] : memref<32x128xbf16, #tpu.memory_space<vmem>>, vector<32x128xbf16>
    %c0_1 = arith.constant 0 : index
    %c0_2 = arith.constant 0 : index
    %1 = vector.load %arg2[%c0_1, %c0_2] : memref<128x128xbf16, #tpu.memory_space<vmem>>, vector<128x128xbf16>
    %cst = arith.constant dense<0.000000e+00> : vector<32x128xf32>
    %2 = tpu.matmul %0, %1, %cst {dimension_numbers = #tpu.dot_dimension_numbers<[1], [0], [0], [1], [0, 0, 1, 1], [], []>} : vector<32x128xbf16>, vector<128x128xbf16>, vector<32x128xf32> -> vector<32x128xf32>
    %c0_3 = arith.constant 0 : index
    %c0_4 = arith.constant 0 : index
    %3 = vector.load %arg3[%c0_3, %c0_4] : memref<1x128xf32, #tpu.memory_space<vmem>>, vector<1x128xf32>
    %4 = vector.broadcast %3 : vector<1x128xf32> to vector<32x128xf32>
    %5 = arith.addf %2, %4 : vector<32x128xf32>
    %c0_5 = arith.constant 0 : index
    %c0_6 = arith.constant 0 : index
    %6 = vector.load %arg4[%c0_5, %c0_6] : memref<32x128xf32, #tpu.memory_space<vmem>>, vector<32x128xf32>
    %7 = arith.addf %5, %6 : vector<32x128xf32>
    %cst_7 = arith.constant dense<0.000000e+00> : vector<32xf32>
    %8 = vector.multi_reduction <add>, %7, %cst_7 [1] : vector<32x128xf32> to vector<32xf32>
    %9 = vector.shape_cast %8 : vector<32xf32> to vector<32x1xf32>
    %cst_8 = arith.constant 1.280000e+02 : f32
    %10 = vector.broadcast %cst_8 : f32 to vector<32x1xf32>
    %11 = arith.divf %9, %10 : vector<32x1xf32>
    %12 = vector.broadcast %11 : vector<32x1xf32> to vector<32x128xf32>
    %13 = arith.subf %7, %12 : vector<32x128xf32>
    %14 = arith.mulf %13, %13 : vector<32x128xf32>
    %cst_9 = arith.constant dense<0.000000e+00> : vector<32xf32>
    %15 = vector.multi_reduction <add>, %14, %cst_9 [1] : vector<32x128xf32> to vector<32xf32>
    %16 = vector.shape_cast %15 : vector<32xf32> to vector<32x1xf32>
    %cst_10 = arith.constant 1.280000e+02 : f32
    %17 = vector.broadcast %cst_10 : f32 to vector<32x1xf32>
    %18 = arith.divf %16, %17 : vector<32x1xf32>
    %19 = vector.broadcast %11 : vector<32x1xf32> to vector<32x128xf32>
    %20 = arith.subf %7, %19 : vector<32x128xf32>
    %cst_11 = arith.constant 9.99999974E-6 : f32
    %21 = vector.broadcast %cst_11 : f32 to vector<32x1xf32>
    %22 = arith.addf %18, %21 : vector<32x1xf32>
    %23 = math.rsqrt %22 : vector<32x1xf32>
    %24 = vector.broadcast %23 : vector<32x1xf32> to vector<32x128xf32>
    %25 = arith.mulf %20, %24 : vector<32x128xf32>
    %c0_12 = arith.constant 0 : index
    %c0_13 = arith.constant 0 : index
    %26 = vector.load %arg5[%c0_12, %c0_13] : memref<1x128xf32, #tpu.memory_space<vmem>>, vector<1x128xf32>
    %27 = vector.broadcast %26 : vector<1x128xf32> to vector<32x128xf32>
    %28 = arith.mulf %25, %27 : vector<32x128xf32>
    %c0_14 = arith.constant 0 : index
    %c0_15 = arith.constant 0 : index
    %29 = vector.load %arg6[%c0_14, %c0_15] : memref<1x128xf32, #tpu.memory_space<vmem>>, vector<1x128xf32>
    %30 = vector.broadcast %29 : vector<1x128xf32> to vector<32x128xf32>
    %31 = arith.addf %28, %30 : vector<32x128xf32>
    %c0_16 = arith.constant 0 : index
    %c0_17 = arith.constant 0 : index
    %32 = vector.load %arg7[%c0_16, %c0_17] : memref<32x128xf32, #tpu.memory_space<vmem>>, vector<32x128xf32>
    tpu.vector_store %arg7[%c0_16, %c0_17], %31 {strides = array<i32>} : memref<32x128xf32, #tpu.memory_space<vmem>>, vector<32x128xf32>,
    return
  }
  func.func @transform_0(%arg0: i32) -> (i32, i32) {
    %c0_i32 = arith.constant 0 : i32
    %c0_i32_0 = arith.constant 0 : i32
    return %arg0, %c0_i32 : i32, i32
  }
  func.func @transform_1(%arg0: i32) -> (i32, i32) {
    %c0_i32 = arith.constant 0 : i32
    %c0_i32_0 = arith.constant 0 : i32
    %c0_i32_1 = arith.constant 0 : i32
    return %c0_i32, %c0_i32_0 : i32, i32
  }
  func.func @transform_2(%arg0: i32) -> (i32, i32) {
    %c0_i32 = arith.constant 0 : i32
    %c0_i32_0 = arith.constant 0 : i32
    %c0_i32_1 = arith.constant 0 : i32
    return %c0_i32, %c0_i32_0 : i32, i32
  }
  func.func @transform_3(%arg0: i32) -> (i32, i32) {
    %c0_i32 = arith.constant 0 : i32
    %c0_i32_0 = arith.constant 0 : i32
    return %arg0, %c0_i32 : i32, i32
  }
  func.func @transform_4(%arg0: i32) -> (i32, i32) {
    %c0_i32 = arith.constant 0 : i32
    %c0_i32_0 = arith.constant 0 : i32
    %c0_i32_1 = arith.constant 0 : i32
    return %c0_i32, %c0_i32_0 : i32, i32
  }
  func.func @transform_5(%arg0: i32) -> (i32, i32) {
    %c0_i32 = arith.constant 0 : i32
    %c0_i32_0 = arith.constant 0 : i32
    %c0_i32_1 = arith.constant 0 : i32
    return %c0_i32, %c0_i32_0 : i32, i32
  }
  func.func @transform_6(%arg0: i32) -> (i32, i32) {
    %c0_i32 = arith.constant 0 : i32
    %c0_i32_0 = arith.constant 0 : i32
    return %arg0, %c0_i32 : i32, i32
  }
}

module attributes {stable_mosaic.version = 11 : i64} {
  func.func @_ffn_add_ln_kernel(%arg0: i32, %arg1: memref<32x128xf32, #tpu.memory_space<vmem>>, %arg2: memref<128x2048xbf16, #tpu.memory_space<vmem>>, %arg3: memref<1x2048xf32, #tpu.memory_space<vmem>>, %arg4: memref<2048x128xbf16, #tpu.memory_space<vmem>>, %arg5: memref<1x128xf32, #tpu.memory_space<vmem>>, %arg6: memref<1x128xf32, #tpu.memory_space<vmem>>, %arg7: memref<1x128xf32, #tpu.memory_space<vmem>>, %arg8: memref<32x128xf32, #tpu.memory_space<vmem>>) attributes {dimension_semantics = [#tpu.dimension_semantics<parallel>], iteration_bounds = array<i64: 2>, scalar_prefetch = 0 : i64, scratch_operands = 0 : i64, tpu.core_type = #tpu.core_type<tc>, window_params = [{transform_indices = @transform_0, window_bounds = array<i64: 32, 128>}, {pipeline_mode = #tpu.pipeline_mode<synchronous>, transform_indices = @transform_1, window_bounds = array<i64: 128, 2048>}, {pipeline_mode = #tpu.pipeline_mode<synchronous>, transform_indices = @transform_2, window_bounds = array<i64: 1, 2048>}, {pipeline_mode = #tpu.pipeline_mode<synchronous>, transform_indices = @transform_3, window_bounds = array<i64: 2048, 128>}, {pipeline_mode = #tpu.pipeline_mode<synchronous>, transform_indices = @transform_4, window_bounds = array<i64: 1, 128>}, {pipeline_mode = #tpu.pipeline_mode<synchronous>, transform_indices = @transform_5, window_bounds = array<i64: 1, 128>}, {pipeline_mode = #tpu.pipeline_mode<synchronous>, transform_indices = @transform_6, window_bounds = array<i64: 1, 128>}, {transform_indices = @transform_7, window_bounds = array<i64: 32, 128>}]} {
    %c0 = arith.constant 0 : index
    %c0_0 = arith.constant 0 : index
    %0 = vector.load %arg1[%c0, %c0_0] : memref<32x128xf32, #tpu.memory_space<vmem>>, vector<32x128xf32>
    %1 = arith.truncf %0 : vector<32x128xf32> to vector<32x128xbf16>
    %c0_1 = arith.constant 0 : index
    %c0_2 = arith.constant 0 : index
    %2 = vector.load %arg5[%c0_1, %c0_2] : memref<1x128xf32, #tpu.memory_space<vmem>>, vector<1x128xf32>
    %3 = vector.broadcast %2 : vector<1x128xf32> to vector<32x128xf32>
    %4 = arith.addf %0, %3 : vector<32x128xf32>
    %c0_3 = arith.constant 0 : index
    %c0_4 = arith.constant 0 : index
    %5 = vector.load %arg2[%c0_3, %c0_4] : memref<128x2048xbf16, #tpu.memory_space<vmem>>, vector<128x512xbf16>
    %c0_5 = arith.constant 0 : index
    %c0_6 = arith.constant 0 : index
    %6 = vector.load %arg3[%c0_5, %c0_6] : memref<1x2048xf32, #tpu.memory_space<vmem>>, vector<1x512xf32>
    %c0_7 = arith.constant 0 : index
    %c0_8 = arith.constant 0 : index
    %7 = vector.load %arg4[%c0_7, %c0_8] : memref<2048x128xbf16, #tpu.memory_space<vmem>>, vector<512x128xbf16>
    %cst = arith.constant dense<0.000000e+00> : vector<32x512xf32>
    %8 = tpu.matmul %1, %5, %cst {dimension_numbers = #tpu.dot_dimension_numbers<[1], [0], [0], [1], [0, 0, 1, 1], [], []>} : vector<32x128xbf16>, vector<128x512xbf16>, vector<32x512xf32> -> vector<32x512xf32>
    %9 = vector.broadcast %6 : vector<1x512xf32> to vector<32x512xf32>
    %10 = arith.addf %8, %9 : vector<32x512xf32>
    %cst_9 = arith.constant 0.000000e+00 : f32
    %11 = vector.broadcast %cst_9 : f32 to vector<32x512xf32>
    %12 = arith.maximumf %10, %11 : vector<32x512xf32>
    %13 = arith.truncf %12 : vector<32x512xf32> to vector<32x512xbf16>
    %cst_10 = arith.constant dense<0.000000e+00> : vector<32x128xf32>
    %14 = tpu.matmul %13, %7, %cst_10 {dimension_numbers = #tpu.dot_dimension_numbers<[1], [0], [0], [1], [0, 0, 1, 1], [], []>} : vector<32x512xbf16>, vector<512x128xbf16>, vector<32x128xf32> -> vector<32x128xf32>
    %15 = arith.addf %4, %14 : vector<32x128xf32>
    %c0_11 = arith.constant 0 : index
    %c512 = arith.constant 512 : index
    %16 = vector.load %arg2[%c0_11, %c512] : memref<128x2048xbf16, #tpu.memory_space<vmem>>, vector<128x512xbf16>
    %c0_12 = arith.constant 0 : index
    %c512_13 = arith.constant 512 : index
    %17 = vector.load %arg3[%c0_12, %c512_13] : memref<1x2048xf32, #tpu.memory_space<vmem>>, vector<1x512xf32>
    %c512_14 = arith.constant 512 : index
    %c0_15 = arith.constant 0 : index
    %18 = vector.load %arg4[%c512_14, %c0_15] : memref<2048x128xbf16, #tpu.memory_space<vmem>>, vector<512x128xbf16>
    %cst_16 = arith.constant dense<0.000000e+00> : vector<32x512xf32>
    %19 = tpu.matmul %1, %16, %cst_16 {dimension_numbers = #tpu.dot_dimension_numbers<[1], [0], [0], [1], [0, 0, 1, 1], [], []>} : vector<32x128xbf16>, vector<128x512xbf16>, vector<32x512xf32> -> vector<32x512xf32>
    %20 = vector.broadcast %17 : vector<1x512xf32> to vector<32x512xf32>
    %21 = arith.addf %19, %20 : vector<32x512xf32>
    %cst_17 = arith.constant 0.000000e+00 : f32
    %22 = vector.broadcast %cst_17 : f32 to vector<32x512xf32>
    %23 = arith.maximumf %21, %22 : vector<32x512xf32>
    %24 = arith.truncf %23 : vector<32x512xf32> to vector<32x512xbf16>
    %cst_18 = arith.constant dense<0.000000e+00> : vector<32x128xf32>
    %25 = tpu.matmul %24, %18, %cst_18 {dimension_numbers = #tpu.dot_dimension_numbers<[1], [0], [0], [1], [0, 0, 1, 1], [], []>} : vector<32x512xbf16>, vector<512x128xbf16>, vector<32x128xf32> -> vector<32x128xf32>
    %26 = arith.addf %15, %25 : vector<32x128xf32>
    %c0_19 = arith.constant 0 : index
    %c1024 = arith.constant 1024 : index
    %27 = vector.load %arg2[%c0_19, %c1024] : memref<128x2048xbf16, #tpu.memory_space<vmem>>, vector<128x512xbf16>
    %c0_20 = arith.constant 0 : index
    %c1024_21 = arith.constant 1024 : index
    %28 = vector.load %arg3[%c0_20, %c1024_21] : memref<1x2048xf32, #tpu.memory_space<vmem>>, vector<1x512xf32>
    %c1024_22 = arith.constant 1024 : index
    %c0_23 = arith.constant 0 : index
    %29 = vector.load %arg4[%c1024_22, %c0_23] : memref<2048x128xbf16, #tpu.memory_space<vmem>>, vector<512x128xbf16>
    %cst_24 = arith.constant dense<0.000000e+00> : vector<32x512xf32>
    %30 = tpu.matmul %1, %27, %cst_24 {dimension_numbers = #tpu.dot_dimension_numbers<[1], [0], [0], [1], [0, 0, 1, 1], [], []>} : vector<32x128xbf16>, vector<128x512xbf16>, vector<32x512xf32> -> vector<32x512xf32>
    %31 = vector.broadcast %28 : vector<1x512xf32> to vector<32x512xf32>
    %32 = arith.addf %30, %31 : vector<32x512xf32>
    %cst_25 = arith.constant 0.000000e+00 : f32
    %33 = vector.broadcast %cst_25 : f32 to vector<32x512xf32>
    %34 = arith.maximumf %32, %33 : vector<32x512xf32>
    %35 = arith.truncf %34 : vector<32x512xf32> to vector<32x512xbf16>
    %cst_26 = arith.constant dense<0.000000e+00> : vector<32x128xf32>
    %36 = tpu.matmul %35, %29, %cst_26 {dimension_numbers = #tpu.dot_dimension_numbers<[1], [0], [0], [1], [0, 0, 1, 1], [], []>} : vector<32x512xbf16>, vector<512x128xbf16>, vector<32x128xf32> -> vector<32x128xf32>
    %37 = arith.addf %26, %36 : vector<32x128xf32>
    %c0_27 = arith.constant 0 : index
    %c1536 = arith.constant 1536 : index
    %38 = vector.load %arg2[%c0_27, %c1536] : memref<128x2048xbf16, #tpu.memory_space<vmem>>, vector<128x512xbf16>
    %c0_28 = arith.constant 0 : index
    %c1536_29 = arith.constant 1536 : index
    %39 = vector.load %arg3[%c0_28, %c1536_29] : memref<1x2048xf32, #tpu.memory_space<vmem>>, vector<1x512xf32>
    %c1536_30 = arith.constant 1536 : index
    %c0_31 = arith.constant 0 : index
    %40 = vector.load %arg4[%c1536_30, %c0_31] : memref<2048x128xbf16, #tpu.memory_space<vmem>>, vector<512x128xbf16>
    %cst_32 = arith.constant dense<0.000000e+00> : vector<32x512xf32>
    %41 = tpu.matmul %1, %38, %cst_32 {dimension_numbers = #tpu.dot_dimension_numbers<[1], [0], [0], [1], [0, 0, 1, 1], [], []>} : vector<32x128xbf16>, vector<128x512xbf16>, vector<32x512xf32> -> vector<32x512xf32>
    %42 = vector.broadcast %39 : vector<1x512xf32> to vector<32x512xf32>
    %43 = arith.addf %41, %42 : vector<32x512xf32>
    %cst_33 = arith.constant 0.000000e+00 : f32
    %44 = vector.broadcast %cst_33 : f32 to vector<32x512xf32>
    %45 = arith.maximumf %43, %44 : vector<32x512xf32>
    %46 = arith.truncf %45 : vector<32x512xf32> to vector<32x512xbf16>
    %cst_34 = arith.constant dense<0.000000e+00> : vector<32x128xf32>
    %47 = tpu.matmul %46, %40, %cst_34 {dimension_numbers = #tpu.dot_dimension_numbers<[1], [0], [0], [1], [0, 0, 1, 1], [], []>} : vector<32x512xbf16>, vector<512x128xbf16>, vector<32x128xf32> -> vector<32x128xf32>
    %48 = arith.addf %37, %47 : vector<32x128xf32>
    %cst_35 = arith.constant dense<0.000000e+00> : vector<32xf32>
    %49 = vector.multi_reduction <add>, %48, %cst_35 [1] : vector<32x128xf32> to vector<32xf32>
    %50 = vector.shape_cast %49 : vector<32xf32> to vector<32x1xf32>
    %cst_36 = arith.constant 1.280000e+02 : f32
    %51 = vector.broadcast %cst_36 : f32 to vector<32x1xf32>
    %52 = arith.divf %50, %51 : vector<32x1xf32>
    %53 = vector.broadcast %52 : vector<32x1xf32> to vector<32x128xf32>
    %54 = arith.subf %48, %53 : vector<32x128xf32>
    %55 = arith.mulf %54, %54 : vector<32x128xf32>
    %cst_37 = arith.constant dense<0.000000e+00> : vector<32xf32>
    %56 = vector.multi_reduction <add>, %55, %cst_37 [1] : vector<32x128xf32> to vector<32xf32>
    %57 = vector.shape_cast %56 : vector<32xf32> to vector<32x1xf32>
    %cst_38 = arith.constant 1.280000e+02 : f32
    %58 = vector.broadcast %cst_38 : f32 to vector<32x1xf32>
    %59 = arith.divf %57, %58 : vector<32x1xf32>
    %60 = vector.broadcast %52 : vector<32x1xf32> to vector<32x128xf32>
    %61 = arith.subf %48, %60 : vector<32x128xf32>
    %cst_39 = arith.constant 9.99999974E-6 : f32
    %62 = vector.broadcast %cst_39 : f32 to vector<32x1xf32>
    %63 = arith.addf %59, %62 : vector<32x1xf32>
    %64 = math.rsqrt %63 : vector<32x1xf32>
    %65 = vector.broadcast %64 : vector<32x1xf32> to vector<32x128xf32>
    %66 = arith.mulf %61, %65 : vector<32x128xf32>
    %c0_40 = arith.constant 0 : index
    %c0_41 = arith.constant 0 : index
    %67 = vector.load %arg6[%c0_40, %c0_41] : memref<1x128xf32, #tpu.memory_space<vmem>>, vector<1x128xf32>
    %68 = vector.broadcast %67 : vector<1x128xf32> to vector<32x128xf32>
    %69 = arith.mulf %66, %68 : vector<32x128xf32>
    %c0_42 = arith.constant 0 : index
    %c0_43 = arith.constant 0 : index
    %70 = vector.load %arg7[%c0_42, %c0_43] : memref<1x128xf32, #tpu.memory_space<vmem>>, vector<1x128xf32>
    %71 = vector.broadcast %70 : vector<1x128xf32> to vector<32x128xf32>
    %72 = arith.addf %69, %71 : vector<32x128xf32>
    %c0_44 = arith.constant 0 : index
    %c0_45 = arith.constant 0 : index
    %73 = vector.load %arg8[%c0_44, %c0_45] : memref<32x128xf32, #tpu.memory_space<vmem>>, vector<32x128xf32>
    tpu.vector_store %arg8[%c0_44, %c0_45], %72 {strides = array<i32>} : memref<32x128xf32, #tpu.memory_space<vmem>>, vector<32x128xf32>,
    return
  }
  func.func @transform_0(%arg0: i32) -> (i32, i32) {
    %c0_i32 = arith.constant 0 : i32
    %c0_i32_0 = arith.constant 0 : i32
    return %arg0, %c0_i32 : i32, i32
  }
  func.func @transform_1(%arg0: i32) -> (i32, i32) {
    %c0_i32 = arith.constant 0 : i32
    %c0_i32_0 = arith.constant 0 : i32
    %c0_i32_1 = arith.constant 0 : i32
    return %c0_i32, %c0_i32_0 : i32, i32
  }
  func.func @transform_2(%arg0: i32) -> (i32, i32) {
    %c0_i32 = arith.constant 0 : i32
    %c0_i32_0 = arith.constant 0 : i32
    %c0_i32_1 = arith.constant 0 : i32
    return %c0_i32, %c0_i32_0 : i32, i32
  }
  func.func @transform_3(%arg0: i32) -> (i32, i32) {
    %c0_i32 = arith.constant 0 : i32
    %c0_i32_0 = arith.constant 0 : i32
    %c0_i32_1 = arith.constant 0 : i32
    return %c0_i32, %c0_i32_0 : i32, i32
  }
  func.func @transform_4(%arg0: i32) -> (i32, i32) {
    %c0_i32 = arith.constant 0 : i32
    %c0_i32_0 = arith.constant 0 : i32
    %c0_i32_1 = arith.constant 0 : i32
    return %c0_i32, %c0_i32_0 : i32, i32
  }
  func.func @transform_5(%arg0: i32) -> (i32, i32) {
    %c0_i32 = arith.constant 0 : i32
    %c0_i32_0 = arith.constant 0 : i32
    %c0_i32_1 = arith.constant 0 : i32
    return %c0_i32, %c0_i32_0 : i32, i32
  }
  func.func @transform_6(%arg0: i32) -> (i32, i32) {
    %c0_i32 = arith.constant 0 : i32
    %c0_i32_0 = arith.constant 0 : i32
    %c0_i32_1 = arith.constant 0 : i32
    return %c0_i32, %c0_i32_0 : i32, i32
  }
  func.func @transform_7(%arg0: i32) -> (i32, i32) {
    %c0_i32 = arith.constant 0 : i32
    %c0_i32_0 = arith.constant 0 : i32
    return %arg0, %c0_i32 : i32, i32
  }
}

module attributes {stable_mosaic.version = 11 : i64} {
  func.func @_proj_add_ln_kernel(%arg0: i32, %arg1: memref<32x128xbf16, #tpu.memory_space<vmem>>, %arg2: memref<128x128xbf16, #tpu.memory_space<vmem>>, %arg3: memref<1x128xf32, #tpu.memory_space<vmem>>, %arg4: memref<32x128xf32, #tpu.memory_space<vmem>>, %arg5: memref<1x128xf32, #tpu.memory_space<vmem>>, %arg6: memref<1x128xf32, #tpu.memory_space<vmem>>, %arg7: memref<32x128xf32, #tpu.memory_space<vmem>>) attributes {dimension_semantics = [#tpu.dimension_semantics<parallel>], iteration_bounds = array<i64: 2>, scalar_prefetch = 0 : i64, scratch_operands = 0 : i64, tpu.core_type = #tpu.core_type<tc>, window_params = [{transform_indices = @transform_0, window_bounds = array<i64: 32, 128>}, {pipeline_mode = #tpu.pipeline_mode<synchronous>, transform_indices = @transform_1, window_bounds = array<i64: 128, 128>}, {pipeline_mode = #tpu.pipeline_mode<synchronous>, transform_indices = @transform_2, window_bounds = array<i64: 1, 128>}, {transform_indices = @transform_3, window_bounds = array<i64: 32, 128>}, {pipeline_mode = #tpu.pipeline_mode<synchronous>, transform_indices = @transform_4, window_bounds = array<i64: 1, 128>}, {pipeline_mode = #tpu.pipeline_mode<synchronous>, transform_indices = @transform_5, window_bounds = array<i64: 1, 128>}, {transform_indices = @transform_6, window_bounds = array<i64: 32, 128>}]} {
    %c0 = arith.constant 0 : index
    %c0_0 = arith.constant 0 : index
    %0 = vector.load %arg1[%c0, %c0_0] : memref<32x128xbf16, #tpu.memory_space<vmem>>, vector<32x128xbf16>
    %c0_1 = arith.constant 0 : index
    %c0_2 = arith.constant 0 : index
    %1 = vector.load %arg2[%c0_1, %c0_2] : memref<128x128xbf16, #tpu.memory_space<vmem>>, vector<128x128xbf16>
    %cst = arith.constant dense<0.000000e+00> : vector<32x128xf32>
    %2 = tpu.matmul %0, %1, %cst {dimension_numbers = #tpu.dot_dimension_numbers<[1], [0], [0], [1], [0, 0, 1, 1], [], []>} : vector<32x128xbf16>, vector<128x128xbf16>, vector<32x128xf32> -> vector<32x128xf32>
    %c0_3 = arith.constant 0 : index
    %c0_4 = arith.constant 0 : index
    %3 = vector.load %arg3[%c0_3, %c0_4] : memref<1x128xf32, #tpu.memory_space<vmem>>, vector<1x128xf32>
    %4 = vector.broadcast %3 : vector<1x128xf32> to vector<32x128xf32>
    %5 = arith.addf %2, %4 : vector<32x128xf32>
    %c0_5 = arith.constant 0 : index
    %c0_6 = arith.constant 0 : index
    %6 = vector.load %arg4[%c0_5, %c0_6] : memref<32x128xf32, #tpu.memory_space<vmem>>, vector<32x128xf32>
    %7 = arith.addf %5, %6 : vector<32x128xf32>
    %cst_7 = arith.constant dense<0.000000e+00> : vector<32xf32>
    %8 = vector.multi_reduction <add>, %7, %cst_7 [1] : vector<32x128xf32> to vector<32xf32>
    %9 = vector.shape_cast %8 : vector<32xf32> to vector<32x1xf32>
    %cst_8 = arith.constant 1.280000e+02 : f32
    %10 = vector.broadcast %cst_8 : f32 to vector<32x1xf32>
    %11 = arith.divf %9, %10 : vector<32x1xf32>
    %12 = vector.broadcast %11 : vector<32x1xf32> to vector<32x128xf32>
    %13 = arith.subf %7, %12 : vector<32x128xf32>
    %14 = arith.mulf %13, %13 : vector<32x128xf32>
    %cst_9 = arith.constant dense<0.000000e+00> : vector<32xf32>
    %15 = vector.multi_reduction <add>, %14, %cst_9 [1] : vector<32x128xf32> to vector<32xf32>
    %16 = vector.shape_cast %15 : vector<32xf32> to vector<32x1xf32>
    %cst_10 = arith.constant 1.280000e+02 : f32
    %17 = vector.broadcast %cst_10 : f32 to vector<32x1xf32>
    %18 = arith.divf %16, %17 : vector<32x1xf32>
    %19 = vector.broadcast %11 : vector<32x1xf32> to vector<32x128xf32>
    %20 = arith.subf %7, %19 : vector<32x128xf32>
    %cst_11 = arith.constant 9.99999974E-6 : f32
    %21 = vector.broadcast %cst_11 : f32 to vector<32x1xf32>
    %22 = arith.addf %18, %21 : vector<32x1xf32>
    %23 = math.rsqrt %22 : vector<32x1xf32>
    %24 = vector.broadcast %23 : vector<32x1xf32> to vector<32x128xf32>
    %25 = arith.mulf %20, %24 : vector<32x128xf32>
    %c0_12 = arith.constant 0 : index
    %c0_13 = arith.constant 0 : index
    %26 = vector.load %arg5[%c0_12, %c0_13] : memref<1x128xf32, #tpu.memory_space<vmem>>, vector<1x128xf32>
    %27 = vector.broadcast %26 : vector<1x128xf32> to vector<32x128xf32>
    %28 = arith.mulf %25, %27 : vector<32x128xf32>
    %c0_14 = arith.constant 0 : index
    %c0_15 = arith.constant 0 : index
    %29 = vector.load %arg6[%c0_14, %c0_15] : memref<1x128xf32, #tpu.memory_space<vmem>>, vector<1x128xf32>
    %30 = vector.broadcast %29 : vector<1x128xf32> to vector<32x128xf32>
    %31 = arith.addf %28, %30 : vector<32x128xf32>
    %c0_16 = arith.constant 0 : index
    %c0_17 = arith.constant 0 : index
    %32 = vector.load %arg7[%c0_16, %c0_17] : memref<32x128xf32, #tpu.memory_space<vmem>>, vector<32x128xf32>
    tpu.vector_store %arg7[%c0_16, %c0_17], %31 {strides = array<i32>} : memref<32x128xf32, #tpu.memory_space<vmem>>, vector<32x128xf32>,
    return
  }
  func.func @transform_0(%arg0: i32) -> (i32, i32) {
    %c0_i32 = arith.constant 0 : i32
    %c0_i32_0 = arith.constant 0 : i32
    return %arg0, %c0_i32 : i32, i32
  }
  func.func @transform_1(%arg0: i32) -> (i32, i32) {
    %c0_i32 = arith.constant 0 : i32
    %c0_i32_0 = arith.constant 0 : i32
    %c0_i32_1 = arith.constant 0 : i32
    return %c0_i32, %c0_i32_0 : i32, i32
  }
  func.func @transform_2(%arg0: i32) -> (i32, i32) {
    %c0_i32 = arith.constant 0 : i32
    %c0_i32_0 = arith.constant 0 : i32
    %c0_i32_1 = arith.constant 0 : i32
    return %c0_i32, %c0_i32_0 : i32, i32
  }
  func.func @transform_3(%arg0: i32) -> (i32, i32) {
    %c0_i32 = arith.constant 0 : i32
    %c0_i32_0 = arith.constant 0 : i32
    return %arg0, %c0_i32 : i32, i32
  }
  func.func @transform_4(%arg0: i32) -> (i32, i32) {
    %c0_i32 = arith.constant 0 : i32
    %c0_i32_0 = arith.constant 0 : i32
    %c0_i32_1 = arith.constant 0 : i32
    return %c0_i32, %c0_i32_0 : i32, i32
  }
  func.func @transform_5(%arg0: i32) -> (i32, i32) {
    %c0_i32 = arith.constant 0 : i32
    %c0_i32_0 = arith.constant 0 : i32
    %c0_i32_1 = arith.constant 0 : i32
    return %c0_i32, %c0_i32_0 : i32, i32
  }
  func.func @transform_6(%arg0: i32) -> (i32, i32) {
    %c0_i32 = arith.constant 0 : i32
    %c0_i32_0 = arith.constant 0 : i32
    return %arg0, %c0_i32 : i32, i32
  }
}

module attributes {stable_mosaic.version = 11 : i64} {
  func.func @_qkv_kernel(%arg0: i32, %arg1: memref<32x128xf32, #tpu.memory_space<vmem>>, %arg2: memref<32x128xf32, #tpu.memory_space<vmem>>, %arg3: memref<128x256xbf16, #tpu.memory_space<vmem>>, %arg4: memref<1x256xf32, #tpu.memory_space<vmem>>, %arg5: memref<128x128xbf16, #tpu.memory_space<vmem>>, %arg6: memref<1x128xf32, #tpu.memory_space<vmem>>, %arg7: memref<32x128xbf16, #tpu.memory_space<vmem>>, %arg8: memref<32x128xbf16, #tpu.memory_space<vmem>>, %arg9: memref<32x128xbf16, #tpu.memory_space<vmem>>) attributes {dimension_semantics = [#tpu.dimension_semantics<parallel>], iteration_bounds = array<i64: 2>, scalar_prefetch = 0 : i64, scratch_operands = 0 : i64, tpu.core_type = #tpu.core_type<tc>, window_params = [{transform_indices = @transform_0, window_bounds = array<i64: 32, 128>}, {transform_indices = @transform_1, window_bounds = array<i64: 32, 128>}, {pipeline_mode = #tpu.pipeline_mode<synchronous>, transform_indices = @transform_2, window_bounds = array<i64: 128, 256>}, {pipeline_mode = #tpu.pipeline_mode<synchronous>, transform_indices = @transform_3, window_bounds = array<i64: 1, 256>}, {pipeline_mode = #tpu.pipeline_mode<synchronous>, transform_indices = @transform_4, window_bounds = array<i64: 128, 128>}, {pipeline_mode = #tpu.pipeline_mode<synchronous>, transform_indices = @transform_5, window_bounds = array<i64: 1, 128>}, {transform_indices = @transform_6, window_bounds = array<i64: 32, 128>}, {transform_indices = @transform_7, window_bounds = array<i64: 32, 128>}, {transform_indices = @transform_8, window_bounds = array<i64: 32, 128>}]} {
    %c0 = arith.constant 0 : index
    %c0_0 = arith.constant 0 : index
    %0 = vector.load %arg1[%c0, %c0_0] : memref<32x128xf32, #tpu.memory_space<vmem>>, vector<32x128xf32>
    %c0_1 = arith.constant 0 : index
    %c0_2 = arith.constant 0 : index
    %1 = vector.load %arg2[%c0_1, %c0_2] : memref<32x128xf32, #tpu.memory_space<vmem>>, vector<32x128xf32>
    %2 = arith.addf %0, %1 : vector<32x128xf32>
    %3 = arith.truncf %2 : vector<32x128xf32> to vector<32x128xbf16>
    %c0_3 = arith.constant 0 : index
    %c0_4 = arith.constant 0 : index
    %4 = vector.load %arg3[%c0_3, %c0_4] : memref<128x256xbf16, #tpu.memory_space<vmem>>, vector<128x256xbf16>
    %cst = arith.constant dense<0.000000e+00> : vector<32x256xf32>
    %5 = tpu.matmul %3, %4, %cst {dimension_numbers = #tpu.dot_dimension_numbers<[1], [0], [0], [1], [0, 0, 1, 1], [], []>} : vector<32x128xbf16>, vector<128x256xbf16>, vector<32x256xf32> -> vector<32x256xf32>
    %c0_5 = arith.constant 0 : index
    %c0_6 = arith.constant 0 : index
    %6 = vector.load %arg4[%c0_5, %c0_6] : memref<1x256xf32, #tpu.memory_space<vmem>>, vector<1x256xf32>
    %7 = vector.broadcast %6 : vector<1x256xf32> to vector<32x256xf32>
    %8 = arith.addf %5, %7 : vector<32x256xf32>
    %9 = vector.extract_strided_slice %8 {offsets = [0, 0], sizes = [32, 128], strides = [1, 1]} : vector<32x256xf32> to vector<32x128xf32>
    %10 = arith.truncf %9 : vector<32x128xf32> to vector<32x128xbf16>
    %c0_7 = arith.constant 0 : index
    %c0_8 = arith.constant 0 : index
    %11 = vector.load %arg7[%c0_7, %c0_8] : memref<32x128xbf16, #tpu.memory_space<vmem>>, vector<32x128xbf16>
    tpu.vector_store %arg7[%c0_7, %c0_8], %10 {strides = array<i32>} : memref<32x128xbf16, #tpu.memory_space<vmem>>, vector<32x128xbf16>,
    %12 = vector.extract_strided_slice %8 {offsets = [0, 128], sizes = [32, 128], strides = [1, 1]} : vector<32x256xf32> to vector<32x128xf32>
    %13 = arith.truncf %12 : vector<32x128xf32> to vector<32x128xbf16>
    %c0_9 = arith.constant 0 : index
    %c0_10 = arith.constant 0 : index
    %14 = vector.load %arg8[%c0_9, %c0_10] : memref<32x128xbf16, #tpu.memory_space<vmem>>, vector<32x128xbf16>
    tpu.vector_store %arg8[%c0_9, %c0_10], %13 {strides = array<i32>} : memref<32x128xbf16, #tpu.memory_space<vmem>>, vector<32x128xbf16>,
    %15 = arith.truncf %0 : vector<32x128xf32> to vector<32x128xbf16>
    %c0_11 = arith.constant 0 : index
    %c0_12 = arith.constant 0 : index
    %16 = vector.load %arg5[%c0_11, %c0_12] : memref<128x128xbf16, #tpu.memory_space<vmem>>, vector<128x128xbf16>
    %cst_13 = arith.constant dense<0.000000e+00> : vector<32x128xf32>
    %17 = tpu.matmul %15, %16, %cst_13 {dimension_numbers = #tpu.dot_dimension_numbers<[1], [0], [0], [1], [0, 0, 1, 1], [], []>} : vector<32x128xbf16>, vector<128x128xbf16>, vector<32x128xf32> -> vector<32x128xf32>
    %c0_14 = arith.constant 0 : index
    %c0_15 = arith.constant 0 : index
    %18 = vector.load %arg6[%c0_14, %c0_15] : memref<1x128xf32, #tpu.memory_space<vmem>>, vector<1x128xf32>
    %19 = vector.broadcast %18 : vector<1x128xf32> to vector<32x128xf32>
    %20 = arith.addf %17, %19 : vector<32x128xf32>
    %21 = arith.truncf %20 : vector<32x128xf32> to vector<32x128xbf16>
    %c0_16 = arith.constant 0 : index
    %c0_17 = arith.constant 0 : index
    %22 = vector.load %arg9[%c0_16, %c0_17] : memref<32x128xbf16, #tpu.memory_space<vmem>>, vector<32x128xbf16>
    tpu.vector_store %arg9[%c0_16, %c0_17], %21 {strides = array<i32>} : memref<32x128xbf16, #tpu.memory_space<vmem>>, vector<32x128xbf16>,
    return
  }
  func.func @transform_0(%arg0: i32) -> (i32, i32) {
    %c0_i32 = arith.constant 0 : i32
    %c0_i32_0 = arith.constant 0 : i32
    return %arg0, %c0_i32 : i32, i32
  }
  func.func @transform_1(%arg0: i32) -> (i32, i32) {
    %c0_i32 = arith.constant 0 : i32
    %c0_i32_0 = arith.constant 0 : i32
    return %arg0, %c0_i32 : i32, i32
  }
  func.func @transform_2(%arg0: i32) -> (i32, i32) {
    %c0_i32 = arith.constant 0 : i32
    %c0_i32_0 = arith.constant 0 : i32
    %c0_i32_1 = arith.constant 0 : i32
    return %c0_i32, %c0_i32_0 : i32, i32
  }
  func.func @transform_3(%arg0: i32) -> (i32, i32) {
    %c0_i32 = arith.constant 0 : i32
    %c0_i32_0 = arith.constant 0 : i32
    %c0_i32_1 = arith.constant 0 : i32
    return %c0_i32, %c0_i32_0 : i32, i32
  }
  func.func @transform_4(%arg0: i32) -> (i32, i32) {
    %c0_i32 = arith.constant 0 : i32
    %c0_i32_0 = arith.constant 0 : i32
    %c0_i32_1 = arith.constant 0 : i32
    return %c0_i32, %c0_i32_0 : i32, i32
  }
  func.func @transform_5(%arg0: i32) -> (i32, i32) {
    %c0_i32 = arith.constant 0 : i32
    %c0_i32_0 = arith.constant 0 : i32
    %c0_i32_1 = arith.constant 0 : i32
    return %c0_i32, %c0_i32_0 : i32, i32
  }
  func.func @transform_6(%arg0: i32) -> (i32, i32) {
    %c0_i32 = arith.constant 0 : i32
    %c0_i32_0 = arith.constant 0 : i32
    return %arg0, %c0_i32 : i32, i32
  }
  func.func @transform_7(%arg0: i32) -> (i32, i32) {
    %c0_i32 = arith.constant 0 : i32
    %c0_i32_0 = arith.constant 0 : i32
    return %arg0, %c0_i32 : i32, i32
  }
  func.func @transform_8(%arg0: i32) -> (i32, i32) {
    %c0_i32 = arith.constant 0 : i32
    %c0_i32_0 = arith.constant 0 : i32
    return %arg0, %c0_i32 : i32, i32
  }
}

module attributes {stable_mosaic.version = 11 : i64} {
  func.func @_ffn_add_ln_kernel(%arg0: i32, %arg1: memref<32x128xf32, #tpu.memory_space<vmem>>, %arg2: memref<128x2048xbf16, #tpu.memory_space<vmem>>, %arg3: memref<1x2048xf32, #tpu.memory_space<vmem>>, %arg4: memref<2048x128xbf16, #tpu.memory_space<vmem>>, %arg5: memref<1x128xf32, #tpu.memory_space<vmem>>, %arg6: memref<1x128xf32, #tpu.memory_space<vmem>>, %arg7: memref<1x128xf32, #tpu.memory_space<vmem>>, %arg8: memref<32x128xf32, #tpu.memory_space<vmem>>) attributes {dimension_semantics = [#tpu.dimension_semantics<parallel>], iteration_bounds = array<i64: 2>, scalar_prefetch = 0 : i64, scratch_operands = 0 : i64, tpu.core_type = #tpu.core_type<tc>, window_params = [{transform_indices = @transform_0, window_bounds = array<i64: 32, 128>}, {pipeline_mode = #tpu.pipeline_mode<synchronous>, transform_indices = @transform_1, window_bounds = array<i64: 128, 2048>}, {pipeline_mode = #tpu.pipeline_mode<synchronous>, transform_indices = @transform_2, window_bounds = array<i64: 1, 2048>}, {pipeline_mode = #tpu.pipeline_mode<synchronous>, transform_indices = @transform_3, window_bounds = array<i64: 2048, 128>}, {pipeline_mode = #tpu.pipeline_mode<synchronous>, transform_indices = @transform_4, window_bounds = array<i64: 1, 128>}, {pipeline_mode = #tpu.pipeline_mode<synchronous>, transform_indices = @transform_5, window_bounds = array<i64: 1, 128>}, {pipeline_mode = #tpu.pipeline_mode<synchronous>, transform_indices = @transform_6, window_bounds = array<i64: 1, 128>}, {transform_indices = @transform_7, window_bounds = array<i64: 32, 128>}]} {
    %c0 = arith.constant 0 : index
    %c0_0 = arith.constant 0 : index
    %0 = vector.load %arg1[%c0, %c0_0] : memref<32x128xf32, #tpu.memory_space<vmem>>, vector<32x128xf32>
    %1 = arith.truncf %0 : vector<32x128xf32> to vector<32x128xbf16>
    %c0_1 = arith.constant 0 : index
    %c0_2 = arith.constant 0 : index
    %2 = vector.load %arg5[%c0_1, %c0_2] : memref<1x128xf32, #tpu.memory_space<vmem>>, vector<1x128xf32>
    %3 = vector.broadcast %2 : vector<1x128xf32> to vector<32x128xf32>
    %4 = arith.addf %0, %3 : vector<32x128xf32>
    %c0_3 = arith.constant 0 : index
    %c0_4 = arith.constant 0 : index
    %5 = vector.load %arg2[%c0_3, %c0_4] : memref<128x2048xbf16, #tpu.memory_space<vmem>>, vector<128x512xbf16>
    %c0_5 = arith.constant 0 : index
    %c0_6 = arith.constant 0 : index
    %6 = vector.load %arg3[%c0_5, %c0_6] : memref<1x2048xf32, #tpu.memory_space<vmem>>, vector<1x512xf32>
    %c0_7 = arith.constant 0 : index
    %c0_8 = arith.constant 0 : index
    %7 = vector.load %arg4[%c0_7, %c0_8] : memref<2048x128xbf16, #tpu.memory_space<vmem>>, vector<512x128xbf16>
    %cst = arith.constant dense<0.000000e+00> : vector<32x512xf32>
    %8 = tpu.matmul %1, %5, %cst {dimension_numbers = #tpu.dot_dimension_numbers<[1], [0], [0], [1], [0, 0, 1, 1], [], []>} : vector<32x128xbf16>, vector<128x512xbf16>, vector<32x512xf32> -> vector<32x512xf32>
    %9 = vector.broadcast %6 : vector<1x512xf32> to vector<32x512xf32>
    %10 = arith.addf %8, %9 : vector<32x512xf32>
    %cst_9 = arith.constant 0.000000e+00 : f32
    %11 = vector.broadcast %cst_9 : f32 to vector<32x512xf32>
    %12 = arith.maximumf %10, %11 : vector<32x512xf32>
    %13 = arith.truncf %12 : vector<32x512xf32> to vector<32x512xbf16>
    %cst_10 = arith.constant dense<0.000000e+00> : vector<32x128xf32>
    %14 = tpu.matmul %13, %7, %cst_10 {dimension_numbers = #tpu.dot_dimension_numbers<[1], [0], [0], [1], [0, 0, 1, 1], [], []>} : vector<32x512xbf16>, vector<512x128xbf16>, vector<32x128xf32> -> vector<32x128xf32>
    %15 = arith.addf %4, %14 : vector<32x128xf32>
    %c0_11 = arith.constant 0 : index
    %c512 = arith.constant 512 : index
    %16 = vector.load %arg2[%c0_11, %c512] : memref<128x2048xbf16, #tpu.memory_space<vmem>>, vector<128x512xbf16>
    %c0_12 = arith.constant 0 : index
    %c512_13 = arith.constant 512 : index
    %17 = vector.load %arg3[%c0_12, %c512_13] : memref<1x2048xf32, #tpu.memory_space<vmem>>, vector<1x512xf32>
    %c512_14 = arith.constant 512 : index
    %c0_15 = arith.constant 0 : index
    %18 = vector.load %arg4[%c512_14, %c0_15] : memref<2048x128xbf16, #tpu.memory_space<vmem>>, vector<512x128xbf16>
    %cst_16 = arith.constant dense<0.000000e+00> : vector<32x512xf32>
    %19 = tpu.matmul %1, %16, %cst_16 {dimension_numbers = #tpu.dot_dimension_numbers<[1], [0], [0], [1], [0, 0, 1, 1], [], []>} : vector<32x128xbf16>, vector<128x512xbf16>, vector<32x512xf32> -> vector<32x512xf32>
    %20 = vector.broadcast %17 : vector<1x512xf32> to vector<32x512xf32>
    %21 = arith.addf %19, %20 : vector<32x512xf32>
    %cst_17 = arith.constant 0.000000e+00 : f32
    %22 = vector.broadcast %cst_17 : f32 to vector<32x512xf32>
    %23 = arith.maximumf %21, %22 : vector<32x512xf32>
    %24 = arith.truncf %23 : vector<32x512xf32> to vector<32x512xbf16>
    %cst_18 = arith.constant dense<0.000000e+00> : vector<32x128xf32>
    %25 = tpu.matmul %24, %18, %cst_18 {dimension_numbers = #tpu.dot_dimension_numbers<[1], [0], [0], [1], [0, 0, 1, 1], [], []>} : vector<32x512xbf16>, vector<512x128xbf16>, vector<32x128xf32> -> vector<32x128xf32>
    %26 = arith.addf %15, %25 : vector<32x128xf32>
    %c0_19 = arith.constant 0 : index
    %c1024 = arith.constant 1024 : index
    %27 = vector.load %arg2[%c0_19, %c1024] : memref<128x2048xbf16, #tpu.memory_space<vmem>>, vector<128x512xbf16>
    %c0_20 = arith.constant 0 : index
    %c1024_21 = arith.constant 1024 : index
    %28 = vector.load %arg3[%c0_20, %c1024_21] : memref<1x2048xf32, #tpu.memory_space<vmem>>, vector<1x512xf32>
    %c1024_22 = arith.constant 1024 : index
    %c0_23 = arith.constant 0 : index
    %29 = vector.load %arg4[%c1024_22, %c0_23] : memref<2048x128xbf16, #tpu.memory_space<vmem>>, vector<512x128xbf16>
    %cst_24 = arith.constant dense<0.000000e+00> : vector<32x512xf32>
    %30 = tpu.matmul %1, %27, %cst_24 {dimension_numbers = #tpu.dot_dimension_numbers<[1], [0], [0], [1], [0, 0, 1, 1], [], []>} : vector<32x128xbf16>, vector<128x512xbf16>, vector<32x512xf32> -> vector<32x512xf32>
    %31 = vector.broadcast %28 : vector<1x512xf32> to vector<32x512xf32>
    %32 = arith.addf %30, %31 : vector<32x512xf32>
    %cst_25 = arith.constant 0.000000e+00 : f32
    %33 = vector.broadcast %cst_25 : f32 to vector<32x512xf32>
    %34 = arith.maximumf %32, %33 : vector<32x512xf32>
    %35 = arith.truncf %34 : vector<32x512xf32> to vector<32x512xbf16>
    %cst_26 = arith.constant dense<0.000000e+00> : vector<32x128xf32>
    %36 = tpu.matmul %35, %29, %cst_26 {dimension_numbers = #tpu.dot_dimension_numbers<[1], [0], [0], [1], [0, 0, 1, 1], [], []>} : vector<32x512xbf16>, vector<512x128xbf16>, vector<32x128xf32> -> vector<32x128xf32>
    %37 = arith.addf %26, %36 : vector<32x128xf32>
    %c0_27 = arith.constant 0 : index
    %c1536 = arith.constant 1536 : index
    %38 = vector.load %arg2[%c0_27, %c1536] : memref<128x2048xbf16, #tpu.memory_space<vmem>>, vector<128x512xbf16>
    %c0_28 = arith.constant 0 : index
    %c1536_29 = arith.constant 1536 : index
    %39 = vector.load %arg3[%c0_28, %c1536_29] : memref<1x2048xf32, #tpu.memory_space<vmem>>, vector<1x512xf32>
    %c1536_30 = arith.constant 1536 : index
    %c0_31 = arith.constant 0 : index
    %40 = vector.load %arg4[%c1536_30, %c0_31] : memref<2048x128xbf16, #tpu.memory_space<vmem>>, vector<512x128xbf16>
    %cst_32 = arith.constant dense<0.000000e+00> : vector<32x512xf32>
    %41 = tpu.matmul %1, %38, %cst_32 {dimension_numbers = #tpu.dot_dimension_numbers<[1], [0], [0], [1], [0, 0, 1, 1], [], []>} : vector<32x128xbf16>, vector<128x512xbf16>, vector<32x512xf32> -> vector<32x512xf32>
    %42 = vector.broadcast %39 : vector<1x512xf32> to vector<32x512xf32>
    %43 = arith.addf %41, %42 : vector<32x512xf32>
    %cst_33 = arith.constant 0.000000e+00 : f32
    %44 = vector.broadcast %cst_33 : f32 to vector<32x512xf32>
    %45 = arith.maximumf %43, %44 : vector<32x512xf32>
    %46 = arith.truncf %45 : vector<32x512xf32> to vector<32x512xbf16>
    %cst_34 = arith.constant dense<0.000000e+00> : vector<32x128xf32>
    %47 = tpu.matmul %46, %40, %cst_34 {dimension_numbers = #tpu.dot_dimension_numbers<[1], [0], [0], [1], [0, 0, 1, 1], [], []>} : vector<32x512xbf16>, vector<512x128xbf16>, vector<32x128xf32> -> vector<32x128xf32>
    %48 = arith.addf %37, %47 : vector<32x128xf32>
    %cst_35 = arith.constant dense<0.000000e+00> : vector<32xf32>
    %49 = vector.multi_reduction <add>, %48, %cst_35 [1] : vector<32x128xf32> to vector<32xf32>
    %50 = vector.shape_cast %49 : vector<32xf32> to vector<32x1xf32>
    %cst_36 = arith.constant 1.280000e+02 : f32
    %51 = vector.broadcast %cst_36 : f32 to vector<32x1xf32>
    %52 = arith.divf %50, %51 : vector<32x1xf32>
    %53 = vector.broadcast %52 : vector<32x1xf32> to vector<32x128xf32>
    %54 = arith.subf %48, %53 : vector<32x128xf32>
    %55 = arith.mulf %54, %54 : vector<32x128xf32>
    %cst_37 = arith.constant dense<0.000000e+00> : vector<32xf32>
    %56 = vector.multi_reduction <add>, %55, %cst_37 [1] : vector<32x128xf32> to vector<32xf32>
    %57 = vector.shape_cast %56 : vector<32xf32> to vector<32x1xf32>
    %cst_38 = arith.constant 1.280000e+02 : f32
    %58 = vector.broadcast %cst_38 : f32 to vector<32x1xf32>
    %59 = arith.divf %57, %58 : vector<32x1xf32>
    %60 = vector.broadcast %52 : vector<32x1xf32> to vector<32x128xf32>
    %61 = arith.subf %48, %60 : vector<32x128xf32>
    %cst_39 = arith.constant 9.99999974E-6 : f32
    %62 = vector.broadcast %cst_39 : f32 to vector<32x1xf32>
    %63 = arith.addf %59, %62 : vector<32x1xf32>
    %64 = math.rsqrt %63 : vector<32x1xf32>
    %65 = vector.broadcast %64 : vector<32x1xf32> to vector<32x128xf32>
    %66 = arith.mulf %61, %65 : vector<32x128xf32>
    %c0_40 = arith.constant 0 : index
    %c0_41 = arith.constant 0 : index
    %67 = vector.load %arg6[%c0_40, %c0_41] : memref<1x128xf32, #tpu.memory_space<vmem>>, vector<1x128xf32>
    %68 = vector.broadcast %67 : vector<1x128xf32> to vector<32x128xf32>
    %69 = arith.mulf %66, %68 : vector<32x128xf32>
    %c0_42 = arith.constant 0 : index
    %c0_43 = arith.constant 0 : index
    %70 = vector.load %arg7[%c0_42, %c0_43] : memref<1x128xf32, #tpu.memory_space<vmem>>, vector<1x128xf32>
    %71 = vector.broadcast %70 : vector<1x128xf32> to vector<32x128xf32>
    %72 = arith.addf %69, %71 : vector<32x128xf32>
    %c0_44 = arith.constant 0 : index
    %c0_45 = arith.constant 0 : index
    %73 = vector.load %arg8[%c0_44, %c0_45] : memref<32x128xf32, #tpu.memory_space<vmem>>, vector<32x128xf32>
    tpu.vector_store %arg8[%c0_44, %c0_45], %72 {strides = array<i32>} : memref<32x128xf32, #tpu.memory_space<vmem>>, vector<32x128xf32>,
    return
  }
  func.func @transform_0(%arg0: i32) -> (i32, i32) {
    %c0_i32 = arith.constant 0 : i32
    %c0_i32_0 = arith.constant 0 : i32
    return %arg0, %c0_i32 : i32, i32
  }
  func.func @transform_1(%arg0: i32) -> (i32, i32) {
    %c0_i32 = arith.constant 0 : i32
    %c0_i32_0 = arith.constant 0 : i32
    %c0_i32_1 = arith.constant 0 : i32
    return %c0_i32, %c0_i32_0 : i32, i32
  }
  func.func @transform_2(%arg0: i32) -> (i32, i32) {
    %c0_i32 = arith.constant 0 : i32
    %c0_i32_0 = arith.constant 0 : i32
    %c0_i32_1 = arith.constant 0 : i32
    return %c0_i32, %c0_i32_0 : i32, i32
  }
  func.func @transform_3(%arg0: i32) -> (i32, i32) {
    %c0_i32 = arith.constant 0 : i32
    %c0_i32_0 = arith.constant 0 : i32
    %c0_i32_1 = arith.constant 0 : i32
    return %c0_i32, %c0_i32_0 : i32, i32
  }
  func.func @transform_4(%arg0: i32) -> (i32, i32) {
    %c0_i32 = arith.constant 0 : i32
    %c0_i32_0 = arith.constant 0 : i32
    %c0_i32_1 = arith.constant 0 : i32
    return %c0_i32, %c0_i32_0 : i32, i32
  }
  func.func @transform_5(%arg0: i32) -> (i32, i32) {
    %c0_i32 = arith.constant 0 : i32
    %c0_i32_0 = arith.constant 0 : i32
    %c0_i32_1 = arith.constant 0 : i32
    return %c0_i32, %c0_i32_0 : i32, i32
  }
  func.func @transform_6(%arg0: i32) -> (i32, i32) {
    %c0_i32 = arith.constant 0 : i32
    %c0_i32_0 = arith.constant 0 : i32
    %c0_i32_1 = arith.constant 0 : i32
    return %c0_i32, %c0_i32_0 : i32, i32
  }
  func.func @transform_7(%arg0: i32) -> (i32, i32) {
    %c0_i32 = arith.constant 0 : i32
    %c0_i32_0 = arith.constant 0 : i32
    return %arg0, %c0_i32 : i32, i32
  }
}

module attributes {stable_mosaic.version = 11 : i64} {
  func.func @_head_kernel(%arg0: memref<64x128xf32, #tpu.memory_space<vmem>>, %arg1: memref<128x128xbf16, #tpu.memory_space<vmem>>, %arg2: memref<1x128xf32, #tpu.memory_space<vmem>>, %arg3: memref<1x128xf32, #tpu.memory_space<vmem>>, %arg4: memref<1x128xf32, #tpu.memory_space<vmem>>, %arg5: memref<128x128xbf16, #tpu.memory_space<vmem>>, %arg6: memref<1x128xf32, #tpu.memory_space<vmem>>, %arg7: memref<1x128xf32, #tpu.memory_space<vmem>>, %arg8: memref<1x128xf32, #tpu.memory_space<vmem>>, %arg9: memref<128x128xbf16, #tpu.memory_space<vmem>>, %arg10: memref<1x128xf32, #tpu.memory_space<vmem>>, %arg11: memref<64x128xf32, #tpu.memory_space<vmem>>) attributes {dimension_semantics = [], scalar_prefetch = 0 : i64, scratch_operands = 0 : i64, tpu.core_type = #tpu.core_type<tc>} {
    %c0 = arith.constant 0 : index
    %c0_0 = arith.constant 0 : index
    %0 = vector.load %arg0[%c0, %c0_0] : memref<64x128xf32, #tpu.memory_space<vmem>>, vector<64x128xf32>
    %1 = arith.truncf %0 : vector<64x128xf32> to vector<64x128xbf16>
    %c0_1 = arith.constant 0 : index
    %c0_2 = arith.constant 0 : index
    %2 = vector.load %arg1[%c0_1, %c0_2] : memref<128x128xbf16, #tpu.memory_space<vmem>>, vector<128x128xbf16>
    %cst = arith.constant dense<0.000000e+00> : vector<64x128xf32>
    %3 = tpu.matmul %1, %2, %cst {dimension_numbers = #tpu.dot_dimension_numbers<[1], [0], [0], [1], [0, 0, 1, 1], [], []>} : vector<64x128xbf16>, vector<128x128xbf16>, vector<64x128xf32> -> vector<64x128xf32>
    %c0_3 = arith.constant 0 : index
    %c0_4 = arith.constant 0 : index
    %4 = vector.load %arg2[%c0_3, %c0_4] : memref<1x128xf32, #tpu.memory_space<vmem>>, vector<1x128xf32>
    %5 = vector.broadcast %4 : vector<1x128xf32> to vector<64x128xf32>
    %6 = arith.addf %3, %5 : vector<64x128xf32>
    %cst_5 = arith.constant dense<0.000000e+00> : vector<128xf32>
    %7 = vector.multi_reduction <add>, %6, %cst_5 [0] : vector<64x128xf32> to vector<128xf32>
    %8 = vector.shape_cast %7 : vector<128xf32> to vector<1x128xf32>
    %cst_6 = arith.constant 6.400000e+01 : f32
    %9 = vector.broadcast %cst_6 : f32 to vector<1x128xf32>
    %10 = arith.divf %8, %9 : vector<1x128xf32>
    %11 = vector.broadcast %10 : vector<1x128xf32> to vector<64x128xf32>
    %12 = arith.subf %6, %11 : vector<64x128xf32>
    %13 = arith.mulf %12, %12 : vector<64x128xf32>
    %cst_7 = arith.constant dense<0.000000e+00> : vector<128xf32>
    %14 = vector.multi_reduction <add>, %13, %cst_7 [0] : vector<64x128xf32> to vector<128xf32>
    %15 = vector.shape_cast %14 : vector<128xf32> to vector<1x128xf32>
    %cst_8 = arith.constant 6.400000e+01 : f32
    %16 = vector.broadcast %cst_8 : f32 to vector<1x128xf32>
    %17 = arith.divf %15, %16 : vector<1x128xf32>
    %18 = vector.broadcast %10 : vector<1x128xf32> to vector<64x128xf32>
    %19 = arith.subf %6, %18 : vector<64x128xf32>
    %cst_9 = arith.constant 9.99999974E-6 : f32
    %20 = vector.broadcast %cst_9 : f32 to vector<1x128xf32>
    %21 = arith.addf %17, %20 : vector<1x128xf32>
    %22 = math.rsqrt %21 : vector<1x128xf32>
    %23 = vector.broadcast %22 : vector<1x128xf32> to vector<64x128xf32>
    %24 = arith.mulf %19, %23 : vector<64x128xf32>
    %c0_10 = arith.constant 0 : index
    %c0_11 = arith.constant 0 : index
    %25 = vector.load %arg3[%c0_10, %c0_11] : memref<1x128xf32, #tpu.memory_space<vmem>>, vector<1x128xf32>
    %26 = vector.broadcast %25 : vector<1x128xf32> to vector<64x128xf32>
    %27 = arith.mulf %24, %26 : vector<64x128xf32>
    %c0_12 = arith.constant 0 : index
    %c0_13 = arith.constant 0 : index
    %28 = vector.load %arg4[%c0_12, %c0_13] : memref<1x128xf32, #tpu.memory_space<vmem>>, vector<1x128xf32>
    %29 = vector.broadcast %28 : vector<1x128xf32> to vector<64x128xf32>
    %30 = arith.addf %27, %29 : vector<64x128xf32>
    %cst_14 = arith.constant 0.000000e+00 : f32
    %31 = vector.broadcast %cst_14 : f32 to vector<64x128xf32>
    %32 = arith.maximumf %30, %31 : vector<64x128xf32>
    %33 = arith.truncf %32 : vector<64x128xf32> to vector<64x128xbf16>
    %c0_15 = arith.constant 0 : index
    %c0_16 = arith.constant 0 : index
    %34 = vector.load %arg5[%c0_15, %c0_16] : memref<128x128xbf16, #tpu.memory_space<vmem>>, vector<128x128xbf16>
    %cst_17 = arith.constant dense<0.000000e+00> : vector<64x128xf32>
    %35 = tpu.matmul %33, %34, %cst_17 {dimension_numbers = #tpu.dot_dimension_numbers<[1], [0], [0], [1], [0, 0, 1, 1], [], []>} : vector<64x128xbf16>, vector<128x128xbf16>, vector<64x128xf32> -> vector<64x128xf32>
    %c0_18 = arith.constant 0 : index
    %c0_19 = arith.constant 0 : index
    %36 = vector.load %arg6[%c0_18, %c0_19] : memref<1x128xf32, #tpu.memory_space<vmem>>, vector<1x128xf32>
    %37 = vector.broadcast %36 : vector<1x128xf32> to vector<64x128xf32>
    %38 = arith.addf %35, %37 : vector<64x128xf32>
    %cst_20 = arith.constant dense<0.000000e+00> : vector<128xf32>
    %39 = vector.multi_reduction <add>, %38, %cst_20 [0] : vector<64x128xf32> to vector<128xf32>
    %40 = vector.shape_cast %39 : vector<128xf32> to vector<1x128xf32>
    %cst_21 = arith.constant 6.400000e+01 : f32
    %41 = vector.broadcast %cst_21 : f32 to vector<1x128xf32>
    %42 = arith.divf %40, %41 : vector<1x128xf32>
    %43 = vector.broadcast %42 : vector<1x128xf32> to vector<64x128xf32>
    %44 = arith.subf %38, %43 : vector<64x128xf32>
    %45 = arith.mulf %44, %44 : vector<64x128xf32>
    %cst_22 = arith.constant dense<0.000000e+00> : vector<128xf32>
    %46 = vector.multi_reduction <add>, %45, %cst_22 [0] : vector<64x128xf32> to vector<128xf32>
    %47 = vector.shape_cast %46 : vector<128xf32> to vector<1x128xf32>
    %cst_23 = arith.constant 6.400000e+01 : f32
    %48 = vector.broadcast %cst_23 : f32 to vector<1x128xf32>
    %49 = arith.divf %47, %48 : vector<1x128xf32>
    %50 = vector.broadcast %42 : vector<1x128xf32> to vector<64x128xf32>
    %51 = arith.subf %38, %50 : vector<64x128xf32>
    %cst_24 = arith.constant 9.99999974E-6 : f32
    %52 = vector.broadcast %cst_24 : f32 to vector<1x128xf32>
    %53 = arith.addf %49, %52 : vector<1x128xf32>
    %54 = math.rsqrt %53 : vector<1x128xf32>
    %55 = vector.broadcast %54 : vector<1x128xf32> to vector<64x128xf32>
    %56 = arith.mulf %51, %55 : vector<64x128xf32>
    %c0_25 = arith.constant 0 : index
    %c0_26 = arith.constant 0 : index
    %57 = vector.load %arg7[%c0_25, %c0_26] : memref<1x128xf32, #tpu.memory_space<vmem>>, vector<1x128xf32>
    %58 = vector.broadcast %57 : vector<1x128xf32> to vector<64x128xf32>
    %59 = arith.mulf %56, %58 : vector<64x128xf32>
    %c0_27 = arith.constant 0 : index
    %c0_28 = arith.constant 0 : index
    %60 = vector.load %arg8[%c0_27, %c0_28] : memref<1x128xf32, #tpu.memory_space<vmem>>, vector<1x128xf32>
    %61 = vector.broadcast %60 : vector<1x128xf32> to vector<64x128xf32>
    %62 = arith.addf %59, %61 : vector<64x128xf32>
    %cst_29 = arith.constant 0.000000e+00 : f32
    %63 = vector.broadcast %cst_29 : f32 to vector<64x128xf32>
    %64 = arith.maximumf %62, %63 : vector<64x128xf32>
    %65 = arith.truncf %64 : vector<64x128xf32> to vector<64x128xbf16>
    %c0_30 = arith.constant 0 : index
    %c0_31 = arith.constant 0 : index
    %66 = vector.load %arg9[%c0_30, %c0_31] : memref<128x128xbf16, #tpu.memory_space<vmem>>, vector<128x128xbf16>
    %cst_32 = arith.constant dense<0.000000e+00> : vector<64x128xf32>
    %67 = tpu.matmul %65, %66, %cst_32 {dimension_numbers = #tpu.dot_dimension_numbers<[1], [0], [0], [1], [0, 0, 1, 1], [], []>} : vector<64x128xbf16>, vector<128x128xbf16>, vector<64x128xf32> -> vector<64x128xf32>
    %c0_33 = arith.constant 0 : index
    %c0_34 = arith.constant 0 : index
    %68 = vector.load %arg10[%c0_33, %c0_34] : memref<1x128xf32, #tpu.memory_space<vmem>>, vector<1x128xf32>
    %69 = vector.broadcast %68 : vector<1x128xf32> to vector<64x128xf32>
    %70 = arith.addf %67, %69 : vector<64x128xf32>
    %71 = arith.negf %70 : vector<64x128xf32>
    %72 = math.exp %71 : vector<64x128xf32>
    %cst_35 = arith.constant 1.000000e+00 : f32
    %73 = vector.broadcast %cst_35 : f32 to vector<64x128xf32>
    %74 = arith.addf %73, %72 : vector<64x128xf32>
    %75 = arith.divf %73, %74 : vector<64x128xf32>
    %c0_36 = arith.constant 0 : index
    %c0_37 = arith.constant 0 : index
    %76 = vector.load %arg11[%c0_36, %c0_37] : memref<64x128xf32, #tpu.memory_space<vmem>>, vector<64x128xf32>
    tpu.vector_store %arg11[%c0_36, %c0_37], %75 {strides = array<i32>} : memref<64x128xf32, #tpu.memory_space<vmem>>, vector<64x128xf32>,
    return
  }
}

</mosaic_0001>

<bundles_post_ra>
// kernel: mtr2_forward.27
= control target key start
LH: loop header
LB: loop body
LE: loop exit
PB: predicated region body
PF: predicated region fallthrough
CT: control target
= control target key end

     0   :  { %14 = vsyncpa [#allocation5], 0  ;;  %s742_s0 = inlined_call_operand.vmem [shape: f32[4,512], index: 0, kind: input, shape index: {}]   ;;  %s743_s1 = inlined_call_operand.<no memory space> [shape: f32[1], index: 1, kind: input, shape index: {}]   ;;  %s744_s2 = inlined_call_operand.<no memory space> [shape: f32[1], index: 2, kind: input, shape index: {}]   ;;  %s745_s3 = inlined_call_operand.vmem [shape: f32[16], index: 3, kind: input, shape index: {}]   ;;  %s746_s4 = inlined_call_operand.vmem [shape: f32[16], index: 4, kind: input, shape index: {}]   ;;  %s747_s5 = inlined_call_operand.vmem [shape: f32[4,512], index: 5, kind: output, shape index: {0}]   ;;  %s748_s6 = inlined_call_operand.vmem [shape: f32[16,4,512], index: 6, kind: output, shape index: {1}]  }
   0x1   :  { %s27_s23 = sshll.u32 %s745_s3, 4  ;;  %s28_s23 = int_to_ptr.vmem [resolvable:$true] %s27_s23 }
   0x2   :  { %15 = vsyncpa [#allocation7], 0  ;;  %s36_s26 = sshll.u32 %s746_s4, 4  ;;  %s416_s27 = smov [#allocation4]   ;;  %s37_s26 = int_to_ptr.vmem [resolvable:$true] %s36_s26 }
   0x3   :  { %30 = dma.vmem_to_smem %s28_s23, 16, %s416_s27, [#allocation5]  }
   0x4   :  { %s417_s28 = smov [#allocation6]  }
   0x5   :  { %39 = dma.vmem_to_smem %s37_s26, 16, %s417_s28, [#allocation7]  }
   0x6   :  { %412 = dma.done.wait [#allocation5], 16  }
   0x7   :  { %413 = vsyncadd [#allocation5], 4294967280 }
   0x8   :  { %414 = dma.done.wait [#allocation7], 16  }
   0x9   :  { %415 = vsyncadd [#allocation7], 4294967280 }
   0xa   :  { %48 = sfence }
   0xb   :  { %v462_v0 = vld [vmem:[%s742_s0] sm:$0xff]  ;;  %v52_v1 = vstv %s743_s1  ;;  %v56_v2 = vstv %s744_s2  ;;  %v473_v3 = vld [vmem:[%s742_s0 + $0x8] sm:$0xff]  ;;  %s99_s11 = sld [smem:[#allocation4]] }
   0xc   :  { %v53_v4 = vmul.f32 %v52_v1, %v462_v0  ;;  %v54_v5 = vmul.f32 %v52_v1, %v473_v3  ;;  %s103_s12 = sld [smem:[#allocation6]] }
   0xd   :  { %s318_s13 = sld [smem:[#allocation4 + $0x1]] }
   0xe   :  { %v57_v6 = vadd.f32 %v56_v2, %v53_v4  ;;  %v58_v7 = vadd.f32 %v56_v2, %v54_v5  ;;  %s319_s14 = sld [smem:[#allocation6 + $0x1]] }
   0xf   :  { %s322_s1 = sld [smem:[#allocation4 + $0x2]] }
  0x10   :  { %v316_v8 = vmul.f32 -1.442695, %v57_v6  ;;  %v317_v9 = vmul.f32 -1.442695, %v58_v7  ;;  %s477_s15 = sld [smem:[#allocation6 + $0x2]] }
  0x11   :  { %v100_v10 = vstv %s99_s11  ;;  %s479_s2 = sld [smem:[#allocation4 + $0x3]] }
  0x12   :  { %380 = vpow2.f32 %v316_v8  ;;  %v101_v11 = vmul.f32 %v100_v10, %v462_v0  ;;  %v104_v12 = vstv %s103_s12  ;;  %v102_v13 = vmul.f32 %v100_v10, %v473_v3  ;;  %s483_s0 = sld [smem:[#allocation6 + $0x3]] }
  0x13   :  { %382 = vpow2.f32 %v317_v9  ;;  %v112_v14 = vstv %s318_s13  ;;  %s485_s16 = sld [smem:[#allocation4 + $0x4]] }
  0x14   :  { %v105_v15 = vadd.f32 %v104_v12, %v101_v11  ;;  %v106_v16 = vadd.f32 %v104_v12, %v102_v13  ;;  %v113_v17 = vmul.f32 %v112_v14, %v462_v0  ;;  %v116_v18 = vstv %s319_s14  ;;  %s488_s17 = sld [smem:[#allocation6 + $0x4]] }
  0x15   :  { %v114_v19 = vmul.f32 %v112_v14, %v473_v3  ;;  %v125_v20 = vstv %s322_s1  ;;  %s491_s18 = sld [smem:[#allocation4 + $0x5]] }
  0x16   :  { %v107_v21 = vmax.f32 %v105_v15, 0.0  ;;  %v108_v22 = vmax.f32 %v106_v16, 0.0  ;;  %v117_v23 = vadd.f32 %v116_v18, %v113_v17  ;;  %v126_v24 = vmul.f32 %v125_v20, %v462_v0  ;;  %s494_s19 = sld [smem:[#allocation6 + $0x5]] }
  0x17   :  { %v118_v25 = vadd.f32 %v116_v18, %v114_v19  ;;  %v129_v26 = vstv %s477_s15  ;;  %v127_v27 = vmul.f32 %v125_v20, %v473_v3  ;;  %v138_v28 = vstv %s479_s2  ;;  %s499_s20 = sld [smem:[#allocation4 + $0x6]] }
  0x18   :  { %v381_v29 = vpop.eup %380  ;;  %109 = vst [vmem:[%s748_s6] sm:$0xff] %v107_v21  ;;  %v119_v30 = vmax.f32 %v117_v23, 0.0  ;;  %v130_v31 = vadd.f32 %v129_v26, %v126_v24  ;;  %v139_v32 = vmul.f32 %v138_v28, %v462_v0  ;;  %v142_v33 = vstv %s483_s0  ;;  %s506_s23 = sld [smem:[#allocation6 + $0x6]] }
  0x19   :  { %v383_v34 = vpop.eup %382  ;;  %v508_v35 = vadd.f32 1.0, %v381_v29  ;;  %110 = vst [vmem:[%s748_s6 + $0x8] sm:$0xff] %v108_v22  ;;  %v120_v36 = vmax.f32 %v118_v25, 0.0  ;;  %v131_v37 = vadd.f32 %v129_v26, %v127_v27  ;;  %s513_s26 = sld [smem:[#allocation4 + $0x7]]  ;;  %v140_v41 = vmul.f32 %v138_v28, %v473_v3 }
  0x1a   :  { %v515_v38 = vadd.f32 1.0, %v383_v34  ;;  %320 = vst [vmem:[%s748_s6 + $0x10] sm:$0xff] %v119_v30  ;;  %v132_v39 = vmax.f32 %v130_v31, 0.0  ;;  %v143_v40 = vadd.f32 %v142_v33, %v139_v32  ;;  %v151_v43 = vstv %s485_s16  ;;  %s536_s4 = sld [smem:[#allocation6 + $0x7]] }
  0x1b   :  { %384 = vrcp.f32 %v508_v35  ;;  %v78_v42 = vand.u32 2147483648, %v508_v35  ;;  %321 = vst [vmem:[%s748_s6 + $0x18] sm:$0xff] %v120_v36  ;;  %vm72_vm0 = vweird.f32 %v508_v35  ;;  %v76_v44 = vand.u32 2147483647, %v508_v35  ;;  %s543_s8 = sld [smem:[#allocation4 + $0x8]] }
  0x1c   :  { %386 = vrcp.f32 %v515_v38  ;;  %v93_v45 = vand.u32 2147483648, %v515_v38  ;;  %324 = vst [vmem:[%s748_s6 + $0x20] sm:$0xff] %v132_v39  ;;  %vm87_vm1 = vweird.f32 %v515_v38  ;;  %v91_v46 = vand.u32 2147483647, %v515_v38  ;;  %s552_s11 = sld [smem:[#allocation6 + $0x8]] }
  0x1d   :  { %v133_v47 = vmax.f32 %v131_v37, 0.0  ;;  %v145_v48 = vmax.f32 %v143_v40, 0.0  ;;  %v538_v49 = vor.u32 1.1754944e-38, %v78_v42  ;;  %v144_v51 = vadd.f32 %v142_v33, %v140_v41  ;;  %s570_s14 = sld [smem:[#allocation4 + $0x9]] }
  0x1e   :  { %v540_v50 = vor.u32 1.1754944e-38, %v93_v45  ;;  %v152_v52 = vmul.f32 %v151_v43, %v462_v0  ;;  %v155_v53 = vstv %s488_s17  ;;  %v153_v54 = vmul.f32 %v151_v43, %v473_v3  ;;  %s576_s2 = sld [smem:[#allocation6 + $0x9]] }
  0x1f   :  { %325 = vst [vmem:[%s748_s6 + $0x28] sm:$0xff] %v133_v47  ;;  %v164_v55 = vstv %s491_s18  ;;  %v168_v56 = vstv %s494_s19  ;;  %vm554_vm2 = vcmp.eq.f32.partialorder %v76_v44, 8.507059e+37  ;;  %v146_v58 = vmax.f32 %v144_v51, 0.0  ;;  %s584_s17 = sld [smem:[#allocation4 + $0xa]] }
  0x20   :  { %328 = vst [vmem:[%s748_s6 + $0x30] sm:$0xff] %v145_v48  ;;  %v156_v59 = vadd.f32 %v155_v53, %v152_v52  ;;  %v165_v60 = vmul.f32 %v164_v55, %v462_v0  ;;  %v166_v61 = vmul.f32 %v164_v55, %v473_v3  ;;  %vm563_vm3 = vcmp.eq.f32.partialorder %v91_v46, 8.507059e+37  ;;  %s620_s27 = sld [smem:[#allocation4 + $0xc]] }
  0x21   :  { %v385_v62 = vpop.eup %384  ;;  %v157_v1 = vadd.f32 %v155_v53, %v153_v54  ;;  %v177_v2 = vstv %s499_s20  ;;  %v181_v4 = vstv %s506_s23  ;;  %v190_v5 = vstv %s513_s26  ;;  %329 = vst [vmem:[%s748_s6 + $0x38] sm:$0xff] %v146_v58  ;;  %s591_s20 = sld [smem:[#allocation6 + $0xa]] }
  0x22   :  { %v387_v6 = vpop.eup %386  ;;  %v68_v7 = vmul.f32 %v385_v62, %v508_v35  ;;  %vm73_vm4 = vweird.f32 %v385_v62  ;;  %v158_v8 = vmax.f32 %v156_v59, 0.0  ;;  %v169_v9 = vadd.f32 %v168_v56, %v165_v60  ;;  %s597_s23 = sld [smem:[#allocation4 + $0xb]] }
  0x23   :  { %v83_v10 = vmul.f32 %v387_v6, %v515_v38  ;;  %vm88_vm5 = vweird.f32 %v387_v6  ;;  %v159_v11 = vmax.f32 %v157_v1, 0.0  ;;  %v170_v12 = vadd.f32 %v168_v56, %v166_v61  ;;  %vm602_vm6 = vmor %vm72_vm0, %vm73_vm4  ;;  %s611_s26 = sld [smem:[#allocation6 + $0xb]] }
  0x24   :  { %v69_v13 = vsub.f32 1.0, %v68_v7  ;;  %332 = vst [vmem:[%s748_s6 + $0x40] sm:$0xff] %v158_v8  ;;  %v171_v14 = vmax.f32 %v169_v9, 0.0  ;;  %v178_v15 = vmul.f32 %v177_v2, %v462_v0  ;;  %v179_v16 = vmul.f32 %v177_v2, %v473_v3  ;;  %vm616_vm7 = vmor %vm87_vm1, %vm88_vm5  ;;  %s624_s28 = sld [smem:[#allocation6 + $0xc]] }
  0x25   :  { %v84_v17 = vsub.f32 1.0, %v83_v10  ;;  %333 = vst [vmem:[%s748_s6 + $0x48] sm:$0xff] %v159_v11  ;;  %v172_v18 = vmax.f32 %v170_v12, 0.0  ;;  %v191_v19 = vmul.f32 %v190_v5, %v462_v0  ;;  %v194_v20 = vstv %s536_s4  ;;  %s633_s3 = sld [smem:[#allocation4 + $0xd]] }
  0x26   :  { %v70_v21 = vmul.f32 %v385_v62, %v69_v13  ;;  %336 = vst [vmem:[%s748_s6 + $0x50] sm:$0xff] %v171_v14  ;;  %v182_v22 = vadd.f32 %v181_v4, %v178_v15  ;;  %v183_v23 = vadd.f32 %v181_v4, %v179_v16  ;;  %v192_v24 = vmul.f32 %v190_v5, %v473_v3  ;;  %s676_s16 = sld [smem:[#allocation6 + $0xf]] }
  0x27   :  { %v85_v26 = vmul.f32 %v387_v6, %v84_v17  ;;  %337 = vst [vmem:[%s748_s6 + $0x58] sm:$0xff] %v172_v18  ;;  %v195_v27 = vadd.f32 %v194_v20, %v191_v19  ;;  %v203_v28 = vstv %s543_s8  ;;  %v207_v29 = vstv %s552_s11  ;;  %s643_s8 = sld [smem:[#allocation6 + $0xd]] }
  0x28   :  { %v71_v30 = vadd.f32 %v385_v62, %v70_v21  ;;  %v184_v32 = vmax.f32 %v182_v22, 0.0  ;;  %v185_v33 = vmax.f32 %v183_v23, 0.0  ;;  %v196_v34 = vadd.f32 %v194_v20, %v192_v24  ;;  %s654_s11 = sld [smem:[#allocation4 + $0xe]] }
  0x29   :  { %v86_v35 = vadd.f32 %v387_v6, %v85_v26  ;;  %v197_v36 = vmax.f32 %v195_v27, 0.0  ;;  %v204_v37 = vmul.f32 %v203_v28, %v462_v0  ;;  %v205_v39 = vmul.f32 %v203_v28, %v473_v3 }
  0x2a   :  { %v75_v38 = vsel %vm602_vm6, %v385_v62, %v71_v30  ;;  %340 = vst [vmem:[%s748_s6 + $0x60] sm:$0xff] %v184_v32  ;;  %v198_v40 = vmax.f32 %v196_v34, 0.0  ;;  %v216_v41 = vstv %s570_s14  ;;  %v220_v42 = vstv %s576_s2  ;;  %s661_s14 = sld [smem:[#allocation6 + $0xe]] }
  0x2b   :  { %v80_v43 = vsel %vm554_vm2, %v538_v49, %v75_v38  ;;  %v90_v44 = vsel %vm616_vm7, %v387_v6, %v86_v35  ;;  %341 = vst [vmem:[%s748_s6 + $0x68] sm:$0xff] %v185_v33  ;;  %v208_v45 = vadd.f32 %v207_v29, %v204_v37  ;;  %v209_v46 = vadd.f32 %v207_v29, %v205_v39  ;;  %s668_s2 = sld [smem:[#allocation4 + $0xf]] }
  0x2c   :  { %97 = vst [vmem:[%s747_s5] sm:$0xff] %v80_v43  ;;  %v95_v47 = vsel %vm563_vm3, %v540_v50, %v90_v44  ;;  %v217_v48 = vmul.f32 %v216_v41, %v462_v0  ;;  %v218_v49 = vmul.f32 %v216_v41, %v473_v3  ;;  %v229_v51 = vstv %s584_s17 }
  0x2d   :  { %98 = vst [vmem:[%s747_s5 + $0x8] sm:$0xff] %v95_v47  ;;  %v210_v52 = vmax.f32 %v208_v45, 0.0  ;;  %v211_v53 = vmax.f32 %v209_v46, 0.0  ;;  %v230_v54 = vmul.f32 %v229_v51, %v462_v0  ;;  %v233_v55 = vstv %s591_s20 }
  0x2e   :  { %344 = vst [vmem:[%s748_s6 + $0x70] sm:$0xff] %v197_v36  ;;  %v221_v50 = vadd.f32 %v220_v42, %v217_v48  ;;  %v222_v56 = vadd.f32 %v220_v42, %v218_v49  ;;  %v231_v57 = vmul.f32 %v229_v51, %v473_v3  ;;  %v242_v58 = vstv %s597_s23 }
  0x2f   :  { %345 = vst [vmem:[%s748_s6 + $0x78] sm:$0xff] %v198_v40  ;;  %v234_v59 = vadd.f32 %v233_v55, %v230_v54  ;;  %v243_v60 = vmul.f32 %v242_v58, %v462_v0  ;;  %v246_v61 = vstv %s611_s26  ;;  %v244_v62 = vmul.f32 %v242_v58, %v473_v3 }
  0x30   :  { %348 = vst [vmem:[%s748_s6 + $0x80] sm:$0xff] %v210_v52  ;;  %v223_v63 = vmax.f32 %v221_v50, 0.0  ;;  %v224_v1 = vmax.f32 %v222_v56, 0.0  ;;  %v235_v2 = vadd.f32 %v233_v55, %v231_v57  ;;  %v255_v4 = vstv %s620_s27 }
  0x31   :  { %349 = vst [vmem:[%s748_s6 + $0x88] sm:$0xff] %v211_v53  ;;  %v236_v5 = vmax.f32 %v234_v59, 0.0  ;;  %v247_v6 = vadd.f32 %v246_v61, %v243_v60  ;;  %v248_v7 = vadd.f32 %v246_v61, %v244_v62  ;;  %v256_v8 = vmul.f32 %v255_v4, %v462_v0 }
  0x32   :  { %352 = vst [vmem:[%s748_s6 + $0x90] sm:$0xff] %v223_v63  ;;  %v237_v9 = vmax.f32 %v235_v2, 0.0  ;;  %v259_v10 = vstv %s624_s28  ;;  %v257_v11 = vmul.f32 %v255_v4, %v473_v3  ;;  %v268_v12 = vstv %s633_s3 }
  0x33   :  { %353 = vst [vmem:[%s748_s6 + $0x98] sm:$0xff] %v224_v1  ;;  %v249_v13 = vmax.f32 %v247_v6, 0.0  ;;  %v250_v14 = vmax.f32 %v248_v7, 0.0  ;;  %v260_v15 = vadd.f32 %v259_v10, %v256_v8  ;;  %v269_v16 = vmul.f32 %v268_v12, %v462_v0 }
  0x34   :  { %356 = vst [vmem:[%s748_s6 + $0xa0] sm:$0xff] %v236_v5  ;;  %v261_v17 = vadd.f32 %v259_v10, %v257_v11  ;;  %v272_v18 = vstv %s643_s8  ;;  %v270_v19 = vmul.f32 %v268_v12, %v473_v3  ;;  %v281_v20 = vstv %s654_s11 }
  0x35   :  { %357 = vst [vmem:[%s748_s6 + $0xa8] sm:$0xff] %v237_v9  ;;  %v262_v21 = vmax.f32 %v260_v15, 0.0  ;;  %v273_v22 = vadd.f32 %v272_v18, %v269_v16  ;;  %v282_v23 = vmul.f32 %v281_v20, %v462_v0  ;;  %v285_v24 = vstv %s661_s14 }
  0x36   :  { %360 = vst [vmem:[%s748_s6 + $0xb0] sm:$0xff] %v249_v13  ;;  %v263_v25 = vmax.f32 %v261_v17, 0.0  ;;  %v274_v26 = vadd.f32 %v272_v18, %v270_v19  ;;  %v283_v27 = vmul.f32 %v281_v20, %v473_v3  ;;  %v294_v28 = vstv %s668_s2 }
  0x37   :  { %361 = vst [vmem:[%s748_s6 + $0xb8] sm:$0xff] %v250_v14  ;;  %v275_v29 = vmax.f32 %v273_v22, 0.0  ;;  %v286_v30 = vadd.f32 %v285_v24, %v282_v23  ;;  %v295_v31 = vmul.f32 %v294_v28, %v462_v0  ;;  %v298_v32 = vstv %s676_s16 }
  0x38   :  { %364 = vst [vmem:[%s748_s6 + $0xc0] sm:$0xff] %v262_v21  ;;  %v276_v33 = vmax.f32 %v274_v26, 0.0  ;;  %v287_v34 = vadd.f32 %v285_v24, %v283_v27  ;;  %v296_v35 = vmul.f32 %v294_v28, %v473_v3 }
  0x39   :  { %365 = vst [vmem:[%s748_s6 + $0xc8] sm:$0xff] %v263_v25  ;;  %v288_v36 = vmax.f32 %v286_v30, 0.0  ;;  %v299_v37 = vadd.f32 %v298_v32, %v295_v31 }
  0x3a   :  { %368 = vst [vmem:[%s748_s6 + $0xd0] sm:$0xff] %v275_v29  ;;  %v289_v0 = vmax.f32 %v287_v34, 0.0  ;;  %v300_v39 = vadd.f32 %v298_v32, %v296_v35 }
  0x3b   :  { %369 = vst [vmem:[%s748_s6 + $0xd8] sm:$0xff] %v276_v33  ;;  %v301_v38 = vmax.f32 %v299_v37, 0.0 }
  0x3c   :  { %372 = vst [vmem:[%s748_s6 + $0xe0] sm:$0xff] %v288_v36  ;;  %v302_v3 = vmax.f32 %v300_v39, 0.0 }
  0x3d   :  { %373 = vst [vmem:[%s748_s6 + $0xe8] sm:$0xff] %v289_v0 }
  0x3e   :  { %376 = vst [vmem:[%s748_s6 + $0xf0] sm:$0xff] %v301_v38 }
  0x3f   :  { %377 = vst [vmem:[%s748_s6 + $0xf8] sm:$0xff] %v302_v3 }
  0x40   :  { %314 = vsyncpa [#allocation5], 1 }
  0x41   :  { %315 = vsyncpa [#allocation7], 1 }

// kernel: mtr2_forward.28
= control target key start
LH: loop header
LB: loop body
LE: loop exit
PB: predicated region body
PF: predicated region fallthrough
CT: control target
= control target key end

     0   :  { %s339_s12 = smov 0   ;;  %s362_s0 = inlined_call_operand.vmem [shape: f32[64,16], index: 0, kind: input, shape index: {}]   ;;  %s363_s1 = inlined_call_operand.vmem [shape: bf16[16,128], index: 1, kind: input, shape index: {}]   ;;  %s364_s2 = inlined_call_operand.vmem [shape: f32[1,128], index: 2, kind: input, shape index: {}]   ;;  %s365_s3 = inlined_call_operand.vmem [shape: f32[64,128], index: 3, kind: output, shape index: {}]  }
   0x1 LB: > { %s283_s13 = sadd.s32 4294967295, %s317_s12   ;;  %p287_p0 = scmp.ge.s32.totalorder %s317_s12, 1  ;;  %s317_s12 = sphi %s339_s12, %s13_s12  }
   0x2   : > { %p138_p1 = scmp.lt.s32.totalorder %s317_s12, 3 }
   0x4   : > { %p139_p2 = pnand %p287_p0, %p138_p1 }
   0x5   : > { %s288_s16 = sshll.u32 (!%p139_p2), %s283_s13, 2 }
   0x6   : > { %142 = sbr.rel (%p139_p2) target bundleno = 157 (0x9d), region = 32  ;;  %p163_p3 = scmp.lt.s32.totalorder (!%p139_p2), %s288_s16, 7 }
   0xb   : > { %v300_v0 = vld [vmem:[%s363_s1] sm:$0xff]  ;;  %s367_s16 = smov (!%p163_p3, %s288_s16), 7  ;;  %vm193_vm0 = vcmask 130048  }
   0xc   : > { %207 = vmatpush.bf16.msra.mxu0 %v300_v0  ;;  %301 = vmatpush.bf16.msra.mxu1 %v300_v0  ;;  %s289_s17 = sshll.u32 %s367_s16, 3  ;;  %v310_v7 = vld [vmem:[%s364_s2] ss:$0 sm:$0xff] }
   0xd   : > { %s166_s20 = scalar_lea.vmem %s362_s0, %s289_s17  ;;  %s172_s25 = scalar_lea.vmem %s365_s3, %s289_s17 }
   0xe   : > { %v175_v1 = vld [vmem:[%s166_s20] sm:$0xff]  ;;  %v176_v2 = vld [vmem:[%s166_s20 + $0x8] sm:$0xff]  ;;  %v177_v3 = vld [vmem:[%s166_s20 + $0x10] sm:$0xff] }
   0xf   : > { %v179_v4 = vpack.c.bf16 %v176_v2, %v175_v1  ;;  %v178_v5 = vld [vmem:[%s166_s20 + $0x18] sm:$0xff] }
  0x10   : > { %v180_v6 = vpack.c.bf16 %v178_v5, %v177_v3 }
  0x11   : > { %296 = vmatmul.msk.bf16.vlgmr.msra.gmra.mxu0 %vm193_vm0, %v179_v4 }
  0x12   : > { %297 = vmatmul.msk.bf16.vlgmr.msra.gmra.mxu1 %vm193_vm0, %v180_v6 }
  0x8e   : > { %v209_v8 = vpop.f32.mrf.mxu0 }
  0x8f   : > { %v210_v9 = vadd.f32 %v310_v7, %v209_v8  ;;  %v214_v10 = vpop.f32.mrf.mxu1 }
  0x90   : > { %v215_v12 = vadd.f32 %v310_v7, %v214_v10 }
  0x91   : > { %v219_v11 = vmax.f32 %v210_v9, 0.0 }
  0x92   : > { %v221_v18 = vmax.f32 %v215_v12, 0.0 }
  0x93   : > { %223 = vst [vmem:[%s172_s25] sm:$0xff] %v219_v11 }
  0x94   : > { %225 = vst [vmem:[%s172_s25 + $0x10] sm:$0xff] %v221_v18 }
  0x96   : > { %v211_v13 = vpop.f32.mrf.mxu0 }
  0x97   : > { %v212_v14 = vadd.f32 %v310_v7, %v211_v13  ;;  %v216_v15 = vpop.f32.mrf.mxu1 }
  0x98   : > { %v217_v16 = vadd.f32 %v310_v7, %v216_v15 }
  0x99   : > { %v220_v17 = vmax.f32 %v212_v14, 0.0 }
  0x9a   : > { %v222_v19 = vmax.f32 %v217_v16, 0.0 }
  0x9b   : > { %224 = vst [vmem:[%s172_s25 + $0x8] sm:$0xff] %v220_v17 }
  0x9c   : > { %226 = vst [vmem:[%s172_s25 + $0x18] sm:$0xff] %v222_v19 }
  0x9d PF: > { %s13_s12 = sadd.s32 1, %s317_s12  }
  0x9e   : > { %p10_p4 = scmp.ge.s32.totalorder %s13_s12, 4  }
  0xa0   :  { %12 = sbr.rel (!%p10_p4) target bundleno = 1 (0x1), region = 62 }

// kernel: mtr2_forward.29
= control target key start
LH: loop header
LB: loop body
LE: loop exit
PB: predicated region body
PF: predicated region fallthrough
CT: control target
= control target key end

     0   :  { %s1001_s27 = smov 0   ;;  %s1157_s0 = inlined_call_operand.vmem [shape: f32[64,128], index: 0, kind: input, shape index: {}]   ;;  %s1158_s1 = inlined_call_operand.vmem [shape: f32[64,128], index: 1, kind: input, shape index: {}]   ;;  %s1159_s2 = inlined_call_operand.vmem [shape: bf16[128,256], index: 2, kind: input, shape index: {}]   ;;  %s1160_s3 = inlined_call_operand.vmem [shape: f32[1,256], index: 3, kind: input, shape index: {}]   ;;  %s1161_s4 = inlined_call_operand.vmem [shape: bf16[128,128], index: 4, kind: input, shape index: {}]   ;;  %s1162_s5 = inlined_call_operand.vmem [shape: f32[1,128], index: 5, kind: input, shape index: {}]   ;;  %s1163_s6 = inlined_call_operand.vmem [shape: bf16[64,128], index: 6, kind: output, shape index: {0}]   ;;  %s1164_s7 = inlined_call_operand.vmem [shape: bf16[64,128], index: 7, kind: output, shape index: {1}]   ;;  %s1165_s8 = inlined_call_operand.vmem [shape: bf16[64,128], index: 8, kind: output, shape index: {2}]  }
   0x1 LB: > { %s761_s28 = sadd.s32 4294967295, %s954_s27   ;;  %p765_p0 = scmp.ge.s32.totalorder %s954_s27, 1  ;;  %s954_s27 = sphi %s1001_s27, %s19_s27  }
   0x2   : > { %p279_p1 = scmp.lt.s32.totalorder %s954_s27, 3 }
   0x4   : > { %p280_p2 = pnand %p765_p0, %p279_p1 }
   0x5   : > { %s766_s25 = sshll.u32 (!%p280_p2), %s761_s28, 2 }
   0x6   : > { %283 = sbr.rel (%p280_p2) target bundleno = 205 (0xcd), region = 44  ;;  %p329_p3 = scmp.lt.s32.totalorder (!%p280_p2), %s766_s25, 7 }
   0xb   : > { %v888_v0 = vld [vmem:[%s1159_s2 + $0x74] sm:$0xf]  ;;  %v836_v1 = vld [vmem:[%s1159_s2 + $0x78] sm:$0xf0]  ;;  %v886_v4 = vld [vmem:[%s1159_s2 + $0x64] sm:$0xf] }
   0xc   : > { %v897_v2 = vld [vmem:[%s1161_s4 + $0x38] sm:$0xff]  ;;  %v839_v3 = vor.u32 %v888_v0, %v836_v1  ;;  %v828_v5 = vld [vmem:[%s1159_s2 + $0x68] sm:$0xf0]  ;;  %v896_v6 = vld [vmem:[%s1161_s4 + $0x30] sm:$0xff]  ;;  %s1167_s25 = smov (!%p329_p3, %s766_s25), 7 }
   0xd   : > { %598 = vmatpush.bf16.msra.mxu2 %v897_v2  ;;  %v834_v7 = vld [vmem:[%s1159_s2 + $0x70] sm:$0xf]  ;;  %v889_v8 = vld [vmem:[%s1159_s2 + $0x74] sm:$0xf0]  ;;  %v831_v9 = vor.u32 %v886_v4, %v828_v5  ;;  %v826_v11 = vld [vmem:[%s1159_s2 + $0x60] sm:$0xf] }
   0xe   : > { %493 = vmatpush.bf16.msra.mxu1 %v839_v3  ;;  %v835_v10 = vor.u32 %v889_v8, %v834_v7  ;;  %v884_v12 = vld [vmem:[%s1159_s2 + $0x54] sm:$0xf]  ;;  %v820_v13 = vld [vmem:[%s1159_s2 + $0x58] sm:$0xf0]  ;;  %v887_v14 = vld [vmem:[%s1159_s2 + $0x64] sm:$0xf0] }
   0xf   : > { %v827_v15 = vor.u32 %v887_v14, %v826_v11  ;;  %v895_v16 = vld [vmem:[%s1161_s4 + $0x28] sm:$0xff]  ;;  %v818_v17 = vld [vmem:[%s1159_s2 + $0x50] sm:$0xf]  ;;  %v885_v18 = vld [vmem:[%s1159_s2 + $0x54] sm:$0xf0]  ;;  %v823_v19 = vor.u32 %v884_v12, %v820_v13  ;;  %s767_s17 = sshll.u32 %s1167_s25, 3 }
  0x10   : > { %931 = vmatpush.bf16.msra.mxu3 %v835_v10  ;;  %474 = vmatpush.bf16.msra.mxu0 %v835_v10  ;;  %v882_v20 = vld [vmem:[%s1159_s2 + $0x44] sm:$0xf]  ;;  %v812_v21 = vld [vmem:[%s1159_s2 + $0x48] sm:$0xf0]  ;;  %v819_v22 = vor.u32 %v885_v18, %v818_v17  ;;  %v810_v24 = vld [vmem:[%s1159_s2 + $0x40] sm:$0xf]  ;;  %s332_s11 = scalar_lea.vmem %s1157_s0, %s767_s17  ;;  %s338_s18 = scalar_lea.vmem %s1158_s1, %s767_s17 }
  0x11   : > { %599 = vmatpush.bf16.msra.mxu2 %v896_v6  ;;  %v894_v23 = vld [vmem:[%s1161_s4 + $0x20] sm:$0xff]  ;;  %v883_v25 = vld [vmem:[%s1159_s2 + $0x44] sm:$0xf0]  ;;  %v815_v26 = vor.u32 %v882_v20, %v812_v21  ;;  %v880_v27 = vld [vmem:[%s1159_s2 + $0x34] sm:$0xf]  ;;  %s771_s16 = sshll.u32 %s1167_s25, 2 }
  0x12   : > { %494 = vmatpush.bf16.msra.mxu1 %v831_v9  ;;  %v804_v28 = vld [vmem:[%s1159_s2 + $0x38] sm:$0xf0]  ;;  %v811_v29 = vor.u32 %v883_v25, %v810_v24  ;;  %v802_v31 = vld [vmem:[%s1159_s2 + $0x30] sm:$0xf]  ;;  %v881_v32 = vld [vmem:[%s1159_s2 + $0x34] sm:$0xf0]  ;;  %s350_s22 = scalar_lea.vmem %s1164_s7, %s771_s16  ;;  %s344_s24 = scalar_lea.vmem %s1163_s6, %s771_s16 }
  0x13   : > { %v893_v30 = vld [vmem:[%s1161_s4 + $0x18] sm:$0xff]  ;;  %v807_v33 = vor.u32 %v880_v27, %v804_v28  ;;  %v878_v34 = vld [vmem:[%s1159_s2 + $0x24] sm:$0xf]  ;;  %v796_v35 = vld [vmem:[%s1159_s2 + $0x28] sm:$0xf0]  ;;  %v803_v36 = vor.u32 %v881_v32, %v802_v31  ;;  %s356_s29 = scalar_lea.vmem %s1165_s8, %s771_s16 }
  0x14   : > { %932 = vmatpush.bf16.msra.mxu3 %v827_v15  ;;  %475 = vmatpush.bf16.msra.mxu0 %v827_v15  ;;  %v892_v37 = vld [vmem:[%s1161_s4 + $0x10] sm:$0xff]  ;;  %v794_v38 = vld [vmem:[%s1159_s2 + $0x20] sm:$0xf]  ;;  %v879_v39 = vld [vmem:[%s1159_s2 + $0x24] sm:$0xf0]  ;;  %v799_v40 = vor.u32 %v878_v34, %v796_v35 }
  0x15   : > { %600 = vmatpush.bf16.msra.mxu2 %v895_v16  ;;  %v876_v41 = vld [vmem:[%s1159_s2 + $0x14] sm:$0xf]  ;;  %v788_v42 = vld [vmem:[%s1159_s2 + $0x18] sm:$0xf0]  ;;  %v891_v43 = vld [vmem:[%s1161_s4 + $0x8] sm:$0xff]  ;;  %v795_v44 = vor.u32 %v879_v39, %v794_v38 }
  0x16   : > { %495 = vmatpush.bf16.msra.mxu1 %v823_v19  ;;  %v358_v45 = vld [vmem:[%s332_s11] sm:$0xff]  ;;  %v786_v46 = vld [vmem:[%s1159_s2 + $0x10] sm:$0xf]  ;;  %v877_v47 = vld [vmem:[%s1159_s2 + $0x14] sm:$0xf0]  ;;  %v791_v48 = vor.u32 %v876_v41, %v788_v42 }
  0x17   : > { %v359_v49 = vld [vmem:[%s332_s11 + $0x8] sm:$0xff]  ;;  %v362_v50 = vld [vmem:[%s338_s18] sm:$0xff]  ;;  %v360_v54 = vld [vmem:[%s332_s11 + $0x10] sm:$0xff]  ;;  %v787_v55 = vor.u32 %v877_v47, %v786_v46 }
  0x18   : > { %933 = vmatpush.bf16.msra.mxu3 %v819_v22  ;;  %476 = vmatpush.bf16.msra.mxu0 %v819_v22  ;;  %v363_v51 = vld [vmem:[%s338_s18 + $0x8] sm:$0xff]  ;;  %v874_v52 = vld [vmem:[%s1159_s2 + $0x4] sm:$0xf]  ;;  %v361_v56 = vld [vmem:[%s332_s11 + $0x18] sm:$0xff]  ;;  %v366_v60 = vadd.f32 %v362_v50, %v358_v45  ;;  %v528_v3 = vpack.c.bf16 %v359_v49, %v358_v45 }
  0x19   : > { %601 = vmatpush.bf16.msra.mxu2 %v894_v23  ;;  %v780_v53 = vld [vmem:[%s1159_s2 + $0x8] sm:$0xf0]  ;;  %v364_v57 = vld [vmem:[%s338_s18 + $0x10] sm:$0xff]  ;;  %v365_v58 = vld [vmem:[%s338_s18 + $0x18] sm:$0xff]  ;;  %v367_v61 = vadd.f32 %v363_v51, %v359_v49  ;;  %v529_v7 = vpack.c.bf16 %v361_v56, %v360_v54 }
  0x1a   : > { %496 = vmatpush.bf16.msra.mxu1 %v815_v26  ;;  %v890_v59 = vld [vmem:[%s1161_s4] sm:$0xff]  ;;  %v875_v63 = vld [vmem:[%s1159_s2 + $0x4] sm:$0xf0]  ;;  %v783_v0 = vor.u32 %v874_v52, %v780_v53  ;;  %v368_v1 = vadd.f32 %v364_v57, %v360_v54  ;;  %v369_v2 = vadd.f32 %v365_v58, %v361_v56 }
  0x1b   : > { %v778_v62 = vld [vmem:[%s1159_s2] sm:$0xf]  ;;  %v370_v5 = vpack.c.bf16 %v367_v61, %v366_v60 }
  0x1c   : > { %934 = vmatpush.bf16.msra.mxu3 %v811_v29  ;;  %477 = vmatpush.bf16.msra.mxu0 %v811_v29  ;;  %v779_v4 = vor.u32 %v875_v63, %v778_v62  ;;  %v371_v6 = vpack.c.bf16 %v369_v2, %v368_v1  ;;  %v388_v9 = vld [vmem:[%s1160_s3] sm:$0x3] }
  0x1d   : > { %602 = vmatpush.bf16.msra.mxu2 %v893_v30  ;;  %v391_v11 = vperm.slane %v388_v9, 1  ;;  %v390_v13 = vperm.slane %v388_v9, 0  ;;  %v947_v18 = vld [vmem:[%s1162_s5] ss:$0 sm:$0xff] }
  0x1e   : > { %497 = vmatpush.bf16.msra.mxu1 %v807_v33 }
  0x20   : > { %935 = vmatpush.bf16.msra.mxu3 %v803_v36  ;;  %478 = vmatpush.bf16.msra.mxu0 %v803_v36 }
  0x21   : > { %603 = vmatpush.bf16.msra.mxu2 %v892_v37 }
  0x22   : > { %498 = vmatpush.bf16.msra.mxu1 %v799_v40 }
  0x24   : > { %936 = vmatpush.bf16.msra.mxu3 %v795_v44  ;;  %479 = vmatpush.bf16.msra.mxu0 %v795_v44 }
  0x25   : > { %604 = vmatpush.bf16.msra.mxu2 %v891_v43 }
  0x26   : > { %499 = vmatpush.bf16.msra.mxu1 %v791_v48 }
  0x28   : > { %937 = vmatpush.bf16.msra.mxu3 %v787_v55  ;;  %480 = vmatpush.bf16.msra.mxu0 %v787_v55 }
  0x29   : > { %605 = vmatpush.bf16.msra.mxu2 %v890_v59 }
  0x2a   : > { %500 = vmatpush.bf16.msra.mxu1 %v783_v0 }
  0x2c   : > { %606 = vmatmul.bf16.vlgmr.msra.gmra.mxu2 %v528_v3  ;;  %938 = vmatpush.bf16.msra.mxu3 %v779_v4 }
  0x2d   : > { %501 = vmatmul.bf16.vlgmr.msra.gmra.mxu1 %v370_v5  ;;  %481 = vmatpush.bf16.msra.mxu0 %v779_v4 }
  0x2f   : > { %487 = vmatmul.bf16.vlgmr.msra.gmra.mxu3 %v371_v6 }
  0x30   : > { %482 = vmatmul.bf16.vlgmr.msra.gmra.mxu0 %v370_v5 }
  0x3c   : > { %611 = vmatmul.bf16.gmra.mxu2 %v529_v7 }
  0x3d   : > { %506 = vmatmul.bf16.gmra.mxu1 %v371_v6 }
  0xaa   : > { %v502_v8 = vpop.f32.mrf.mxu1 }
  0xab   : > { %v503_v16 = vadd.f32 %v502_v8, %v391_v11 }
  0xad   : > { %v483_v10 = vpop.f32.mrf.mxu0 }
  0xae   : > { %v484_v19 = vadd.f32 %v483_v10, %v390_v13 }
  0xaf   : > { %v607_v12 = vpop.f32.mrf.mxu2 }
  0xb0   : > { %v608_v24 = vadd.f32 %v947_v18, %v607_v12 }
  0xb2   : > { %v504_v14 = vpop.f32.mrf.mxu1  ;;  %v488_v15 = vpop.f32.mrf.mxu3 }
  0xb3   : > { %v505_v17 = vadd.f32 %v504_v14, %v391_v11  ;;  %v489_v27 = vadd.f32 %v488_v15, %v390_v13 }
  0xb5   : > { %v911_v20 = vpack.c.bf16 %v505_v17, %v503_v16  ;;  %v485_v21 = vpop.f32.mrf.mxu0 }
  0xb6   : > { %v486_v22 = vadd.f32 %v485_v21, %v390_v13 }
  0xb7   : > { %912 = vst [vmem:[%s350_s22] sm:$0xff] %v911_v20   ;;  %v609_v23 = vpop.f32.mrf.mxu2 }
  0xb8   : > { %v610_v25 = vadd.f32 %v947_v18, %v609_v23  ;;  %v901_v26 = vpack.c.bf16 %v486_v22, %v484_v19 }
  0xba   : > { %v921_v28 = vpack.c.bf16 %v610_v25, %v608_v24  ;;  %v507_v29 = vpop.f32.mrf.mxu1  ;;  %902 = vst [vmem:[%s344_s24] sm:$0xff] %v901_v26   ;;  %v490_v30 = vpop.f32.mrf.mxu3 }
  0xbb   : > { %v491_v31 = vadd.f32 %v490_v30, %v390_v13  ;;  %v508_v35 = vadd.f32 %v507_v29, %v391_v11 }
  0xbc   : > { %922 = vst [vmem:[%s356_s29] sm:$0xff] %v921_v28  }
  0xbd   : > { %v906_v32 = vpack.c.bf16 %v491_v31, %v489_v27 }
  0xbf   : > { %928 = vst [vmem:[%s344_s24 + $0x8] sm:$0xff] %v906_v32   ;;  %v612_v33 = vpop.f32.mrf.mxu2 }
  0xc0   : > { %v613_v39 = vadd.f32 %v947_v18, %v612_v33 }
  0xc2   : > { %v509_v34 = vpop.f32.mrf.mxu1 }
  0xc3   : > { %v510_v36 = vadd.f32 %v509_v34, %v391_v11 }
  0xc5   : > { %v916_v37 = vpack.c.bf16 %v510_v36, %v508_v35 }
  0xc7   : > { %929 = vst [vmem:[%s350_s22 + $0x8] sm:$0xff] %v916_v37   ;;  %v614_v38 = vpop.f32.mrf.mxu2 }
  0xc8   : > { %v615_v40 = vadd.f32 %v947_v18, %v614_v38 }
  0xca   : > { %v926_v41 = vpack.c.bf16 %v615_v40, %v613_v39 }
  0xcc   : > { %930 = vst [vmem:[%s356_s29 + $0x8] sm:$0xff] %v926_v41  }
  0xcd PF: > { %s19_s27 = sadd.s32 1, %s954_s27  }
  0xce   : > { %p16_p4 = scmp.ge.s32.totalorder %s19_s27, 4  }
  0xd0   :  { %18 = sbr.rel (!%p16_p4) target bundleno = 1 (0x1), region = 101 }

// kernel: mtr2_forward.31
= control target key start
LH: loop header
LB: loop body
LE: loop exit
PB: predicated region body
PF: predicated region fallthrough
CT: control target
= control target key end

     0   :  { %11 = vsyncpa [#allocation3], 0  ;;  %s1015_s0 = inlined_call_operand.vmem [shape: bf16[64,128], index: 0, kind: input, shape index: {}]   ;;  %s1016_s1 = inlined_call_operand.vmem [shape: bf16[128,128], index: 1, kind: input, shape index: {}]   ;;  %s1017_s2 = inlined_call_operand.hbm [shape: f32[1,128], index: 2, kind: input, shape index: {}]   ;;  %s1018_s3 = inlined_call_operand.vmem [shape: f32[64,128], index: 3, kind: input, shape index: {}]   ;;  %s1019_s4 = inlined_call_operand.hbm [shape: f32[1,128], index: 4, kind: input, shape index: {}]   ;;  %s1020_s5 = inlined_call_operand.hbm [shape: f32[1,128], index: 5, kind: input, shape index: {}]   ;;  %s1021_s6 = inlined_call_operand.vmem [shape: f32[64,128], index: 6, kind: output, shape index: {}]  }
   0x1   :  { %12 = vsyncpa [#allocation5], 0  ;;  %s913_s21 = smov 0  }
   0x2 LB: > { %s212_s24 = sshll.u32 %s1019_s4, 4  ;;  %s638_s25 = sadd.s32 4294967295, %s872_s21   ;;  %s872_s21 = sphi %s913_s21, %s18_s21   ;;  %s213_s24 = int_to_ptr.hbm [resolvable:$true] %s212_s24 }
   0x3   : > { %p640_p0 = scmp.ge.s32.totalorder %s872_s21, 1  ;;  %p185_p1 = scmp.lt.s32.totalorder %s872_s21, 3 }
   0x4   : > { %p926_p2 = scmp.eq.s32.totalorder %s638_s25, 0  ;;  %s874_s28 = smov [#allocation4]  }
   0x5   : > { %p930_p3 = pnand %p640_p0, %p185_p1  ;;  %s214_s29 = sshll.u32 %s874_s28, 4  ;;  %s215_s29 = int_to_ptr.vmem [resolvable:$true] %s214_s29 }
   0x6   : > { %s200_s8 = sshll.u32 %s1017_s2, 4  ;;  %s224_s11 = sshll.u32 %s1020_s5, 4  ;;  %s201_s8 = int_to_ptr.hbm [resolvable:$true] %s200_s8  ;;  %s225_s11 = int_to_ptr.hbm [resolvable:$true] %s224_s11 }
   0x7   : > { %p727_p4 = pneg %p930_p3  ;;  %s875_s12 = smov [#allocation2]  }
   0x8   : > { %s202_s13 = sshll.u32 %s875_s12, 4  ;;  %s876_s14 = smov [#allocation6]   ;;  %s203_s13 = int_to_ptr.vmem [resolvable:$true] %s202_s13 }
   0x9   : > { %p728_p5 = pnand %p926_p2, %p727_p4  ;;  %s226_s15 = sshll.u32 %s876_s14, 4  ;;  %s227_s15 = int_to_ptr.vmem [resolvable:$true] %s226_s15 }
   0xa   : > { %257 = sbr.rel (%p930_p3) target bundleno = 456 (0x1c8), region = 44 }
   0xb   : > { %733 = dma.hbm_to_vmem [thread:$0]  (!%p728_p5), %s213_s24, 16, %s215_s29, [#allocation5]  }
   0xc   : > { %730 = dma.hbm_to_vmem [thread:$0]  (!%p728_p5), %s201_s8, 16, %s203_s13, [#allocation3]  }
   0xd   : > { %736 = dma.hbm_to_vmem [thread:$0]  (!%p728_p5), %s225_s11, 16, %s227_s15, [#allocation5]  }
   0xf   : > { %863 = dma.done.wait (%p926_p2), [#allocation3], 16  }
  0x10   : > { %865 = vsyncadd (%p926_p2), [#allocation3], 4294967280 }
  0x11   : > { %867 = dma.done.wait (%p926_p2), [#allocation5], 32  }
  0x12   : > { %869 = vsyncadd (%p926_p2), [#allocation5], 4294967264  ;;  %v706_v0 = vld [vmem:[%s1016_s1 + $0x38] sm:$0xff]  ;;  %v705_v1 = vld [vmem:[%s1016_s1 + $0x30] sm:$0xff]  ;;  %s649_s26 = sshll.u32 %s638_s25, 2  ;;  %v877_v27 = vmov 128.0  }
  0x13   : > { %405 = vmatpush.bf16.msra.mxu0 %v706_v0  ;;  %707 = vmatpush.bf16.msra.mxu1 %v706_v0  ;;  %v704_v2 = vld [vmem:[%s1016_s1 + $0x28] sm:$0xff]  ;;  %v703_v3 = vld [vmem:[%s1016_s1 + $0x20] sm:$0xff]  ;;  %v702_v4 = vld [vmem:[%s1016_s1 + $0x18] sm:$0xff]  ;;  %p304_p6 = scmp.lt.s32.totalorder %s649_s26, 7  ;;  %758 = vrcp.f32 %v877_v27 }
  0x14   : > { %v701_v5 = vld [vmem:[%s1016_s1 + $0x10] sm:$0xff]  ;;  %v700_v6 = vld [vmem:[%s1016_s1 + $0x8] sm:$0xff]  ;;  %v699_v7 = vld [vmem:[%s1016_s1] sm:$0xff] }
  0x15   : > { %s1025_s26 = smov (!%p304_p6, %s649_s26), 7  ;;  %v755_v10 = vld [vmem:[#allocation2] ss:$0 sm:$0xff] }
  0x16   : > { %s650_s8 = sshll.u32 %s1025_s26, 2  ;;  %s652_s14 = sshll.u32 %s1025_s26, 3 }
  0x17   : > { %406 = vmatpush.bf16.msra.mxu0 %v705_v1  ;;  %708 = vmatpush.bf16.msra.mxu1 %v705_v1  ;;  %s307_s13 = scalar_lea.vmem %s1015_s0, %s650_s8  ;;  %s313_s17 = scalar_lea.vmem %s1018_s3, %s652_s14 }
  0x18   : > { %v697_v8 = vld [vmem:[%s307_s13] sm:$0xff]  ;;  %v698_v9 = vld [vmem:[%s307_s13 + $0x8] sm:$0xff]  ;;  %v426_v13 = vld [vmem:[%s313_s17 + $0x10] sm:$0xff]  ;;  %s319_s20 = scalar_lea.vmem %s1021_s6, %s652_s14 }
  0x19   : > { %v424_v14 = vld [vmem:[%s313_s17] sm:$0xff]  ;;  %v427_v21 = vld [vmem:[%s313_s17 + $0x18] sm:$0xff]  ;;  %v425_v22 = vld [vmem:[%s313_s17 + $0x8] sm:$0xff]  ;;  %v759_v28 = vpop.eup %758 }
  0x1a   : > { %v441_v29 = vmul.f32 128.0, %v759_v28  ;;  %vm445_vm0 = vweird.f32 %v759_v28 }
  0x1b   : > { %407 = vmatpush.bf16.msra.mxu0 %v704_v2  ;;  %709 = vmatpush.bf16.msra.mxu1 %v704_v2 }
  0x1c   : > { %v442_v30 = vsub.f32 1.0, %v441_v29 }
  0x1e   : > { %v443_v31 = vmul.f32 %v759_v28, %v442_v30 }
  0x1f   : > { %408 = vmatpush.bf16.msra.mxu0 %v703_v3  ;;  %710 = vmatpush.bf16.msra.mxu1 %v703_v3 }
  0x20   : > { %v444_v32 = vadd.f32 %v759_v28, %v443_v31 }
  0x22   : > { %v446_v33 = vsel %vm445_vm0, %v759_v28, %v444_v32 }
  0x23   : > { %409 = vmatpush.bf16.msra.mxu0 %v702_v4  ;;  %711 = vmatpush.bf16.msra.mxu1 %v702_v4 }
  0x27   : > { %410 = vmatpush.bf16.msra.mxu0 %v701_v5  ;;  %712 = vmatpush.bf16.msra.mxu1 %v701_v5 }
  0x2b   : > { %411 = vmatpush.bf16.msra.mxu0 %v700_v6  ;;  %713 = vmatpush.bf16.msra.mxu1 %v700_v6 }
  0x2f   : > { %412 = vmatpush.bf16.msra.mxu0 %v699_v7  ;;  %714 = vmatpush.bf16.msra.mxu1 %v699_v7 }
  0x32   : > { %413 = vmatmul.bf16.vlgmr.msra.gmra.mxu0 %v697_v8  ;;  %418 = vmatmul.bf16.vlgmr.msra.gmra.mxu1 %v698_v9 }
  0xaf   : > { %v414_v11 = vpop.f32.mrf.mxu0  ;;  %v419_v12 = vpop.f32.mrf.mxu1 }
  0xb0   : > { %v415_v15 = vadd.f32 %v755_v10, %v414_v11  ;;  %v420_v16 = vadd.f32 %v755_v10, %v419_v12  ;;  %v756_v12 = vld [vmem:[#allocation4] ss:$0 sm:$0xff] }
  0xb2   : > { %v430_v17 = vadd.f32 %v426_v13, %v420_v16  ;;  %v428_v18 = vadd.f32 %v424_v14, %v415_v15 }
  0xb4   : > { %436 = vadd.xlane.f32.xlu1 %v430_v17  ;;  %432 = vadd.xlane.f32.xlu0 %v428_v18 }
  0xb7   : > { %v416_v19 = vpop.f32.mrf.mxu0  ;;  %v421_v20 = vpop.f32.mrf.mxu1 }
  0xb8   : > { %v417_v23 = vadd.f32 %v755_v10, %v416_v19  ;;  %v422_v24 = vadd.f32 %v755_v10, %v421_v20 }
  0xba   : > { %v431_v25 = vadd.f32 %v427_v21, %v422_v24  ;;  %v429_v26 = vadd.f32 %v425_v22, %v417_v23 }
  0xbc   : > { %438 = vadd.xlane.f32.xlu1 %v431_v25  ;;  %434 = vadd.xlane.f32.xlu0 %v429_v26 }
 0x127   : > { %v437_v34 = vpop.xlane.xlu1 %436  ;;  %v433_v35 = vpop.xlane.xlu0 %432 }
 0x128   : > { %v449_v36 = vmul.f32 %v446_v33, %v437_v34  ;;  %v447_v37 = vmul.f32 %v446_v33, %v433_v35 }
 0x12a   : > { %v992_v38 = vsub.f32 %v430_v17, %v449_v36  ;;  %v451_v39 = vsub.f32 %v428_v18, %v447_v37  ;;  %v757_v17 = vld [vmem:[#allocation6] ss:$0 sm:$0xff] }
 0x12c   : > { %v457_v40 = vmul.f32 %v992_v38, %v992_v38  ;;  %v455_v41 = vmul.f32 %v451_v39, %v451_v39 }
 0x12e   : > { %463 = vadd.xlane.f32.xlu0 %v457_v40  ;;  %459 = vadd.xlane.f32.xlu2 %v455_v41 }
 0x12f   : > { %v439_v42 = vpop.xlane.xlu1 %438  ;;  %v435_v43 = vpop.xlane.xlu0 %434 }
 0x130   : > { %v450_v44 = vmul.f32 %v446_v33, %v439_v42  ;;  %v448_v45 = vmul.f32 %v446_v33, %v435_v43 }
 0x132   : > { %v996_v46 = vsub.f32 %v431_v25, %v450_v44  ;;  %v998_v47 = vsub.f32 %v429_v26, %v448_v45 }
 0x134   : > { %v458_v48 = vmul.f32 %v996_v46, %v996_v46  ;;  %v456_v49 = vmul.f32 %v998_v47, %v998_v47 }
 0x136   : > { %465 = vadd.xlane.f32.xlu1 %v458_v48  ;;  %461 = vadd.xlane.f32.xlu2 %v456_v49 }
 0x1a1   : > { %v460_v50 = vpop.xlane.xlu2 %459  ;;  %v464_v51 = vpop.xlane.xlu0 %463 }
 0x1a2   : > { %v467_v52 = vmul.f32 %v460_v50, %v446_v33  ;;  %v469_v53 = vmul.f32 %v464_v51, %v446_v33 }
 0x1a4   : > { %v471_v54 = vadd.f32 1e-05, %v467_v52  ;;  %v473_v55 = vadd.f32 1e-05, %v469_v53 }
 0x1a6   : > { %760 = vrsqrt.f32 %v471_v54  ;;  %vm481_vm2 = vweird.f32 %v471_v54  ;;  %vm501_vm5 = vweird.f32 %v473_v55 }
 0x1a7   : > { %762 = vrsqrt.f32 %v473_v55 }
 0x1a9   : > { %v466_v56 = vpop.xlane.xlu1 %465  ;;  %v462_v57 = vpop.xlane.xlu2 %461 }
 0x1aa   : > { %v470_v58 = vmul.f32 %v466_v56, %v446_v33  ;;  %v468_v59 = vmul.f32 %v462_v57, %v446_v33 }
 0x1ac   : > { %v761_v60 = vpop.eup %760  ;;  %v474_v61 = vadd.f32 1e-05, %v470_v58  ;;  %v472_v62 = vadd.f32 1e-05, %v468_v59 }
 0x1ad   : > { %v763_v63 = vpop.eup %762  ;;  %v476_v0 = vmul.f32 %v761_v60, %v471_v54  ;;  %vm482_vm1 = vweird.f32 %v761_v60 }
 0x1ae   : > { %v496_v1 = vmul.f32 %v763_v63, %v473_v55  ;;  %764 = vrsqrt.f32 %v474_v61  ;;  %vm483_vm3 = vmor %vm481_vm2, %vm482_vm1  ;;  %vm502_vm4 = vweird.f32 %v763_v63  ;;  %vm511_vm9 = vweird.f32 %v474_v61 }
 0x1af   : > { %v477_v2 = vmul.f32 %v761_v60, %v476_v0  ;;  %766 = vrsqrt.f32 %v472_v62  ;;  %vm503_vm6 = vmor %vm501_vm5, %vm502_vm4  ;;  %vm491_vm11 = vweird.f32 %v472_v62 }
 0x1b0   : > { %v497_v3 = vmul.f32 %v763_v63, %v496_v1 }
 0x1b1   : > { %v478_v4 = vmul.f32 0.5, %v477_v2 }
 0x1b2   : > { %v498_v5 = vmul.f32 0.5, %v497_v3 }
 0x1b3   : > { %v479_v6 = vsub.f32 1.5, %v478_v4 }
 0x1b4   : > { %v765_v7 = vpop.eup %764  ;;  %v499_v8 = vsub.f32 1.5, %v498_v5 }
 0x1b5   : > { %v767_v9 = vpop.eup %766  ;;  %v480_v10 = vmul.f32 %v761_v60, %v479_v6  ;;  %v506_v11 = vmul.f32 %v765_v7, %v474_v61  ;;  %vm512_vm7 = vweird.f32 %v765_v7 }
 0x1b6   : > { %v486_v13 = vmul.f32 %v767_v9, %v472_v62  ;;  %v500_v15 = vmul.f32 %v763_v63, %v499_v8  ;;  %vm492_vm8 = vweird.f32 %v767_v9  ;;  %vm513_vm10 = vmor %vm511_vm9, %vm512_vm7 }
 0x1b7   : > { %v484_v14 = vsel %vm483_vm3, %v761_v60, %v480_v10  ;;  %v507_v16 = vmul.f32 %v765_v7, %v506_v11  ;;  %vm493_vm12 = vmor %vm491_vm11, %vm492_vm8 }
 0x1b8   : > { %v515_v18 = vmul.f32 %v484_v14, %v451_v39  ;;  %v487_v19 = vmul.f32 %v767_v9, %v486_v13  ;;  %v504_v23 = vsel %vm503_vm6, %v763_v63, %v500_v15 }
 0x1b9   : > { %v508_v20 = vmul.f32 0.5, %v507_v16  ;;  %v517_v28 = vmul.f32 %v504_v23, %v992_v38 }
 0x1ba   : > { %v523_v21 = vmul.f32 %v756_v12, %v515_v18  ;;  %v488_v22 = vmul.f32 0.5, %v487_v19 }
 0x1bb   : > { %v509_v24 = vsub.f32 1.5, %v508_v20  ;;  %v525_v34 = vmul.f32 %v756_v12, %v517_v28 }
 0x1bc   : > { %v531_v25 = vadd.f32 %v757_v17, %v523_v21  ;;  %v489_v26 = vsub.f32 1.5, %v488_v22 }
 0x1bd   : > { %v510_v27 = vmul.f32 %v765_v7, %v509_v24  ;;  %v533_v39 = vadd.f32 %v757_v17, %v525_v34 }
 0x1be   : > { %535 = vst [vmem:[%s319_s20] sm:$0xff] %v531_v25  ;;  %v490_v29 = vmul.f32 %v767_v9, %v489_v26 }
 0x1bf   : > { %v514_v30 = vsel %vm513_vm10, %v765_v7, %v510_v27  ;;  %537 = vst [vmem:[%s319_s20 + $0x10] sm:$0xff] %v533_v39 }
 0x1c0   : > { %v518_v31 = vmul.f32 %v514_v30, %v996_v46  ;;  %v494_v32 = vsel %vm493_vm12, %v767_v9, %v490_v29 }
 0x1c1   : > { %v516_v33 = vmul.f32 %v494_v32, %v998_v47 }
 0x1c2   : > { %v526_v35 = vmul.f32 %v756_v12, %v518_v31 }
 0x1c3   : > { %v524_v36 = vmul.f32 %v756_v12, %v516_v33 }
 0x1c4   : > { %v534_v40 = vadd.f32 %v757_v17, %v526_v35 }
 0x1c5   : > { %v532_v37 = vadd.f32 %v757_v17, %v524_v36 }
 0x1c6   : > { %538 = vst [vmem:[%s319_s20 + $0x18] sm:$0xff] %v534_v40 }
 0x1c7   : > { %536 = vst [vmem:[%s319_s20 + $0x8] sm:$0xff] %v532_v37 }
 0x1c8 PF: > { %s18_s21 = sadd.s32 1, %s872_s21  }
 0x1c9   : > { %p15_p7 = scmp.ge.s32.totalorder %s18_s21, 4  }
 0x1cb   :  { %17 = sbr.rel (!%p15_p7) target bundleno = 2 (0x2), region = 90 }
 0x1d0   :  { %561 = vsyncpa [#allocation3], 1 }
 0x1d1   :  { %563 = vsyncpa [#allocation3 + $0x1], 1 }
 0x1d2   :  { %564 = vsyncpa [#allocation5], 1 }

// kernel: mtr2_forward.30
= control target key start
LH: loop header
LB: loop body
LE: loop exit
PB: predicated region body
PF: predicated region fallthrough
CT: control target
= control target key end

     0   :  { %s1805_s15 = smov 0   ;;  %s2438_s0 = inlined_call_operand.vmem [shape: bf16[2,32,128], index: 0, kind: input, shape index: {}]   ;;  %s2439_s1 = inlined_call_operand.vmem [shape: bf16[2,32,128], index: 1, kind: input, shape index: {}]   ;;  %s2440_s2 = inlined_call_operand.vmem [shape: bf16[2,32,128], index: 2, kind: input, shape index: {}]   ;;  %s2441_s3 = inlined_call_operand.vmem [shape: f32[2,1,32], index: 3, kind: input, shape index: {}]   ;;  %s2442_s4 = inlined_call_operand.vmem [shape: bf16[2,32,128], index: 4, kind: output, shape index: {}]  }
   0x1 LB: > { %s1458_s16 = sadd.s32 4294967295, %s1771_s15   ;;  %p1462_p0 = scmp.ge.s32.totalorder %s1771_s15, 1  ;;  %s1771_s15 = sphi %s1805_s15, %s14_s15  }
   0x2   : > { %p190_p1 = scmp.lt.s32.totalorder %s1771_s15, 3 }
   0x4   : > { %p191_p2 = pnand %p1462_p0, %p190_p1 }
   0x5   : > { %p229_p3 = scmp.lt.s32.totalorder (!%p191_p2), %s1458_s16, 1  ;;  %s1773_s24 = smov (!%p191_p2), 112  }
   0x6   : > { %194 = sbr.rel (%p191_p2) target bundleno = 1309 (0x51d), region = 36  ;;  %s1774_s25 = smov (!%p191_p2), 80  }
   0x7   : > { %s1775_s26 = smov (!%p191_p2), 96   ;;  %s1776_s30 = smov (!%p191_p2), 64  }
   0x8   : > { %s1777_s5 = smov (!%p191_p2), 48   ;;  %s1778_s6 = smov (!%p191_p2), 16  }
   0x9   : > { %s1779_s7 = smov (!%p191_p2), 32  }
   0xb   : > { %s2444_s16 = smov (!%p229_p3, %s1458_s16), 1  ;;  %vm289_vm0 = vcmask 130048   ;;  %vm321_vm1 = vcmask 261120   ;;  %vm1337_vm2 = vcmask 392192   ;;  %vm1342_vm3 = vcmask 523264  }
   0xc   : > { %s1816_s17 = sshll.u32 %s2444_s16, 4  ;;  %s246_s20 = scalar_lea.vmem %s2441_s3, %s2444_s16  ;;  %vm1347_vm4 = vcmask 654336   ;;  %vm1352_vm5 = vcmask 785408   ;;  %vm1357_vm6 = vcmask 916480  }
   0xd   : > { %s238_s23 = scalar_lea.vmem %s2439_s1, %s1816_s17  ;;  %s233_s29 = scalar_lea.vmem %s2438_s0, %s1816_s17  ;;  %v1894_v23 = vld [vmem:[%s246_s20] ss:$0 sm:$0xff] }
   0xe   : > { %v1536_v0 = vld [vmem:[%s238_s23 + $0x8] sm:$0xff]  ;;  %v1535_v2 = vld [vmem:[%s238_s23] sm:$0xff]  ;;  %s1878_s10 = scalar_lea.vmem %s2440_s2, %s1816_s17  ;;  %s2411_s16 = scalar_lea.vmem %s2442_s4, %s1816_s17 }
   0xf   : > { %411 = vrot.lane.b32.xlu2 %v1536_v0, %s1773_s24  ;;  %v300_v1 = vsel %vm289_vm0, %v1536_v0, 0  ;;  %643 = vrot.lane.b32.xlu1 %v1536_v0, %s1774_s25  ;;  %v297_v3 = vsel %vm289_vm0, %v1535_v2, 0  ;;  %v1533_v4 = vld [vmem:[%s233_s29] sm:$0xff]  ;;  %v1838_v5 = vld [vmem:[%s233_s29 + $0x8] sm:$0xff] }
  0x10   : > { %308 = vmatpush.bf16.xpose.msra.mxu0 %v300_v1  ;;  %527 = vrot.lane.b32.xlu0 %v1536_v0, %s1775_s26  ;;  %v1881_v19 = vld [vmem:[%s1878_s10 + $0x8] sm:$0xff]  ;;  %v1885_v20 = vld [vmem:[%s1878_s10] sm:$0xff] }
  0x11   : > { %392 = vmatpush.bf16.msra.mxu1 %v1881_v19 }
  0x15   : > { %393 = vmatpush.bf16.msra.mxu1 %v1885_v20 }
  0x17   : > { %409 = vrot.lane.b32.xlu2 %v1535_v2, %s1773_s24  ;;  %759 = vrot.lane.b32.xlu1 %v1536_v0, %s1776_s30 }
  0x18   : > { %309 = vmatpush.bf16.xpose.msra.mxu0 %v297_v3  ;;  %637 = vrot.lane.b32.xlu0 %v1533_v4, %s1774_s25 }
  0x1f   : > { %405 = vrot.lane.b32.xlu2 %v1533_v4, %s1773_s24  ;;  %1487 = vmatmul.msk.bf16.vlgmr.msra.gmra.mxu0 %vm289_vm0, %v1533_v4 }
  0x20   : > { %639 = vrot.lane.b32.xlu0 %v1838_v5, %s1774_s25  ;;  %757 = vrot.lane.b32.xlu1 %v1535_v2, %s1776_s30 }
  0x27   : > { %407 = vrot.lane.b32.xlu2 %v1838_v5, %s1773_s24 }
  0x28   : > { %873 = vrot.lane.b32.xlu0 %v1535_v2, %s1777_s5  ;;  %869 = vrot.lane.b32.xlu1 %v1533_v4, %s1777_s5 }
  0x2f   : > { %1488 = vmatmul.msk.bf16.gmra.mxu0 %vm289_vm0, %v1838_v5  ;;  %525 = vrot.lane.b32.xlu2 %v1535_v2, %s1775_s26 }
  0x30   : > { %755 = vrot.lane.b32.xlu0 %v1838_v5, %s1776_s30  ;;  %871 = vrot.lane.b32.xlu1 %v1838_v5, %s1777_s5 }
  0x37   : > { %641 = vrot.lane.b32.xlu2 %v1535_v2, %s1774_s25 }
  0x38   : > { %1107 = vrot.lane.b32.xlu0 %v1536_v0, %s1778_s6  ;;  %1105 = vrot.lane.b32.xlu1 %v1535_v2, %s1778_s6 }
  0x3f   : > { %521 = vrot.lane.b32.xlu2 %v1533_v4, %s1775_s26 }
  0x40   : > { %985 = vrot.lane.b32.xlu0 %v1533_v4, %s1779_s7 }
  0x47   : > { %523 = vrot.lane.b32.xlu2 %v1838_v5, %s1775_s26 }
  0x4f   : > { %875 = vrot.lane.b32.xlu2 %v1536_v0, %s1777_s5 }
  0x57   : > { %753 = vrot.lane.b32.xlu2 %v1533_v4, %s1776_s30 }
  0x5f   : > { %991 = vrot.lane.b32.xlu2 %v1536_v0, %s1779_s7 }
  0x67   : > { %989 = vrot.lane.b32.xlu2 %v1535_v2, %s1779_s7 }
  0x69   : > { %v412_v6 = vpop.permute.xlu2 %411 }
  0x6a   : > { %v423_v7 = vsel %vm289_vm0, %v412_v6, 0 }
  0x6b   : > { %431 = vmatpush.bf16.xpose.msra.mxu2 %v423_v7 }
  0x6f   : > { %1101 = vrot.lane.b32.xlu2 %v1533_v4, %s1778_s6 }
  0x71   : > { %v410_v8 = vpop.permute.xlu2 %409 }
  0x72   : > { %v420_v9 = vsel %vm289_vm0, %v410_v8, 0 }
  0x73   : > { %432 = vmatpush.bf16.xpose.msra.mxu2 %v420_v9 }
  0x79   : > { %v406_v10 = vpop.permute.xlu2 %405 }
  0x7a   : > { %1499 = vmatmul.msk.bf16.vlgmr.msra.gmra.mxu2 %vm289_vm0, %v406_v10 }
  0x81   : > { %v408_v11 = vpop.permute.xlu2 %407  ;;  %v644_v12 = vpop.permute.xlu1 %643 }
  0x82   : > { %v655_v13 = vsel %vm289_vm0, %v644_v12, 0  ;;  %v528_v14 = vpop.permute.xlu0 %527 }
  0x83   : > { %663 = vmatpush.bf16.xpose.msrb.mxu0 %v655_v13  ;;  %v539_v25 = vsel %vm289_vm0, %v528_v14, 0 }
  0x84   : > { %547 = vmatpush.bf16.xpose.msrb.mxu1 %v539_v25 }
  0x89   : > { %v526_v15 = vpop.permute.xlu2 %525  ;;  %v1887_v21 = vpop.permute.xlu1 %759 }
  0x8a   : > { %1500 = vmatmul.msk.bf16.gmra.mxu2 %vm289_vm0, %v408_v11  ;;  %v638_v16 = vpop.permute.xlu0 %637  ;;  %v536_v32 = vsel %vm289_vm0, %v526_v15, 0 }
  0x8c   : > { %548 = vmatpush.bf16.xpose.msrb.mxu1 %v536_v32 }
  0x91   : > { %v642_v17 = vpop.permute.xlu2 %641 }
  0x92   : > { %v652_v18 = vsel %vm289_vm0, %v642_v17, 0  ;;  %v640_v22 = vpop.permute.xlu0 %639  ;;  %v1903_v29 = vpop.permute.xlu1 %757 }
  0x93   : > { %664 = vmatpush.bf16.xpose.msrb.mxu0 %v652_v18 }
  0x99   : > { %v1896_v24 = vpop.permute.xlu2 %521 }
  0x9a   : > { %1507 = vmatmul.msk.bf16.vlgmr.msrb.gmra.mxu0 %vm289_vm0, %v638_v16  ;;  %v874_v30 = vpop.permute.xlu0 %873  ;;  %v870_v36 = vpop.permute.xlu1 %869 }
  0x9b   : > { %v884_v43 = vsel %vm289_vm0, %v874_v30, 0 }
  0x9c   : > { %v311_v26 = vpop.f32.mrf.mxu0 }
  0x9d   : > { %v312_v27 = vadd.f32 %v1894_v23, %v311_v26 }
  0x9f   : > { %v322_v28 = vsel %vm321_vm1, %v312_v27, -inf }
  0xa0   : > { %323 = vmax.xlane.f32.xlu0 %v322_v28 }
  0xa1   : > { %v1905_v31 = vpop.permute.xlu2 %523 }
  0xa2   : > { %v1910_v37 = vpop.permute.xlu0 %755  ;;  %v872_v44 = vpop.permute.xlu1 %871 }
  0xa4   : > { %v313_v33 = vpop.f32.mrf.mxu0 }
  0xa5   : > { %v314_v34 = vadd.f32 %v1894_v23, %v313_v33 }
  0xa7   : > { %v325_v35 = vsel %vm321_vm1, %v314_v34, -inf }
  0xa8   : > { %326 = vmax.xlane.f32.xlu0 %v325_v35 }
  0xa9   : > { %v876_v38 = vpop.permute.xlu2 %875 }
  0xaa   : > { %v887_v39 = vsel %vm289_vm0, %v876_v38, 0  ;;  %1508 = vmatmul.msk.bf16.gmra.mxu0 %vm289_vm0, %v640_v22  ;;  %v1108_v45 = vpop.permute.xlu0 %1107  ;;  %v1106_v50 = vpop.permute.xlu1 %1105 }
  0xab   : > { %895 = vmatpush.bf16.xpose.msra.mxu0 %v887_v39  ;;  %v1119_v46 = vsel %vm289_vm0, %v1108_v45, 0  ;;  %v1116_v52 = vsel %vm289_vm0, %v1106_v50, 0 }
  0xac   : > { %v316_v40 = vpop.f32.mrf.mxu0 }
  0xad   : > { %v317_v41 = vadd.f32 %v1894_v23, %v316_v40 }
  0xaf   : > { %v328_v42 = vsel %vm321_vm1, %v317_v41, -inf }
  0xb0   : > { %329 = vmax.xlane.f32.xlu1 %v328_v42 }
  0xb1   : > { %v1920_v51 = vpop.permute.xlu2 %753 }
  0xb2   : > { %v1937_v60 = vpop.permute.xlu0 %985 }
  0xb3   : > { %896 = vmatpush.bf16.xpose.msra.mxu0 %v884_v43 }
  0xb4   : > { %v318_v47 = vpop.f32.mrf.mxu0 }
  0xb5   : > { %v319_v48 = vadd.f32 %v1894_v23, %v318_v47 }
  0xb7   : > { %v331_v49 = vsel %vm321_vm1, %v319_v48, -inf }
  0xb8   : > { %332 = vmax.xlane.f32.xlu1 %v331_v49 }
  0xb9   : > { %v1924_v53 = vpop.permute.xlu2 %991 }
  0xba   : > { %1515 = vmatmul.msk.bf16.vlgmr.msra.gmra.mxu0 %vm289_vm0, %v870_v36 }
  0xbb   : > { %1127 = vmatpush.bf16.xpose.msrb.mxu0 %v1119_v46 }
  0xc1   : > { %v1927_v54 = vpop.permute.xlu2 %989 }
  0xc3   : > { %1128 = vmatpush.bf16.xpose.msrb.mxu0 %v1116_v52 }
  0xc9   : > { %v1102_v55 = vpop.permute.xlu2 %1101 }
  0xca   : > { %1516 = vmatmul.msk.bf16.gmra.mxu0 %vm289_vm0, %v872_v44 }
  0xda   : > { %1523 = vmatmul.msk.bf16.vlgmr.msrb.gmra.mxu0 %vm289_vm0, %v1102_v55 }
  0xfd   : > { %v434_v56 = vpop.f32.mrf.mxu2 }
  0xfe   : > { %v1931_v57 = vadd.f32 %v1894_v23, %v434_v56 }
 0x100   : > { %v444_v58 = vsel %vm321_vm1, %v1931_v57, -inf }
 0x101   : > { %445 = vmax.xlane.f32.xlu2 %v444_v58 }
 0x105   : > { %v1935_v59 = vpop.f32.mrf.mxu2 }
 0x106   : > { %v1998_v49 = vadd.f32 %v1894_v23, %v1935_v59 }
 0x108   : > { %v447_v52 = vsel %vm321_vm1, %v1998_v49, -inf }
 0x10d   : > { %v439_v61 = vpop.f32.mrf.mxu2 }
 0x10e   : > { %v1981_v42 = vadd.f32 %v1894_v23, %v439_v61 }
 0x110   : > { %v450_v44 = vsel %vm321_vm1, %v1981_v42, -inf }
 0x113   : > { %v324_v62 = vpop.xlane.xlu0 %323 }
 0x114   : > { %v334_v63 = vsub.f32 %v312_v27, %v324_v62 }
 0x115   : > { %v441_v0 = vpop.f32.mrf.mxu2 }
 0x116   : > { %v338_v1 = vmul.f32 1.442695, %v334_v63  ;;  %v1940_v2 = vadd.f32 %v1894_v23, %v441_v0 }
 0x117   : > { %v666_v3 = vpop.f32.mrf.mxu0 }
 0x118   : > { %1636 = vpow2.f32 %v338_v1  ;;  %v453_v4 = vsel %vm321_vm1, %v1940_v2, -inf  ;;  %v1945_v6 = vadd.f32 %v1894_v23, %v666_v3 }
 0x119   : > { %454 = vmax.xlane.f32.xlu2 %v453_v4 }
 0x11a   : > { %v676_v11 = vsel %vm321_vm1, %v1945_v6, -inf }
 0x11b   : > { %v327_v7 = vpop.xlane.xlu0 %326 }
 0x11c   : > { %v335_v8 = vsub.f32 %v314_v34, %v327_v7 }
 0x11e   : > { %v1947_v9 = vpop.eup %1636  ;;  %v340_v10 = vmul.f32 1.442695, %v335_v8  ;;  %v771_v8 = vsel %vm289_vm0, %v1887_v21, 0 }
 0x11f   : > { %v346_v12 = vsel %vm321_vm1, %v1947_v9, 0.0  ;;  %v668_v13 = vpop.f32.mrf.mxu0 }
 0x120   : > { %1638 = vpow2.f32 %v340_v10  ;;  %347 = vadd.xlane.f32.xlu0 %v346_v12  ;;  %v2003_v55 = vadd.f32 %v1894_v23, %v668_v13 }
 0x121   : > { %677 = vmax.xlane.f32.xlu2 %v676_v11 }
 0x122   : > { %v679_v58 = vsel %vm321_vm1, %v2003_v55, -inf }
 0x123   : > { %v330_v14 = vpop.xlane.xlu1 %329 }
 0x124   : > { %v336_v15 = vsub.f32 %v317_v41, %v330_v14 }
 0x126   : > { %v1639_v16 = vpop.eup %1638  ;;  %v342_v17 = vmul.f32 1.442695, %v336_v15 }
 0x127   : > { %v349_v18 = vsel %vm321_vm1, %v1639_v16, 0.0  ;;  %v671_v22 = vpop.f32.mrf.mxu0 }
 0x128   : > { %1640 = vpow2.f32 %v342_v17  ;;  %350 = vadd.xlane.f32.xlu1 %v349_v18  ;;  %v2012_v59 = vadd.f32 %v1894_v23, %v671_v22  ;;  %v1000_v22 = vsel %vm289_vm0, %v1927_v54, 0 }
 0x12a   : > { %v682_v61 = vsel %vm321_vm1, %v2012_v59, -inf }
 0x12b   : > { %v333_v25 = vpop.xlane.xlu1 %332 }
 0x12c   : > { %v337_v26 = vsub.f32 %v319_v48, %v333_v25 }
 0x12e   : > { %v1954_v27 = vpop.eup %1640  ;;  %v344_v28 = vmul.f32 1.442695, %v337_v26 }
 0x12f   : > { %v352_v30 = vsel %vm321_vm1, %v1954_v27, 0.0  ;;  %v673_v32 = vpop.f32.mrf.mxu0 }
 0x130   : > { %1642 = vpow2.f32 %v344_v28  ;;  %353 = vadd.xlane.f32.xlu0 %v352_v30 }
 0x136   : > { %v1958_v33 = vpop.eup %1642 }
 0x137   : > { %v355_v34 = vsel %vm321_vm1, %v1958_v33, 0.0  ;;  %v898_v35 = vpop.f32.mrf.mxu0 }
 0x138   : > { %356 = vadd.xlane.f32.xlu1 %v355_v34  ;;  %v2029_v12 = vadd.f32 %v1894_v23, %v898_v35 }
 0x139   : > { %490 = vrot.lane.b32.xlu2 %v1885_v20, %s1773_s24 }
 0x13a   : > { %v908_v21 = vsel %vm321_vm1, %v2029_v12, -inf }
 0x13f   : > { %v1964_v36 = vpop.f32.mrf.mxu0 }
 0x140   : > { %v2049_v25 = vadd.f32 %v1894_v23, %v1964_v36 }
 0x141   : > { %608 = vrot.lane.b32.xlu2 %v1881_v19, %s1775_s26 }
 0x144   : > { %1103 = vrot.lane.b32.xlu0 %v1838_v5, %s1778_s6 }
 0x147   : > { %v1972_v38 = vpop.f32.mrf.mxu0 }
 0x149   : > { %838 = vrot.lane.b32.xlu2 %v1885_v20, %s1776_s30 }
 0x14f   : > { %v1976_v39 = vpop.f32.mrf.mxu0 }
 0x150   : > { %v2067_v26 = vadd.f32 %v1894_v23, %v1976_v39 }
 0x151   : > { %987 = vrot.lane.b32.xlu1 %v1838_v5, %s1779_s7  ;;  %v1991_v5 = vadd.f32 %v1894_v23, %v673_v32 }
 0x153   : > { %v685_v48 = vsel %vm321_vm1, %v1991_v5, -inf }
 0x157   : > { %v1978_v40 = vpop.f32.mrf.mxu0 }
 0x15f   : > { %v1132_v41 = vpop.f32.mrf.mxu0 }
 0x160   : > { %v1984_v43 = vadd.f32 %v1894_v23, %v1132_v41 }
 0x162   : > { %v1143_v45 = vsel %vm321_vm1, %v1984_v43, -inf }
 0x16e   : > { %451 = vmax.xlane.f32.xlu0 %v450_v44 }
 0x172   : > { %1144 = vmax.xlane.f32.xlu2 %v1143_v45 }
 0x174   : > { %v446_v46 = vpop.xlane.xlu2 %445 }
 0x175   : > { %v456_v47 = vsub.f32 %v1931_v57, %v446_v46 }
 0x176   : > { %686 = vmax.xlane.f32.xlu0 %v685_v48 }
 0x177   : > { %v460_v50 = vmul.f32 1.442695, %v456_v47 }
 0x179   : > { %1644 = vpow2.f32 %v460_v50 }
 0x17b   : > { %448 = vmax.xlane.f32.xlu1 %v447_v52 }
 0x17f   : > { %v2005_v56 = vpop.eup %1644 }
 0x180   : > { %v468_v57 = vsel %vm321_vm1, %v2005_v56, 0.0 }
 0x181   : > { %469 = vadd.xlane.f32.xlu2 %v468_v57 }
 0x183   : > { %680 = vmax.xlane.f32.xlu1 %v679_v58 }
 0x18a   : > { %492 = vrot.lane.b32.xlu0 %v1881_v19, %s1773_s24 }
 0x18b   : > { %683 = vmax.xlane.f32.xlu1 %v682_v61 }
 0x193   : > { %v348_v62 = vpop.xlane.xlu0 %347 }
 0x194   : > { %1646 = vrcp.f32 %v348_v62 }
 0x19a   : > { %v1647_v0 = vpop.eup %1646 }
 0x19b   : > { %v351_v63 = vpop.xlane.xlu1 %350  ;;  %v362_v3 = vmul.f32 %v1647_v0, %v1947_v9  ;;  %v768_v9 = vsel %vm289_vm0, %v1903_v29, 0  ;;  %v1003_v29 = vsel %vm289_vm0, %v1924_v53, 0  ;;  %v911_v53 = vsel %vm321_vm1, %v2049_v25, -inf }
 0x19c   : > { %1648 = vrcp.f32 %v351_v63 }
 0x1a2   : > { %v1649_v1 = vpop.eup %1648 }
 0x1a3   : > { %v363_v4 = vmul.f32 %v1649_v1, %v1639_v16  ;;  %v354_v10 = vpop.xlane.xlu0 %353 }
 0x1a4   : > { %724 = vrot.lane.b32.xlu1 %v1881_v19, %s1774_s25  ;;  %1650 = vrcp.f32 %v354_v10 }
 0x1a5   : > { %v366_v7 = vpack.c.bf16 %v363_v4, %v362_v3 }
 0x1a7   : > { %1497 = vmatmul.msk.bf16.vlgmr.msra.gmra.mxu1 %vm321_vm1, %v366_v7 }
 0x1a8   : > { %779 = vmatpush.bf16.xpose.msra.mxu1 %v771_v8 }
 0x1aa   : > { %v1651_v13 = vpop.eup %1650 }
 0x1ab   : > { %v357_v11 = vpop.xlane.xlu1 %356  ;;  %v364_v15 = vmul.f32 %v1651_v13, %v1954_v27  ;;  %v2069_v27 = vpop.xlane.xlu2 %454 }
 0x1ac   : > { %1652 = vrcp.f32 %v357_v11  ;;  %840 = vrot.lane.b32.xlu1 %v1881_v19, %s1776_s30 }
 0x1b0   : > { %780 = vmatpush.bf16.xpose.msra.mxu1 %v768_v9 }
 0x1b2   : > { %v1653_v14 = vpop.eup %1652 }
 0x1b3   : > { %v365_v16 = vmul.f32 %v1653_v14, %v1958_v33  ;;  %v678_v33 = vpop.xlane.xlu2 %677 }
 0x1b4   : > { %909 = vmax.xlane.f32.xlu0 %v908_v21  ;;  %v688_v58 = vsub.f32 %v1945_v6, %v678_v33 }
 0x1b5   : > { %v367_v17 = vpack.c.bf16 %v365_v16, %v364_v15 }
 0x1b6   : > { %v1104_v18 = vpop.permute.xlu0 %1103 }
 0x1b7   : > { %1498 = vmatmul.msk.bf16.gmra.mxu1 %vm321_vm1, %v367_v17  ;;  %1524 = vmatmul.msk.bf16.gmra.mxu0 %vm289_vm0, %v1104_v18 }
 0x1bb   : > { %v491_v36 = vpop.permute.xlu2 %490 }
 0x1c3   : > { %v988_v28 = vpop.permute.xlu1 %987  ;;  %v609_v44 = vpop.permute.xlu2 %608 }
 0x1c7   : > { %1503 = vmatmul.msk.bf16.vlgmr.msrb.gmra.mxu1 %vm289_vm0, %v1896_v24  ;;  %v2059_v24 = vadd.f32 %v1894_v23, %v1972_v38 }
 0x1c8   : > { %1011 = vmatpush.bf16.xpose.msrb.mxu1 %v1003_v29  ;;  %606 = vrot.lane.b32.xlu0 %v1885_v20, %s1775_s26 }
 0x1c9   : > { %v914_v54 = vsel %vm321_vm1, %v2059_v24, -inf }
 0x1d0   : > { %1012 = vmatpush.bf16.xpose.msrb.mxu1 %v1000_v22  ;;  %722 = vrot.lane.b32.xlu0 %v1885_v20, %s1774_s25 }
 0x1d6   : > { %912 = vmax.xlane.f32.xlu1 %v911_v53 }
 0x1d7   : > { %1504 = vmatmul.msk.bf16.gmra.mxu1 %vm289_vm0, %v1905_v31  ;;  %v917_v31 = vsel %vm321_vm1, %v2067_v26, -inf }
 0x1d8   : > { %956 = vrot.lane.b32.xlu0 %v1881_v19, %s1777_s5 }
 0x1de   : > { %915 = vmax.xlane.f32.xlu1 %v914_v54 }
 0x1e0   : > { %954 = vrot.lane.b32.xlu0 %v1885_v20, %s1777_s5 }
 0x1e1   : > { %v452_v30 = vpop.xlane.xlu0 %451 }
 0x1e2   : > { %v458_v45 = vsub.f32 %v1981_v42, %v452_v30  ;;  %v2137_v30 = vpop.permute.xlu2 %838 }
 0x1e4   : > { %v464_v47 = vmul.f32 1.442695, %v458_v45 }
 0x1e6   : > { %918 = vmax.xlane.f32.xlu1 %v917_v31 }
 0x1e7   : > { %1511 = vmatmul.msk.bf16.vlgmr.msra.gmra.mxu1 %vm289_vm0, %v1920_v51  ;;  %v2081_v51 = vadd.f32 %v1894_v23, %v1978_v40 }
 0x1e9   : > { %v687_v34 = vpop.xlane.xlu0 %686 }
 0x1ee   : > { %v449_v32 = vpop.xlane.xlu1 %448 }
 0x1ef   : > { %v457_v0 = vsub.f32 %v1998_v49, %v449_v32  ;;  %v691_v49 = vsub.f32 %v1991_v5, %v687_v34 }
 0x1f1   : > { %v462_v7 = vmul.f32 1.442695, %v457_v0  ;;  %v698_v15 = vmul.f32 1.442695, %v691_v49 }
 0x1f6   : > { %v681_v35 = vpop.xlane.xlu1 %680 }
 0x1f7   : > { %1512 = vmatmul.msk.bf16.gmra.mxu1 %vm289_vm0, %v1910_v37  ;;  %v1140_v37 = vsel %vm321_vm1, %v2081_v51, -inf  ;;  %v689_v3 = vsub.f32 %v2003_v55, %v681_v35 }
 0x1f9   : > { %v694_v8 = vmul.f32 1.442695, %v689_v3 }
 0x1fc   : > { %v493_v38 = vpop.permute.xlu0 %492 }
 0x1fd   : > { %508 = vmatpush.bf16.msra.mxu3 %v493_v38 }
 0x1fe   : > { %v684_v39 = vpop.xlane.xlu1 %683 }
 0x1ff   : > { %v690_v41 = vsub.f32 %v2012_v59, %v684_v39  ;;  %v692_v59 = vmul.f32 1.442695, %v688_v58 }
 0x201   : > { %v696_v46 = vmul.f32 1.442695, %v690_v41  ;;  %509 = vmatpush.bf16.msra.mxu3 %v491_v36 }
 0x203   : > { %1654 = vpow2.f32 %v696_v46  ;;  %v1145_v46 = vpop.xlane.xlu2 %1144 }
 0x204   : > { %1656 = vpow2.f32 %v464_v47 }
 0x205   : > { %624 = vmatpush.bf16.msrb.mxu3 %v609_v44  ;;  %1658 = vpow2.f32 %v692_v59 }
 0x206   : > { %1660 = vpow2.f32 %v462_v7 }
 0x207   : > { %1519 = vmatmul.msk.bf16.vlgmr.msrb.gmra.mxu1 %vm289_vm0, %v1937_v60  ;;  %1662 = vpow2.f32 %v694_v8 }
 0x208   : > { %1664 = vpow2.f32 %v698_v15 }
 0x209   : > { %v2087_v48 = vpop.eup %1654 }
 0x20a   : > { %1141 = vmax.xlane.f32.xlu0 %v1140_v37  ;;  %v706_v42 = vsel %vm321_vm1, %v2087_v48, 0.0  ;;  %v2091_v50 = vpop.eup %1656 }
 0x20b   : > { %707 = vadd.xlane.f32.xlu2 %v706_v42  ;;  %v474_v40 = vsel %vm321_vm1, %v2091_v50, 0.0  ;;  %v2110_v10 = vpop.eup %1658  ;;  %v1153_v42 = vsub.f32 %v1984_v43, %v1145_v46 }
 0x20c   : > { %v700_v21 = vsel %vm321_vm1, %v2110_v10, 0.0  ;;  %v2125_v18 = vpop.eup %1660 }
 0x20d   : > { %v2127_v29 = vpop.eup %1662  ;;  %v471_v54 = vsel %vm321_vm1, %v2125_v18, 0.0 }
 0x20e   : > { %v703_v53 = vsel %vm321_vm1, %v2127_v29, 0.0  ;;  %v2140_v34 = vpop.eup %1664 }
 0x20f   : > { %v709_v36 = vsel %vm321_vm1, %v2140_v34, 0.0 }
 0x213   : > { %475 = vadd.xlane.f32.xlu2 %v474_v40 }
 0x216   : > { %v725_v52 = vpop.permute.xlu1 %724 }
 0x217   : > { %1520 = vmatmul.msk.bf16.gmra.mxu1 %vm289_vm0, %v988_v28  ;;  %740 = vmatpush.bf16.msrb.mxu2 %v725_v52 }
 0x21e   : > { %v2123_v16 = vpop.permute.xlu1 %840 }
 0x224   : > { %v2096_v60 = vpop.f32.mrf.mxu1 }
 0x227   : > { %v910_v61 = vpop.xlane.xlu0 %909 }
 0x228   : > { %v920_v55 = vsub.f32 %v2029_v12, %v910_v61  ;;  %v459_v12 = vsub.f32 %v1940_v2, %v2069_v27 }
 0x22a   : > { %v924_v17 = vmul.f32 1.442695, %v920_v55  ;;  %v466_v31 = vmul.f32 1.442695, %v459_v12 }
 0x22c   : > { %v2098_v57 = vpop.f32.mrf.mxu1  ;;  %1666 = vpow2.f32 %v924_v17 }
 0x22d   : > { %1668 = vpow2.f32 %v466_v31 }
 0x232   : > { %v2142_v2 = vpop.eup %1666 }
 0x233   : > { %v932_v38 = vsel %vm321_vm1, %v2142_v2, 0.0  ;;  %v2149_v44 = vpop.eup %1668 }
 0x234   : > { %v2101_v62 = vpop.f32.mrf.mxu1  ;;  %v1135_v63 = vpop.f32.mrf.mxu0  ;;  %v477_v52 = vsel %vm321_vm1, %v2149_v44, 0.0 }
 0x235   : > { %v2105_v1 = vadd.f32 %v1894_v23, %v1135_v63 }
 0x237   : > { %v1146_v4 = vsel %vm321_vm1, %v2105_v1, -inf }
 0x238   : > { %1147 = vmax.xlane.f32.xlu1 %v1146_v4 }
 0x23a   : > { %v607_v6 = vpop.permute.xlu0 %606 }
 0x23b   : > { %625 = vmatpush.bf16.msrb.mxu3 %v607_v6 }
 0x23c   : > { %v2112_v11 = vpop.f32.mrf.mxu1  ;;  %v1137_v9 = vpop.f32.mrf.mxu0 }
 0x23d   : > { %v2116_v13 = vadd.f32 %v1894_v23, %v1137_v9 }
 0x23f   : > { %v1149_v14 = vsel %vm321_vm1, %v2116_v13, -inf }
 0x240   : > { %1150 = vmax.xlane.f32.xlu0 %v1149_v14  ;;  %701 = vadd.xlane.f32.xlu1 %v700_v21 }
 0x242   : > { %v723_v5 = vpop.permute.xlu0 %722 }
 0x243   : > { %741 = vmatpush.bf16.msrb.mxu2 %v723_v5 }
 0x244   : > { %v2129_v22 = vpop.f32.mrf.mxu1 }
 0x248   : > { %704 = vadd.xlane.f32.xlu0 %v703_v53  ;;  %472 = vadd.xlane.f32.xlu1 %v471_v54 }
 0x249   : > { %v913_v28 = vpop.xlane.xlu1 %912 }
 0x24a   : > { %v921_v32 = vsub.f32 %v2049_v25, %v913_v28  ;;  %v957_v33 = vpop.permute.xlu0 %956 }
 0x24b   : > { %972 = vmatpush.bf16.msra.mxu2 %v957_v33 }
 0x24c   : > { %v926_v27 = vmul.f32 1.442695, %v921_v32  ;;  %v552_v35 = vpop.f32.mrf.mxu1 }
 0x24d   : > { %v2169_v7 = vadd.f32 %v1894_v23, %v552_v35 }
 0x24e   : > { %1670 = vpow2.f32 %v926_v27 }
 0x24f   : > { %v563_v49 = vsel %vm321_vm1, %v2169_v7, -inf }
 0x250   : > { %710 = vadd.xlane.f32.xlu1 %v709_v36  ;;  %933 = vadd.xlane.f32.xlu0 %v932_v38 }
 0x251   : > { %v916_v39 = vpop.xlane.xlu1 %915 }
 0x252   : > { %v922_v25 = vsub.f32 %v2059_v24, %v916_v39  ;;  %v955_v41 = vpop.permute.xlu0 %954  ;;  %v1158_v24 = vmul.f32 1.442695, %v1153_v42 }
 0x253   : > { %973 = vmatpush.bf16.msra.mxu2 %v955_v41 }
 0x254   : > { %v2151_v45 = vpop.eup %1670  ;;  %v928_v47 = vmul.f32 1.442695, %v922_v25  ;;  %v555_v37 = vpop.f32.mrf.mxu1 }
 0x255   : > { %v935_v40 = vsel %vm321_vm1, %v2151_v45, 0.0  ;;  %v2182_v14 = vadd.f32 %v1894_v23, %v555_v37 }
 0x256   : > { %1672 = vpow2.f32 %v928_v47  ;;  %936 = vadd.xlane.f32.xlu2 %v935_v40 }
 0x257   : > { %1674 = vpow2.f32 %v1158_v24  ;;  %v566_v15 = vsel %vm321_vm1, %v2182_v14, -inf }
 0x258   : > { %478 = vadd.xlane.f32.xlu1 %v477_v52 }
 0x259   : > { %v919_v58 = vpop.xlane.xlu1 %918 }
 0x25a   : > { %v923_v59 = vsub.f32 %v2067_v26, %v919_v58 }
 0x25c   : > { %v2159_v61 = vpop.eup %1672  ;;  %v930_v63 = vmul.f32 1.442695, %v923_v59  ;;  %v557_v0 = vpop.f32.mrf.mxu1 }
 0x25d   : > { %v2162_v43 = vadd.f32 %v1894_v23, %v557_v0  ;;  %v938_v3 = vsel %vm321_vm1, %v2159_v61, 0.0  ;;  %v2171_v26 = vpop.eup %1674 }
 0x25e   : > { %1676 = vpow2.f32 %v930_v63  ;;  %939 = vadd.xlane.f32.xlu0 %v938_v3  ;;  %v1167_v55 = vsel %vm321_vm1, %v2171_v26, 0.0 }
 0x25f   : > { %v569_v4 = vsel %vm321_vm1, %v2162_v43, -inf }
 0x260   : > { %570 = vmax.xlane.f32.xlu2 %v569_v4  ;;  %v470_v4 = vpop.xlane.xlu2 %469 }
 0x264   : > { %v2173_v8 = vpop.eup %1676  ;;  %v782_v6 = vpop.f32.mrf.mxu1 }
 0x265   : > { %v941_v9 = vsel %vm321_vm1, %v2173_v8, 0.0  ;;  %v2203_v39 = vadd.f32 %v1894_v23, %v782_v6 }
 0x266   : > { %942 = vadd.xlane.f32.xlu1 %v941_v9  ;;  %564 = vmax.xlane.f32.xlu0 %v563_v49 }
 0x267   : > { %v792_v46 = vsel %vm321_vm1, %v2203_v39, -inf }
 0x268   : > { %1168 = vadd.xlane.f32.xlu2 %v1167_v55 }
 0x26c   : > { %v784_v21 = vpop.f32.mrf.mxu1 }
 0x26d   : > { %v2213_v47 = vadd.f32 %v1894_v23, %v784_v21 }
 0x26e   : > { %567 = vmax.xlane.f32.xlu0 %v566_v15 }
 0x26f   : > { %v795_v40 = vsel %vm321_vm1, %v2213_v47, -inf }
 0x274   : > { %v787_v17 = vpop.f32.mrf.mxu1 }
 0x275   : > { %v2223_v52 = vadd.f32 %v1894_v23, %v787_v17 }
 0x277   : > { %v798_v24 = vsel %vm321_vm1, %v2223_v52, -inf }
 0x27c   : > { %v789_v5 = vpop.f32.mrf.mxu1 }
 0x27d   : > { %v1142_v12 = vpop.xlane.xlu0 %1141  ;;  %v2230_v59 = vadd.f32 %v1894_v23, %v789_v5 }
 0x27e   : > { %v1152_v53 = vsub.f32 %v2081_v51, %v1142_v12  ;;  %v2198_v51 = vadd.f32 %v1894_v23, %v2129_v22  ;;  %v708_v21 = vpop.xlane.xlu2 %707 }
 0x27f   : > { %v801_v63 = vsel %vm321_vm1, %v2230_v59, -inf }
 0x280   : > { %v1156_v54 = vmul.f32 1.442695, %v1152_v53  ;;  %v560_v36 = vsel %vm321_vm1, %v2198_v51, -inf }
 0x282   : > { %1678 = vpow2.f32 %v1156_v54 }
 0x283   : > { %1680 = vrcp.f32 %v470_v4 }
 0x284   : > { %v1014_v31 = vpop.f32.mrf.mxu1 }
 0x285   : > { %v2188_v28 = vadd.f32 %v1894_v23, %v1014_v31 }
 0x287   : > { %v1024_v32 = vsel %vm321_vm1, %v2188_v28, -inf }
 0x288   : > { %v2192_v33 = vpop.eup %1678  ;;  %1025 = vmax.xlane.f32.xlu2 %v1024_v32 }
 0x289   : > { %v1164_v27 = vsel %vm321_vm1, %v2192_v33, 0.0  ;;  %v1681_v15 = vpop.eup %1680 }
 0x28a   : > { %1165 = vadd.xlane.f32.xlu1 %v1164_v27  ;;  %v484_v54 = vmul.f32 %v1681_v15, %v2005_v56 }
 0x28c   : > { %v1016_v35 = vpop.f32.mrf.mxu1 }
 0x28d   : > { %v2237_v6 = vadd.f32 %v1894_v23, %v1016_v35 }
 0x28f   : > { %v1027_v9 = vsel %vm321_vm1, %v2237_v6, -inf }
 0x292   : > { %561 = vmax.xlane.f32.xlu1 %v560_v36  ;;  %v476_v36 = vpop.xlane.xlu2 %475 }
 0x294   : > { %v1019_v38 = vpop.f32.mrf.mxu1 }
 0x295   : > { %v2206_v25 = vadd.f32 %v1894_v23, %v1019_v38 }
 0x297   : > { %v1030_v41 = vsel %vm321_vm1, %v2206_v25, -inf }
 0x298   : > { %1031 = vmax.xlane.f32.xlu0 %v1030_v41 }
 0x29a   : > { %793 = vmax.xlane.f32.xlu1 %v792_v46 }
 0x29c   : > { %v1021_v22 = vpop.f32.mrf.mxu1 }
 0x29d   : > { %v2216_v37 = vadd.f32 %v1894_v23, %v1021_v22 }
 0x29f   : > { %v1033_v42 = vsel %vm321_vm1, %v2216_v37, -inf }
 0x2a0   : > { %1034 = vmax.xlane.f32.xlu2 %v1033_v42 }
 0x2a2   : > { %796 = vmax.xlane.f32.xlu1 %v795_v40 }
 0x2aa   : > { %799 = vmax.xlane.f32.xlu1 %v798_v24 }
 0x2ab   : > { %v2227_v58 = vpop.xlane.xlu1 %1147 }
 0x2b2   : > { %802 = vmax.xlane.f32.xlu1 %v801_v63 }
 0x2b3   : > { %v702_v0 = vpop.xlane.xlu1 %701  ;;  %v2234_v3 = vpop.xlane.xlu0 %1150 }
 0x2b4   : > { %1682 = vrcp.f32 %v702_v0 }
 0x2ba   : > { %1028 = vmax.xlane.f32.xlu1 %v1027_v9  ;;  %v1683_v17 = vpop.eup %1682 }
 0x2bb   : > { %v473_v49 = vpop.xlane.xlu1 %472  ;;  %v705_v55 = vpop.xlane.xlu0 %704  ;;  %v716_v31 = vmul.f32 %v1683_v17, %v2110_v10 }
 0x2bc   : > { %1684 = vrcp.f32 %v473_v49 }
 0x2bd   : > { %1686 = vrcp.f32 %v705_v55 }
 0x2c2   : > { %v1685_v5 = vpop.eup %1684 }
 0x2c3   : > { %v1687_v12 = vpop.eup %1686  ;;  %v711_v53 = vpop.xlane.xlu1 %710  ;;  %v485_v23 = vmul.f32 %v1685_v5, %v2125_v18 }
 0x2c4   : > { %v717_v32 = vmul.f32 %v1687_v12, %v2127_v29  ;;  %1688 = vrcp.f32 %v711_v53  ;;  %v934_v38 = vpop.xlane.xlu0 %933 }
 0x2c5   : > { %v488_v27 = vpack.c.bf16 %v485_v23, %v484_v54  ;;  %1690 = vrcp.f32 %v476_v36 }
 0x2c6   : > { %v720_v35 = vpack.c.bf16 %v717_v32, %v716_v31  ;;  %1692 = vrcp.f32 %v708_v21 }
 0x2c7   : > { %1501 = vmatmul.msk.bf16.vlgmr.msra.gmra.mxu3 %vm321_vm1, %v488_v27 }
 0x2c8   : > { %1509 = vmatmul.msk.bf16.vlgmr.msrb.gmra.mxu2 %vm321_vm1, %v720_v35  ;;  %856 = vmatpush.bf16.msra.mxu3 %v2123_v16 }
 0x2c9   : > { %v937_v63 = vpop.xlane.xlu2 %936 }
 0x2ca   : > { %v1689_v10 = vpop.eup %1688 }
 0x2cb   : > { %v479_v56 = vpop.xlane.xlu1 %478  ;;  %v1691_v18 = vpop.eup %1690  ;;  %v719_v22 = vmul.f32 %v1689_v10, %v2140_v34 }
 0x2cc   : > { %1694 = vrcp.f32 %v479_v56  ;;  %857 = vmatpush.bf16.msra.mxu3 %v2137_v30  ;;  %v1693_v29 = vpop.eup %1692  ;;  %v486_v42 = vmul.f32 %v1691_v18, %v2091_v50 }
 0x2cd   : > { %v718_v16 = vmul.f32 %v1693_v29, %v2087_v48  ;;  %1696 = vrcp.f32 %v937_v63 }
 0x2ce   : > { %1698 = vrcp.f32 %v934_v38 }
 0x2cf   : > { %v721_v0 = vpack.c.bf16 %v719_v22, %v718_v16 }
 0x2d1   : > { %v940_v41 = vpop.xlane.xlu0 %939 }
 0x2d2   : > { %v1695_v46 = vpop.eup %1694 }
 0x2d3   : > { %v487_v40 = vmul.f32 %v1695_v46, %v2149_v44  ;;  %v1697_v34 = vpop.eup %1696 }
 0x2d4   : > { %v1699_v50 = vpop.eup %1698  ;;  %v949_v44 = vmul.f32 %v1697_v34, %v2151_v45 }
 0x2d5   : > { %v489_v24 = vpack.c.bf16 %v487_v40, %v486_v42  ;;  %v948_v21 = vmul.f32 %v1699_v50, %v2142_v2  ;;  %v571_v2 = vpop.xlane.xlu2 %570 }
 0x2d7   : > { %1502 = vmatmul.msk.bf16.gmra.mxu3 %vm321_vm1, %v489_v24  ;;  %v952_v5 = vpack.c.bf16 %v949_v44, %v948_v21 }
 0x2d8   : > { %1510 = vmatmul.msk.bf16.gmra.mxu2 %vm321_vm1, %v721_v0 }
 0x2d9   : > { %v565_v30 = vpop.xlane.xlu0 %564 }
 0x2da   : > { %v573_v4 = vsub.f32 %v2169_v7, %v565_v30  ;;  %v943_v7 = vpop.xlane.xlu1 %942 }
 0x2dc   : > { %v578_v9 = vmul.f32 1.442695, %v573_v4 }
 0x2dd   : > { %v1169_v32 = vpop.xlane.xlu2 %1168 }
 0x2de   : > { %1700 = vpow2.f32 %v578_v9 }
 0x2e1   : > { %v568_v49 = vpop.xlane.xlu0 %567 }
 0x2e2   : > { %v574_v48 = vsub.f32 %v2182_v14, %v568_v49 }
 0x2e4   : > { %v2258_v55 = vpop.eup %1700  ;;  %v580_v15 = vmul.f32 1.442695, %v574_v48 }
 0x2e5   : > { %v587_v17 = vsel %vm321_vm1, %v2258_v55, 0.0 }
 0x2e6   : > { %1702 = vpow2.f32 %v580_v15  ;;  %588 = vadd.xlane.f32.xlu2 %v587_v17 }
 0x2e7   : > { %1704 = vrcp.f32 %v943_v7 }
 0x2e8   : > { %1517 = vmatmul.msk.bf16.vlgmr.msra.gmra.mxu2 %vm321_vm1, %v952_v5  ;;  %1706 = vrcp.f32 %v940_v41 }
 0x2e9   : > { %1708 = vrcp.f32 %v1169_v32 }
 0x2ec   : > { %v2264_v12 = vpop.eup %1702 }
 0x2ed   : > { %v590_v45 = vsel %vm321_vm1, %v2264_v12, 0.0  ;;  %v1705_v14 = vpop.eup %1704 }
 0x2ee   : > { %591 = vadd.xlane.f32.xlu1 %v590_v45  ;;  %v1707_v53 = vpop.eup %1706  ;;  %v951_v54 = vmul.f32 %v1705_v14, %v2173_v8 }
 0x2ef   : > { %v950_v23 = vmul.f32 %v1707_v53, %v2159_v61  ;;  %v1709_v35 = vpop.eup %1708 }
 0x2f0   : > { %v2272_v38 = vmul.f32 %v1709_v35, %v2171_v26 }
 0x2f1   : > { %v953_v31 = vpack.c.bf16 %v951_v54, %v950_v23 }
 0x2f8   : > { %1518 = vmatmul.msk.bf16.gmra.mxu2 %vm321_vm1, %v953_v31 }
 0x2fd   : > { %v1166_v27 = vpop.xlane.xlu1 %1165 }
 0x2fe   : > { %1710 = vrcp.f32 %v1166_v27  ;;  %v1155_v27 = vsub.f32 %v2116_v13, %v2234_v3 }
 0x304   : > { %v1711_v36 = vpop.eup %1710 }
 0x305   : > { %v2275_v56 = vmul.f32 %v1711_v36, %v2192_v33  ;;  %v562_v10 = vpop.xlane.xlu1 %561 }
 0x306   : > { %v572_v8 = vsub.f32 %v2198_v51, %v562_v10 }
 0x307   : > { %v1184_v61 = vpack.c.bf16 %v2272_v38, %v2275_v56 }
 0x308   : > { %v576_v18 = vmul.f32 1.442695, %v572_v8  ;;  %v1154_v8 = vsub.f32 %v2105_v1, %v2227_v58 }
 0x30a   : > { %1712 = vpow2.f32 %v576_v18 }
 0x30d   : > { %v794_v29 = vpop.xlane.xlu1 %793 }
 0x30e   : > { %v804_v41 = vsub.f32 %v2203_v39, %v794_v29  ;;  %v1764_v29 = vld [vmem:[%s1878_s10] sm:$0xff] }
 0x310   : > { %v2281_v46 = vpop.eup %1712  ;;  %v808_v22 = vmul.f32 1.442695, %v804_v41  ;;  %v1160_v41 = vmul.f32 1.442695, %v1154_v8 }
 0x311   : > { %v584_v26 = vsel %vm321_vm1, %v2281_v46, 0.0 }
 0x312   : > { %1714 = vpow2.f32 %v808_v22  ;;  %585 = vadd.xlane.f32.xlu0 %v584_v26 }
 0x315   : > { %v797_v33 = vpop.xlane.xlu1 %796 }
 0x316   : > { %v805_v42 = vsub.f32 %v2213_v47, %v797_v33  ;;  %v1026_v47 = vpop.xlane.xlu2 %1025 }
 0x317   : > { %v1036_v50 = vsub.f32 %v2188_v28, %v1026_v47  ;;  %v575_v28 = vsub.f32 %v2162_v43, %v571_v2 }
 0x318   : > { %v2286_v51 = vpop.eup %1714  ;;  %v810_v40 = vmul.f32 1.442695, %v805_v42 }
 0x319   : > { %v816_v16 = vsel %vm321_vm1, %v2286_v51, 0.0  ;;  %v1040_v44 = vmul.f32 1.442695, %v1036_v50  ;;  %v582_v17 = vmul.f32 1.442695, %v575_v28 }
 0x31a   : > { %1716 = vpow2.f32 %v810_v40  ;;  %817 = vadd.xlane.f32.xlu2 %v816_v16 }
 0x31d   : > { %v800_v39 = vpop.xlane.xlu1 %799 }
 0x31e   : > { %v806_v24 = vsub.f32 %v2223_v52, %v800_v39  ;;  %v1035_v1 = vpop.xlane.xlu2 %1034 }
 0x31f   : > { %v1039_v40 = vsub.f32 %v2216_v37, %v1035_v1 }
 0x320   : > { %v2291_v63 = vpop.eup %1716  ;;  %v812_v0 = vmul.f32 1.442695, %v806_v24 }
 0x321   : > { %v819_v30 = vsel %vm321_vm1, %v2291_v63, 0.0  ;;  %v1046_v24 = vmul.f32 1.442695, %v1039_v40 }
 0x322   : > { %1718 = vpow2.f32 %v812_v0  ;;  %820 = vadd.xlane.f32.xlu1 %v819_v30 }
 0x325   : > { %v803_v4 = vpop.xlane.xlu1 %802 }
 0x326   : > { %v807_v9 = vsub.f32 %v2230_v59, %v803_v4  ;;  %1072 = vrot.lane.b32.xlu0 %v1881_v19, %s1779_s7 }
 0x328   : > { %v2298_v34 = vpop.eup %1718  ;;  %v814_v52 = vmul.f32 1.442695, %v807_v9 }
 0x329   : > { %v822_v49 = vsel %vm321_vm1, %v2298_v34, 0.0 }
 0x32a   : > { %1720 = vpow2.f32 %v814_v52  ;;  %823 = vadd.xlane.f32.xlu1 %v822_v49 }
 0x32b   : > { %1722 = vpow2.f32 %v1040_v44 }
 0x32c   : > { %1724 = vpow2.f32 %v582_v17 }
 0x32d   : > { %v1029_v5 = vpop.xlane.xlu1 %1028 }
 0x32e   : > { %v1037_v7 = vsub.f32 %v2237_v6, %v1029_v5  ;;  %v1032_v6 = vpop.xlane.xlu0 %1031 }
 0x32f   : > { %v1038_v23 = vsub.f32 %v2206_v25, %v1032_v6 }
 0x330   : > { %v2303_v48 = vpop.eup %1720  ;;  %v1042_v45 = vmul.f32 1.442695, %v1037_v7 }
 0x331   : > { %v825_v59 = vsel %vm321_vm1, %v2303_v48, 0.0  ;;  %v2307_v21 = vpop.eup %1722  ;;  %v1044_v32 = vmul.f32 1.442695, %v1038_v23 }
 0x332   : > { %826 = vadd.xlane.f32.xlu2 %v825_v59  ;;  %v1048_v15 = vsel %vm321_vm1, %v2307_v21, 0.0  ;;  %v2317_v53 = vpop.eup %1724  ;;  %1726 = vpow2.f32 %v1042_v45 }
 0x333   : > { %v593_v54 = vsel %vm321_vm1, %v2317_v53, 0.0  ;;  %1728 = vpow2.f32 %v1044_v32 }
 0x338   : > { %v2323_v2 = vpop.eup %1726 }
 0x339   : > { %v2330_v10 = vpop.eup %1728 }
 0x33a   : > { %1049 = vadd.xlane.f32.xlu2 %v1048_v15  ;;  %v1054_v25 = vsel %vm321_vm1, %v2330_v10, 0.0 }
 0x343   : > { %1188 = vrot.lane.b32.xlu1 %v1881_v19, %s1778_s6  ;;  %v1051_v19 = vsel %vm321_vm1, %v2323_v2, 0.0 }
 0x34a   : > { %v511_v16 = vpop.f32.mrf.mxu3 }
 0x34b   : > { %v2315_v14 = vpop.f32.mrf.mxu2 }
 0x350   : > { %594 = vadd.xlane.f32.xlu0 %v593_v54 }
 0x352   : > { %1070 = vrot.lane.b32.xlu2 %v1885_v20, %s1779_s7  ;;  %v1162_v20 = vmul.f32 1.442695, %v1155_v27  ;;  %v513_v52 = vpop.f32.mrf.mxu3 }
 0x353   : > { %v745_v43 = vpop.f32.mrf.mxu2  ;;  %v1565_v44 = vpack.i.bf16 %v513_v52, %v511_v16 }
 0x354   : > { %1730 = vpow2.f32 %v1162_v20 }
 0x355   : > { %1732 = vpow2.f32 %v1160_v41 }
 0x358   : > { %1052 = vadd.xlane.f32.xlu0 %v1051_v19 }
 0x359   : > { %v589_v42 = vpop.xlane.xlu2 %588 }
 0x35a   : > { %v2338_v13 = vpop.eup %1730  ;;  %1734 = vrcp.f32 %v589_v42 }
 0x35b   : > { %v748_v31 = vpop.f32.mrf.mxu2  ;;  %v1173_v3 = vsel %vm321_vm1, %v2338_v13, 0.0  ;;  %v2342_v26 = vpop.eup %1732 }
 0x35c   : > { %v1170_v58 = vsel %vm321_vm1, %v2342_v26, 0.0 }
 0x360   : > { %v1735_v30 = vpop.eup %1734 }
 0x361   : > { %v601_v9 = vmul.f32 %v1735_v30, %v2258_v55  ;;  %v1575_v55 = vpack.i.bf16 %v745_v43, %v2315_v14  ;;  %v592_v28 = vpop.xlane.xlu1 %591 }
 0x363   : > { %v750_v35 = vpop.f32.mrf.mxu2 }
 0x364   : > { %v1580_v36 = vpack.i.bf16 %v750_v35, %v748_v31 }
 0x36b   : > { %v975_v18 = vpop.f32.mrf.mxu2 }
 0x36c   : > { %1186 = vrot.lane.b32.xlu0 %v1764_v29, %s1778_s6 }
 0x36d   : > { %1055 = vadd.xlane.f32.xlu1 %v1054_v25 }
 0x373   : > { %v977_v22 = vpop.f32.mrf.mxu2 }
 0x374   : > { %v1585_v31 = vpack.i.bf16 %v977_v22, %v975_v18 }
 0x375   : > { %1174 = vadd.xlane.f32.xlu1 %v1173_v3 }
 0x37b   : > { %1171 = vadd.xlane.f32.xlu2 %v1170_v58  ;;  %v980_v33 = vpop.f32.mrf.mxu2 }
 0x383   : > { %v982_v0 = vpop.f32.mrf.mxu2 }
 0x384   : > { %v1590_v4 = vpack.i.bf16 %v982_v0, %v980_v33 }
 0x385   : > { %v586_v39 = vpop.xlane.xlu0 %585 }
 0x386   : > { %1736 = vrcp.f32 %v586_v39 }
 0x387   : > { %1738 = vpow2.f32 %v1046_v24 }
 0x388   : > { %1740 = vrcp.f32 %v592_v28 }
 0x38c   : > { %v1737_v47 = vpop.eup %1736 }
 0x38d   : > { %v600_v50 = vmul.f32 %v1737_v47, %v2281_v46  ;;  %v2351_v37 = vpop.eup %1738  ;;  %v516_v46 = vpop.f32.mrf.mxu3 }
 0x38e   : > { %1591 = vrot.lane.b32.xlu1 %v1590_v4, %s1774_s25  ;;  %v1057_v59 = vsel %vm321_vm1, %v2351_v37, 0.0  ;;  %v818_v7 = vpop.xlane.xlu2 %817  ;;  %v1741_v32 = vpop.eup %1740 }
 0x38f   : > { %v604_v49 = vpack.c.bf16 %v601_v9, %v600_v50  ;;  %v602_v35 = vmul.f32 %v1741_v32, %v2264_v12 }
 0x391   : > { %1505 = vmatmul.msk.bf16.vlgmr.msrb.gmra.mxu3 %vm321_vm1, %v604_v49 }
 0x393   : > { %1566 = vrot.lane.b32.xlu2 %v1565_v44, %s1778_s6 }
 0x395   : > { %v821_v17 = vpop.xlane.xlu1 %820  ;;  %v518_v5 = vpop.f32.mrf.mxu3 }
 0x396   : > { %1058 = vadd.xlane.f32.xlu0 %v1057_v59  ;;  %v1570_v45 = vpack.i.bf16 %v518_v5, %v516_v46 }
 0x398   : > { %v1073_v15 = vpop.permute.xlu0 %1072 }
 0x399   : > { %1088 = vmatpush.bf16.msrb.mxu3 %v1073_v15 }
 0x39b   : > { %1576 = vrot.lane.b32.xlu2 %v1575_v55, %s1777_s5 }
 0x39d   : > { %v824_v54 = vpop.xlane.xlu1 %823 }
 0x3a5   : > { %v827_v19 = vpop.xlane.xlu2 %826 }
 0x3aa   : > { %1571 = vrot.lane.b32.xlu0 %v1570_v45, %s1778_s6 }
 0x3ad   : > { %v1050_v23 = vpop.xlane.xlu2 %1049 }
 0x3b2   : > { %1581 = vrot.lane.b32.xlu0 %v1580_v36, %s1777_s5 }
 0x3b5   : > { %v1189_v6 = vpop.permute.xlu1 %1188  ;;  %v1071_v14 = vpop.permute.xlu2 %1070 }
 0x3b6   : > { %1204 = vmatpush.bf16.msrb.mxu2 %v1189_v6  ;;  %1089 = vmatpush.bf16.msrb.mxu3 %v1071_v14 }
 0x3ba   : > { %1586 = vrot.lane.b32.xlu0 %v1585_v31, %s1774_s25 }
 0x3c3   : > { %v595_v43 = vpop.xlane.xlu0 %594 }
 0x3c4   : > { %1742 = vrcp.f32 %v595_v43 }
 0x3c5   : > { %1744 = vrcp.f32 %v821_v17 }
 0x3c6   : > { %1746 = vrcp.f32 %v818_v7 }
 0x3c7   : > { %1748 = vrcp.f32 %v827_v19 }
 0x3c8   : > { %1750 = vrcp.f32 %v824_v54 }
 0x3ca   : > { %v1743_v27 = vpop.eup %1742 }
 0x3cb   : > { %v603_v20 = vmul.f32 %v1743_v27, %v2317_v53  ;;  %v1745_v36 = vpop.eup %1744  ;;  %v1053_v18 = vpop.xlane.xlu0 %1052 }
 0x3cc   : > { %v1747_v29 = vpop.eup %1746  ;;  %v833_v25 = vmul.f32 %v1745_v36, %v2291_v63 }
 0x3cd   : > { %v605_v8 = vpack.c.bf16 %v603_v20, %v602_v35  ;;  %v832_v41 = vmul.f32 %v1747_v29, %v2286_v51  ;;  %v1749_v53 = vpop.eup %1748 }
 0x3ce   : > { %v1751_v1 = vpop.eup %1750  ;;  %v835_v58 = vmul.f32 %v1749_v53, %v2303_v48 }
 0x3cf   : > { %1506 = vmatmul.msk.bf16.gmra.mxu3 %vm321_vm1, %v605_v8  ;;  %v836_v3 = vpack.c.bf16 %v833_v25, %v832_v41  ;;  %v834_v51 = vmul.f32 %v1751_v1, %v2298_v34 }
 0x3d1   : > { %v837_v33 = vpack.c.bf16 %v835_v58, %v834_v51 }
 0x3de   : > { %v1187_v22 = vpop.permute.xlu0 %1186 }
 0x3df   : > { %1513 = vmatmul.msk.bf16.vlgmr.msra.gmra.mxu3 %vm321_vm1, %v836_v3  ;;  %1205 = vmatpush.bf16.msrb.mxu2 %v1187_v22 }
 0x3e0   : > { %v1056_v12 = vpop.xlane.xlu1 %1055 }
 0x3e2   : > { %1525 = vmatmul.msk.bf16.vlgmr.msrb.gmra.mxu2 %vm321_vm1, %v1184_v61 }
 0x3e8   : > { %v1175_v63 = vpop.xlane.xlu1 %1174 }
 0x3e9   : > { %1752 = vrcp.f32 %v1175_v63 }
 0x3ee   : > { %v1172_v42 = vpop.xlane.xlu2 %1171 }
 0x3ef   : > { %1754 = vrcp.f32 %v1172_v42  ;;  %1514 = vmatmul.msk.bf16.gmra.mxu3 %vm321_vm1, %v837_v33  ;;  %v1753_v40 = vpop.eup %1752 }
 0x3f0   : > { %1756 = vrcp.f32 %v1053_v18  ;;  %v1183_v61 = vmul.f32 %v1753_v40, %v2338_v13 }
 0x3f1   : > { %1758 = vrcp.f32 %v1050_v23 }
 0x3f2   : > { %1760 = vrcp.f32 %v1056_v12 }
 0x3f5   : > { %v1755_v16 = vpop.eup %1754 }
 0x3f6   : > { %v1757_v38 = vpop.eup %1756  ;;  %v1182_v56 = vmul.f32 %v1755_v16, %v2342_v26  ;;  %v1567_v32 = vpop.permute.xlu2 %1566 }
 0x3f7   : > { %v1759_v39 = vpop.eup %1758  ;;  %v1065_v24 = vmul.f32 %v1757_v38, %v2323_v2  ;;  %v1569_v18 = vunpack.i.h.bf16 %v1567_v32  ;;  %v1568_v29 = vunpack.i.l.bf16 %v1567_v32 }
 0x3f8   : > { %v1185_v48 = vpack.c.bf16 %v1183_v61, %v1182_v56  ;;  %v1064_v34 = vmul.f32 %v1759_v39, %v2307_v21  ;;  %v1761_v47 = vpop.eup %1760 }
 0x3f9   : > { %v1066_v26 = vmul.f32 %v1761_v47, %v2330_v10  ;;  %v1330_v12 = vsel %vm289_vm0, %v2098_v57, %v1569_v18  ;;  %v1329_v53 = vsel %vm289_vm0, %v2096_v60, %v1568_v29 }
 0x3fa   : > { %1526 = vmatmul.msk.bf16.gmra.mxu2 %vm321_vm1, %v1185_v48  ;;  %v1068_v0 = vpack.c.bf16 %v1065_v24, %v1064_v34 }
 0x3fe   : > { %v1577_v20 = vpop.permute.xlu2 %1576 }
 0x3ff   : > { %1521 = vmatmul.msk.bf16.vlgmr.msrb.gmra.mxu3 %vm321_vm1, %v1068_v0  ;;  %v1579_v33 = vunpack.i.h.bf16 %v1577_v20  ;;  %v1578_v42 = vunpack.i.l.bf16 %v1577_v20 }
 0x400   : > { %v2391_v27 = vpop.permute.xlu1 %1591 }
 0x409   : > { %v1059_v30 = vpop.xlane.xlu0 %1058 }
 0x40a   : > { %1762 = vrcp.f32 %v1059_v30 }
 0x410   : > { %v1763_v4 = vpop.eup %1762 }
 0x411   : > { %v1067_v13 = vmul.f32 %v1763_v4, %v2351_v37 }
 0x413   : > { %v1069_v9 = vpack.c.bf16 %v1067_v13, %v1066_v26 }
 0x414   : > { %v627_v50 = vpop.f32.mrf.mxu3 }
 0x415   : > { %1522 = vmatmul.msk.bf16.gmra.mxu3 %vm321_vm1, %v1069_v9 }
 0x41c   : > { %v629_v2 = vpop.f32.mrf.mxu3  ;;  %v1572_v35 = vpop.permute.xlu0 %1571 }
 0x41d   : > { %v1595_v52 = vpack.i.bf16 %v629_v2, %v627_v50 }
 0x41f   : > { %1596 = vrot.lane.b32.xlu1 %v1595_v52, %s1779_s7 }
 0x424   : > { %v1582_v36 = vpop.permute.xlu0 %1581 }
 0x42c   : > { %v1587_v40 = vpop.permute.xlu0 %1586 }
 0x42d   : > { %v1589_v56 = vunpack.i.h.bf16 %v1587_v40  ;;  %v1588_v61 = vunpack.i.l.bf16 %v1587_v40 }
 0x452   : > { %v632_v21 = vpop.f32.mrf.mxu3 }
 0x45a   : > { %v634_v49 = vpop.f32.mrf.mxu3 }
 0x45b   : > { %v1600_v44 = vpack.i.bf16 %v634_v49, %v632_v21  ;;  %v1574_v21 = vunpack.i.h.bf16 %v1572_v35  ;;  %v1573_v49 = vunpack.i.l.bf16 %v1572_v35 }
 0x45d   : > { %1601 = vrot.lane.b32.xlu0 %v1600_v44, %s1779_s7 }
 0x462   : > { %v859_v59 = vpop.f32.mrf.mxu3 }
 0x465   : > { %v1207_v15 = vpop.f32.mrf.mxu2 }
 0x46a   : > { %v861_v55 = vpop.f32.mrf.mxu3 }
 0x46b   : > { %v1605_v46 = vpack.i.bf16 %v861_v55, %v859_v59  ;;  %v1331_v55 = vsel %vm289_vm0, %v2101_v62, %v1573_v49  ;;  %v1594_v62 = vunpack.i.h.bf16 %v2391_v27 }
 0x46d   : > { %1606 = vrot.lane.b32.xlu1 %v1605_v46, %s1776_s30  ;;  %v1209_v10 = vpop.f32.mrf.mxu2 }
 0x46e   : > { %v1625_v28 = vpack.i.bf16 %v1209_v10, %v1207_v15  ;;  %v1332_v15 = vsel %vm289_vm0, %v2112_v11, %v1574_v21 }
 0x472   : > { %v864_v37 = vpop.f32.mrf.mxu3 }
 0x475   : > { %1626 = vrot.lane.b32.xlu1 %v1625_v28, %s1773_s24 }
 0x47a   : > { %v866_v17 = vpop.f32.mrf.mxu3 }
 0x47b   : > { %v1610_v5 = vpack.i.bf16 %v866_v17, %v864_v37  ;;  %v1584_v17 = vunpack.i.h.bf16 %v1582_v36 }
 0x47d   : > { %1611 = vrot.lane.b32.xlu2 %v1610_v5, %s1776_s30  ;;  %v1212_v45 = vpop.f32.mrf.mxu2  ;;  %v1583_v5 = vunpack.i.l.bf16 %v1582_v36 }
 0x482   : > { %v1091_v7 = vpop.f32.mrf.mxu3 }
 0x485   : > { %v1214_v6 = vpop.f32.mrf.mxu2 }
 0x486   : > { %v1630_v23 = vpack.i.bf16 %v1214_v6, %v1212_v45  ;;  %v1593_v6 = vunpack.i.l.bf16 %v2391_v27 }
 0x48a   : > { %v1093_v54 = vpop.f32.mrf.mxu3 }
 0x48b   : > { %v1615_v19 = vpack.i.bf16 %v1093_v54, %v1091_v7 }
 0x48d   : > { %1616 = vrot.lane.b32.xlu2 %v1615_v19, %s1775_s26 }
 0x491   : > { %v1597_v8 = vpop.permute.xlu1 %1596 }
 0x492   : > { %v1599_v25 = vunpack.i.h.bf16 %v1597_v8  ;;  %v1598_v41 = vunpack.i.l.bf16 %v1597_v8 }
 0x494   : > { %v1334_v1 = vsel %vm321_vm1, %v1330_v12, %v1599_v25  ;;  %v1333_v58 = vsel %vm321_vm1, %v1329_v53, %v1598_v41 }
 0x495   : > { %1631 = vrot.lane.b32.xlu2 %v1630_v23, %s1773_s24  ;;  %v1338_v16 = vsel %vm1337_vm2, %v1333_v58, %v1578_v42  ;;  %v1339_v38 = vsel %vm1337_vm2, %v1334_v1, %v1579_v33 }
 0x498   : > { %v1096_v31 = vpop.f32.mrf.mxu3 }
 0x4a0   : > { %v1098_v14 = vpop.f32.mrf.mxu3 }
 0x4a1   : > { %v1620_v43 = vpack.i.bf16 %v1098_v14, %v1096_v31 }
 0x4a3   : > { %1621 = vrot.lane.b32.xlu0 %v1620_v43, %s1775_s26 }
 0x4cf   : > { %v1602_v52 = vpop.permute.xlu0 %1601 }
 0x4d0   : > { %v1604_v44 = vunpack.i.h.bf16 %v1602_v52  ;;  %v1603_v59 = vunpack.i.l.bf16 %v1602_v52 }
 0x4d2   : > { %v1335_v46 = vsel %vm321_vm1, %v1331_v55, %v1603_v59  ;;  %v1336_v10 = vsel %vm321_vm1, %v1332_v15, %v1604_v44 }
 0x4d3   : > { %v1340_v7 = vsel %vm1337_vm2, %v1335_v46, %v1583_v5  ;;  %v1341_v45 = vsel %vm1337_vm2, %v1336_v10, %v1584_v17 }
 0x4d7   : > { %v1612_v3 = vpop.permute.xlu2 %1611 }
 0x4d8   : > { %v1614_v37 = vunpack.i.h.bf16 %v1612_v3  ;;  %v1613_v28 = vunpack.i.l.bf16 %v1612_v3 }
 0x4da   : > { %v1345_v54 = vsel %vm1342_vm3, %v1340_v7, %v1613_v28  ;;  %v1346_v19 = vsel %vm1342_vm3, %v1341_v45, %v1614_v37 }
 0x4db   : > { %v1350_v35 = vsel %vm1347_vm4, %v1345_v54, %v1593_v6  ;;  %v1351_v20 = vsel %vm1347_vm4, %v1346_v19, %v1594_v62 }
 0x4df   : > { %v1607_v22 = vpop.permute.xlu1 %1606 }
 0x4e0   : > { %v1609_v63 = vunpack.i.h.bf16 %v1607_v22  ;;  %v1608_v51 = vunpack.i.l.bf16 %v1607_v22 }
 0x4e2   : > { %v1344_v57 = vsel %vm1342_vm3, %v1339_v38, %v1609_v63  ;;  %v1343_v60 = vsel %vm1342_vm3, %v1338_v16, %v1608_v51 }
 0x4e3   : > { %v1348_v47 = vsel %vm1347_vm4, %v1343_v60, %v1588_v61  ;;  %v1349_v4 = vsel %vm1347_vm4, %v1344_v57, %v1589_v56 }
 0x4e7   : > { %v1617_v39 = vpop.permute.xlu2 %1616  ;;  %v1627_v48 = vpop.permute.xlu1 %1626 }
 0x4e8   : > { %v1619_v24 = vunpack.i.h.bf16 %v1617_v39  ;;  %v1618_v34 = vunpack.i.l.bf16 %v1617_v39  ;;  %v1629_v0 = vunpack.i.h.bf16 %v1627_v48  ;;  %v1628_v30 = vunpack.i.l.bf16 %v1627_v48 }
 0x4ea   : > { %v1353_v26 = vsel %vm1352_vm5, %v1348_v47, %v1618_v34  ;;  %v1354_v13 = vsel %vm1352_vm5, %v1349_v4, %v1619_v24 }
 0x4eb   : > { %v1358_v9 = vsel %vm1357_vm6, %v1353_v26, %v1628_v30  ;;  %v1359_v50 = vsel %vm1357_vm6, %v1354_v13, %v1629_v0 }
 0x4ec   : > { %v1542_v2 = vpack.c.bf16 %v1359_v50, %v1358_v9 }
 0x4ee   : > { %1543 = vst [vmem:[%s2411_s16] sm:$0xff] %v1542_v2  }
 0x4ef   : > { %v1632_v11 = vpop.permute.xlu2 %1631 }
 0x4f0   : > { %v1634_v43 = vunpack.i.h.bf16 %v1632_v11  ;;  %v1633_v32 = vunpack.i.l.bf16 %v1632_v11 }
 0x515   : > { %v1622_v23 = vpop.permute.xlu0 %1621 }
 0x516   : > { %v1624_v31 = vunpack.i.h.bf16 %v1622_v23  ;;  %v1623_v14 = vunpack.i.l.bf16 %v1622_v23 }
 0x518   : > { %v1355_v8 = vsel %vm1352_vm5, %v1350_v35, %v1623_v14  ;;  %v1356_v36 = vsel %vm1352_vm5, %v1351_v20, %v1624_v31 }
 0x519   : > { %v1360_v18 = vsel %vm1357_vm6, %v1355_v8, %v1633_v32  ;;  %v1361_v29 = vsel %vm1357_vm6, %v1356_v36, %v1634_v43 }
 0x51a   : > { %v1547_v25 = vpack.c.bf16 %v1361_v29, %v1360_v18 }
 0x51c   : > { %1549 = vst [vmem:[%s2411_s16 + $0x8] sm:$0xff] %v1547_v25  }
 0x51d PF: > { %s14_s15 = sadd.s32 1, %s1771_s15  }
 0x51e   : > { %p11_p4 = scmp.ge.s32.totalorder %s14_s15, 4  }
 0x520   :  { %13 = sbr.rel (!%p11_p4) target bundleno = 1 (0x1), region = 75 }

// kernel: mtr2_forward.51
= control target key start
LH: loop header
LB: loop body
LE: loop exit
PB: predicated region body
PF: predicated region fallthrough
CT: control target
= control target key end

     0   :  { %11 = vsyncpa [#allocation3], 0  ;;  %s949_s0 = inlined_call_operand.vmem [shape: bf16[64,128], index: 0, kind: input, shape index: {}]   ;;  %s950_s1 = inlined_call_operand.vmem [shape: bf16[128,128], index: 1, kind: input, shape index: {}]   ;;  %s951_s2 = inlined_call_operand.vmem [shape: f32[1,128], index: 2, kind: input, shape index: {}]   ;;  %s952_s3 = inlined_call_operand.vmem [shape: f32[64,128], index: 3, kind: input, shape index: {}]   ;;  %s953_s4 = inlined_call_operand.hbm [shape: f32[1,128], index: 4, kind: input, shape index: {}]   ;;  %s954_s5 = inlined_call_operand.hbm [shape: f32[1,128], index: 5, kind: input, shape index: {}]   ;;  %s955_s6 = inlined_call_operand.vmem [shape: f32[64,128], index: 6, kind: output, shape index: {}]  }
   0x1   :  { %12 = vsyncpa [#allocation5], 0  ;;  %s847_s21 = smov 0  }
   0x2 LB: > { %s203_s24 = sshll.u32 %s953_s4, 4  ;;  %s615_s25 = sadd.s32 4294967295, %s807_s21   ;;  %s807_s21 = sphi %s847_s21, %s18_s21   ;;  %s204_s24 = int_to_ptr.hbm [resolvable:$true] %s203_s24 }
   0x3   : > { %p617_p0 = scmp.ge.s32.totalorder %s807_s21, 1  ;;  %p185_p1 = scmp.lt.s32.totalorder %s807_s21, 3 }
   0x4   : > { %p860_p2 = scmp.eq.s32.totalorder %s615_s25, 0  ;;  %s809_s28 = smov [#allocation2]  }
   0x5   : > { %p864_p3 = pnand %p617_p0, %p185_p1  ;;  %s205_s29 = sshll.u32 %s809_s28, 4  ;;  %s206_s29 = int_to_ptr.vmem [resolvable:$true] %s205_s29 }
   0x6   : > { %s215_s8 = sshll.u32 %s954_s5, 4  ;;  %s810_s9 = smov [#allocation4]   ;;  %s216_s8 = int_to_ptr.hbm [resolvable:$true] %s215_s8 }
   0x7   : > { %p698_p4 = pneg %p864_p3  ;;  %s217_s10 = sshll.u32 %s810_s9, 4  ;;  %s218_s10 = int_to_ptr.vmem [resolvable:$true] %s217_s10 }
   0x8   : > { %248 = sbr.rel (%p864_p3) target bundleno = 454 (0x1c6), region = 44 }
   0x9   : > { %p699_p5 = pnand %p860_p2, %p698_p4 }
   0xb   : > { %701 = dma.hbm_to_vmem [thread:$0]  (!%p699_p5), %s204_s24, 16, %s206_s29, [#allocation3]  }
   0xc   : > { %704 = dma.hbm_to_vmem [thread:$0]  (!%p699_p5), %s216_s8, 16, %s218_s10, [#allocation5]  }
   0xd   : > { %798 = dma.done.wait (%p860_p2), [#allocation3], 16  }
   0xe   : > { %800 = vsyncadd (%p860_p2), [#allocation3], 4294967280 }
   0xf   : > { %802 = dma.done.wait (%p860_p2), [#allocation5], 16  }
  0x10   : > { %804 = vsyncadd (%p860_p2), [#allocation5], 4294967280  ;;  %v681_v0 = vld [vmem:[%s950_s1 + $0x38] sm:$0xff]  ;;  %v680_v1 = vld [vmem:[%s950_s1 + $0x30] sm:$0xff]  ;;  %s624_s19 = sshll.u32 %s615_s25, 2  ;;  %v811_v27 = vmov 128.0  }
  0x11   : > { %391 = vmatpush.bf16.msra.mxu0 %v681_v0  ;;  %682 = vmatpush.bf16.msra.mxu1 %v681_v0  ;;  %v679_v2 = vld [vmem:[%s950_s1 + $0x28] sm:$0xff]  ;;  %v678_v3 = vld [vmem:[%s950_s1 + $0x20] sm:$0xff]  ;;  %v677_v4 = vld [vmem:[%s950_s1 + $0x18] sm:$0xff]  ;;  %p290_p6 = scmp.lt.s32.totalorder %s624_s19, 7  ;;  %723 = vrcp.f32 %v811_v27 }
  0x12   : > { %v676_v5 = vld [vmem:[%s950_s1 + $0x10] sm:$0xff]  ;;  %v675_v6 = vld [vmem:[%s950_s1 + $0x8] sm:$0xff]  ;;  %v674_v7 = vld [vmem:[%s950_s1] sm:$0xff] }
  0x13   : > { %s959_s19 = smov (!%p290_p6, %s624_s19), 7  ;;  %v720_v10 = vld [vmem:[%s951_s2] ss:$0 sm:$0xff] }
  0x14   : > { %s625_s27 = sshll.u32 %s959_s19, 2  ;;  %s627_s9 = sshll.u32 %s959_s19, 3 }
  0x15   : > { %392 = vmatpush.bf16.msra.mxu0 %v680_v1  ;;  %683 = vmatpush.bf16.msra.mxu1 %v680_v1  ;;  %s293_s8 = scalar_lea.vmem %s949_s0, %s625_s27  ;;  %s299_s14 = scalar_lea.vmem %s952_s3, %s627_s9 }
  0x16   : > { %v672_v8 = vld [vmem:[%s293_s8] sm:$0xff]  ;;  %v673_v9 = vld [vmem:[%s293_s8 + $0x8] sm:$0xff]  ;;  %v412_v13 = vld [vmem:[%s299_s14 + $0x10] sm:$0xff]  ;;  %s305_s17 = scalar_lea.vmem %s955_s6, %s627_s9 }
  0x17   : > { %v410_v14 = vld [vmem:[%s299_s14] sm:$0xff]  ;;  %v413_v21 = vld [vmem:[%s299_s14 + $0x18] sm:$0xff]  ;;  %v411_v22 = vld [vmem:[%s299_s14 + $0x8] sm:$0xff]  ;;  %v724_v28 = vpop.eup %723 }
  0x18   : > { %v427_v29 = vmul.f32 128.0, %v724_v28  ;;  %vm431_vm0 = vweird.f32 %v724_v28 }
  0x19   : > { %393 = vmatpush.bf16.msra.mxu0 %v679_v2  ;;  %684 = vmatpush.bf16.msra.mxu1 %v679_v2 }
  0x1a   : > { %v428_v30 = vsub.f32 1.0, %v427_v29 }
  0x1c   : > { %v429_v31 = vmul.f32 %v724_v28, %v428_v30 }
  0x1d   : > { %394 = vmatpush.bf16.msra.mxu0 %v678_v3  ;;  %685 = vmatpush.bf16.msra.mxu1 %v678_v3 }
  0x1e   : > { %v430_v32 = vadd.f32 %v724_v28, %v429_v31 }
  0x20   : > { %v432_v33 = vsel %vm431_vm0, %v724_v28, %v430_v32 }
  0x21   : > { %395 = vmatpush.bf16.msra.mxu0 %v677_v4  ;;  %686 = vmatpush.bf16.msra.mxu1 %v677_v4 }
  0x25   : > { %396 = vmatpush.bf16.msra.mxu0 %v676_v5  ;;  %687 = vmatpush.bf16.msra.mxu1 %v676_v5 }
  0x29   : > { %397 = vmatpush.bf16.msra.mxu0 %v675_v6  ;;  %688 = vmatpush.bf16.msra.mxu1 %v675_v6 }
  0x2d   : > { %398 = vmatpush.bf16.msra.mxu0 %v674_v7  ;;  %689 = vmatpush.bf16.msra.mxu1 %v674_v7 }
  0x30   : > { %399 = vmatmul.bf16.vlgmr.msra.gmra.mxu0 %v672_v8  ;;  %404 = vmatmul.bf16.vlgmr.msra.gmra.mxu1 %v673_v9 }
  0xad   : > { %v400_v11 = vpop.f32.mrf.mxu0  ;;  %v405_v12 = vpop.f32.mrf.mxu1 }
  0xae   : > { %v401_v15 = vadd.f32 %v720_v10, %v400_v11  ;;  %v406_v16 = vadd.f32 %v720_v10, %v405_v12  ;;  %v721_v12 = vld [vmem:[#allocation2] ss:$0 sm:$0xff] }
  0xb0   : > { %v416_v17 = vadd.f32 %v412_v13, %v406_v16  ;;  %v414_v18 = vadd.f32 %v410_v14, %v401_v15 }
  0xb2   : > { %422 = vadd.xlane.f32.xlu1 %v416_v17  ;;  %418 = vadd.xlane.f32.xlu0 %v414_v18 }
  0xb5   : > { %v402_v19 = vpop.f32.mrf.mxu0  ;;  %v407_v20 = vpop.f32.mrf.mxu1 }
  0xb6   : > { %v403_v23 = vadd.f32 %v720_v10, %v402_v19  ;;  %v408_v24 = vadd.f32 %v720_v10, %v407_v20 }
  0xb8   : > { %v417_v25 = vadd.f32 %v413_v21, %v408_v24  ;;  %v415_v26 = vadd.f32 %v411_v22, %v403_v23 }
  0xba   : > { %424 = vadd.xlane.f32.xlu1 %v417_v25  ;;  %420 = vadd.xlane.f32.xlu0 %v415_v26 }
 0x125   : > { %v423_v34 = vpop.xlane.xlu1 %422  ;;  %v419_v35 = vpop.xlane.xlu0 %418 }
 0x126   : > { %v435_v36 = vmul.f32 %v432_v33, %v423_v34  ;;  %v433_v37 = vmul.f32 %v432_v33, %v419_v35 }
 0x128   : > { %v926_v38 = vsub.f32 %v416_v17, %v435_v36  ;;  %v437_v39 = vsub.f32 %v414_v18, %v433_v37  ;;  %v722_v17 = vld [vmem:[#allocation4] ss:$0 sm:$0xff] }
 0x12a   : > { %v443_v40 = vmul.f32 %v926_v38, %v926_v38  ;;  %v441_v41 = vmul.f32 %v437_v39, %v437_v39 }
 0x12c   : > { %449 = vadd.xlane.f32.xlu0 %v443_v40  ;;  %445 = vadd.xlane.f32.xlu2 %v441_v41 }
 0x12d   : > { %v425_v42 = vpop.xlane.xlu1 %424  ;;  %v421_v43 = vpop.xlane.xlu0 %420 }
 0x12e   : > { %v436_v44 = vmul.f32 %v432_v33, %v425_v42  ;;  %v434_v45 = vmul.f32 %v432_v33, %v421_v43 }
 0x130   : > { %v930_v46 = vsub.f32 %v417_v25, %v436_v44  ;;  %v932_v47 = vsub.f32 %v415_v26, %v434_v45 }
 0x132   : > { %v444_v48 = vmul.f32 %v930_v46, %v930_v46  ;;  %v442_v49 = vmul.f32 %v932_v47, %v932_v47 }
 0x134   : > { %451 = vadd.xlane.f32.xlu1 %v444_v48  ;;  %447 = vadd.xlane.f32.xlu2 %v442_v49 }
 0x19f   : > { %v446_v50 = vpop.xlane.xlu2 %445  ;;  %v450_v51 = vpop.xlane.xlu0 %449 }
 0x1a0   : > { %v453_v52 = vmul.f32 %v446_v50, %v432_v33  ;;  %v455_v53 = vmul.f32 %v450_v51, %v432_v33 }
 0x1a2   : > { %v457_v54 = vadd.f32 1e-05, %v453_v52  ;;  %v459_v55 = vadd.f32 1e-05, %v455_v53 }
 0x1a4   : > { %725 = vrsqrt.f32 %v457_v54  ;;  %vm467_vm2 = vweird.f32 %v457_v54  ;;  %vm487_vm5 = vweird.f32 %v459_v55 }
 0x1a5   : > { %727 = vrsqrt.f32 %v459_v55 }
 0x1a7   : > { %v452_v56 = vpop.xlane.xlu1 %451  ;;  %v448_v57 = vpop.xlane.xlu2 %447 }
 0x1a8   : > { %v456_v58 = vmul.f32 %v452_v56, %v432_v33  ;;  %v454_v59 = vmul.f32 %v448_v57, %v432_v33 }
 0x1aa   : > { %v726_v60 = vpop.eup %725  ;;  %v460_v61 = vadd.f32 1e-05, %v456_v58  ;;  %v458_v62 = vadd.f32 1e-05, %v454_v59 }
 0x1ab   : > { %v728_v63 = vpop.eup %727  ;;  %v462_v0 = vmul.f32 %v726_v60, %v457_v54  ;;  %vm468_vm1 = vweird.f32 %v726_v60 }
 0x1ac   : > { %v482_v1 = vmul.f32 %v728_v63, %v459_v55  ;;  %729 = vrsqrt.f32 %v460_v61  ;;  %vm469_vm3 = vmor %vm467_vm2, %vm468_vm1  ;;  %vm488_vm4 = vweird.f32 %v728_v63  ;;  %vm497_vm9 = vweird.f32 %v460_v61 }
 0x1ad   : > { %v463_v2 = vmul.f32 %v726_v60, %v462_v0  ;;  %731 = vrsqrt.f32 %v458_v62  ;;  %vm489_vm6 = vmor %vm487_vm5, %vm488_vm4  ;;  %vm477_vm11 = vweird.f32 %v458_v62 }
 0x1ae   : > { %v483_v3 = vmul.f32 %v728_v63, %v482_v1 }
 0x1af   : > { %v464_v4 = vmul.f32 0.5, %v463_v2 }
 0x1b0   : > { %v484_v5 = vmul.f32 0.5, %v483_v3 }
 0x1b1   : > { %v465_v6 = vsub.f32 1.5, %v464_v4 }
 0x1b2   : > { %v730_v7 = vpop.eup %729  ;;  %v485_v8 = vsub.f32 1.5, %v484_v5 }
 0x1b3   : > { %v732_v9 = vpop.eup %731  ;;  %v466_v10 = vmul.f32 %v726_v60, %v465_v6  ;;  %v492_v11 = vmul.f32 %v730_v7, %v460_v61  ;;  %vm498_vm7 = vweird.f32 %v730_v7 }
 0x1b4   : > { %v472_v13 = vmul.f32 %v732_v9, %v458_v62  ;;  %v486_v15 = vmul.f32 %v728_v63, %v485_v8  ;;  %vm478_vm8 = vweird.f32 %v732_v9  ;;  %vm499_vm10 = vmor %vm497_vm9, %vm498_vm7 }
 0x1b5   : > { %v470_v14 = vsel %vm469_vm3, %v726_v60, %v466_v10  ;;  %v493_v16 = vmul.f32 %v730_v7, %v492_v11  ;;  %vm479_vm12 = vmor %vm477_vm11, %vm478_vm8 }
 0x1b6   : > { %v501_v18 = vmul.f32 %v470_v14, %v437_v39  ;;  %v473_v19 = vmul.f32 %v732_v9, %v472_v13  ;;  %v490_v23 = vsel %vm489_vm6, %v728_v63, %v486_v15 }
 0x1b7   : > { %v494_v20 = vmul.f32 0.5, %v493_v16  ;;  %v503_v28 = vmul.f32 %v490_v23, %v926_v38 }
 0x1b8   : > { %v509_v21 = vmul.f32 %v721_v12, %v501_v18  ;;  %v474_v22 = vmul.f32 0.5, %v473_v19 }
 0x1b9   : > { %v495_v24 = vsub.f32 1.5, %v494_v20  ;;  %v511_v34 = vmul.f32 %v721_v12, %v503_v28 }
 0x1ba   : > { %v517_v25 = vadd.f32 %v722_v17, %v509_v21  ;;  %v475_v26 = vsub.f32 1.5, %v474_v22 }
 0x1bb   : > { %v496_v27 = vmul.f32 %v730_v7, %v495_v24  ;;  %v519_v39 = vadd.f32 %v722_v17, %v511_v34 }
 0x1bc   : > { %521 = vst [vmem:[%s305_s17] sm:$0xff] %v517_v25  ;;  %v476_v29 = vmul.f32 %v732_v9, %v475_v26 }
 0x1bd   : > { %v500_v30 = vsel %vm499_vm10, %v730_v7, %v496_v27  ;;  %523 = vst [vmem:[%s305_s17 + $0x10] sm:$0xff] %v519_v39 }
 0x1be   : > { %v504_v31 = vmul.f32 %v500_v30, %v930_v46  ;;  %v480_v32 = vsel %vm479_vm12, %v732_v9, %v476_v29 }
 0x1bf   : > { %v502_v33 = vmul.f32 %v480_v32, %v932_v47 }
 0x1c0   : > { %v512_v35 = vmul.f32 %v721_v12, %v504_v31 }
 0x1c1   : > { %v510_v36 = vmul.f32 %v721_v12, %v502_v33 }
 0x1c2   : > { %v520_v40 = vadd.f32 %v722_v17, %v512_v35 }
 0x1c3   : > { %v518_v37 = vadd.f32 %v722_v17, %v510_v36 }
 0x1c4   : > { %524 = vst [vmem:[%s305_s17 + $0x18] sm:$0xff] %v520_v40 }
 0x1c5   : > { %522 = vst [vmem:[%s305_s17 + $0x8] sm:$0xff] %v518_v37 }
 0x1c6 PF: > { %s18_s21 = sadd.s32 1, %s807_s21  }
 0x1c7   : > { %p15_p7 = scmp.ge.s32.totalorder %s18_s21, 4  }
 0x1c9   :  { %17 = sbr.rel (!%p15_p7) target bundleno = 2 (0x2), region = 86 }
 0x1ce   :  { %547 = vsyncpa [#allocation3], 1 }
 0x1cf   :  { %549 = vsyncpa [#allocation3 + $0x1], 1 }
 0x1d0   :  { %550 = vsyncpa [#allocation5], 1 }

// kernel: mtr2_forward.33
= control target key start
LH: loop header
LB: loop body
LE: loop exit
PB: predicated region body
PF: predicated region fallthrough
CT: control target
= control target key end

     0   :  { %14 = vsyncpa [#allocation3], 0  ;;  %s1330_s0 = inlined_call_operand.vmem [shape: f32[64,128], index: 0, kind: input, shape index: {}]   ;;  %s1331_s1 = inlined_call_operand.vmem [shape: f32[64,128], index: 1, kind: input, shape index: {}]   ;;  %s1332_s2 = inlined_call_operand.vmem [shape: bf16[128,256], index: 2, kind: input, shape index: {}]   ;;  %s1333_s3 = inlined_call_operand.hbm [shape: f32[1,256], index: 3, kind: input, shape index: {}]   ;;  %s1334_s4 = inlined_call_operand.vmem [shape: bf16[128,128], index: 4, kind: input, shape index: {}]   ;;  %s1335_s5 = inlined_call_operand.hbm [shape: f32[1,128], index: 5, kind: input, shape index: {}]   ;;  %s1336_s6 = inlined_call_operand.vmem [shape: bf16[64,128], index: 6, kind: output, shape index: {0}]   ;;  %s1337_s7 = inlined_call_operand.vmem [shape: bf16[64,128], index: 7, kind: output, shape index: {1}]   ;;  %s1338_s8 = inlined_call_operand.vmem [shape: bf16[64,128], index: 8, kind: output, shape index: {2}]  }
   0x1   :  { %15 = vsyncpa [#allocation5], 0  ;;  %s1148_s27 = smov 0  }
   0x2 LB: > { %s255_s30 = sshll.u32 %s1333_s3, 4  ;;  %s813_s9 = sadd.s32 4294967295, %s1099_s27   ;;  %s1099_s27 = sphi %s1148_s27, %s21_s27   ;;  %s256_s30 = int_to_ptr.hbm [resolvable:$true] %s255_s30 }
   0x3   : > { %p815_p0 = scmp.ge.s32.totalorder %s1099_s27, 1  ;;  %p240_p1 = scmp.lt.s32.totalorder %s1099_s27, 3 }
   0x4   : > { %p1161_p2 = scmp.eq.s32.totalorder %s813_s9, 0  ;;  %s1101_s12 = smov [#allocation2]  }
   0x5   : > { %p1165_p3 = pnand %p815_p0, %p240_p1  ;;  %s257_s13 = sshll.u32 %s1101_s12, 4  ;;  %s258_s13 = int_to_ptr.vmem [resolvable:$true] %s257_s13 }
   0x6   : > { %s270_s16 = sshll.u32 %s1335_s5, 4  ;;  %s1102_s17 = smov [#allocation4]   ;;  %s271_s16 = int_to_ptr.hbm [resolvable:$true] %s270_s16 }
   0x7   : > { %p1003_p4 = pneg %p1165_p3  ;;  %s272_s18 = sshll.u32 %s1102_s17, 4  ;;  %s273_s18 = int_to_ptr.vmem [resolvable:$true] %s272_s18 }
   0x8   : > { %303 = sbr.rel (%p1165_p3) target bundleno = 211 (0xd3), region = 44 }
   0x9   : > { %p1004_p5 = pnand %p1161_p2, %p1003_p4 }
   0xb   : > { %1006 = dma.hbm_to_vmem [thread:$0]  (!%p1004_p5), %s256_s30, 32, %s258_s13, [#allocation3]  }
   0xc   : > { %1009 = dma.hbm_to_vmem [thread:$0]  (!%p1004_p5), %s271_s16, 16, %s273_s18, [#allocation5]  }
   0xd   : > { %1090 = dma.done.wait (%p1161_p2), [#allocation3], 32  }
   0xe   : > { %1092 = vsyncadd (%p1161_p2), [#allocation3], 4294967264 }
   0xf   : > { %1094 = dma.done.wait (%p1161_p2), [#allocation5], 16  }
  0x10   : > { %1096 = vsyncadd (%p1161_p2), [#allocation5], 4294967280  ;;  %v944_v0 = vld [vmem:[%s1332_s2 + $0x74] sm:$0xf]  ;;  %v892_v1 = vld [vmem:[%s1332_s2 + $0x78] sm:$0xf0] }
  0x11   : > { %v953_v2 = vld [vmem:[%s1334_s4 + $0x38] sm:$0xff]  ;;  %v895_v3 = vor.u32 %v944_v0, %v892_v1  ;;  %v942_v4 = vld [vmem:[%s1332_s2 + $0x64] sm:$0xf]  ;;  %v884_v5 = vld [vmem:[%s1332_s2 + $0x68] sm:$0xf0]  ;;  %s822_s17 = sshll.u32 %s813_s9, 2 }
  0x12   : > { %628 = vmatpush.bf16.msra.mxu2 %v953_v2  ;;  %v952_v6 = vld [vmem:[%s1334_s4 + $0x30] sm:$0xff]  ;;  %v945_v8 = vld [vmem:[%s1332_s2 + $0x74] sm:$0xf0]  ;;  %v887_v9 = vor.u32 %v942_v4, %v884_v5  ;;  %v882_v11 = vld [vmem:[%s1332_s2 + $0x60] sm:$0xf]  ;;  %p359_p6 = scmp.lt.s32.totalorder %s822_s17, 7 }
  0x13   : > { %v890_v7 = vld [vmem:[%s1332_s2 + $0x70] sm:$0xf]  ;;  %523 = vmatpush.bf16.msra.mxu1 %v895_v3  ;;  %v940_v12 = vld [vmem:[%s1332_s2 + $0x54] sm:$0xf]  ;;  %v876_v13 = vld [vmem:[%s1332_s2 + $0x58] sm:$0xf0] }
  0x14   : > { %v891_v10 = vor.u32 %v945_v8, %v890_v7  ;;  %v943_v14 = vld [vmem:[%s1332_s2 + $0x64] sm:$0xf0]  ;;  %v874_v17 = vld [vmem:[%s1332_s2 + $0x50] sm:$0xf]  ;;  %v941_v18 = vld [vmem:[%s1332_s2 + $0x54] sm:$0xf0]  ;;  %v879_v19 = vor.u32 %v940_v12, %v876_v13 }
  0x15   : > { %v883_v15 = vor.u32 %v943_v14, %v882_v11  ;;  %v951_v16 = vld [vmem:[%s1334_s4 + $0x28] sm:$0xff]  ;;  %v938_v20 = vld [vmem:[%s1332_s2 + $0x44] sm:$0xf]  ;;  %v875_v22 = vor.u32 %v941_v18, %v874_v17  ;;  %v866_v24 = vld [vmem:[%s1332_s2 + $0x40] sm:$0xf]  ;;  %s1342_s17 = smov (!%p359_p6, %s822_s17), 7 }
  0x16   : > { %987 = vmatpush.bf16.msra.mxu3 %v891_v10  ;;  %504 = vmatpush.bf16.msra.mxu0 %v891_v10  ;;  %v868_v21 = vld [vmem:[%s1332_s2 + $0x48] sm:$0xf0]  ;;  %v950_v23 = vld [vmem:[%s1334_s4 + $0x20] sm:$0xff]  ;;  %v939_v25 = vld [vmem:[%s1332_s2 + $0x44] sm:$0xf0]  ;;  %s823_s30 = sshll.u32 %s1342_s17, 3 }
  0x17   : > { %629 = vmatpush.bf16.msra.mxu2 %v952_v6  ;;  %524 = vmatpush.bf16.msra.mxu1 %v887_v9  ;;  %v871_v26 = vor.u32 %v938_v20, %v868_v21  ;;  %v936_v27 = vld [vmem:[%s1332_s2 + $0x34] sm:$0xf]  ;;  %v860_v28 = vld [vmem:[%s1332_s2 + $0x38] sm:$0xf0]  ;;  %v867_v29 = vor.u32 %v939_v25, %v866_v24  ;;  %v858_v31 = vld [vmem:[%s1332_s2 + $0x30] sm:$0xf]  ;;  %s362_s23 = scalar_lea.vmem %s1330_s0, %s823_s30  ;;  %s368_s10 = scalar_lea.vmem %s1331_s1, %s823_s30 }
  0x18   : > { %v949_v30 = vld [vmem:[%s1334_s4 + $0x18] sm:$0xff]  ;;  %v863_v33 = vor.u32 %v936_v27, %v860_v28  ;;  %v934_v34 = vld [vmem:[%s1332_s2 + $0x24] sm:$0xf]  ;;  %v852_v35 = vld [vmem:[%s1332_s2 + $0x28] sm:$0xf0] }
  0x19   : > { %v937_v32 = vld [vmem:[%s1332_s2 + $0x34] sm:$0xf0]  ;;  %v948_v37 = vld [vmem:[%s1334_s4 + $0x10] sm:$0xff]  ;;  %v850_v38 = vld [vmem:[%s1332_s2 + $0x20] sm:$0xf]  ;;  %v855_v40 = vor.u32 %v934_v34, %v852_v35 }
  0x1a   : > { %988 = vmatpush.bf16.msra.mxu3 %v883_v15  ;;  %505 = vmatpush.bf16.msra.mxu0 %v883_v15  ;;  %v859_v36 = vor.u32 %v937_v32, %v858_v31  ;;  %v935_v39 = vld [vmem:[%s1332_s2 + $0x24] sm:$0xf0]  ;;  %v932_v41 = vld [vmem:[%s1332_s2 + $0x14] sm:$0xf]  ;;  %v844_v42 = vld [vmem:[%s1332_s2 + $0x18] sm:$0xf0] }
  0x1b   : > { %630 = vmatpush.bf16.msra.mxu2 %v951_v16  ;;  %525 = vmatpush.bf16.msra.mxu1 %v879_v19  ;;  %v947_v43 = vld [vmem:[%s1334_s4 + $0x8] sm:$0xff]  ;;  %v851_v44 = vor.u32 %v935_v39, %v850_v38  ;;  %v388_v45 = vld [vmem:[%s362_s23] sm:$0xff]  ;;  %v842_v46 = vld [vmem:[%s1332_s2 + $0x10] sm:$0xf]  ;;  %v847_v48 = vor.u32 %v932_v41, %v844_v42 }
  0x1c   : > { %v933_v47 = vld [vmem:[%s1332_s2 + $0x14] sm:$0xf0]  ;;  %v389_v49 = vld [vmem:[%s362_s23 + $0x8] sm:$0xff]  ;;  %v392_v50 = vld [vmem:[%s368_s10] sm:$0xff] }
  0x1d   : > { %v393_v51 = vld [vmem:[%s368_s10 + $0x8] sm:$0xff]  ;;  %v930_v52 = vld [vmem:[%s1332_s2 + $0x4] sm:$0xf]  ;;  %v390_v54 = vld [vmem:[%s362_s23 + $0x10] sm:$0xff]  ;;  %v843_v55 = vor.u32 %v933_v47, %v842_v46  ;;  %v396_v60 = vadd.f32 %v392_v50, %v388_v45  ;;  %v558_v3 = vpack.c.bf16 %v389_v49, %v388_v45 }
  0x1e   : > { %989 = vmatpush.bf16.msra.mxu3 %v875_v22  ;;  %506 = vmatpush.bf16.msra.mxu0 %v875_v22  ;;  %v836_v53 = vld [vmem:[%s1332_s2 + $0x8] sm:$0xf0]  ;;  %v391_v56 = vld [vmem:[%s362_s23 + $0x18] sm:$0xff]  ;;  %v394_v57 = vld [vmem:[%s368_s10 + $0x10] sm:$0xff]  ;;  %v397_v61 = vadd.f32 %v393_v51, %v389_v49  ;;  %s827_s23 = sshll.u32 %s1342_s17, 2 }
  0x1f   : > { %631 = vmatpush.bf16.msra.mxu2 %v950_v23  ;;  %526 = vmatpush.bf16.msra.mxu1 %v871_v26  ;;  %v395_v58 = vld [vmem:[%s368_s10 + $0x18] sm:$0xff]  ;;  %v946_v59 = vld [vmem:[%s1334_s4] sm:$0xff]  ;;  %v931_v63 = vld [vmem:[%s1332_s2 + $0x4] sm:$0xf0]  ;;  %v839_v0 = vor.u32 %v930_v52, %v836_v53  ;;  %v398_v1 = vadd.f32 %v394_v57, %v390_v54  ;;  %v559_v7 = vpack.c.bf16 %v391_v56, %v390_v54  ;;  %s380_s10 = scalar_lea.vmem %s1337_s7, %s827_s23  ;;  %s374_s13 = scalar_lea.vmem %s1336_s6, %s827_s23 }
  0x20   : > { %v834_v62 = vld [vmem:[%s1332_s2] sm:$0xf]  ;;  %v399_v2 = vadd.f32 %v395_v58, %v391_v56  ;;  %v400_v5 = vpack.c.bf16 %v397_v61, %v396_v60  ;;  %s386_s15 = scalar_lea.vmem %s1338_s8, %s827_s23 }
  0x21   : > { %v835_v4 = vor.u32 %v931_v63, %v834_v62  ;;  %v418_v9 = vld [vmem:[#allocation2] sm:$0x3]  ;;  %v1024_v18 = vld [vmem:[#allocation4] ss:$0 sm:$0xff] }
  0x22   : > { %990 = vmatpush.bf16.msra.mxu3 %v867_v29  ;;  %507 = vmatpush.bf16.msra.mxu0 %v867_v29  ;;  %v401_v6 = vpack.c.bf16 %v399_v2, %v398_v1  ;;  %v421_v11 = vperm.slane %v418_v9, 1  ;;  %v420_v13 = vperm.slane %v418_v9, 0 }
  0x23   : > { %632 = vmatpush.bf16.msra.mxu2 %v949_v30  ;;  %527 = vmatpush.bf16.msra.mxu1 %v863_v33 }
  0x26   : > { %991 = vmatpush.bf16.msra.mxu3 %v859_v36  ;;  %508 = vmatpush.bf16.msra.mxu0 %v859_v36 }
  0x27   : > { %633 = vmatpush.bf16.msra.mxu2 %v948_v37  ;;  %528 = vmatpush.bf16.msra.mxu1 %v855_v40 }
  0x2a   : > { %992 = vmatpush.bf16.msra.mxu3 %v851_v44  ;;  %509 = vmatpush.bf16.msra.mxu0 %v851_v44 }
  0x2b   : > { %634 = vmatpush.bf16.msra.mxu2 %v947_v43  ;;  %529 = vmatpush.bf16.msra.mxu1 %v847_v48 }
  0x2e   : > { %993 = vmatpush.bf16.msra.mxu3 %v843_v55  ;;  %510 = vmatpush.bf16.msra.mxu0 %v843_v55 }
  0x2f   : > { %635 = vmatpush.bf16.msra.mxu2 %v946_v59  ;;  %530 = vmatpush.bf16.msra.mxu1 %v839_v0 }
  0x32   : > { %636 = vmatmul.bf16.vlgmr.msra.gmra.mxu2 %v558_v3  ;;  %994 = vmatpush.bf16.msra.mxu3 %v835_v4 }
  0x33   : > { %531 = vmatmul.bf16.vlgmr.msra.gmra.mxu1 %v400_v5  ;;  %511 = vmatpush.bf16.msra.mxu0 %v835_v4 }
  0x35   : > { %517 = vmatmul.bf16.vlgmr.msra.gmra.mxu3 %v401_v6 }
  0x36   : > { %512 = vmatmul.bf16.vlgmr.msra.gmra.mxu0 %v400_v5 }
  0x42   : > { %641 = vmatmul.bf16.gmra.mxu2 %v559_v7 }
  0x43   : > { %536 = vmatmul.bf16.gmra.mxu1 %v401_v6 }
  0xb0   : > { %v532_v8 = vpop.f32.mrf.mxu1 }
  0xb1   : > { %v533_v16 = vadd.f32 %v532_v8, %v421_v11 }
  0xb3   : > { %v513_v10 = vpop.f32.mrf.mxu0 }
  0xb4   : > { %v514_v19 = vadd.f32 %v513_v10, %v420_v13 }
  0xb5   : > { %v637_v12 = vpop.f32.mrf.mxu2 }
  0xb6   : > { %v638_v24 = vadd.f32 %v1024_v18, %v637_v12 }
  0xb8   : > { %v534_v14 = vpop.f32.mrf.mxu1  ;;  %v518_v15 = vpop.f32.mrf.mxu3 }
  0xb9   : > { %v535_v17 = vadd.f32 %v534_v14, %v421_v11  ;;  %v519_v27 = vadd.f32 %v518_v15, %v420_v13 }
  0xbb   : > { %v967_v20 = vpack.c.bf16 %v535_v17, %v533_v16  ;;  %v515_v21 = vpop.f32.mrf.mxu0 }
  0xbc   : > { %v516_v22 = vadd.f32 %v515_v21, %v420_v13 }
  0xbd   : > { %968 = vst [vmem:[%s380_s10] sm:$0xff] %v967_v20   ;;  %v639_v23 = vpop.f32.mrf.mxu2 }
  0xbe   : > { %v640_v25 = vadd.f32 %v1024_v18, %v639_v23  ;;  %v957_v26 = vpack.c.bf16 %v516_v22, %v514_v19 }
  0xc0   : > { %v977_v28 = vpack.c.bf16 %v640_v25, %v638_v24  ;;  %v537_v29 = vpop.f32.mrf.mxu1  ;;  %958 = vst [vmem:[%s374_s13] sm:$0xff] %v957_v26   ;;  %v520_v30 = vpop.f32.mrf.mxu3 }
  0xc1   : > { %v521_v31 = vadd.f32 %v520_v30, %v420_v13  ;;  %v538_v35 = vadd.f32 %v537_v29, %v421_v11 }
  0xc2   : > { %978 = vst [vmem:[%s386_s15] sm:$0xff] %v977_v28  }
  0xc3   : > { %v962_v32 = vpack.c.bf16 %v521_v31, %v519_v27 }
  0xc5   : > { %984 = vst [vmem:[%s374_s13 + $0x8] sm:$0xff] %v962_v32   ;;  %v642_v33 = vpop.f32.mrf.mxu2 }
  0xc6   : > { %v643_v39 = vadd.f32 %v1024_v18, %v642_v33 }
  0xc8   : > { %v539_v34 = vpop.f32.mrf.mxu1 }
  0xc9   : > { %v540_v36 = vadd.f32 %v539_v34, %v421_v11 }
  0xcb   : > { %v972_v37 = vpack.c.bf16 %v540_v36, %v538_v35 }
  0xcd   : > { %985 = vst [vmem:[%s380_s10 + $0x8] sm:$0xff] %v972_v37   ;;  %v644_v38 = vpop.f32.mrf.mxu2 }
  0xce   : > { %v645_v40 = vadd.f32 %v1024_v18, %v644_v38 }
  0xd0   : > { %v982_v41 = vpack.c.bf16 %v645_v40, %v643_v39 }
  0xd2   : > { %986 = vst [vmem:[%s386_s15 + $0x8] sm:$0xff] %v982_v41  }
  0xd3 PF: > { %s21_s27 = sadd.s32 1, %s1099_s27  }
  0xd4   : > { %p18_p7 = scmp.ge.s32.totalorder %s21_s27, 4  }
  0xd6   :  { %20 = sbr.rel (!%p18_p7) target bundleno = 2 (0x2), region = 110 }
  0xdb   :  { %711 = vsyncpa [#allocation3], 1 }
  0xdc   :  { %713 = vsyncpa [#allocation3 + $0x1], 1 }
  0xdd   :  { %714 = vsyncpa [#allocation5], 1 }

// kernel: mtr2_forward.53
= control target key start
LH: loop header
LB: loop body
LE: loop exit
PB: predicated region body
PF: predicated region fallthrough
CT: control target
= control target key end

     0   :  { %16 = vsyncpa [#allocation3], 0  ;;  %s1380_s0 = inlined_call_operand.vmem [shape: f32[64,128], index: 0, kind: input, shape index: {}]   ;;  %s1381_s1 = inlined_call_operand.vmem [shape: bf16[128,128], index: 1, kind: input, shape index: {}]   ;;  %s1382_s2 = inlined_call_operand.vmem [shape: f32[1,128], index: 2, kind: input, shape index: {}]   ;;  %s1383_s3 = inlined_call_operand.hbm [shape: f32[1,128], index: 3, kind: input, shape index: {}]   ;;  %s1384_s4 = inlined_call_operand.hbm [shape: f32[1,128], index: 4, kind: input, shape index: {}]   ;;  %s1385_s5 = inlined_call_operand.vmem [shape: bf16[128,128], index: 5, kind: input, shape index: {}]   ;;  %s1386_s6 = inlined_call_operand.hbm [shape: f32[1,128], index: 6, kind: input, shape index: {}]   ;;  %s1387_s7 = inlined_call_operand.hbm [shape: f32[1,128], index: 7, kind: input, shape index: {}]   ;;  %s1388_s8 = inlined_call_operand.hbm [shape: f32[1,128], index: 8, kind: input, shape index: {}]   ;;  %s1389_s9 = inlined_call_operand.vmem [shape: bf16[128,128], index: 9, kind: input, shape index: {}]   ;;  %s1390_s10 = inlined_call_operand.hbm [shape: f32[1,128], index: 10, kind: input, shape index: {}]   ;;  %s1391_s11 = inlined_call_operand.vmem [shape: f32[64,128], index: 11, kind: output, shape index: {}]  }
   0x1   :  { %17 = vsyncpa [#allocation5], 0 }
   0x2   :  { %18 = vsyncpa [#allocation8], 0  ;;  %s42_s19 = sshll.u32 %s1384_s4, 4  ;;  %s43_s19 = int_to_ptr.hbm [resolvable:$true] %s42_s19 }
   0x3   :  { %19 = vsyncpa [#allocation11], 0  ;;  %s1136_s20 = smov [#allocation4]   ;;  %s66_s24 = sshll.u32 %s1387_s7, 4  ;;  %s67_s24 = int_to_ptr.hbm [resolvable:$true] %s66_s24 }
   0x4   :  { %s44_s21 = sshll.u32 %s1136_s20, 4  ;;  %s1137_s25 = smov [#allocation7]   ;;  %s45_s21 = int_to_ptr.vmem [resolvable:$true] %s44_s21 }
   0x5   :  { %47 = dma.hbm_to_vmem [thread:$0]  %s43_s19, 16, %s45_s21, [#allocation5]  }
   0x6   :  { %s68_s26 = sshll.u32 %s1137_s25, 4  ;;  %s31_s29 = sshll.u32 %s1383_s3, 4  ;;  %s69_s26 = int_to_ptr.vmem [resolvable:$true] %s68_s26  ;;  %s32_s29 = int_to_ptr.hbm [resolvable:$true] %s31_s29 }
   0x7   :  { %71 = dma.hbm_to_vmem [thread:$0]  %s67_s24, 16, %s69_s26, [#allocation8]  }
   0x8   :  { %s55_s12 = sshll.u32 %s1386_s6, 4  ;;  %s1138_s13 = smov [#allocation2]   ;;  %s56_s12 = int_to_ptr.hbm [resolvable:$true] %s55_s12 }
   0x9   :  { %s33_s14 = sshll.u32 %s1138_s13, 4  ;;  %s1139_s7 = smov [#allocation6]   ;;  %s34_s14 = int_to_ptr.vmem [resolvable:$true] %s33_s14 }
   0xa   :  { %36 = dma.hbm_to_vmem [thread:$0]  %s32_s29, 16, %s34_s14, [#allocation3]  }
   0xb   :  { %s57_s15 = sshll.u32 %s1139_s7, 4  ;;  %s77_s18 = sshll.u32 %s1388_s8, 4  ;;  %s58_s15 = int_to_ptr.vmem [resolvable:$true] %s57_s15  ;;  %s78_s18 = int_to_ptr.hbm [resolvable:$true] %s77_s18 }
   0xc   :  { %60 = dma.hbm_to_vmem [thread:$0]  %s56_s12, 16, %s58_s15, [#allocation5]  }
   0xd   :  { %s90_s20 = sshll.u32 %s1390_s10, 4  ;;  %s1140_s21 = smov [#allocation9]   ;;  %s91_s20 = int_to_ptr.hbm [resolvable:$true] %s90_s20 }
   0xe   :  { %s79_s6 = sshll.u32 %s1140_s21, 4  ;;  %s1141_s22 = smov [#allocation10]   ;;  %s80_s6 = int_to_ptr.vmem [resolvable:$true] %s79_s6 }
   0xf   :  { %82 = dma.hbm_to_vmem [thread:$0]  %s78_s18, 16, %s80_s6, [#allocation8]  }
  0x10   :  { %s92_s23 = sshll.u32 %s1141_s22, 4  ;;  %s93_s23 = int_to_ptr.vmem [resolvable:$true] %s92_s23 }
  0x11   :  { %95 = dma.hbm_to_vmem [thread:$0]  %s91_s20, 16, %s93_s23, [#allocation11]  }
  0x12   :  { %1128 = dma.done.wait [#allocation3], 16  }
  0x13   :  { %1129 = vsyncadd [#allocation3], 4294967280 }
  0x14   :  { %1130 = dma.done.wait [#allocation5], 32  }
  0x15   :  { %1131 = vsyncadd [#allocation5], 4294967264 }
  0x16   :  { %1132 = dma.done.wait [#allocation8], 32  }
  0x17   :  { %1133 = vsyncadd [#allocation8], 4294967264 }
  0x18   :  { %1134 = dma.done.wait [#allocation11], 16  }
  0x19   :  { %1135 = vsyncadd [#allocation11], 4294967280  ;;  %v907_v0 = vld [vmem:[%s1381_s1 + $0x38] sm:$0xff]  ;;  %v906_v1 = vld [vmem:[%s1381_s1 + $0x30] sm:$0xff]  ;;  %v1142_v30 = vmov 64.0  }
  0x1a   :  { %200 = vmatpush.bf16.msra.mxu0 %v907_v0  ;;  %924 = vmatpush.bf16.msra.mxu3 %v907_v0  ;;  %v905_v2 = vld [vmem:[%s1381_s1 + $0x28] sm:$0xff]  ;;  %v904_v3 = vld [vmem:[%s1381_s1 + $0x20] sm:$0xff]  ;;  %v903_v4 = vld [vmem:[%s1381_s1 + $0x18] sm:$0xff]  ;;  %946 = vrcp.f32 %v1142_v30 }
  0x1b   :  { %v902_v5 = vld [vmem:[%s1381_s1 + $0x10] sm:$0xff]  ;;  %v901_v6 = vld [vmem:[%s1381_s1 + $0x8] sm:$0xff]  ;;  %v900_v7 = vld [vmem:[%s1381_s1] sm:$0xff] }
  0x1c   :  { %v120_v8 = vld [vmem:[%s1380_s0] sm:$0xff]  ;;  %v121_v9 = vld [vmem:[%s1380_s0 + $0x8] sm:$0xff]  ;;  %v122_v10 = vld [vmem:[%s1380_s0 + $0x10] sm:$0xff] }
  0x1d   :  { %v123_v11 = vld [vmem:[%s1380_s0 + $0x18] sm:$0xff]  ;;  %v128_v12 = vpack.c.bf16 %v121_v9, %v120_v8  ;;  %v124_v14 = vld [vmem:[%s1380_s0 + $0x20] sm:$0xff]  ;;  %v125_v15 = vld [vmem:[%s1380_s0 + $0x28] sm:$0xff] }
  0x1e   :  { %201 = vmatpush.bf16.msra.mxu0 %v906_v1  ;;  %925 = vmatpush.bf16.msra.mxu3 %v906_v1  ;;  %v129_v13 = vpack.c.bf16 %v123_v11, %v122_v10  ;;  %v130_v16 = vpack.c.bf16 %v125_v15, %v124_v14  ;;  %v126_v17 = vld [vmem:[%s1380_s0 + $0x30] sm:$0xff]  ;;  %v127_v18 = vld [vmem:[%s1380_s0 + $0x38] sm:$0xff]  ;;  %v939_v25 = vld [vmem:[%s1382_s2] ss:$0 sm:$0xff] }
  0x1f   :  { %v131_v19 = vpack.c.bf16 %v127_v18, %v126_v17  ;;  %v915_v58 = vld [vmem:[%s1385_s5 + $0x38] sm:$0xff]  ;;  %v914_v1 = vld [vmem:[%s1385_s5 + $0x30] sm:$0xff]  ;;  %v913_v8 = vld [vmem:[%s1385_s5 + $0x28] sm:$0xff] }
  0x20   :  { %v947_v36 = vpop.eup %946  ;;  %403 = vmatpush.bf16.msra.mxu1 %v915_v58  ;;  %v912_v15 = vld [vmem:[%s1385_s5 + $0x20] sm:$0xff] }
  0x21   :  { %v243_v41 = vmul.f32 64.0, %v947_v36  ;;  %vm247_vm0 = vweird.f32 %v947_v36 }
  0x22   :  { %202 = vmatpush.bf16.msra.mxu0 %v905_v2  ;;  %926 = vmatpush.bf16.msra.mxu3 %v905_v2 }
  0x23   :  { %v244_v46 = vsub.f32 1.0, %v243_v41 }
  0x24   :  { %404 = vmatpush.bf16.msra.mxu1 %v914_v1 }
  0x25   :  { %v245_v49 = vmul.f32 %v947_v36, %v244_v46 }
  0x26   :  { %203 = vmatpush.bf16.msra.mxu0 %v904_v3  ;;  %927 = vmatpush.bf16.msra.mxu3 %v904_v3 }
  0x27   :  { %v246_v52 = vadd.f32 %v947_v36, %v245_v49 }
  0x28   :  { %405 = vmatpush.bf16.msra.mxu1 %v913_v8 }
  0x29   :  { %v1272_v55 = vsel %vm247_vm0, %v947_v36, %v246_v52 }
  0x2a   :  { %204 = vmatpush.bf16.msra.mxu0 %v903_v4  ;;  %928 = vmatpush.bf16.msra.mxu3 %v903_v4 }
  0x2c   :  { %406 = vmatpush.bf16.msra.mxu1 %v912_v15 }
  0x2e   :  { %205 = vmatpush.bf16.msra.mxu0 %v902_v5  ;;  %929 = vmatpush.bf16.msra.mxu3 %v902_v5 }
  0x32   :  { %206 = vmatpush.bf16.msra.mxu0 %v901_v6  ;;  %930 = vmatpush.bf16.msra.mxu3 %v901_v6 }
  0x36   :  { %207 = vmatpush.bf16.msra.mxu0 %v900_v7  ;;  %931 = vmatpush.bf16.msra.mxu3 %v900_v7 }
  0x39   :  { %208 = vmatmul.bf16.vlgmr.msra.gmra.mxu0 %v128_v12  ;;  %213 = vmatmul.bf16.vlgmr.msra.gmra.mxu3 %v129_v13 }
  0x49   :  { %218 = vmatmul.bf16.gmra.mxu3 %v130_v16 }
  0x59   :  { %223 = vmatmul.bf16.gmra.mxu3 %v131_v19 }
  0xb6   :  { %v209_v22 = vpop.f32.mrf.mxu0 }
  0xb7   :  { %v210_v27 = vadd.f32 %v939_v25, %v209_v22 }
  0xbc   :  { %v214_v20 = vpop.f32.mrf.mxu3 }
  0xbd   :  { %v215_v31 = vadd.f32 %v939_v25, %v214_v20  ;;  %v911_v20 = vld [vmem:[%s1385_s5 + $0x18] sm:$0xff] }
  0xbe   :  { %v211_v24 = vpop.f32.mrf.mxu0  ;;  %407 = vmatpush.bf16.msra.mxu1 %v911_v20 }
  0xbf   :  { %v212_v28 = vadd.f32 %v939_v25, %v211_v24 }
  0xc1   :  { %v229_v29 = vadd.f32 %v212_v28, %v210_v27 }
  0xc3   :  { %v230_v34 = vadd.f32 %v229_v29, %v215_v31 }
  0xc4   :  { %v216_v21 = vpop.f32.mrf.mxu3 }
  0xc5   :  { %v217_v32 = vadd.f32 %v939_v25, %v216_v21 }
  0xc7   :  { %v231_v37 = vadd.f32 %v230_v34, %v217_v32 }
  0xcc   :  { %v219_v23 = vpop.f32.mrf.mxu3 }
  0xcd   :  { %v220_v35 = vadd.f32 %v939_v25, %v219_v23  ;;  %v910_v23 = vld [vmem:[%s1385_s5 + $0x10] sm:$0xff] }
  0xce   :  { %408 = vmatpush.bf16.msra.mxu1 %v910_v23 }
  0xcf   :  { %v232_v39 = vadd.f32 %v231_v37, %v220_v35 }
  0xd4   :  { %v221_v26 = vpop.f32.mrf.mxu3 }
  0xd5   :  { %v222_v38 = vadd.f32 %v939_v25, %v221_v26 }
  0xd7   :  { %v233_v42 = vadd.f32 %v232_v39, %v222_v38  ;;  %v940_v39 = vld [vmem:[#allocation2] ss:$0 sm:$0xff] }
  0xdc   :  { %v224_v33 = vpop.f32.mrf.mxu3 }
  0xdd   :  { %v225_v40 = vadd.f32 %v939_v25, %v224_v33 }
  0xdf   :  { %v234_v44 = vadd.f32 %v233_v42, %v225_v40 }
  0xe4   :  { %v226_v43 = vpop.f32.mrf.mxu3 }
  0xe5   :  { %v227_v45 = vadd.f32 %v939_v25, %v226_v43  ;;  %v909_v25 = vld [vmem:[%s1385_s5 + $0x8] sm:$0xff] }
  0xe6   :  { %409 = vmatpush.bf16.msra.mxu1 %v909_v25 }
  0xe7   :  { %v235_v47 = vadd.f32 %v234_v44, %v227_v45  ;;  %v941_v44 = vld [vmem:[#allocation4] ss:$0 sm:$0xff] }
  0xe9   :  { %v236_v48 = vrot.slane %v235_v47, 4 }
  0xeb   :  { %v237_v50 = vadd.f32 %v236_v48, %v235_v47 }
  0xed   :  { %v238_v51 = vrot.slane %v237_v50, 2 }
  0xef   :  { %v239_v53 = vadd.f32 %v238_v51, %v237_v50 }
  0xf1   :  { %v240_v54 = vrot.slane %v239_v53, 1 }
  0xf3   :  { %v241_v56 = vadd.f32 %v240_v54, %v239_v53 }
  0xf5   :  { %v249_v57 = vmul.f32 %v1272_v55, %v241_v56 }
  0xf7   :  { %v250_v59 = vsub.f32 %v210_v27, %v249_v57  ;;  %v251_v60 = vsub.f32 %v212_v28, %v249_v57  ;;  %v1278_v61 = vsub.f32 %v215_v31, %v249_v57  ;;  %v1280_v62 = vsub.f32 %v217_v32, %v249_v57  ;;  %v908_v28 = vld [vmem:[%s1385_s5] sm:$0xff] }
  0xf8   :  { %v254_v2 = vsub.f32 %v220_v35, %v249_v57  ;;  %v255_v5 = vsub.f32 %v222_v38, %v249_v57  ;;  %v256_v9 = vsub.f32 %v225_v40, %v249_v57  ;;  %v257_v12 = vsub.f32 %v227_v45, %v249_v57  ;;  %410 = vmatpush.bf16.msra.mxu1 %v908_v28 }
  0xf9   :  { %v258_v63 = vmul.f32 %v250_v59, %v250_v59  ;;  %v259_v0 = vmul.f32 %v251_v60, %v251_v60  ;;  %v260_v3 = vmul.f32 %v1278_v61, %v1278_v61  ;;  %v261_v6 = vmul.f32 %v1280_v62, %v1280_v62 }
  0xfa   :  { %v262_v10 = vmul.f32 %v254_v2, %v254_v2  ;;  %v263_v13 = vmul.f32 %v255_v5, %v255_v5  ;;  %v264_v16 = vmul.f32 %v256_v9, %v256_v9  ;;  %v265_v18 = vmul.f32 %v257_v12, %v257_v12 }
  0xfb   :  { %v266_v4 = vadd.f32 %v259_v0, %v258_v63 }
  0xfd   :  { %v267_v7 = vadd.f32 %v266_v4, %v260_v3 }
  0xff   :  { %v268_v11 = vadd.f32 %v267_v7, %v261_v6 }
 0x101   :  { %v269_v14 = vadd.f32 %v268_v11, %v262_v10 }
 0x103   :  { %v270_v17 = vadd.f32 %v269_v14, %v263_v13 }
 0x105   :  { %v271_v19 = vadd.f32 %v270_v17, %v264_v16 }
 0x107   :  { %v272_v21 = vadd.f32 %v271_v19, %v265_v18 }
 0x109   :  { %v273_v22 = vrot.slane %v272_v21, 4 }
 0x10b   :  { %v274_v24 = vadd.f32 %v273_v22, %v272_v21 }
 0x10d   :  { %v275_v26 = vrot.slane %v274_v24, 2 }
 0x10f   :  { %v276_v27 = vadd.f32 %v275_v26, %v274_v24 }
 0x111   :  { %v277_v29 = vrot.slane %v276_v27, 1 }
 0x113   :  { %v278_v30 = vadd.f32 %v277_v29, %v276_v27 }
 0x115   :  { %v279_v31 = vmul.f32 %v278_v30, %v1272_v55 }
 0x117   :  { %v280_v32 = vadd.f32 1e-05, %v279_v31 }
 0x119   :  { %948 = vrsqrt.f32 %v280_v32  ;;  %vm287_vm2 = vweird.f32 %v280_v32 }
 0x11f   :  { %v949_v33 = vpop.eup %948 }
 0x120   :  { %v282_v34 = vmul.f32 %v949_v33, %v280_v32  ;;  %vm288_vm1 = vweird.f32 %v949_v33 }
 0x121   :  { %vm289_vm3 = vmor %vm287_vm2, %vm288_vm1 }
 0x122   :  { %v283_v35 = vmul.f32 %v949_v33, %v282_v34 }
 0x124   :  { %v284_v36 = vmul.f32 0.5, %v283_v35 }
 0x126   :  { %v285_v37 = vsub.f32 1.5, %v284_v36 }
 0x128   :  { %v286_v38 = vmul.f32 %v949_v33, %v285_v37 }
 0x12a   :  { %v290_v40 = vsel %vm289_vm3, %v949_v33, %v286_v38 }
 0x12b   :  { %v298_v41 = vmul.f32 %v290_v40, %v257_v12  ;;  %v291_v42 = vmul.f32 %v290_v40, %v250_v59  ;;  %v292_v43 = vmul.f32 %v290_v40, %v251_v60  ;;  %v295_v45 = vmul.f32 %v290_v40, %v254_v2 }
 0x12c   :  { %v296_v46 = vmul.f32 %v290_v40, %v255_v5  ;;  %v297_v47 = vmul.f32 %v290_v40, %v256_v9  ;;  %v293_v6 = vmul.f32 %v290_v40, %v1278_v61  ;;  %v294_v7 = vmul.f32 %v290_v40, %v1280_v62  ;;  %v942_v62 = vld [vmem:[#allocation6] ss:$0 sm:$0xff] }
 0x12d   :  { %v303_v48 = vmul.f32 %v940_v39, %v291_v42  ;;  %v304_v49 = vmul.f32 %v940_v39, %v292_v43  ;;  %v310_v50 = vmul.f32 %v940_v39, %v298_v41  ;;  %v307_v51 = vmul.f32 %v940_v39, %v295_v45 }
 0x12e   :  { %v308_v52 = vmul.f32 %v940_v39, %v296_v46  ;;  %v309_v53 = vmul.f32 %v940_v39, %v297_v47  ;;  %v305_v10 = vmul.f32 %v940_v39, %v293_v6  ;;  %v306_v11 = vmul.f32 %v940_v39, %v294_v7  ;;  %v923_v46 = vld [vmem:[%s1389_s9 + $0x38] sm:$0xff]  ;;  %v920_v6 = vld [vmem:[%s1389_s9 + $0x20] sm:$0xff] }
 0x12f   :  { %v315_v54 = vadd.f32 %v941_v44, %v303_v48  ;;  %v316_v56 = vadd.f32 %v941_v44, %v304_v49  ;;  %v322_v57 = vadd.f32 %v941_v44, %v310_v50  ;;  %v319_v58 = vadd.f32 %v941_v44, %v307_v51  ;;  %599 = vmatpush.bf16.msra.mxu2 %v923_v46 }
 0x130   :  { %v320_v63 = vadd.f32 %v941_v44, %v308_v52  ;;  %v321_v0 = vadd.f32 %v941_v44, %v309_v53  ;;  %v317_v12 = vadd.f32 %v941_v44, %v305_v10  ;;  %v318_v13 = vadd.f32 %v941_v44, %v306_v11  ;;  %v922_v53 = vld [vmem:[%s1389_s9 + $0x30] sm:$0xff]  ;;  %v919_v11 = vld [vmem:[%s1389_s9 + $0x18] sm:$0xff] }
 0x131   :  { %v323_v1 = vmax.f32 %v315_v54, 0.0  ;;  %v324_v3 = vmax.f32 %v316_v56, 0.0  ;;  %v330_v59 = vmax.f32 %v322_v57, 0.0  ;;  %v327_v60 = vmax.f32 %v319_v58, 0.0 }
 0x132   :  { %v328_v4 = vmax.f32 %v320_v63, 0.0  ;;  %v329_v2 = vmax.f32 %v321_v0, 0.0  ;;  %v325_v14 = vmax.f32 %v317_v12, 0.0  ;;  %v326_v15 = vmax.f32 %v318_v13, 0.0 }
 0x133   :  { %v331_v5 = vpack.c.bf16 %v324_v3, %v323_v1  ;;  %600 = vmatpush.bf16.msra.mxu2 %v922_v53  ;;  %v921_v1 = vld [vmem:[%s1389_s9 + $0x28] sm:$0xff] }
 0x134   :  { %v333_v8 = vpack.c.bf16 %v328_v4, %v327_v60  ;;  %v334_v9 = vpack.c.bf16 %v330_v59, %v329_v2  ;;  %v332_v16 = vpack.c.bf16 %v326_v15, %v325_v14  ;;  %v918_v14 = vld [vmem:[%s1389_s9 + $0x10] sm:$0xff] }
 0x135   :  { %411 = vmatmul.bf16.vlgmr.msra.gmra.mxu1 %v331_v5 }
 0x137   :  { %601 = vmatpush.bf16.msra.mxu2 %v921_v1 }
 0x13b   :  { %602 = vmatpush.bf16.msra.mxu2 %v920_v6 }
 0x13f   :  { %603 = vmatpush.bf16.msra.mxu2 %v919_v11 }
 0x143   :  { %604 = vmatpush.bf16.msra.mxu2 %v918_v14 }
 0x145   :  { %416 = vmatmul.bf16.gmra.mxu1 %v332_v16  ;;  %v917_v16 = vld [vmem:[%s1389_s9 + $0x8] sm:$0xff] }
 0x147   :  { %605 = vmatpush.bf16.msra.mxu2 %v917_v16 }
 0x155   :  { %421 = vmatmul.bf16.gmra.mxu1 %v333_v8 }
 0x165   :  { %426 = vmatmul.bf16.gmra.mxu1 %v334_v9 }
 0x1b2   :  { %v412_v17 = vpop.f32.mrf.mxu1 }
 0x1b3   :  { %v413_v23 = vadd.f32 %v942_v62, %v412_v17 }
 0x1ba   :  { %v414_v18 = vpop.f32.mrf.mxu1 }
 0x1bb   :  { %v415_v22 = vadd.f32 %v942_v62, %v414_v18 }
 0x1bd   :  { %v432_v25 = vadd.f32 %v415_v22, %v413_v23 }
 0x1c2   :  { %v417_v19 = vpop.f32.mrf.mxu1 }
 0x1c3   :  { %v418_v24 = vadd.f32 %v942_v62, %v417_v19  ;;  %v916_v19 = vld [vmem:[%s1389_s9] sm:$0xff] }
 0x1c4   :  { %606 = vmatpush.bf16.msra.mxu2 %v916_v19 }
 0x1c5   :  { %v433_v28 = vadd.f32 %v432_v25, %v418_v24 }
 0x1ca   :  { %v419_v20 = vpop.f32.mrf.mxu1 }
 0x1cb   :  { %v420_v26 = vadd.f32 %v942_v62, %v419_v20 }
 0x1cd   :  { %v434_v30 = vadd.f32 %v433_v28, %v420_v26  ;;  %v943_v28 = vld [vmem:[#allocation7] ss:$0 sm:$0xff] }
 0x1d2   :  { %v422_v61 = vpop.f32.mrf.mxu1 }
 0x1d3   :  { %v423_v29 = vadd.f32 %v942_v62, %v422_v61 }
 0x1d5   :  { %v435_v32 = vadd.f32 %v434_v30, %v423_v29 }
 0x1da   :  { %v424_v21 = vpop.f32.mrf.mxu1 }
 0x1db   :  { %v425_v31 = vadd.f32 %v942_v62, %v424_v21 }
 0x1dd   :  { %v436_v34 = vadd.f32 %v435_v32, %v425_v31 }
 0x1e2   :  { %v427_v27 = vpop.f32.mrf.mxu1 }
 0x1e3   :  { %v428_v33 = vadd.f32 %v942_v62, %v427_v27 }
 0x1e5   :  { %v437_v36 = vadd.f32 %v436_v34, %v428_v33 }
 0x1ea   :  { %v429_v35 = vpop.f32.mrf.mxu1 }
 0x1eb   :  { %v430_v37 = vadd.f32 %v942_v62, %v429_v35 }
 0x1ed   :  { %v438_v38 = vadd.f32 %v437_v36, %v430_v37 }
 0x1ef   :  { %v439_v39 = vrot.slane %v438_v38, 4 }
 0x1f1   :  { %v440_v40 = vadd.f32 %v439_v39, %v438_v38 }
 0x1f3   :  { %v441_v41 = vrot.slane %v440_v40, 2 }
 0x1f5   :  { %v442_v42 = vadd.f32 %v441_v41, %v440_v40 }
 0x1f7   :  { %v443_v43 = vrot.slane %v442_v42, 1 }
 0x1f9   :  { %v444_v44 = vadd.f32 %v443_v43, %v442_v42 }
 0x1fb   :  { %v445_v45 = vmul.f32 %v444_v44, %v1272_v55 }
 0x1fd   :  { %v446_v47 = vsub.f32 %v413_v23, %v445_v45  ;;  %v447_v48 = vsub.f32 %v415_v22, %v445_v45  ;;  %v1314_v49 = vsub.f32 %v418_v24, %v445_v45  ;;  %v1316_v50 = vsub.f32 %v420_v26, %v445_v45 }
 0x1fe   :  { %v450_v54 = vsub.f32 %v423_v29, %v445_v45  ;;  %v451_v58 = vsub.f32 %v425_v31, %v445_v45  ;;  %v452_v3 = vsub.f32 %v428_v33, %v445_v45  ;;  %v453_v4 = vsub.f32 %v430_v37, %v445_v45  ;;  %v944_v33 = vld [vmem:[#allocation9] ss:$0 sm:$0xff] }
 0x1ff   :  { %v454_v51 = vmul.f32 %v446_v47, %v446_v47  ;;  %v455_v52 = vmul.f32 %v447_v48, %v447_v48  ;;  %v456_v56 = vmul.f32 %v1314_v49, %v1314_v49  ;;  %v457_v63 = vmul.f32 %v1316_v50, %v1316_v50 }
 0x200   :  { %v458_v59 = vmul.f32 %v450_v54, %v450_v54  ;;  %v459_v2 = vmul.f32 %v451_v58, %v451_v58  ;;  %v460_v7 = vmul.f32 %v452_v3, %v452_v3  ;;  %v461_v9 = vmul.f32 %v453_v4, %v453_v4 }
 0x201   :  { %v462_v57 = vadd.f32 %v455_v52, %v454_v51 }
 0x203   :  { %v463_v0 = vadd.f32 %v462_v57, %v456_v56 }
 0x205   :  { %v464_v60 = vadd.f32 %v463_v0, %v457_v63 }
 0x207   :  { %v465_v5 = vadd.f32 %v464_v60, %v458_v59 }
 0x209   :  { %v466_v8 = vadd.f32 %v465_v5, %v459_v2 }
 0x20b   :  { %v467_v10 = vadd.f32 %v466_v8, %v460_v7  ;;  %v1346_v7 = vld [vmem:[#allocation10] ss:$0 sm:$0xff] }
 0x20d   :  { %v468_v12 = vadd.f32 %v467_v10, %v461_v9 }
 0x20f   :  { %v469_v13 = vrot.slane %v468_v12, 4 }
 0x211   :  { %v470_v15 = vadd.f32 %v469_v13, %v468_v12 }
 0x213   :  { %v471_v17 = vrot.slane %v470_v15, 2 }
 0x215   :  { %v472_v18 = vadd.f32 %v471_v17, %v470_v15 }
 0x217   :  { %v473_v20 = vrot.slane %v472_v18, 1 }
 0x219   :  { %v474_v61 = vadd.f32 %v473_v20, %v472_v18 }
 0x21b   :  { %v475_v21 = vmul.f32 %v474_v61, %v1272_v55 }
 0x21d   :  { %v476_v62 = vadd.f32 1e-05, %v475_v21 }
 0x21f   :  { %950 = vrsqrt.f32 %v476_v62  ;;  %vm483_vm5 = vweird.f32 %v476_v62 }
 0x225   :  { %v951_v22 = vpop.eup %950 }
 0x226   :  { %v478_v23 = vmul.f32 %v951_v22, %v476_v62  ;;  %vm484_vm4 = vweird.f32 %v951_v22 }
 0x227   :  { %vm485_vm6 = vmor %vm483_vm5, %vm484_vm4 }
 0x228   :  { %v479_v24 = vmul.f32 %v951_v22, %v478_v23 }
 0x22a   :  { %v480_v25 = vmul.f32 0.5, %v479_v24 }
 0x22c   :  { %v481_v26 = vsub.f32 1.5, %v480_v25 }
 0x22e   :  { %v482_v27 = vmul.f32 %v951_v22, %v481_v26 }
 0x230   :  { %v486_v29 = vsel %vm485_vm6, %v951_v22, %v482_v27 }
 0x231   :  { %v494_v30 = vmul.f32 %v486_v29, %v453_v4  ;;  %v487_v31 = vmul.f32 %v486_v29, %v446_v47  ;;  %v488_v32 = vmul.f32 %v486_v29, %v447_v48  ;;  %v491_v34 = vmul.f32 %v486_v29, %v450_v54 }
 0x232   :  { %v492_v35 = vmul.f32 %v486_v29, %v451_v58  ;;  %v493_v55 = vmul.f32 %v486_v29, %v452_v3  ;;  %v489_v58 = vmul.f32 %v486_v29, %v1314_v49  ;;  %v490_v63 = vmul.f32 %v486_v29, %v1316_v50 }
 0x233   :  { %v499_v36 = vmul.f32 %v943_v28, %v487_v31  ;;  %v500_v37 = vmul.f32 %v943_v28, %v488_v32  ;;  %v506_v38 = vmul.f32 %v943_v28, %v494_v30  ;;  %v503_v39 = vmul.f32 %v943_v28, %v491_v34 }
 0x234   :  { %v504_v40 = vmul.f32 %v943_v28, %v492_v35  ;;  %v505_v41 = vmul.f32 %v943_v28, %v493_v55  ;;  %v501_v3 = vmul.f32 %v943_v28, %v489_v58  ;;  %v502_v59 = vmul.f32 %v943_v28, %v490_v63 }
 0x235   :  { %v511_v42 = vadd.f32 %v944_v33, %v499_v36  ;;  %v512_v43 = vadd.f32 %v944_v33, %v500_v37  ;;  %v518_v44 = vadd.f32 %v944_v33, %v506_v38  ;;  %v515_v45 = vadd.f32 %v944_v33, %v503_v39 }
 0x236   :  { %v516_v46 = vadd.f32 %v944_v33, %v504_v40  ;;  %v517_v51 = vadd.f32 %v944_v33, %v505_v41  ;;  %v513_v60 = vadd.f32 %v944_v33, %v501_v3  ;;  %v514_v4 = vadd.f32 %v944_v33, %v502_v59 }
 0x237   :  { %v519_v52 = vmax.f32 %v511_v42, 0.0  ;;  %v520_v53 = vmax.f32 %v512_v43, 0.0  ;;  %v526_v47 = vmax.f32 %v518_v44, 0.0  ;;  %v523_v48 = vmax.f32 %v515_v45, 0.0 }
 0x238   :  { %v524_v56 = vmax.f32 %v516_v46, 0.0  ;;  %v525_v54 = vmax.f32 %v517_v51, 0.0  ;;  %v521_v2 = vmax.f32 %v513_v60, 0.0  ;;  %v522_v5 = vmax.f32 %v514_v4, 0.0 }
 0x239   :  { %v527_v57 = vpack.c.bf16 %v520_v53, %v519_v52 }
 0x23a   :  { %v529_v0 = vpack.c.bf16 %v524_v56, %v523_v48  ;;  %v530_v1 = vpack.c.bf16 %v526_v47, %v525_v54  ;;  %v528_v6 = vpack.c.bf16 %v522_v5, %v521_v2 }
 0x23b   :  { %607 = vmatmul.bf16.vlgmr.msra.gmra.mxu2 %v527_v57 }
 0x24b   :  { %612 = vmatmul.bf16.gmra.mxu2 %v528_v6 }
 0x25b   :  { %617 = vmatmul.bf16.gmra.mxu2 %v529_v0 }
 0x26b   :  { %622 = vmatmul.bf16.gmra.mxu2 %v530_v1 }
 0x2be   :  { %v608_v8 = vpop.f32.mrf.mxu2 }
 0x2bf   :  { %v609_v49 = vadd.f32 %v1346_v7, %v608_v8 }
 0x2c1   :  { %v892_v9 = vmul.f32 -1.442695, %v609_v49 }
 0x2c3   :  { %952 = vpow2.f32 %v892_v9 }
 0x2c6   :  { %v610_v50 = vpop.f32.mrf.mxu2 }
 0x2c7   :  { %v611_v10 = vadd.f32 %v1346_v7, %v610_v50 }
 0x2c9   :  { %v953_v11 = vpop.eup %952  ;;  %v893_v12 = vmul.f32 -1.442695, %v611_v10 }
 0x2ca   :  { %v652_v13 = vadd.f32 1.0, %v953_v11 }
 0x2cb   :  { %954 = vpow2.f32 %v893_v12 }
 0x2cc   :  { %956 = vrcp.f32 %v652_v13  ;;  %v671_v21 = vand.u32 2147483648, %v652_v13  ;;  %v669_v23 = vand.u32 2147483647, %v652_v13  ;;  %vm665_vm8 = vweird.f32 %v652_v13 }
 0x2ce   :  { %v613_v14 = vpop.f32.mrf.mxu2  ;;  %v672_v29 = vor.u32 1.1754944e-38, %v671_v21  ;;  %vm670_vm10 = vcmp.eq.f32.partialorder %v669_v23, 8.507059e+37 }
 0x2cf   :  { %v614_v15 = vadd.f32 %v1346_v7, %v613_v14 }
 0x2d1   :  { %v955_v16 = vpop.eup %954  ;;  %v894_v17 = vmul.f32 -1.442695, %v614_v15 }
 0x2d2   :  { %v957_v18 = vpop.eup %956  ;;  %v653_v19 = vadd.f32 1.0, %v955_v16 }
 0x2d3   :  { %v661_v20 = vmul.f32 %v957_v18, %v652_v13  ;;  %958 = vpow2.f32 %v894_v17  ;;  %vm666_vm7 = vweird.f32 %v957_v18 }
 0x2d4   :  { %960 = vrcp.f32 %v653_v19  ;;  %vm667_vm9 = vmor %vm665_vm8, %vm666_vm7  ;;  %v686_v35 = vand.u32 2147483648, %v653_v19  ;;  %v684_v37 = vand.u32 2147483647, %v653_v19  ;;  %vm680_vm12 = vweird.f32 %v653_v19 }
 0x2d5   :  { %v662_v61 = vsub.f32 1.0, %v661_v20 }
 0x2d6   :  { %v615_v62 = vpop.f32.mrf.mxu2  ;;  %v687_v43 = vor.u32 1.1754944e-38, %v686_v35  ;;  %vm685_vm14 = vcmp.eq.f32.partialorder %v684_v37, 8.507059e+37 }
 0x2d7   :  { %v663_v22 = vmul.f32 %v957_v18, %v662_v61  ;;  %v616_v24 = vadd.f32 %v1346_v7, %v615_v62 }
 0x2d9   :  { %v959_v25 = vpop.eup %958  ;;  %v664_v26 = vadd.f32 %v957_v18, %v663_v22  ;;  %v895_v27 = vmul.f32 -1.442695, %v616_v24 }
 0x2da   :  { %v961_v28 = vpop.eup %960  ;;  %v654_v30 = vadd.f32 1.0, %v959_v25 }
 0x2db   :  { %v668_v31 = vsel %vm667_vm9, %v957_v18, %v664_v26  ;;  %v676_v32 = vmul.f32 %v961_v28, %v653_v19  ;;  %962 = vpow2.f32 %v895_v27  ;;  %vm681_vm11 = vweird.f32 %v961_v28 }
 0x2dc   :  { %v673_v33 = vsel %vm670_vm10, %v672_v29, %v668_v31  ;;  %964 = vrcp.f32 %v654_v30  ;;  %vm682_vm13 = vmor %vm680_vm12, %vm681_vm11  ;;  %v701_v53 = vand.u32 2147483648, %v654_v30  ;;  %v699_v56 = vand.u32 2147483647, %v654_v30 }
 0x2dd   :  { %780 = vst [vmem:[%s1391_s11] sm:$0xff] %v673_v33  ;;  %v677_v34 = vsub.f32 1.0, %v676_v32  ;;  %vm695_vm0 = vweird.f32 %v654_v30 }
 0x2de   :  { %v618_v55 = vpop.f32.mrf.mxu2  ;;  %v702_v1 = vor.u32 1.1754944e-38, %v701_v53  ;;  %vm700_vm2 = vcmp.eq.f32.partialorder %v699_v56, 8.507059e+37 }
 0x2df   :  { %v678_v36 = vmul.f32 %v961_v28, %v677_v34  ;;  %v619_v38 = vadd.f32 %v1346_v7, %v618_v55 }
 0x2e1   :  { %v963_v39 = vpop.eup %962  ;;  %v679_v40 = vadd.f32 %v961_v28, %v678_v36  ;;  %v896_v41 = vmul.f32 -1.442695, %v619_v38 }
 0x2e2   :  { %v965_v42 = vpop.eup %964  ;;  %v655_v44 = vadd.f32 1.0, %v963_v39 }
 0x2e3   :  { %v683_v45 = vsel %vm682_vm13, %v961_v28, %v679_v40  ;;  %v691_v46 = vmul.f32 %v965_v42, %v654_v30  ;;  %966 = vpow2.f32 %v896_v41  ;;  %vm696_vm15 = vweird.f32 %v965_v42 }
 0x2e4   :  { %v688_v51 = vsel %vm685_vm14, %v687_v43, %v683_v45  ;;  %968 = vrcp.f32 %v655_v44  ;;  %vm697_vm1 = vmor %vm695_vm0, %vm696_vm15  ;;  %v716_v5 = vand.u32 2147483648, %v655_v44  ;;  %v714_v49 = vand.u32 2147483647, %v655_v44 }
 0x2e5   :  { %781 = vst [vmem:[%s1391_s11 + $0x8] sm:$0xff] %v688_v51  ;;  %v692_v52 = vsub.f32 1.0, %v691_v46  ;;  %vm710_vm4 = vweird.f32 %v655_v44 }
 0x2e6   :  { %v620_v47 = vpop.f32.mrf.mxu2  ;;  %v717_v13 = vor.u32 1.1754944e-38, %v716_v5  ;;  %vm715_vm6 = vcmp.eq.f32.partialorder %v714_v49, 8.507059e+37 }
 0x2e7   :  { %v693_v48 = vmul.f32 %v965_v42, %v692_v52  ;;  %v621_v54 = vadd.f32 %v1346_v7, %v620_v47 }
 0x2e9   :  { %v967_v57 = vpop.eup %966  ;;  %v694_v58 = vadd.f32 %v965_v42, %v693_v48  ;;  %v897_v63 = vmul.f32 -1.442695, %v621_v54 }
 0x2ea   :  { %v969_v0 = vpop.eup %968  ;;  %v656_v3 = vadd.f32 1.0, %v967_v57 }
 0x2eb   :  { %v698_v59 = vsel %vm697_vm1, %v965_v42, %v694_v58  ;;  %v706_v60 = vmul.f32 %v969_v0, %v655_v44  ;;  %970 = vpow2.f32 %v897_v63  ;;  %vm711_vm3 = vweird.f32 %v969_v0 }
 0x2ec   :  { %v703_v4 = vsel %vm700_vm2, %v702_v1, %v698_v59  ;;  %972 = vrcp.f32 %v656_v3  ;;  %vm712_vm5 = vmor %vm710_vm4, %vm711_vm3  ;;  %v731_v19 = vand.u32 2147483648, %v656_v3  ;;  %v729_v21 = vand.u32 2147483647, %v656_v3 }
 0x2ed   :  { %782 = vst [vmem:[%s1391_s11 + $0x10] sm:$0xff] %v703_v4  ;;  %v707_v2 = vsub.f32 1.0, %v706_v60  ;;  %vm725_vm8 = vweird.f32 %v656_v3 }
 0x2ee   :  { %v623_v6 = vpop.f32.mrf.mxu2  ;;  %v732_v26 = vor.u32 1.1754944e-38, %v731_v19  ;;  %vm730_vm10 = vcmp.eq.f32.partialorder %v729_v21, 8.507059e+37 }
 0x2ef   :  { %v708_v8 = vmul.f32 %v969_v0, %v707_v2  ;;  %v624_v9 = vadd.f32 %v1346_v7, %v623_v6 }
 0x2f1   :  { %v971_v50 = vpop.eup %970  ;;  %v709_v10 = vadd.f32 %v969_v0, %v708_v8  ;;  %v898_v11 = vmul.f32 -1.442695, %v624_v9 }
 0x2f2   :  { %v973_v12 = vpop.eup %972  ;;  %v657_v14 = vadd.f32 1.0, %v971_v50 }
 0x2f3   :  { %v713_v15 = vsel %vm712_vm5, %v969_v0, %v709_v10  ;;  %v721_v16 = vmul.f32 %v973_v12, %v656_v3  ;;  %974 = vpow2.f32 %v898_v11  ;;  %vm726_vm7 = vweird.f32 %v973_v12 }
 0x2f4   :  { %v718_v17 = vsel %vm715_vm6, %v717_v13, %v713_v15  ;;  %976 = vrcp.f32 %v657_v14  ;;  %vm727_vm9 = vmor %vm725_vm8, %vm726_vm7  ;;  %v744_v33 = vand.u32 2147483647, %v657_v14  ;;  %vm740_vm12 = vweird.f32 %v657_v14 }
 0x2f5   :  { %783 = vst [vmem:[%s1391_s11 + $0x18] sm:$0xff] %v718_v17  ;;  %v722_v18 = vsub.f32 1.0, %v721_v16 }
 0x2f6   :  { %v625_v20 = vpop.f32.mrf.mxu2  ;;  %vm745_vm14 = vcmp.eq.f32.partialorder %v744_v33, 8.507059e+37 }
 0x2f7   :  { %v723_v61 = vmul.f32 %v973_v12, %v722_v18  ;;  %v626_v62 = vadd.f32 %v1346_v7, %v625_v20  ;;  %v746_v7 = vand.u32 2147483648, %v657_v14 }
 0x2f9   :  { %v975_v22 = vpop.eup %974  ;;  %v724_v23 = vadd.f32 %v973_v12, %v723_v61  ;;  %v899_v24 = vmul.f32 -1.442695, %v626_v62  ;;  %v747_v36 = vor.u32 1.1754944e-38, %v746_v7 }
 0x2fa   :  { %v977_v25 = vpop.eup %976  ;;  %v658_v27 = vadd.f32 1.0, %v975_v22 }
 0x2fb   :  { %v728_v28 = vsel %vm727_vm9, %v973_v12, %v724_v23  ;;  %v736_v29 = vmul.f32 %v977_v25, %v657_v14  ;;  %978 = vpow2.f32 %v899_v24  ;;  %vm741_vm11 = vweird.f32 %v977_v25 }
 0x2fc   :  { %v733_v30 = vsel %vm730_vm10, %v732_v26, %v728_v28  ;;  %980 = vrcp.f32 %v658_v27  ;;  %vm742_vm13 = vmor %vm740_vm12, %vm741_vm11  ;;  %v761_v42 = vand.u32 2147483648, %v658_v27  ;;  %v759_v44 = vand.u32 2147483647, %v658_v27 }
 0x2fd   :  { %784 = vst [vmem:[%s1391_s11 + $0x20] sm:$0xff] %v733_v30  ;;  %v737_v31 = vsub.f32 1.0, %v736_v29  ;;  %vm755_vm0 = vweird.f32 %v658_v27 }
 0x2fe   :  { %v762_v51 = vor.u32 1.1754944e-38, %v761_v42  ;;  %vm760_vm2 = vcmp.eq.f32.partialorder %v759_v44, 8.507059e+37 }
 0x2ff   :  { %v738_v32 = vmul.f32 %v977_v25, %v737_v31 }
 0x301   :  { %v979_v34 = vpop.eup %978  ;;  %v739_v35 = vadd.f32 %v977_v25, %v738_v32 }
 0x302   :  { %v981_v55 = vpop.eup %980  ;;  %v659_v37 = vadd.f32 1.0, %v979_v34 }
 0x303   :  { %v743_v38 = vsel %vm742_vm13, %v977_v25, %v739_v35  ;;  %v751_v39 = vmul.f32 %v981_v55, %v658_v27  ;;  %vm756_vm15 = vweird.f32 %v981_v55 }
 0x304   :  { %v748_v40 = vsel %vm745_vm14, %v747_v36, %v743_v38  ;;  %982 = vrcp.f32 %v659_v37  ;;  %vm757_vm1 = vmor %vm755_vm0, %vm756_vm15  ;;  %v776_v56 = vand.u32 2147483648, %v659_v37  ;;  %v774_v57 = vand.u32 2147483647, %v659_v37 }
 0x305   :  { %785 = vst [vmem:[%s1391_s11 + $0x28] sm:$0xff] %v748_v40  ;;  %v752_v41 = vsub.f32 1.0, %v751_v39  ;;  %vm770_vm4 = vweird.f32 %v659_v37 }
 0x306   :  { %v777_v63 = vor.u32 1.1754944e-38, %v776_v56  ;;  %vm775_vm6 = vcmp.eq.f32.partialorder %v774_v57, 8.507059e+37 }
 0x307   :  { %v753_v43 = vmul.f32 %v981_v55, %v752_v41 }
 0x309   :  { %v754_v45 = vadd.f32 %v981_v55, %v753_v43 }
 0x30a   :  { %v983_v46 = vpop.eup %982 }
 0x30b   :  { %v758_v52 = vsel %vm757_vm1, %v981_v55, %v754_v45  ;;  %v766_v53 = vmul.f32 %v983_v46, %v659_v37  ;;  %vm771_vm3 = vweird.f32 %v983_v46 }
 0x30c   :  { %v763_v47 = vsel %vm760_vm2, %v762_v51, %v758_v52  ;;  %vm772_vm5 = vmor %vm770_vm4, %vm771_vm3 }
 0x30d   :  { %786 = vst [vmem:[%s1391_s11 + $0x30] sm:$0xff] %v763_v47  ;;  %v767_v48 = vsub.f32 1.0, %v766_v53 }
 0x30f   :  { %v768_v54 = vmul.f32 %v983_v46, %v767_v48 }
 0x311   :  { %v769_v58 = vadd.f32 %v983_v46, %v768_v54 }
 0x313   :  { %v773_v0 = vsel %vm772_vm5, %v983_v46, %v769_v58 }
 0x314   :  { %v778_v1 = vsel %vm775_vm6, %v777_v63, %v773_v0 }
 0x315   :  { %787 = vst [vmem:[%s1391_s11 + $0x38] sm:$0xff] %v778_v1 }
 0x316   :  { %792 = vsyncpa [#allocation3], 1 }
 0x317   :  { %793 = vsyncpa [#allocation5], 1 }
 0x318   :  { %794 = vsyncpa [#allocation8], 1 }
 0x319   :  { %795 = vsyncpa [#allocation11], 1 }

// kernel: mtr2_forward.32
= control target key start
LH: loop header
LB: loop body
LE: loop exit
PB: predicated region body
PF: predicated region fallthrough
CT: control target
= control target key end

     0   :  { %12 = vsyncpa [#allocation3], 0  ;;  %s6034_s0 = inlined_call_operand.vmem [shape: f32[64,128], index: 0, kind: input, shape index: {}]   ;;  %s6035_s1 = inlined_call_operand.vmem [shape: bf16[128,2048], index: 1, kind: input, shape index: {}]   ;;  %s6036_s2 = inlined_call_operand.vmem [shape: f32[1,2048], index: 2, kind: input, shape index: {}]   ;;  %s6037_s3 = inlined_call_operand.vmem [shape: bf16[2048,128], index: 3, kind: input, shape index: {}]   ;;  %s6038_s4 = inlined_call_operand.hbm [shape: f32[1,128], index: 4, kind: input, shape index: {}]   ;;  %s6039_s5 = inlined_call_operand.hbm [shape: f32[1,128], index: 5, kind: input, shape index: {}]   ;;  %s6040_s6 = inlined_call_operand.hbm [shape: f32[1,128], index: 6, kind: input, shape index: {}]   ;;  %s6041_s7 = inlined_call_operand.vmem [shape: f32[64,128], index: 7, kind: output, shape index: {}]  }
   0x1   :  { %13 = vsyncpa [#allocation5], 0  ;;  %s4590_s24 = smov 0  }
   0x2 LB: > { %s235_s27 = sshll.u32 %s6039_s5, 4  ;;  %s3086_s28 = sadd.s32 4294967295, %s4544_s24   ;;  %s4544_s24 = sphi %s4590_s24, %s19_s24   ;;  %s236_s27 = int_to_ptr.hbm [resolvable:$true] %s235_s27 }
   0x3   : > { %p3088_p0 = scmp.ge.s32.totalorder %s4544_s24, 1  ;;  %p202_p1 = scmp.lt.s32.totalorder %s4544_s24, 3 }
   0x4   : > { %p4603_p2 = scmp.eq.s32.totalorder %s3086_s28, 0  ;;  %s4546_s8 = smov [#allocation4]  }
   0x5   : > { %p4607_p3 = pnand %p3088_p0, %p202_p1  ;;  %s237_s9 = sshll.u32 %s4546_s8, 4  ;;  %s238_s9 = int_to_ptr.vmem [resolvable:$true] %s237_s9 }
   0x6   : > { %s223_s12 = sshll.u32 %s6038_s4, 4  ;;  %s247_s15 = sshll.u32 %s6040_s6, 4  ;;  %s224_s12 = int_to_ptr.hbm [resolvable:$true] %s223_s12  ;;  %s248_s15 = int_to_ptr.hbm [resolvable:$true] %s247_s15 }
   0x7   : > { %p4395_p4 = pneg %p4607_p3  ;;  %s4547_s16 = smov [#allocation2]  }
   0x8   : > { %s225_s17 = sshll.u32 %s4547_s16, 4  ;;  %s4548_s18 = smov [#allocation6]   ;;  %s226_s17 = int_to_ptr.vmem [resolvable:$true] %s225_s17 }
   0x9   : > { %p4396_p5 = pnand %p4603_p2, %p4395_p4  ;;  %s249_s19 = sshll.u32 %s4548_s18, 4  ;;  %s250_s19 = int_to_ptr.vmem [resolvable:$true] %s249_s19 }
   0xa   : > { %271 = sbr.rel (%p4607_p3) target bundleno = 1162 (0x48a), region = 48 }
   0xb   : > { %4401 = dma.hbm_to_vmem [thread:$0]  (!%p4396_p5), %s236_s27, 16, %s238_s9, [#allocation5]  }
   0xc   : > { %4398 = dma.hbm_to_vmem [thread:$0]  (!%p4396_p5), %s224_s12, 16, %s226_s17, [#allocation3]  }
   0xd   : > { %4404 = dma.hbm_to_vmem [thread:$0]  (!%p4396_p5), %s248_s15, 16, %s250_s19, [#allocation5]  }
   0xf   : > { %4535 = dma.done.wait (%p4603_p2), [#allocation3], 16  }
  0x10   : > { %4537 = vsyncadd (%p4603_p2), [#allocation3], 4294967280 }
  0x11   : > { %4539 = dma.done.wait (%p4603_p2), [#allocation5], 32  }
  0x12   : > { %4541 = vsyncadd (%p4603_p2), [#allocation5], 4294967264  ;;  %v3223_v0 = vld [vmem:[%s6035_s1 + $0x388] sm:$0xf]  ;;  %v4156_v2 = vld [vmem:[%s6035_s1 + $0x38c] sm:$0xf] }
  0x13   : > { %v4158_v1 = vld [vmem:[%s6035_s1 + $0x3c4] sm:$0xf0]  ;;  %v3225_v4 = vld [vmem:[%s6035_s1 + $0x3c8] sm:$0xf0]  ;;  %v3215_v14 = vld [vmem:[%s6035_s1 + $0x380] sm:$0xf] }
  0x14   : > { %v3224_v3 = vor.u32 %v4158_v1, %v3223_v0  ;;  %v3207_v5 = vld [vmem:[%s6035_s1 + $0x308] sm:$0xf]  ;;  %v3228_v7 = vor.u32 %v4156_v2, %v3225_v4  ;;  %v4152_v8 = vld [vmem:[%s6035_s1 + $0x30c] sm:$0xf]  ;;  %v4157_v15 = vld [vmem:[%s6035_s1 + $0x3bc] sm:$0xf0] }
  0x15   : > { %v4154_v6 = vld [vmem:[%s6035_s1 + $0x344] sm:$0xf0]  ;;  %v3209_v9 = vld [vmem:[%s6035_s1 + $0x348] sm:$0xf0]  ;;  %v4155_v16 = vld [vmem:[%s6035_s1 + $0x384] sm:$0xf]  ;;  %v3216_v19 = vor.u32 %v4157_v15, %v3215_v14 }
  0x16   : > { %644 = vmatpush.bf16.msra.mxu2 %v3224_v3  ;;  %v3208_v10 = vor.u32 %v4154_v6, %v3207_v5  ;;  %v3191_v11 = vld [vmem:[%s6035_s1 + $0x288] sm:$0xf]  ;;  %663 = vmatpush.bf16.msra.mxu3 %v3228_v7  ;;  %v3212_v13 = vor.u32 %v4152_v8, %v3209_v9  ;;  %v4148_v17 = vld [vmem:[%s6035_s1 + $0x28c] sm:$0xf]  ;;  %v3217_v20 = vld [vmem:[%s6035_s1 + $0x3c0] sm:$0xf0] }
  0x17   : > { %v4150_v12 = vld [vmem:[%s6035_s1 + $0x2c4] sm:$0xf0]  ;;  %v3193_v18 = vld [vmem:[%s6035_s1 + $0x2c8] sm:$0xf0]  ;;  %v3220_v21 = vor.u32 %v4155_v16, %v3217_v20  ;;  %v3199_v22 = vld [vmem:[%s6035_s1 + $0x300] sm:$0xf]  ;;  %606 = vmatpush.bf16.msra.mxu0 %v3216_v19 }
  0x18   : > { %s4684_s12 = sshll.u32 %s3086_s28, 2  ;;  %v3192_v23 = vor.u32 %v4150_v12, %v3191_v11  ;;  %v4153_v24 = vld [vmem:[%s6035_s1 + $0x33c] sm:$0xf0]  ;;  %v4151_v25 = vld [vmem:[%s6035_s1 + $0x304] sm:$0xf]  ;;  %v3196_v27 = vor.u32 %v4148_v17, %v3193_v18 }
  0x19   : > { %v3201_v26 = vld [vmem:[%s6035_s1 + $0x340] sm:$0xf0]  ;;  %625 = vmatpush.bf16.msra.mxu1 %v3220_v21  ;;  %v3175_v28 = vld [vmem:[%s6035_s1 + $0x208] sm:$0xf]  ;;  %v4144_v30 = vld [vmem:[%s6035_s1 + $0x20c] sm:$0xf]  ;;  %v3200_v31 = vor.u32 %v4153_v24, %v3199_v22 }
  0x1a   : > { %645 = vmatpush.bf16.msra.mxu2 %v3208_v10  ;;  %664 = vmatpush.bf16.msra.mxu3 %v3212_v13  ;;  %v4146_v29 = vld [vmem:[%s6035_s1 + $0x244] sm:$0xf0]  ;;  %v3204_v32 = vor.u32 %v4151_v25, %v3201_v26  ;;  %v3177_v33 = vld [vmem:[%s6035_s1 + $0x248] sm:$0xf0]  ;;  %v3183_v34 = vld [vmem:[%s6035_s1 + $0x280] sm:$0xf] }
  0x1b   : > { %v4149_v35 = vld [vmem:[%s6035_s1 + $0x2bc] sm:$0xf0]  ;;  %v4147_v36 = vld [vmem:[%s6035_s1 + $0x284] sm:$0xf]  ;;  %v3176_v38 = vor.u32 %v4146_v29, %v3175_v28  ;;  %607 = vmatpush.bf16.msra.mxu0 %v3200_v31  ;;  %v3159_v39 = vld [vmem:[%s6035_s1 + $0x188] sm:$0xf]  ;;  %v3180_v42 = vor.u32 %v4144_v30, %v3177_v33 }
  0x1c   : > { %v3185_v37 = vld [vmem:[%s6035_s1 + $0x2c0] sm:$0xf0]  ;;  %v4142_v40 = vld [vmem:[%s6035_s1 + $0x1c4] sm:$0xf0]  ;;  %v3184_v41 = vor.u32 %v4149_v35, %v3183_v34  ;;  %p315_p6 = scmp.lt.s32.totalorder %s4684_s12, 7  ;;  %v4190_v33 = vld [vmem:[%s6037_s3 + $0xf8] sm:$0xff] }
  0x1d   : > { %626 = vmatpush.bf16.msra.mxu1 %v3204_v32  ;;  %v4140_v43 = vld [vmem:[%s6035_s1 + $0x18c] sm:$0xf]  ;;  %v3188_v44 = vor.u32 %v4147_v36, %v3185_v37  ;;  %v3167_v45 = vld [vmem:[%s6035_s1 + $0x200] sm:$0xf]  ;;  %v4143_v48 = vld [vmem:[%s6035_s1 + $0x204] sm:$0xf]  ;;  %v3160_v50 = vor.u32 %v4142_v40, %v3159_v39 }
  0x1e   : > { %646 = vmatpush.bf16.msra.mxu2 %v3192_v23  ;;  %665 = vmatpush.bf16.msra.mxu3 %v3196_v27  ;;  %v4145_v46 = vld [vmem:[%s6035_s1 + $0x23c] sm:$0xf0]  ;;  %v3161_v47 = vld [vmem:[%s6035_s1 + $0x1c8] sm:$0xf0]  ;;  %v3169_v49 = vld [vmem:[%s6035_s1 + $0x240] sm:$0xf0] }
  0x1f   : > { %608 = vmatpush.bf16.msra.mxu0 %v3184_v41  ;;  %v3143_v51 = vld [vmem:[%s6035_s1 + $0x108] sm:$0xf]  ;;  %v3168_v53 = vor.u32 %v4145_v46, %v3167_v45  ;;  %s6045_s12 = smov (!%p315_p6, %s4684_s12), 7  ;;  %v3164_v54 = vor.u32 %v4140_v43, %v3161_v47  ;;  %v4136_v55 = vld [vmem:[%s6035_s1 + $0x10c] sm:$0xf]  ;;  %v3172_v56 = vor.u32 %v4143_v48, %v3169_v49  ;;  %v4182_v32 = vld [vmem:[%s6037_s3 + $0xb8] sm:$0xff] }
  0x20   : > { %v4138_v52 = vld [vmem:[%s6035_s1 + $0x144] sm:$0xf0]  ;;  %v3151_v57 = vld [vmem:[%s6035_s1 + $0x180] sm:$0xf]  ;;  %v3145_v59 = vld [vmem:[%s6035_s1 + $0x148] sm:$0xf0] }
  0x21   : > { %627 = vmatpush.bf16.msra.mxu1 %v3188_v44  ;;  %v4141_v58 = vld [vmem:[%s6035_s1 + $0x1bc] sm:$0xf0]  ;;  %v4139_v60 = vld [vmem:[%s6035_s1 + $0x184] sm:$0xf]  ;;  %v3144_v62 = vor.u32 %v4138_v52, %v3143_v51  ;;  %v3127_v63 = vld [vmem:[%s6035_s1 + $0x88] sm:$0xf]  ;;  %v3148_v2 = vor.u32 %v4136_v55, %v3145_v59 }
  0x22   : > { %647 = vmatpush.bf16.msra.mxu2 %v3176_v38  ;;  %666 = vmatpush.bf16.msra.mxu3 %v3180_v42  ;;  %v3153_v61 = vld [vmem:[%s6035_s1 + $0x1c0] sm:$0xf0]  ;;  %v4134_v0 = vld [vmem:[%s6035_s1 + $0xc4] sm:$0xf0]  ;;  %v3152_v1 = vor.u32 %v4141_v58, %v3151_v57  ;;  %s3098_s8 = sshll.u32 %s6045_s12, 3  ;;  %v4166_v37 = vld [vmem:[%s6037_s3 + $0x38] sm:$0xff] }
  0x23   : > { %609 = vmatpush.bf16.msra.mxu0 %v3168_v53  ;;  %v4132_v3 = vld [vmem:[%s6035_s1 + $0x8c] sm:$0xf]  ;;  %v3156_v4 = vor.u32 %v4139_v60, %v3153_v61  ;;  %v3135_v5 = vld [vmem:[%s6035_s1 + $0x100] sm:$0xf]  ;;  %v4135_v8 = vld [vmem:[%s6035_s1 + $0x104] sm:$0xf]  ;;  %v3128_v10 = vor.u32 %v4134_v0, %v3127_v63  ;;  %s4809_s27 = scalar_lea.vmem %s6034_s0, %s3098_s8  ;;  %s6023_s11 = scalar_lea.vmem %s6041_s7, %s3098_s8 }
  0x24   : > { %v4137_v6 = vld [vmem:[%s6035_s1 + $0x13c] sm:$0xf0]  ;;  %v3129_v7 = vld [vmem:[%s6035_s1 + $0xc8] sm:$0xf0]  ;;  %v3137_v9 = vld [vmem:[%s6035_s1 + $0x140] sm:$0xf0] }
  0x25   : > { %628 = vmatpush.bf16.msra.mxu1 %v3172_v56  ;;  %v3111_v11 = vld [vmem:[%s6035_s1 + $0x8] sm:$0xf]  ;;  %v3136_v13 = vor.u32 %v4137_v6, %v3135_v5  ;;  %v3132_v14 = vor.u32 %v4132_v3, %v3129_v7  ;;  %v4128_v15 = vld [vmem:[%s6035_s1 + $0xc] sm:$0xf]  ;;  %v3140_v16 = vor.u32 %v4135_v8, %v3137_v9  ;;  %v3119_v17 = vld [vmem:[%s6035_s1 + $0x80] sm:$0xf] }
  0x26   : > { %648 = vmatpush.bf16.msra.mxu2 %v3160_v50  ;;  %667 = vmatpush.bf16.msra.mxu3 %v3164_v54  ;;  %v4130_v12 = vld [vmem:[%s6035_s1 + $0x44] sm:$0xf0]  ;;  %v4133_v18 = vld [vmem:[%s6035_s1 + $0xbc] sm:$0xf0]  ;;  %v3113_v19 = vld [vmem:[%s6035_s1 + $0x48] sm:$0xf0] }
  0x27   : > { %610 = vmatpush.bf16.msra.mxu0 %v3152_v1  ;;  %v4131_v20 = vld [vmem:[%s6035_s1 + $0x84] sm:$0xf]  ;;  %v3112_v23 = vor.u32 %v4130_v12, %v3111_v11  ;;  %v327_v24 = vld [vmem:[%s4809_s27 + $0x8] sm:$0xff]  ;;  %v3120_v25 = vor.u32 %v4133_v18, %v3119_v17  ;;  %v3103_v26 = vld [vmem:[%s6035_s1] sm:$0xf]  ;;  %v3116_v28 = vor.u32 %v4128_v15, %v3113_v19 }
  0x28   : > { %v3121_v21 = vld [vmem:[%s6035_s1 + $0xc0] sm:$0xf0]  ;;  %v4129_v27 = vld [vmem:[%s6035_s1 + $0x3c] sm:$0xf0]  ;;  %v4181_v38 = vld [vmem:[%s6037_s3 + $0xb0] sm:$0xff] }
  0x29   : > { %629 = vmatpush.bf16.msra.mxu1 %v3156_v4  ;;  %v326_v22 = vld [vmem:[%s4809_s27] sm:$0xff]  ;;  %v3124_v29 = vor.u32 %v4131_v20, %v3121_v21  ;;  %v3104_v35 = vor.u32 %v4129_v27, %v3103_v26  ;;  %v4174_v39 = vld [vmem:[%s6037_s3 + $0x78] sm:$0xff]  ;;  %v4189_v40 = vld [vmem:[%s6037_s3 + $0xf0] sm:$0xff] }
  0x2a   : > { %649 = vmatpush.bf16.msra.mxu2 %v3144_v62  ;;  %668 = vmatpush.bf16.msra.mxu3 %v3148_v2  ;;  %v4127_v30 = vld [vmem:[%s6035_s1 + $0x4] sm:$0xf]  ;;  %v4849_v34 = vpack.c.bf16 %v327_v24, %v326_v22  ;;  %v4165_v41 = vld [vmem:[%s6037_s3 + $0x30] sm:$0xff]  ;;  %v4180_v42 = vld [vmem:[%s6037_s3 + $0xa8] sm:$0xff] }
  0x2b   : > { %611 = vmatpush.bf16.msra.mxu0 %v3136_v13  ;;  %v3105_v31 = vld [vmem:[%s6035_s1 + $0x40] sm:$0xf0]  ;;  %v4173_v43 = vld [vmem:[%s6037_s3 + $0x70] sm:$0xff]  ;;  %v4188_v44 = vld [vmem:[%s6037_s3 + $0xe8] sm:$0xff] }
  0x2c   : > { %v3108_v36 = vor.u32 %v4127_v30, %v3105_v31  ;;  %v4164_v45 = vld [vmem:[%s6037_s3 + $0x28] sm:$0xff]  ;;  %v4179_v46 = vld [vmem:[%s6037_s3 + $0xa0] sm:$0xff]  ;;  %v328_v49 = vld [vmem:[%s4809_s27 + $0x10] sm:$0xff] }
  0x2d   : > { %630 = vmatpush.bf16.msra.mxu1 %v3140_v16  ;;  %v4172_v47 = vld [vmem:[%s6037_s3 + $0x68] sm:$0xff]  ;;  %v4187_v48 = vld [vmem:[%s6037_s3 + $0xe0] sm:$0xff]  ;;  %v329_v50 = vld [vmem:[%s4809_s27 + $0x18] sm:$0xff] }
  0x2e   : > { %650 = vmatpush.bf16.msra.mxu2 %v3128_v10  ;;  %669 = vmatpush.bf16.msra.mxu3 %v3132_v14  ;;  %v4178_v51 = vld [vmem:[%s6037_s3 + $0x98] sm:$0xff]  ;;  %v4896_v52 = vpack.c.bf16 %v329_v50, %v328_v49  ;;  %v4163_v53 = vld [vmem:[%s6037_s3 + $0x20] sm:$0xff]  ;;  %v4177_v56 = vld [vmem:[%s6037_s3 + $0x90] sm:$0xff] }
  0x2f   : > { %612 = vmatpush.bf16.msra.mxu0 %v3120_v25  ;;  %v4171_v54 = vld [vmem:[%s6037_s3 + $0x60] sm:$0xff]  ;;  %v4186_v55 = vld [vmem:[%s6037_s3 + $0xd8] sm:$0xff]  ;;  %v4185_v59 = vld [vmem:[%s6037_s3 + $0xd0] sm:$0xff] }
  0x30   : > { %v4162_v57 = vld [vmem:[%s6037_s3 + $0x18] sm:$0xff]  ;;  %v4176_v60 = vld [vmem:[%s6037_s3 + $0x88] sm:$0xff]  ;;  %v4161_v61 = vld [vmem:[%s6037_s3 + $0x10] sm:$0xff] }
  0x31   : > { %631 = vmatpush.bf16.msra.mxu1 %v3124_v29  ;;  %v4170_v58 = vld [vmem:[%s6037_s3 + $0x58] sm:$0xff]  ;;  %v4169_v62 = vld [vmem:[%s6037_s3 + $0x50] sm:$0xff]  ;;  %v4184_v63 = vld [vmem:[%s6037_s3 + $0xc8] sm:$0xff] }
  0x32   : > { %651 = vmatpush.bf16.msra.mxu2 %v3112_v23  ;;  %670 = vmatpush.bf16.msra.mxu3 %v3116_v28  ;;  %v4175_v0 = vld [vmem:[%s6037_s3 + $0x80] sm:$0xff]  ;;  %v4160_v1 = vld [vmem:[%s6037_s3 + $0x8] sm:$0xff]  ;;  %v3479_v4 = vld [vmem:[%s6035_s1 + $0x398] sm:$0xf] }
  0x33   : > { %613 = vmatpush.bf16.msra.mxu0 %v3104_v35  ;;  %v4168_v2 = vld [vmem:[%s6037_s3 + $0x48] sm:$0xff]  ;;  %v4183_v3 = vld [vmem:[%s6037_s3 + $0xc0] sm:$0xff]  ;;  %v4222_v5 = vld [vmem:[%s6035_s1 + $0x3d4] sm:$0xf0] }
  0x34   : > { %v4220_v6 = vld [vmem:[%s6035_s1 + $0x39c] sm:$0xf]  ;;  %v3480_v7 = vor.u32 %v4222_v5, %v3479_v4  ;;  %v4159_v8 = vld [vmem:[%s6037_s3] sm:$0xff]  ;;  %v3463_v12 = vld [vmem:[%s6035_s1 + $0x318] sm:$0xf] }
  0x35   : > { %652 = vmatmul.bf16.vlgmr.msra.gmra.mxu2 %v4849_v34  ;;  %671 = vmatmul.bf16.vlgmr.msra.gmra.mxu3 %v4849_v34  ;;  %v4167_v9 = vld [vmem:[%s6037_s3 + $0x40] sm:$0xff]  ;;  %v3481_v10 = vld [vmem:[%s6035_s1 + $0x3d8] sm:$0xf0]  ;;  %v4218_v13 = vld [vmem:[%s6035_s1 + $0x354] sm:$0xf0] }
  0x36   : > { %936 = vmatpush.bf16.msrb.mxu2 %v4182_v32  ;;  %955 = vmatpush.bf16.msrb.mxu3 %v4190_v33  ;;  %v3484_v11 = vor.u32 %v4220_v6, %v3481_v10  ;;  %v4216_v14 = vld [vmem:[%s6035_s1 + $0x31c] sm:$0xf]  ;;  %v3464_v15 = vor.u32 %v4218_v13, %v3463_v12  ;;  %v3471_v18 = vld [vmem:[%s6035_s1 + $0x390] sm:$0xf]  ;;  %v4219_v20 = vld [vmem:[%s6035_s1 + $0x394] sm:$0xf] }
  0x37   : > { %632 = vmatpush.bf16.msra.mxu1 %v3108_v36  ;;  %898 = vmatpush.bf16.msrb.mxu0 %v4166_v37  ;;  %v3465_v16 = vld [vmem:[%s6035_s1 + $0x358] sm:$0xf0]  ;;  %v4221_v19 = vld [vmem:[%s6035_s1 + $0x3cc] sm:$0xf0]  ;;  %v3473_v22 = vld [vmem:[%s6035_s1 + $0x3d0] sm:$0xf0] }
  0x38   : > { %614 = vmatmul.bf16.vlgmr.msra.gmra.mxu0 %v4849_v34  ;;  %v3468_v17 = vor.u32 %v4216_v14, %v3465_v16  ;;  %v3472_v21 = vor.u32 %v4221_v19, %v3471_v18  ;;  %v3447_v23 = vld [vmem:[%s6035_s1 + $0x298] sm:$0xf]  ;;  %v3476_v25 = vor.u32 %v4219_v20, %v3473_v22  ;;  %v4212_v27 = vld [vmem:[%s6035_s1 + $0x29c] sm:$0xf]  ;;  %v3455_v30 = vld [vmem:[%s6035_s1 + $0x310] sm:$0xf] }
  0x39   : > { %v4214_v24 = vld [vmem:[%s6035_s1 + $0x2d4] sm:$0xf0]  ;;  %v3449_v28 = vld [vmem:[%s6035_s1 + $0x2d8] sm:$0xf0]  ;;  %v4217_v31 = vld [vmem:[%s6035_s1 + $0x34c] sm:$0xf0] }
  0x3a   : > { %937 = vmatpush.bf16.msrb.mxu2 %v4181_v38  ;;  %956 = vmatpush.bf16.msrb.mxu3 %v4189_v40  ;;  %v3448_v26 = vor.u32 %v4214_v24, %v3447_v23  ;;  %v3452_v29 = vor.u32 %v4212_v27, %v3449_v28  ;;  %v4215_v32 = vld [vmem:[%s6035_s1 + $0x314] sm:$0xf]  ;;  %v372_v33 = vld [vmem:[%s6036_s2] sm:$0xf]  ;;  %v3456_v35 = vor.u32 %v4217_v31, %v3455_v30  ;;  %v3431_v38 = vld [vmem:[%s6035_s1 + $0x218] sm:$0xf] }
  0x3b   : > { %917 = vmatpush.bf16.msrb.mxu1 %v4174_v39  ;;  %899 = vmatpush.bf16.msrb.mxu0 %v4165_v41  ;;  %v3457_v36 = vld [vmem:[%s6035_s1 + $0x350] sm:$0xf0]  ;;  %v4210_v39 = vld [vmem:[%s6035_s1 + $0x254] sm:$0xf0]  ;;  %v4208_v40 = vld [vmem:[%s6035_s1 + $0x21c] sm:$0xf] }
  0x3c   : > { %633 = vmatmul.bf16.vlgmr.msra.gmra.mxu1 %v4849_v34  ;;  %v3460_v37 = vor.u32 %v4215_v32, %v3457_v36  ;;  %v5025_v41 = vperm.slane %v372_v33, 0  ;;  %v3441_v50 = vld [vmem:[%s6035_s1 + $0x2d0] sm:$0xf0]  ;;  %v3399_v6 = vld [vmem:[%s6035_s1 + $0x118] sm:$0xf]  ;;  %v5083_v10 = vperm.slane %v372_v33, 2 }
  0x3d   : > { %v3425_v5 = vld [vmem:[%s6035_s1 + $0x250] sm:$0xf0]  ;;  %v3401_v13 = vld [vmem:[%s6035_s1 + $0x158] sm:$0xf0]  ;;  %v3407_v14 = vld [vmem:[%s6035_s1 + $0x190] sm:$0xf] }
  0x3e   : > { %938 = vmatpush.bf16.msrb.mxu2 %v4180_v42  ;;  %957 = vmatpush.bf16.msrb.mxu3 %v4188_v44  ;;  %v5027_v42 = vperm.slane %v372_v33, 1  ;;  %v3433_v44 = vld [vmem:[%s6035_s1 + $0x258] sm:$0xf0]  ;;  %v4205_v18 = vld [vmem:[%s6035_s1 + $0x1cc] sm:$0xf0] }
  0x3f   : > { %918 = vmatpush.bf16.msrb.mxu1 %v4173_v43  ;;  %900 = vmatpush.bf16.msrb.mxu0 %v4164_v45  ;;  %v3432_v43 = vor.u32 %v4210_v39, %v3431_v38  ;;  %v3436_v45 = vor.u32 %v4208_v40, %v3433_v44  ;;  %v4203_v19 = vld [vmem:[%s6035_s1 + $0x194] sm:$0xf]  ;;  %v3408_v20 = vor.u32 %v4205_v18, %v3407_v14  ;;  %v3383_v22 = vld [vmem:[%s6035_s1 + $0x98] sm:$0xf]  ;;  %v4196_v27 = vld [vmem:[%s6035_s1 + $0x9c] sm:$0xf] }
  0x40   : > { %v4198_v23 = vld [vmem:[%s6035_s1 + $0xd4] sm:$0xf0]  ;;  %v3385_v28 = vld [vmem:[%s6035_s1 + $0xd8] sm:$0xf0]  ;;  %v4199_v36 = vld [vmem:[%s6035_s1 + $0x114] sm:$0xf] }
  0x41   : > { %v4191_v14 = vld [vmem:[%s6035_s1 + $0x14] sm:$0xf] }
  0x42   : > { %939 = vmatpush.bf16.msrb.mxu2 %v4179_v46  ;;  %958 = vmatpush.bf16.msrb.mxu3 %v4187_v48  ;;  %v3439_v46 = vld [vmem:[%s6035_s1 + $0x290] sm:$0xf]  ;;  %v4211_v48 = vld [vmem:[%s6035_s1 + $0x294] sm:$0xf] }
  0x43   : > { %919 = vmatpush.bf16.msrb.mxu1 %v4172_v47  ;;  %901 = vmatpush.bf16.msrb.mxu0 %v4163_v53  ;;  %v4213_v47 = vld [vmem:[%s6035_s1 + $0x2cc] sm:$0xf0]  ;;  %v3444_v53 = vor.u32 %v4211_v48, %v3441_v50 }
  0x44   : > { %v3440_v49 = vor.u32 %v4213_v47, %v3439_v46  ;;  %v4194_v46 = vld [vmem:[%s6035_s1 + $0x54] sm:$0xf0]  ;;  %v4192_v47 = vld [vmem:[%s6035_s1 + $0x1c] sm:$0xf] }
  0x45   : > { %657 = vmatmul.bf16.gmra.mxu2 %v4896_v52  ;;  %676 = vmatmul.bf16.gmra.mxu3 %v4896_v52 }
  0x46   : > { %940 = vmatpush.bf16.msrb.mxu2 %v4178_v51  ;;  %959 = vmatpush.bf16.msrb.mxu3 %v4186_v55  ;;  %v4206_v55 = vld [vmem:[%s6035_s1 + $0x1d4] sm:$0xf0] }
  0x47   : > { %920 = vmatpush.bf16.msrb.mxu1 %v4171_v54  ;;  %902 = vmatpush.bf16.msrb.mxu0 %v4162_v57  ;;  %v3415_v54 = vld [vmem:[%s6035_s1 + $0x198] sm:$0xf] }
  0x48   : > { %619 = vmatmul.bf16.gmra.mxu0 %v4896_v52 }
  0x4a   : > { %941 = vmatpush.bf16.msrb.mxu2 %v4177_v56  ;;  %960 = vmatpush.bf16.msrb.mxu3 %v4185_v59  ;;  %v4204_v56 = vld [vmem:[%s6035_s1 + $0x19c] sm:$0xf] }
  0x4b   : > { %921 = vmatpush.bf16.msrb.mxu1 %v4170_v58  ;;  %903 = vmatpush.bf16.msrb.mxu0 %v4161_v61  ;;  %v3416_v58 = vor.u32 %v4206_v55, %v3415_v54  ;;  %v3417_v59 = vld [vmem:[%s6035_s1 + $0x1d8] sm:$0xf0]  ;;  %v3375_v54 = vld [vmem:[%s6035_s1 + $0x90] sm:$0xf] }
  0x4c   : > { %638 = vmatmul.bf16.gmra.mxu1 %v4896_v52 }
  0x4e   : > { %942 = vmatpush.bf16.msrb.mxu2 %v4176_v60  ;;  %961 = vmatpush.bf16.msrb.mxu3 %v4184_v63  ;;  %v3420_v63 = vor.u32 %v4204_v56, %v3417_v59  ;;  %v4195_v59 = vld [vmem:[%s6035_s1 + $0x94] sm:$0xf] }
  0x4f   : > { %922 = vmatpush.bf16.msrb.mxu1 %v4169_v62  ;;  %904 = vmatpush.bf16.msrb.mxu0 %v4160_v1  ;;  %v4209_v1 = vld [vmem:[%s6035_s1 + $0x24c] sm:$0xf0] }
  0x52   : > { %943 = vmatpush.bf16.msrb.mxu2 %v4175_v0  ;;  %962 = vmatpush.bf16.msrb.mxu3 %v4183_v3  ;;  %v3423_v0 = vld [vmem:[%s6035_s1 + $0x210] sm:$0xf] }
  0x53   : > { %923 = vmatpush.bf16.msrb.mxu1 %v4168_v2  ;;  %905 = vmatpush.bf16.msrb.mxu0 %v4159_v8  ;;  %v4207_v2 = vld [vmem:[%s6035_s1 + $0x214] sm:$0xf]  ;;  %v3424_v4 = vor.u32 %v4209_v1, %v3423_v0  ;;  %v4202_v8 = vld [vmem:[%s6035_s1 + $0x154] sm:$0xf0] }
  0x54   : > { %v3400_v12 = vor.u32 %v4202_v8, %v3399_v6  ;;  %v3377_v0 = vld [vmem:[%s6035_s1 + $0xd0] sm:$0xf0] }
  0x56   : > { %1282 = vmatpush.bf16.msra.mxu2 %v3480_v7  ;;  %1301 = vmatpush.bf16.msra.mxu3 %v3484_v11  ;;  %v3428_v7 = vor.u32 %v4207_v2, %v3425_v5  ;;  %v5085_v11 = vperm.slane %v372_v33, 3  ;;  %v3388_v33 = vor.u32 %v4196_v27, %v3385_v28 }
  0x57   : > { %924 = vmatpush.bf16.msrb.mxu1 %v4167_v9  ;;  %1244 = vmatpush.bf16.msra.mxu0 %v3472_v21  ;;  %v4200_v9 = vld [vmem:[%s6035_s1 + $0x11c] sm:$0xf]  ;;  %v3409_v21 = vld [vmem:[%s6035_s1 + $0x1d0] sm:$0xf0] }
  0x5a   : > { %1283 = vmatpush.bf16.msra.mxu2 %v3464_v15  ;;  %1302 = vmatpush.bf16.msra.mxu3 %v3468_v17  ;;  %v3404_v17 = vor.u32 %v4200_v9, %v3401_v13  ;;  %v4193_v13 = vld [vmem:[%s6035_s1 + $0x4c] sm:$0xf0] }
  0x5b   : > { %1263 = vmatpush.bf16.msra.mxu1 %v3476_v25  ;;  %1245 = vmatpush.bf16.msra.mxu0 %v3456_v35  ;;  %v3412_v25 = vor.u32 %v4203_v19, %v3409_v21  ;;  %v4201_v35 = vld [vmem:[%s6035_s1 + $0x14c] sm:$0xf0] }
  0x5e   : > { %1284 = vmatpush.bf16.msra.mxu2 %v3448_v26  ;;  %1303 = vmatpush.bf16.msra.mxu3 %v3452_v29  ;;  %v3384_v26 = vor.u32 %v4198_v23, %v3383_v22  ;;  %v3391_v29 = vld [vmem:[%s6035_s1 + $0x110] sm:$0xf] }
  0x5f   : > { %1264 = vmatpush.bf16.msra.mxu1 %v3460_v37  ;;  %1246 = vmatpush.bf16.msra.mxu0 %v3440_v49  ;;  %v3393_v37 = vld [vmem:[%s6035_s1 + $0x150] sm:$0xf0] }
  0x60   : > { %v3396_v44 = vor.u32 %v4199_v36, %v3393_v37 }
  0x62   : > { %1285 = vmatpush.bf16.msra.mxu2 %v3432_v43  ;;  %1304 = vmatpush.bf16.msra.mxu3 %v3436_v45  ;;  %v3392_v43 = vor.u32 %v4201_v35, %v3391_v29  ;;  %v3367_v45 = vld [vmem:[%s6035_s1 + $0x18] sm:$0xf] }
  0x63   : > { %1265 = vmatpush.bf16.msra.mxu1 %v3444_v53  ;;  %1247 = vmatpush.bf16.msra.mxu0 %v3424_v4  ;;  %v3369_v53 = vld [vmem:[%s6035_s1 + $0x58] sm:$0xf0]  ;;  %v3380_v4 = vor.u32 %v4195_v59, %v3377_v0  ;;  %v4227_v59 = vld [vmem:[%s6037_s3 + $0x120] sm:$0xff] }
  0x64   : > { %v4234_v0 = vld [vmem:[%s6037_s3 + $0x158] sm:$0xff] }
  0x66   : > { %1286 = vmatpush.bf16.msra.mxu2 %v3416_v58  ;;  %1305 = vmatpush.bf16.msra.mxu3 %v3420_v63  ;;  %v4197_v58 = vld [vmem:[%s6035_s1 + $0xcc] sm:$0xf0] }
  0x67   : > { %1266 = vmatpush.bf16.msra.mxu1 %v3428_v7  ;;  %1248 = vmatpush.bf16.msra.mxu0 %v3408_v20  ;;  %v3376_v63 = vor.u32 %v4197_v58, %v3375_v54  ;;  %v4252_v54 = vld [vmem:[%s6037_s3 + $0x1e8] sm:$0xff]  ;;  %v4243_v58 = vld [vmem:[%s6037_s3 + $0x1a0] sm:$0xff] }
  0x6a   : > { %1287 = vmatpush.bf16.msra.mxu2 %v3400_v12  ;;  %1306 = vmatpush.bf16.msra.mxu3 %v3404_v17  ;;  %v3359_v12 = vld [vmem:[%s6035_s1 + $0x10] sm:$0xf]  ;;  %v3361_v17 = vld [vmem:[%s6035_s1 + $0x50] sm:$0xf0] }
  0x6b   : > { %1267 = vmatpush.bf16.msra.mxu1 %v3412_v25  ;;  %1249 = vmatpush.bf16.msra.mxu0 %v3392_v43  ;;  %v3364_v18 = vor.u32 %v4191_v14, %v3361_v17  ;;  %v4240_v14 = vld [vmem:[%s6037_s3 + $0x188] sm:$0xff] }
  0x6c   : > { %v4248_v17 = vld [vmem:[%s6037_s3 + $0x1c8] sm:$0xff] }
  0x6e   : > { %1288 = vmatpush.bf16.msra.mxu2 %v3384_v26  ;;  %1307 = vmatpush.bf16.msra.mxu3 %v3388_v33 }
  0x6f   : > { %1268 = vmatpush.bf16.msra.mxu1 %v3396_v44  ;;  %1250 = vmatpush.bf16.msra.mxu0 %v3376_v63  ;;  %v4226_v63 = vld [vmem:[%s6037_s3 + $0x118] sm:$0xff] }
  0x73   : > { %1269 = vmatpush.bf16.msra.mxu1 %v3380_v4 }
  0x77   : > { %1270 = vmatpush.bf16.msra.mxu1 %v3364_v18 }
  0xb5   : > { %v615_v51 = vpop.f32.mrf.mxu0 }
  0xb6   : > { %v5057_v61 = vadd.f32 %v615_v51, %v5025_v41  ;;  %v3368_v51 = vor.u32 %v4194_v46, %v3367_v45  ;;  %v4254_v45 = vld [vmem:[%s6037_s3 + $0x1f8] sm:$0xff]  ;;  %v4245_v46 = vld [vmem:[%s6037_s3 + $0x1b0] sm:$0xff] }
  0xb8   : > { %v653_v60 = vpop.f32.mrf.mxu2  ;;  %v672_v3 = vpop.f32.mrf.mxu3  ;;  %v682_v15 = vmax.f32 %v5057_v61, 0.0  ;;  %1289 = vmatpush.bf16.msra.mxu2 %v3368_v51  ;;  %v4228_v51 = vld [vmem:[%s6037_s3 + $0x128] sm:$0xff] }
  0xb9   : > { %v634_v57 = vpop.f32.mrf.mxu1  ;;  %v654_v30 = vadd.f32 %v653_v60, %v5083_v10  ;;  %v673_v38 = vadd.f32 %v672_v3, %v5085_v11 }
  0xba   : > { %v5060_v62 = vadd.f32 %v634_v57, %v5027_v42  ;;  %v3372_v57 = vor.u32 %v4192_v47, %v3369_v53  ;;  %v4229_v47 = vld [vmem:[%s6037_s3 + $0x130] sm:$0xff]  ;;  %v4236_v53 = vld [vmem:[%s6037_s3 + $0x168] sm:$0xff] }
  0xbb   : > { %v684_v60 = vmax.f32 %v654_v30, 0.0  ;;  %v685_v1 = vmax.f32 %v673_v38, 0.0 }
  0xbc   : > { %v683_v16 = vmax.f32 %v5060_v62, 0.0  ;;  %1308 = vmatpush.bf16.msra.mxu3 %v3372_v57 }
  0xbd   : > { %v617_v24 = vpop.f32.mrf.mxu0 }
  0xbe   : > { %v618_v31 = vadd.f32 %v617_v24, %v5025_v41 }
  0xc0   : > { %v655_v39 = vpop.f32.mrf.mxu2  ;;  %v674_v49 = vpop.f32.mrf.mxu3  ;;  %v686_v50 = vmax.f32 %v618_v31, 0.0 }
  0xc1   : > { %v636_v32 = vpop.f32.mrf.mxu1  ;;  %v656_v48 = vadd.f32 %v655_v39, %v5083_v10  ;;  %v675_v55 = vadd.f32 %v674_v49, %v5085_v11  ;;  %v4253_v49 = vld [vmem:[%s6037_s3 + $0x1f0] sm:$0xff] }
  0xc2   : > { %v637_v40 = vadd.f32 %v636_v32, %v5027_v42  ;;  %v698_v62 = vpack.c.bf16 %v686_v50, %v682_v15  ;;  %v4244_v50 = vld [vmem:[%s6037_s3 + $0x1a8] sm:$0xff] }
  0xc3   : > { %v688_v61 = vmax.f32 %v656_v48, 0.0  ;;  %v689_v2 = vmax.f32 %v675_v55, 0.0  ;;  %v4237_v48 = vld [vmem:[%s6037_s3 + $0x170] sm:$0xff] }
  0xc4   : > { %v687_v56 = vmax.f32 %v637_v40, 0.0  ;;  %906 = vmatmul.bf16.vlgmr.msrb.gmra.mxu0 %v698_v62  ;;  %v4242_v62 = vld [vmem:[%s6037_s3 + $0x198] sm:$0xff] }
  0xc5   : > { %v700_v5 = vpack.c.bf16 %v688_v61, %v684_v60  ;;  %v701_v6 = vpack.c.bf16 %v689_v2, %v685_v1  ;;  %v620_v7 = vpop.f32.mrf.mxu0  ;;  %v4235_v60 = vld [vmem:[%s6037_s3 + $0x160] sm:$0xff]  ;;  %v4250_v1 = vld [vmem:[%s6037_s3 + $0x1d8] sm:$0xff] }
  0xc6   : > { %v699_v3 = vpack.c.bf16 %v687_v56, %v683_v16  ;;  %v3360_v16 = vor.u32 %v4193_v13, %v3359_v12  ;;  %v621_v19 = vadd.f32 %v620_v7, %v5025_v41  ;;  %v4251_v61 = vld [vmem:[%s6037_s3 + $0x1e0] sm:$0xff]  ;;  %v4233_v12 = vld [vmem:[%s6037_s3 + $0x150] sm:$0xff] }
  0xc7   : > { %944 = vmatmul.bf16.vlgmr.msrb.gmra.mxu2 %v700_v5  ;;  %963 = vmatmul.bf16.vlgmr.msrb.gmra.mxu3 %v701_v6  ;;  %v4249_v13 = vld [vmem:[%s6037_s3 + $0x1d0] sm:$0xff] }
  0xc8   : > { %925 = vmatmul.bf16.vlgmr.msrb.gmra.mxu1 %v699_v3  ;;  %v658_v9 = vpop.f32.mrf.mxu2  ;;  %v677_v15 = vpop.f32.mrf.mxu3  ;;  %1251 = vmatpush.bf16.msra.mxu0 %v3360_v16  ;;  %v690_v23 = vmax.f32 %v621_v19, 0.0  ;;  %v4232_v16 = vld [vmem:[%s6037_s3 + $0x148] sm:$0xff] }
  0xc9   : > { %v639_v8 = vpop.f32.mrf.mxu1  ;;  %v659_v22 = vadd.f32 %v658_v9, %v5083_v10  ;;  %v678_v26 = vadd.f32 %v677_v15, %v5085_v11  ;;  %1593 = vmatpush.bf16.msrb.mxu3 %v4254_v45  ;;  %v4225_v9 = vld [vmem:[%s6037_s3 + $0x110] sm:$0xff]  ;;  %v4224_v15 = vld [vmem:[%s6037_s3 + $0x108] sm:$0xff] }
  0xca   : > { %v640_v20 = vadd.f32 %v639_v8, %v5027_v42  ;;  %v4241_v8 = vld [vmem:[%s6037_s3 + $0x190] sm:$0xff]  ;;  %v4282_v45 = vld [vmem:[%s6035_s1 + $0x364] sm:$0xf0] }
  0xcb   : > { %v692_v36 = vmax.f32 %v659_v22, 0.0  ;;  %v693_v39 = vmax.f32 %v678_v26, 0.0  ;;  %v4247_v26 = vld [vmem:[%s6037_s3 + $0x1c0] sm:$0xff] }
  0xcc   : > { %v691_v27 = vmax.f32 %v640_v20, 0.0 }
  0xcd   : > { %v622_v21 = vpop.f32.mrf.mxu0  ;;  %1594 = vmatpush.bf16.msrb.mxu3 %v4253_v49  ;;  %v4281_v49 = vld [vmem:[%s6035_s1 + $0x35c] sm:$0xf0] }
  0xce   : > { %v623_v24 = vadd.f32 %v622_v21, %v5025_v41 }
  0xd0   : > { %v660_v28 = vpop.f32.mrf.mxu2  ;;  %v679_v31 = vpop.f32.mrf.mxu3  ;;  %v694_v32 = vmax.f32 %v623_v24, 0.0  ;;  %v4223_v24 = vld [vmem:[%s6037_s3 + $0x100] sm:$0xff] }
  0xd1   : > { %v641_v25 = vpop.f32.mrf.mxu1  ;;  %v661_v30 = vadd.f32 %v660_v28, %v5083_v10  ;;  %v680_v33 = vadd.f32 %v679_v31, %v5085_v11  ;;  %v4230_v10 = vld [vmem:[%s6037_s3 + $0x138] sm:$0xff]  ;;  %1595 = vmatpush.bf16.msrb.mxu3 %v4252_v54  ;;  %v4286_v28 = vld [vmem:[%s6035_s1 + $0x3e4] sm:$0xf0]  ;;  %v4285_v31 = vld [vmem:[%s6035_s1 + $0x3dc] sm:$0xf0] }
  0xd2   : > { %v642_v29 = vadd.f32 %v641_v25, %v5027_v42  ;;  %v702_v38 = vpack.c.bf16 %v694_v32, %v690_v23  ;;  %v4246_v42 = vld [vmem:[%s6037_s3 + $0x1b8] sm:$0xff]  ;;  %1536 = vmatpush.bf16.msrb.mxu0 %v4230_v10  ;;  %v4239_v23 = vld [vmem:[%s6037_s3 + $0x180] sm:$0xff] }
  0xd3   : > { %v696_v37 = vmax.f32 %v661_v30, 0.0  ;;  %v697_v40 = vmax.f32 %v680_v33, 0.0  ;;  %1574 = vmatpush.bf16.msrb.mxu2 %v4246_v42  ;;  %v4238_v11 = vld [vmem:[%s6037_s3 + $0x178] sm:$0xff]  ;;  %v4231_v25 = vld [vmem:[%s6037_s3 + $0x140] sm:$0xff] }
  0xd4   : > { %v695_v35 = vmax.f32 %v642_v29, 0.0  ;;  %911 = vmatmul.bf16.gmra.mxu0 %v702_v38  ;;  %1555 = vmatpush.bf16.msrb.mxu1 %v4238_v11  ;;  %v3727_v29 = vld [vmem:[%s6035_s1 + $0x3a0] sm:$0xf]  ;;  %v4283_v32 = vld [vmem:[%s6035_s1 + $0x3a4] sm:$0xf] }
  0xd5   : > { %v704_v43 = vpack.c.bf16 %v696_v37, %v692_v36  ;;  %v705_v44 = vpack.c.bf16 %v697_v40, %v693_v39  ;;  %1596 = vmatpush.bf16.msrb.mxu3 %v4251_v61  ;;  %v3729_v33 = vld [vmem:[%s6035_s1 + $0x3e0] sm:$0xf0]  ;;  %v3728_v37 = vor.u32 %v4285_v31, %v3727_v29  ;;  %v4284_v39 = vld [vmem:[%s6035_s1 + $0x3ac] sm:$0xf]  ;;  %v3719_v11 = vld [vmem:[%s6035_s1 + $0x328] sm:$0xf] }
  0xd6   : > { %v703_v41 = vpack.c.bf16 %v695_v35, %v691_v27  ;;  %1537 = vmatpush.bf16.msrb.mxu0 %v4229_v47  ;;  %v3735_v27 = vld [vmem:[%s6035_s1 + $0x3a8] sm:$0xf]  ;;  %v3732_v38 = vor.u32 %v4283_v32, %v3729_v33  ;;  %v3737_v40 = vld [vmem:[%s6035_s1 + $0x3e8] sm:$0xf0]  ;;  %v5323_v10 = vld [vmem:[%s6036_s2 + $0x4] sm:$0xf] }
  0xd7   : > { %949 = vmatmul.bf16.gmra.mxu2 %v704_v43  ;;  %968 = vmatmul.bf16.gmra.mxu3 %v705_v44  ;;  %v3736_v30 = vor.u32 %v4286_v28, %v3735_v27  ;;  %v3740_v42 = vor.u32 %v4284_v39, %v3737_v40  ;;  %v4278_v61 = vld [vmem:[%s6035_s1 + $0x2e4] sm:$0xf0]  ;;  %v3681_v28 = vld [vmem:[%s6035_s1 + $0x260] sm:$0xf0]  ;;  %v4272_v29 = vld [vmem:[%s6035_s1 + $0x22c] sm:$0xf] }
  0xd8   : > { %930 = vmatmul.bf16.gmra.mxu1 %v703_v41  ;;  %1575 = vmatpush.bf16.msrb.mxu2 %v4245_v46  ;;  %v3711_v46 = vld [vmem:[%s6035_s1 + $0x320] sm:$0xf]  ;;  %v3689_v33 = vld [vmem:[%s6035_s1 + $0x268] sm:$0xf0] }
  0xd9   : > { %1556 = vmatpush.bf16.msrb.mxu1 %v4237_v48  ;;  %1597 = vmatpush.bf16.msrb.mxu3 %v4250_v1  ;;  %v3720_v48 = vor.u32 %v4282_v45, %v3719_v11  ;;  %v4275_v1 = vld [vmem:[%s6035_s1 + $0x2a4] sm:$0xf]  ;;  %v3663_v39 = vld [vmem:[%s6035_s1 + $0x1a0] sm:$0xf] }
  0xda   : > { %1538 = vmatpush.bf16.msrb.mxu0 %v4228_v51  ;;  %v3713_v51 = vld [vmem:[%s6035_s1 + $0x360] sm:$0xf0] }
  0xdc   : > { %1576 = vmatpush.bf16.msrb.mxu2 %v4244_v50  ;;  %v4279_v50 = vld [vmem:[%s6035_s1 + $0x324] sm:$0xf] }
  0xdd   : > { %1557 = vmatpush.bf16.msrb.mxu1 %v4236_v53  ;;  %1598 = vmatpush.bf16.msrb.mxu3 %v4249_v13  ;;  %v3712_v53 = vor.u32 %v4281_v49, %v3711_v46  ;;  %v3716_v54 = vor.u32 %v4279_v50, %v3713_v51  ;;  %v4268_v49 = vld [vmem:[%s6035_s1 + $0x1ac] sm:$0xf]  ;;  %v3655_v51 = vld [vmem:[%s6035_s1 + $0x128] sm:$0xf] }
  0xde   : > { %1539 = vmatpush.bf16.msrb.mxu0 %v4227_v59  ;;  %v5358_v59 = vperm.slane %v5323_v10, 1  ;;  %v3673_v50 = vld [vmem:[%s6035_s1 + $0x1e8] sm:$0xf0] }
  0xe0   : > { %1577 = vmatpush.bf16.msrb.mxu2 %v4243_v58  ;;  %v5355_v58 = vperm.slane %v5323_v10, 0 }
  0xe1   : > { %1558 = vmatpush.bf16.msrb.mxu1 %v4235_v60  ;;  %1599 = vmatpush.bf16.msrb.mxu3 %v4248_v17 }
  0xe2   : > { %1540 = vmatpush.bf16.msrb.mxu0 %v4226_v63  ;;  %v3695_v63 = vld [vmem:[%s6035_s1 + $0x2a0] sm:$0xf] }
  0xe4   : > { %1252 = vmatmul.bf16.vlgmr.msra.gmra.mxu0 %v4849_v34  ;;  %1578 = vmatpush.bf16.msrb.mxu2 %v4242_v62 }
  0xe5   : > { %1559 = vmatpush.bf16.msrb.mxu1 %v4234_v0  ;;  %1600 = vmatpush.bf16.msrb.mxu3 %v4247_v26  ;;  %v4277_v0 = vld [vmem:[%s6035_s1 + $0x2dc] sm:$0xf0]  ;;  %v4271_v26 = vld [vmem:[%s6035_s1 + $0x224] sm:$0xf] }
  0xe6   : > { %1541 = vmatpush.bf16.msrb.mxu0 %v4225_v9  ;;  %v3684_v32 = vor.u32 %v4271_v26, %v3681_v28  ;;  %v3633_v26 = vld [vmem:[%s6035_s1 + $0xe0] sm:$0xf0] }
  0xe7   : > { %1290 = vmatmul.bf16.vlgmr.msra.gmra.mxu2 %v4849_v34  ;;  %1309 = vmatmul.bf16.vlgmr.msra.gmra.mxu3 %v4849_v34 }
  0xe8   : > { %1271 = vmatmul.bf16.vlgmr.msra.gmra.mxu1 %v4849_v34  ;;  %1579 = vmatpush.bf16.msrb.mxu2 %v4241_v8  ;;  %v3705_v8 = vld [vmem:[%s6035_s1 + $0x2e8] sm:$0xf0] }
  0xe9   : > { %1560 = vmatpush.bf16.msrb.mxu1 %v4233_v12  ;;  %1939 = vmatpush.bf16.msra.mxu3 %v3740_v42  ;;  %v3665_v42 = vld [vmem:[%s6035_s1 + $0x1e0] sm:$0xf0] }
  0xea   : > { %1542 = vmatpush.bf16.msrb.mxu0 %v4224_v15 }
  0xec   : > { %1580 = vmatpush.bf16.msrb.mxu2 %v4240_v14 }
  0xed   : > { %1561 = vmatpush.bf16.msrb.mxu1 %v4232_v16 }
  0xee   : > { %1543 = vmatpush.bf16.msrb.mxu0 %v4223_v24 }
  0xf0   : > { %1581 = vmatpush.bf16.msrb.mxu2 %v4239_v23  ;;  %v3679_v23 = vld [vmem:[%s6035_s1 + $0x220] sm:$0xf] }
  0xf1   : > { %1562 = vmatpush.bf16.msrb.mxu1 %v4231_v25  ;;  %v4273_v25 = vld [vmem:[%s6035_s1 + $0x25c] sm:$0xf0] }
  0xf2   : > { %1882 = vmatpush.bf16.msra.mxu0 %v3728_v37  ;;  %v3680_v27 = vor.u32 %v4273_v25, %v3679_v23  ;;  %v3671_v37 = vld [vmem:[%s6035_s1 + $0x1a8] sm:$0xf]  ;;  %v4261_v25 = vld [vmem:[%s6035_s1 + $0xdc] sm:$0xf0] }
  0xf4   : > { %1257 = vmatmul.bf16.gmra.mxu0 %v4896_v52  ;;  %1920 = vmatpush.bf16.msra.mxu2 %v3736_v30 }
  0xf5   : > { %1901 = vmatpush.bf16.msra.mxu1 %v3732_v38  ;;  %v4270_v38 = vld [vmem:[%s6035_s1 + $0x1e4] sm:$0xf0] }
  0xf6   : > { %1883 = vmatpush.bf16.msra.mxu0 %v3712_v53  ;;  %v3672_v40 = vor.u32 %v4270_v38, %v3671_v37  ;;  %v3615_v37 = vld [vmem:[%s6035_s1 + $0x20] sm:$0xf] }
  0xf7   : > { %1295 = vmatmul.bf16.gmra.mxu2 %v4896_v52  ;;  %1314 = vmatmul.bf16.gmra.mxu3 %v4896_v52  ;;  %v4257_v38 = vld [vmem:[%s6035_s1 + $0x5c] sm:$0xf0] }
  0xf8   : > { %1276 = vmatmul.bf16.gmra.mxu1 %v4896_v52  ;;  %1921 = vmatpush.bf16.msra.mxu2 %v3720_v48 }
  0xf9   : > { %1902 = vmatpush.bf16.msra.mxu1 %v3716_v54 }
 0x141   : > { %v907_v55 = vpop.f32.mrf.mxu0 }
 0x145   : > { %v926_v56 = vpop.f32.mrf.mxu1 }
 0x146   : > { %v927_v57 = vadd.f32 %v926_v56, %v907_v55  ;;  %v4280_v55 = vld [vmem:[%s6035_s1 + $0x32c] sm:$0xf] }
 0x147   : > { %v3721_v56 = vld [vmem:[%s6035_s1 + $0x368] sm:$0xf0] }
 0x148   : > { %v3724_v60 = vor.u32 %v4280_v55, %v3721_v56  ;;  %v3676_v56 = vor.u32 %v4268_v49, %v3673_v50 }
 0x149   : > { %v5246_v3 = vpop.f32.mrf.mxu0 }
 0x14a   : > { %v945_v2 = vpop.f32.mrf.mxu2  ;;  %v964_v5 = vpop.f32.mrf.mxu3  ;;  %1940 = vmatpush.bf16.msra.mxu3 %v3724_v60  ;;  %v3647_v60 = vld [vmem:[%s6035_s1 + $0x120] sm:$0xf] }
 0x14b   : > { %v946_v4 = vadd.f32 %v945_v2, %v927_v57  ;;  %v3703_v57 = vld [vmem:[%s6035_s1 + $0x2a8] sm:$0xf]  ;;  %v3696_v2 = vor.u32 %v4277_v0, %v3695_v63 }
 0x14c   : > { %v3704_v62 = vor.u32 %v4278_v61, %v3703_v57  ;;  %v4266_v57 = vld [vmem:[%s6035_s1 + $0x164] sm:$0xf0]  ;;  %v4265_v61 = vld [vmem:[%s6035_s1 + $0x15c] sm:$0xf0] }
 0x14d   : > { %v5248_v6 = vpop.f32.mrf.mxu1  ;;  %v5250_v7 = vadd.f32 %v964_v5, %v946_v4  ;;  %v3697_v4 = vld [vmem:[%s6035_s1 + $0x2e0] sm:$0xf0]  ;;  %v4276_v5 = vld [vmem:[%s6035_s1 + $0x2ac] sm:$0xf]  ;;  %1884 = vmatpush.bf16.msra.mxu0 %v3696_v2  ;;  %v3656_v63 = vor.u32 %v4266_v57, %v3655_v51  ;;  %v3648_v0 = vor.u32 %v4265_v61, %v3647_v60  ;;  %v3616_v51 = vor.u32 %v4257_v38, %v3615_v37  ;;  %v4293_v37 = vld [vmem:[%s6037_s3 + $0x230] sm:$0xff] }
 0x14e   : > { %v3700_v13 = vor.u32 %v4275_v1, %v3697_v4  ;;  %v3708_v14 = vor.u32 %v4276_v5, %v3705_v8  ;;  %1922 = vmatpush.bf16.msra.mxu2 %v3704_v62  ;;  %v4263_v1 = vld [vmem:[%s6035_s1 + $0x124] sm:$0xf]  ;;  %v4264_v4 = vld [vmem:[%s6035_s1 + $0x12c] sm:$0xf]  ;;  %v5465_v5 = vperm.slane %v5323_v10, 2  ;;  %v4301_v38 = vld [vmem:[%s6037_s3 + $0x270] sm:$0xff] }
 0x14f   : > { %v3649_v2 = vld [vmem:[%s6035_s1 + $0x160] sm:$0xf0] }
 0x150   : > { %1903 = vmatpush.bf16.msra.mxu1 %v3700_v13  ;;  %1941 = vmatpush.bf16.msra.mxu3 %v3708_v14  ;;  %v3657_v13 = vld [vmem:[%s6035_s1 + $0x168] sm:$0xf0]  ;;  %v3639_v14 = vld [vmem:[%s6035_s1 + $0xa8] sm:$0xf] }
 0x151   : > { %v912_v19 = vpop.f32.mrf.mxu0  ;;  %1885 = vmatpush.bf16.msra.mxu0 %v3680_v27 }
 0x152   : > { %v5276_v18 = vpop.f32.mrf.mxu2  ;;  %v5278_v20 = vpop.f32.mrf.mxu3 }
 0x154   : > { %1904 = vmatpush.bf16.msra.mxu1 %v3684_v32  ;;  %v3623_v32 = vld [vmem:[%s6035_s1 + $0x28] sm:$0xf] }
 0x155   : > { %v931_v21 = vpop.f32.mrf.mxu1 }
 0x156   : > { %v932_v22 = vadd.f32 %v931_v21, %v912_v19  ;;  %v3687_v21 = vld [vmem:[%s6035_s1 + $0x228] sm:$0xf] }
 0x159   : > { %v5310_v36 = vpop.f32.mrf.mxu0 }
 0x15a   : > { %v950_v35 = vpop.f32.mrf.mxu2  ;;  %v969_v43 = vpop.f32.mrf.mxu3 }
 0x15b   : > { %v951_v41 = vadd.f32 %v950_v35, %v932_v22  ;;  %v4274_v22 = vld [vmem:[%s6035_s1 + $0x264] sm:$0xf0]  ;;  %v3692_v35 = vor.u32 %v4272_v29, %v3689_v33  ;;  %v4260_v29 = vld [vmem:[%s6035_s1 + $0xac] sm:$0xf] }
 0x15c   : > { %v3688_v24 = vor.u32 %v4274_v22, %v3687_v21  ;;  %v4262_v21 = vld [vmem:[%s6035_s1 + $0xe4] sm:$0xf0]  ;;  %v3631_v22 = vld [vmem:[%s6035_s1 + $0xa0] sm:$0xf] }
 0x15d   : > { %v5318_v44 = vpop.f32.mrf.mxu1  ;;  %v5334_v47 = vadd.f32 %v969_v43, %v951_v41  ;;  %v4269_v41 = vld [vmem:[%s6035_s1 + $0x1dc] sm:$0xf0]  ;;  %v4267_v43 = vld [vmem:[%s6035_s1 + $0x1a4] sm:$0xf]  ;;  %1942 = vmatpush.bf16.msra.mxu3 %v3692_v35  ;;  %v3632_v28 = vor.u32 %v4261_v25, %v3631_v22 }
 0x15e   : > { %1923 = vmatpush.bf16.msra.mxu2 %v3688_v24  ;;  %v3664_v46 = vor.u32 %v4269_v41, %v3663_v39  ;;  %v3668_v48 = vor.u32 %v4267_v43, %v3665_v42  ;;  %v3640_v24 = vor.u32 %v4262_v21, %v3639_v14  ;;  %v4255_v42 = vld [vmem:[%s6035_s1 + $0x24] sm:$0xf] }
 0x160   : > { %1886 = vmatpush.bf16.msra.mxu0 %v3664_v46  ;;  %1905 = vmatpush.bf16.msra.mxu1 %v3668_v48 }
 0x161   : > { %v1253_v12 = vpop.f32.mrf.mxu0  ;;  %1943 = vmatpush.bf16.msra.mxu3 %v3676_v56 }
 0x162   : > { %v5381_v9 = vpop.f32.mrf.mxu2  ;;  %v5383_v15 = vpop.f32.mrf.mxu3  ;;  %v5386_v16 = vadd.f32 %v1253_v12, %v5355_v58  ;;  %1924 = vmatpush.bf16.msra.mxu2 %v3672_v40  ;;  %v3652_v12 = vor.u32 %v4263_v1, %v3649_v2 }
 0x164   : > { %v1320_v30 = vmax.f32 %v5386_v16, 0.0  ;;  %v5474_v16 = vperm.slane %v5323_v10, 3  ;;  %v4259_v10 = vld [vmem:[%s6035_s1 + $0xa4] sm:$0xf]  ;;  %1887 = vmatpush.bf16.msra.mxu0 %v3648_v0  ;;  %1906 = vmatpush.bf16.msra.mxu1 %v3652_v12 }
 0x165   : > { %v1272_v17 = vpop.f32.mrf.mxu1  ;;  %v3636_v35 = vor.u32 %v4259_v10, %v3633_v26 }
 0x166   : > { %v5389_v19 = vadd.f32 %v1272_v17, %v5358_v59  ;;  %1925 = vmatpush.bf16.msra.mxu2 %v3656_v63 }
 0x168   : > { %v1321_v31 = vmax.f32 %v5389_v19, 0.0  ;;  %v3660_v19 = vor.u32 %v4264_v4, %v3657_v13  ;;  %1888 = vmatpush.bf16.msra.mxu0 %v3632_v28  ;;  %1907 = vmatpush.bf16.msra.mxu1 %v3636_v35 }
 0x169   : > { %v1255_v45 = vpop.f32.mrf.mxu0 }
 0x16a   : > { %v1291_v11 = vpop.f32.mrf.mxu2  ;;  %v1310_v53 = vpop.f32.mrf.mxu3  ;;  %v1256_v54 = vadd.f32 %v1255_v45, %v5355_v58  ;;  %1944 = vmatpush.bf16.msra.mxu3 %v3660_v19  ;;  %1926 = vmatpush.bf16.msra.mxu2 %v3640_v24 }
 0x16b   : > { %v1292_v33 = vadd.f32 %v1291_v11, %v5465_v5  ;;  %v1311_v39 = vadd.f32 %v1310_v53, %v5474_v16  ;;  %v3617_v11 = vld [vmem:[%s6035_s1 + $0x60] sm:$0xf0]  ;;  %v4256_v53 = vld [vmem:[%s6035_s1 + $0x2c] sm:$0xf] }
 0x16c   : > { %v1324_v8 = vmax.f32 %v1256_v54, 0.0  ;;  %v3625_v54 = vld [vmem:[%s6035_s1 + $0x68] sm:$0xf0]  ;;  %v3620_v57 = vor.u32 %v4255_v42, %v3617_v11  ;;  %1889 = vmatpush.bf16.msra.mxu0 %v3616_v51 }
 0x16d   : > { %v1274_v55 = vpop.f32.mrf.mxu1  ;;  %v1323_v60 = vmax.f32 %v1311_v39, 0.0  ;;  %v3628_v0 = vor.u32 %v4256_v53, %v3625_v54  ;;  %v4310_v39 = vld [vmem:[%s6037_s3 + $0x2b8] sm:$0xff]  ;;  %v4308_v51 = vld [vmem:[%s6037_s3 + $0x2a8] sm:$0xff] }
 0x16e   : > { %v1275_v62 = vadd.f32 %v1274_v55, %v5358_v59  ;;  %v1336_v23 = vpack.c.bf16 %v1324_v8, %v1320_v30  ;;  %v3641_v30 = vld [vmem:[%s6035_s1 + $0xe8] sm:$0xf0]  ;;  %v1322_v55 = vmax.f32 %v1292_v33, 0.0  ;;  %1908 = vmatpush.bf16.msra.mxu1 %v3620_v57  ;;  %v4290_v54 = vld [vmem:[%s6037_s3 + $0x218] sm:$0xff]  ;;  %v5589_v57 = vld [vmem:[#allocation2] ss:$0 sm:$0xff] }
 0x16f   : > { %v3644_v43 = vor.u32 %v4260_v29, %v3641_v30  ;;  %v4316_v53 = vld [vmem:[%s6037_s3 + $0x2e8] sm:$0xff] }
 0x170   : > { %v1325_v17 = vmax.f32 %v1275_v62, 0.0  ;;  %1544 = vmatmul.bf16.vlgmr.msrb.gmra.mxu0 %v1336_v23 }
 0x171   : > { %v1258_v41 = vpop.f32.mrf.mxu0  ;;  %1945 = vmatpush.bf16.msra.mxu3 %v3644_v43  ;;  %v4300_v43 = vld [vmem:[%s6037_s3 + $0x268] sm:$0xff] }
 0x172   : > { %v1337_v27 = vpack.c.bf16 %v1325_v17, %v1321_v31  ;;  %v4258_v31 = vld [vmem:[%s6035_s1 + $0x64] sm:$0xf0]  ;;  %v1293_v40 = vpop.f32.mrf.mxu2  ;;  %v1312_v46 = vpop.f32.mrf.mxu3  ;;  %v1259_v63 = vadd.f32 %v1258_v41, %v5355_v58 }
 0x173   : > { %v1294_v45 = vadd.f32 %v1293_v40, %v5465_v5  ;;  %v3624_v49 = vor.u32 %v4258_v31, %v3623_v32  ;;  %v1313_v50 = vadd.f32 %v1312_v46, %v5474_v16  ;;  %v4318_v40 = vld [vmem:[%s6037_s3 + $0x2f8] sm:$0xff]  ;;  %v4292_v41 = vld [vmem:[%s6037_s3 + $0x228] sm:$0xff]  ;;  %v4317_v46 = vld [vmem:[%s6037_s3 + $0x2f0] sm:$0xff] }
 0x174   : > { %1563 = vmatmul.bf16.vlgmr.msrb.gmra.mxu1 %v1337_v27  ;;  %v1328_v12 = vmax.f32 %v1259_v63, 0.0 }
 0x175   : > { %v1277_v48 = vpop.f32.mrf.mxu1  ;;  %v1326_v56 = vmax.f32 %v1294_v45, 0.0  ;;  %v1327_v61 = vmax.f32 %v1313_v50, 0.0  ;;  %1927 = vmatpush.bf16.msra.mxu2 %v3624_v49  ;;  %1946 = vmatpush.bf16.msra.mxu3 %v3628_v0  ;;  %v4309_v45 = vld [vmem:[%s6037_s3 + $0x2b0] sm:$0xff]  ;;  %v4291_v49 = vld [vmem:[%s6037_s3 + $0x220] sm:$0xff] }
 0x176   : > { %v1278_v2 = vadd.f32 %v1277_v48, %v5358_v59  ;;  %v4299_v50 = vld [vmem:[%s6037_s3 + $0x260] sm:$0xff]  ;;  %v4289_v0 = vld [vmem:[%s6037_s3 + $0x210] sm:$0xff] }
 0x177   : > { %v1338_v62 = vpack.c.bf16 %v1326_v56, %v1322_v55  ;;  %v1339_v1 = vpack.c.bf16 %v1327_v61, %v1323_v60  ;;  %v4298_v55 = vld [vmem:[%s6037_s3 + $0x258] sm:$0xff]  ;;  %v4307_v61 = vld [vmem:[%s6037_s3 + $0x2a0] sm:$0xff] }
 0x178   : > { %v1329_v19 = vmax.f32 %v1278_v2, 0.0  ;;  %v4306_v2 = vld [vmem:[%s6037_s3 + $0x298] sm:$0xff] }
 0x179   : > { %1582 = vmatmul.bf16.vlgmr.msrb.gmra.mxu2 %v1338_v62  ;;  %1601 = vmatmul.bf16.vlgmr.msrb.gmra.mxu3 %v1339_v1  ;;  %v1260_v8 = vpop.f32.mrf.mxu0  ;;  %v4315_v62 = vld [vmem:[%s6037_s3 + $0x2e0] sm:$0xff]  ;;  %v4297_v1 = vld [vmem:[%s6037_s3 + $0x250] sm:$0xff] }
 0x17a   : > { %v1296_v4 = vpop.f32.mrf.mxu2  ;;  %v1315_v13 = vpop.f32.mrf.mxu3  ;;  %v1261_v14 = vadd.f32 %v1260_v8, %v5355_v58  ;;  %2212 = vmatpush.bf16.msrb.mxu2 %v4310_v39  ;;  %2231 = vmatpush.bf16.msrb.mxu3 %v4318_v40 }
 0x17b   : > { %v1297_v10 = vadd.f32 %v1296_v4, %v5465_v5  ;;  %v1316_v26 = vadd.f32 %v1315_v13, %v5474_v16  ;;  %v4436_v4 = vld [vmem:[%s4809_s27] sm:$0xff] }
 0x17c   : > { %v1332_v22 = vmax.f32 %v1261_v14, 0.0  ;;  %v336_v8 = vadd.f32 %v4436_v4, %v5589_v57  ;;  %v4341_v4 = vld [vmem:[%s6035_s1 + $0x2ec] sm:$0xf0] }
 0x17d   : > { %v1279_v17 = vpop.f32.mrf.mxu1  ;;  %v1330_v30 = vmax.f32 %v1297_v10, 0.0  ;;  %v1331_v33 = vmax.f32 %v1316_v26, 0.0  ;;  %v4305_v10 = vld [vmem:[%s6037_s3 + $0x290] sm:$0xff] }
 0x17e   : > { %v1280_v21 = vadd.f32 %v1279_v17, %v5358_v59  ;;  %v1340_v24 = vpack.c.bf16 %v1332_v22, %v1328_v12  ;;  %2213 = vmatpush.bf16.msrb.mxu2 %v4309_v45  ;;  %2232 = vmatpush.bf16.msrb.mxu3 %v4317_v46  ;;  %v4314_v12 = vld [vmem:[%s6037_s3 + $0x2d8] sm:$0xff]  ;;  %v4313_v26 = vld [vmem:[%s6037_s3 + $0x2d0] sm:$0xff] }
 0x17f   : > { %v3967_v45 = vld [vmem:[%s6035_s1 + $0x330] sm:$0xf] }
 0x180   : > { %v1333_v23 = vmax.f32 %v1280_v21, 0.0  ;;  %1549 = vmatmul.bf16.gmra.mxu0 %v1340_v24  ;;  %v4296_v21 = vld [vmem:[%s6037_s3 + $0x248] sm:$0xff]  ;;  %v4345_v46 = vld [vmem:[%s6035_s1 + $0x36c] sm:$0xf0] }
 0x182   : > { %v1341_v25 = vpack.c.bf16 %v1333_v23, %v1329_v19  ;;  %v1298_v27 = vpop.f32.mrf.mxu2  ;;  %v1317_v29 = vpop.f32.mrf.mxu3  ;;  %2214 = vmatpush.bf16.msrb.mxu2 %v4308_v51  ;;  %2233 = vmatpush.bf16.msrb.mxu3 %v4316_v53  ;;  %v4288_v19 = vld [vmem:[%s6037_s3 + $0x208] sm:$0xff]  ;;  %v974_v23 = vadd.f32 %v5250_v7, %v336_v8  ;;  %v4295_v7 = vld [vmem:[%s6037_s3 + $0x240] sm:$0xff]  ;;  %v3991_v53 = vld [vmem:[%s6035_s1 + $0x3b8] sm:$0xf] }
 0x183   : > { %v1299_v28 = vadd.f32 %v1298_v27, %v5465_v5  ;;  %v1318_v58 = vadd.f32 %v1317_v29, %v5474_v16  ;;  %v4294_v5 = vld [vmem:[%s6037_s3 + $0x238] sm:$0xff]  ;;  %v4339_v8 = vld [vmem:[%s6035_s1 + $0x2b4] sm:$0xf] }
 0x184   : > { %1568 = vmatmul.bf16.gmra.mxu1 %v1341_v25  ;;  %v4302_v16 = vld [vmem:[%s6037_s3 + $0x278] sm:$0xff]  ;;  %2174 = vmatpush.bf16.msrb.mxu0 %v4294_v5 }
 0x185   : > { %v1334_v32 = vmax.f32 %v1299_v28, 0.0  ;;  %v1335_v59 = vmax.f32 %v1318_v58, 0.0  ;;  %2193 = vmatpush.bf16.msrb.mxu1 %v4302_v16  ;;  %v4287_v28 = vld [vmem:[%s6037_s3 + $0x200] sm:$0xff]  ;;  %v4304_v58 = vld [vmem:[%s6037_s3 + $0x288] sm:$0xff] }
 0x186   : > { %2215 = vmatpush.bf16.msrb.mxu2 %v4307_v61  ;;  %2234 = vmatpush.bf16.msrb.mxu3 %v4315_v62  ;;  %v5686_v61 = vld [vmem:[%s6036_s2 + $0x8] sm:$0xf] }
 0x187   : > { %v1342_v35 = vpack.c.bf16 %v1334_v32, %v1330_v30  ;;  %v1343_v31 = vpack.c.bf16 %v1335_v59, %v1331_v33  ;;  %v4312_v30 = vld [vmem:[%s6037_s3 + $0x2c8] sm:$0xff]  ;;  %v3983_v33 = vld [vmem:[%s6035_s1 + $0x3b0] sm:$0xf] }
 0x188   : > { %2175 = vmatpush.bf16.msrb.mxu0 %v4293_v37  ;;  %v4349_v59 = vld [vmem:[%s6035_s1 + $0x3ec] sm:$0xf0]  ;;  %v3985_v37 = vld [vmem:[%s6035_s1 + $0x3f0] sm:$0xf0] }
 0x189   : > { %1587 = vmatmul.bf16.gmra.mxu2 %v1342_v35  ;;  %1606 = vmatmul.bf16.gmra.mxu3 %v1343_v31  ;;  %v4347_v35 = vld [vmem:[%s6035_s1 + $0x3b4] sm:$0xf]  ;;  %v3984_v16 = vor.u32 %v4349_v59, %v3983_v33 }
 0x18a   : > { %2194 = vmatpush.bf16.msrb.mxu1 %v4301_v38  ;;  %2216 = vmatpush.bf16.msrb.mxu2 %v4306_v2  ;;  %v3988_v39 = vor.u32 %v4347_v35, %v3985_v37  ;;  %v3951_v2 = vld [vmem:[%s6035_s1 + $0x2b0] sm:$0xf]  ;;  %v4335_v33 = vld [vmem:[%s6035_s1 + $0x234] sm:$0xf] }
 0x18b   : > { %2235 = vmatpush.bf16.msrb.mxu3 %v4314_v12 }
 0x18c   : > { %2176 = vmatpush.bf16.msrb.mxu0 %v4292_v41 }
 0x18e   : > { %2195 = vmatpush.bf16.msrb.mxu1 %v4300_v43  ;;  %2217 = vmatpush.bf16.msrb.mxu2 %v4305_v10  ;;  %v4303_v43 = vld [vmem:[%s6037_s3 + $0x280] sm:$0xff] }
 0x18f   : > { %2236 = vmatpush.bf16.msrb.mxu3 %v4313_v26 }
 0x190   : > { %1890 = vmatmul.bf16.vlgmr.msra.gmra.mxu0 %v4849_v34 }
 0x191   : > { %2177 = vmatpush.bf16.msrb.mxu0 %v4291_v49  ;;  %v3968_v49 = vor.u32 %v4345_v46, %v3967_v45 }
 0x192   : > { %2196 = vmatpush.bf16.msrb.mxu1 %v4299_v50  ;;  %2218 = vmatpush.bf16.msrb.mxu2 %v4304_v58  ;;  %v3969_v50 = vld [vmem:[%s6035_s1 + $0x370] sm:$0xf0]  ;;  %v3977_v58 = vld [vmem:[%s6035_s1 + $0x378] sm:$0xf0] }
 0x193   : > { %2237 = vmatpush.bf16.msrb.mxu3 %v4312_v30 }
 0x194   : > { %1909 = vmatmul.bf16.vlgmr.msra.gmra.mxu1 %v4849_v34 }
 0x195   : > { %2178 = vmatpush.bf16.msrb.mxu0 %v4290_v54  ;;  %v4350_v54 = vld [vmem:[%s6035_s1 + $0x3f4] sm:$0xf0] }
 0x196   : > { %2197 = vmatpush.bf16.msrb.mxu1 %v4298_v55  ;;  %2219 = vmatpush.bf16.msrb.mxu2 %v4303_v43  ;;  %v4348_v55 = vld [vmem:[%s6035_s1 + $0x3bc] sm:$0xf]  ;;  %v3992_v62 = vor.u32 %v4350_v54, %v3991_v53 }
 0x199   : > { %1928 = vmatmul.bf16.vlgmr.msra.gmra.mxu2 %v4849_v34  ;;  %1947 = vmatmul.bf16.vlgmr.msra.gmra.mxu3 %v4849_v34 }
 0x19a   : > { %2179 = vmatpush.bf16.msrb.mxu0 %v4289_v0  ;;  %2198 = vmatpush.bf16.msrb.mxu1 %v4297_v1 }
 0x19b   : > { %2558 = vmatpush.bf16.msra.mxu2 %v3992_v62 }
 0x19e   : > { %2180 = vmatpush.bf16.msrb.mxu0 %v4288_v19  ;;  %2199 = vmatpush.bf16.msrb.mxu1 %v4296_v21  ;;  %v3953_v19 = vld [vmem:[%s6035_s1 + $0x2f0] sm:$0xf0] }
 0x1a0   : > { %1895 = vmatmul.bf16.gmra.mxu0 %v4896_v52 }
 0x1a2   : > { %2181 = vmatpush.bf16.msrb.mxu0 %v4287_v28  ;;  %2200 = vmatpush.bf16.msrb.mxu1 %v4295_v7 }
 0x1a4   : > { %1914 = vmatmul.bf16.gmra.mxu1 %v4896_v52 }
 0x1a6   : > { %2520 = vmatpush.bf16.msra.mxu0 %v3984_v16  ;;  %2539 = vmatpush.bf16.msra.mxu1 %v3988_v39  ;;  %v3959_v16 = vld [vmem:[%s6035_s1 + $0x2b8] sm:$0xf]  ;;  %v4340_v39 = vld [vmem:[%s6035_s1 + $0x2bc] sm:$0xf] }
 0x1a9   : > { %1933 = vmatmul.bf16.gmra.mxu2 %v4896_v52  ;;  %1952 = vmatmul.bf16.gmra.mxu3 %v4896_v52 }
 0x1aa   : > { %2521 = vmatpush.bf16.msra.mxu0 %v3968_v49  ;;  %v4333_v49 = vld [vmem:[%s6035_s1 + $0x1ec] sm:$0xf0] }
 0x1ed   : > { %v1545_v42 = vpop.f32.mrf.mxu0 }
 0x1f1   : > { %v1564_v11 = vpop.f32.mrf.mxu1 }
 0x1f2   : > { %v1565_v48 = vadd.f32 %v1564_v11, %v1545_v42  ;;  %v4311_v42 = vld [vmem:[%s6037_s3 + $0x2c0] sm:$0xff] }
 0x1f3   : > { %2238 = vmatpush.bf16.msrb.mxu3 %v4311_v42  ;;  %v3961_v42 = vld [vmem:[%s6035_s1 + $0x2f8] sm:$0xf0] }
 0x1f4   : > { %v3964_v46 = vor.u32 %v4340_v39, %v3961_v42  ;;  %v3911_v42 = vld [vmem:[%s6035_s1 + $0x138] sm:$0xf] }
 0x1f5   : > { %v1547_v56 = vpop.f32.mrf.mxu0 }
 0x1f9   : > { %v1566_v60 = vpop.f32.mrf.mxu1 }
 0x1fa   : > { %v1567_v63 = vadd.f32 %v1566_v60, %v1547_v56  ;;  %v4437_v56 = vld [vmem:[%s4809_s27 + $0x10] sm:$0xff] }
 0x1fb   : > { %v338_v60 = vadd.f32 %v4437_v56, %v5589_v57  ;;  %v3921_v56 = vld [vmem:[%s6035_s1 + $0x1f0] sm:$0xf0] }
 0x1fc   : > { %v1583_v13 = vpop.f32.mrf.mxu2  ;;  %v1602_v17 = vpop.f32.mrf.mxu3 }
 0x1fd   : > { %v1584_v14 = vadd.f32 %v1583_v13, %v1565_v48  ;;  %v1550_v22 = vpop.f32.mrf.mxu0  ;;  %v4343_v48 = vld [vmem:[%s6035_s1 + $0x334] sm:$0xf]  ;;  %v976_v10 = vadd.f32 %v5334_v47, %v338_v60  ;;  %v4337_v47 = vld [vmem:[%s6035_s1 + $0x26c] sm:$0xf0] }
 0x1fe   : > { %v3972_v51 = vor.u32 %v4343_v48, %v3969_v50  ;;  %v3919_v48 = vld [vmem:[%s6035_s1 + $0x1b0] sm:$0xf]  ;;  %v4331_v50 = vld [vmem:[%s6035_s1 + $0x1b4] sm:$0xf] }
 0x1ff   : > { %v1603_v24 = vadd.f32 %v1602_v17, %v1584_v14  ;;  %v5701_v14 = vperm.slane %v5686_v61, 0  ;;  %v3952_v17 = vor.u32 %v4341_v4, %v3951_v2  ;;  %v3924_v62 = vor.u32 %v4331_v50, %v3921_v56  ;;  %v4328_v50 = vld [vmem:[%s6035_s1 + $0x13c] sm:$0xf] }
 0x200   : > { %2540 = vmatpush.bf16.msra.mxu1 %v3972_v51 }
 0x201   : > { %v1569_v25 = vpop.f32.mrf.mxu1  ;;  %v5630_v29 = vadd.f32 %v1603_v24, %v974_v23  ;;  %v3975_v23 = vld [vmem:[%s6035_s1 + $0x338] sm:$0xf]  ;;  %2522 = vmatpush.bf16.msra.mxu0 %v3952_v17 }
 0x202   : > { %v1570_v27 = vadd.f32 %v1569_v25, %v1550_v22  ;;  %v3956_v22 = vor.u32 %v4339_v8, %v3953_v19  ;;  %v4346_v24 = vld [vmem:[%s6035_s1 + $0x374] sm:$0xf0]  ;;  %v4344_v25 = vld [vmem:[%s6035_s1 + $0x33c] sm:$0xf] }
 0x203   : > { %v3976_v7 = vor.u32 %v4346_v24, %v3975_v23  ;;  %v3980_v30 = vor.u32 %v4344_v25, %v3977_v58  ;;  %v4327_v23 = vld [vmem:[%s6035_s1 + $0x134] sm:$0xf]  ;;  %v4334_v58 = vld [vmem:[%s6035_s1 + $0x1f4] sm:$0xf0] }
 0x204   : > { %v1585_v32 = vpop.f32.mrf.mxu2  ;;  %v1604_v5 = vpop.f32.mrf.mxu3  ;;  %2541 = vmatpush.bf16.msra.mxu1 %v3956_v22  ;;  %v4329_v22 = vld [vmem:[%s6035_s1 + $0x16c] sm:$0xf0] }
 0x205   : > { %v1586_v31 = vadd.f32 %v1585_v32, %v1567_v63  ;;  %v1552_v38 = vpop.f32.mrf.mxu0  ;;  %v3993_v63 = vld [vmem:[%s6035_s1 + $0x3f8] sm:$0xf0]  ;;  %v3935_v32 = vld [vmem:[%s6035_s1 + $0x230] sm:$0xf]  ;;  %2559 = vmatpush.bf16.msra.mxu2 %v3976_v7  ;;  %v3927_v7 = vld [vmem:[%s6035_s1 + $0x1b8] sm:$0xf] }
 0x206   : > { %v3996_v1 = vor.u32 %v4348_v55, %v3993_v63  ;;  %v3920_v55 = vor.u32 %v4333_v49, %v3919_v48  ;;  %v3943_v63 = vld [vmem:[%s6035_s1 + $0x238] sm:$0xf] }
 0x207   : > { %v5650_v40 = vadd.f32 %v1604_v5, %v1586_v31  ;;  %v3936_v31 = vor.u32 %v4337_v47, %v3935_v32  ;;  %v3937_v5 = vld [vmem:[%s6035_s1 + $0x270] sm:$0xf0]  ;;  %v3928_v32 = vor.u32 %v4334_v58, %v3927_v7  ;;  %v4332_v47 = vld [vmem:[%s6035_s1 + $0x1bc] sm:$0xf] }
 0x208   : > { %2577 = vmatpush.bf16.msra.mxu3 %v3996_v1  ;;  %v3940_v37 = vor.u32 %v4335_v33, %v3937_v5  ;;  %v3929_v33 = vld [vmem:[%s6035_s1 + $0x1f8] sm:$0xf0] }
 0x209   : > { %v1571_v41 = vpop.f32.mrf.mxu1  ;;  %2523 = vmatpush.bf16.msra.mxu0 %v3936_v31  ;;  %v3932_v5 = vor.u32 %v4332_v47, %v3929_v33 }
 0x20a   : > { %v5658_v11 = vadd.f32 %v1571_v41, %v1552_v38  ;;  %v4342_v38 = vld [vmem:[%s6035_s1 + $0x2f4] sm:$0xf0]  ;;  %2542 = vmatpush.bf16.msra.mxu1 %v3940_v37  ;;  %v4325_v37 = vld [vmem:[%s6035_s1 + $0xec] sm:$0xf0] }
 0x20b   : > { %v3960_v43 = vor.u32 %v4342_v38, %v3959_v16  ;;  %v3887_v16 = vld [vmem:[%s6035_s1 + $0xb0] sm:$0xf]  ;;  %v4323_v38 = vld [vmem:[%s6035_s1 + $0xb4] sm:$0xf] }
 0x20c   : > { %v1588_v0 = vpop.f32.mrf.mxu2  ;;  %v1607_v13 = vpop.f32.mrf.mxu3  ;;  %2578 = vmatpush.bf16.msra.mxu3 %v3980_v30 }
 0x20d   : > { %v1589_v12 = vadd.f32 %v1588_v0, %v1570_v27  ;;  %v1891_v21 = vpop.f32.mrf.mxu0  ;;  %v5717_v27 = vperm.slane %v5686_v61, 1  ;;  %2560 = vmatpush.bf16.msra.mxu2 %v3960_v43  ;;  %v4338_v0 = vld [vmem:[%s6035_s1 + $0x274] sm:$0xf0]  ;;  %2524 = vmatpush.bf16.msra.mxu0 %v3920_v55  ;;  %v3889_v43 = vld [vmem:[%s6035_s1 + $0xf0] sm:$0xf0] }
 0x20e   : > { %v1892_v35 = vadd.f32 %v1891_v21, %v5701_v14  ;;  %2543 = vmatpush.bf16.msra.mxu1 %v3924_v62  ;;  %v3903_v21 = vld [vmem:[%s6035_s1 + $0x130] sm:$0xf]  ;;  %v3892_v48 = vor.u32 %v4323_v38, %v3889_v43  ;;  %v4319_v62 = vld [vmem:[%s6035_s1 + $0x34] sm:$0xf] }
 0x20f   : > { %v1608_v26 = vadd.f32 %v1607_v13, %v1589_v12  ;;  %v3944_v12 = vor.u32 %v4338_v0, %v3943_v63  ;;  %v3945_v13 = vld [vmem:[%s6035_s1 + $0x278] sm:$0xf0]  ;;  %v3904_v25 = vor.u32 %v4329_v22, %v3903_v21  ;;  %v1717_v63 = vperm.slane %v5686_v61, 3 }
 0x210   : > { %v1958_v54 = vmax.f32 %v1892_v35, 0.0  ;;  %2579 = vmatpush.bf16.msra.mxu3 %v3964_v46 }
 0x211   : > { %v1910_v28 = vpop.f32.mrf.mxu1  ;;  %v5731_v59 = vadd.f32 %v1608_v26, %v976_v10  ;;  %2561 = vmatpush.bf16.msra.mxu2 %v3944_v12  ;;  %v3905_v10 = vld [vmem:[%s6035_s1 + $0x170] sm:$0xf0]  ;;  %2525 = vmatpush.bf16.msra.mxu0 %v3904_v25  ;;  %v3881_v25 = vld [vmem:[%s6035_s1 + $0x78] sm:$0xf0] }
 0x212   : > { %v1911_v41 = vadd.f32 %v1910_v28, %v5717_v27  ;;  %v3908_v28 = vor.u32 %v4327_v23, %v3905_v10  ;;  %v4322_v23 = vld [vmem:[%s6035_s1 + $0x74] sm:$0xf0] }
 0x214   : > { %v1590_v45 = vpop.f32.mrf.mxu2  ;;  %v1609_v53 = vpop.f32.mrf.mxu3  ;;  %v1959_v2 = vmax.f32 %v1911_v41, 0.0  ;;  %2544 = vmatpush.bf16.msra.mxu1 %v3908_v28  ;;  %v3888_v41 = vor.u32 %v4325_v37, %v3887_v16 }
 0x215   : > { %v1591_v51 = vadd.f32 %v1590_v45, %v5658_v11  ;;  %v1893_v60 = vpop.f32.mrf.mxu0  ;;  %v4336_v11 = vld [vmem:[%s6035_s1 + $0x23c] sm:$0xf]  ;;  %2562 = vmatpush.bf16.msra.mxu2 %v3928_v32  ;;  %v4330_v45 = vld [vmem:[%s6035_s1 + $0x174] sm:$0xf0] }
 0x216   : > { %v1894_v4 = vadd.f32 %v1893_v60, %v5701_v14  ;;  %v3948_v19 = vor.u32 %v4336_v11, %v3945_v13  ;;  %v3912_v49 = vor.u32 %v4330_v45, %v3911_v42  ;;  %2526 = vmatpush.bf16.msra.mxu0 %v3888_v41  ;;  %v4321_v60 = vld [vmem:[%s6035_s1 + $0x6c] sm:$0xf0]  ;;  %v3873_v11 = vld [vmem:[%s6035_s1 + $0x70] sm:$0xf0]  ;;  %v3897_v13 = vld [vmem:[%s6035_s1 + $0xf8] sm:$0xf0] }
 0x217   : > { %v5772_v1 = vadd.f32 %v1609_v53, %v1591_v51  ;;  %v3913_v51 = vld [vmem:[%s6035_s1 + $0x178] sm:$0xf0]  ;;  %v3871_v53 = vld [vmem:[%s6035_s1 + $0x30] sm:$0xf] }
 0x218   : > { %v1962_v24 = vmax.f32 %v1894_v4, 0.0  ;;  %2580 = vmatpush.bf16.msra.mxu3 %v3948_v19  ;;  %v3916_v56 = vor.u32 %v4328_v50, %v3913_v51  ;;  %2545 = vmatpush.bf16.msra.mxu1 %v3892_v48  ;;  %v3872_v0 = vor.u32 %v4321_v60, %v3871_v53  ;;  %v3876_v4 = vor.u32 %v4319_v62, %v3873_v11 }
 0x219   : > { %v1912_v8 = vpop.f32.mrf.mxu1  ;;  %2563 = vmatpush.bf16.msra.mxu2 %v3912_v49 }
 0x21a   : > { %v1913_v17 = vadd.f32 %v1912_v8, %v5717_v27  ;;  %v1974_v30 = vpack.c.bf16 %v1962_v24, %v1958_v54  ;;  %v5831_v54 = vperm.slane %v5686_v61, 2  ;;  %v4326_v8 = vld [vmem:[%s6035_s1 + $0xf4] sm:$0xf0]  ;;  %v4324_v61 = vld [vmem:[%s6035_s1 + $0xbc] sm:$0xf]  ;;  %2527 = vmatpush.bf16.msra.mxu0 %v3872_v0 }
 0x21b   : > { %v3900_v22 = vor.u32 %v4324_v61, %v3897_v13  ;;  %v4320_v24 = vld [vmem:[%s6035_s1 + $0x3c] sm:$0xf]  ;;  %v4364_v13 = vld [vmem:[%s6037_s3 + $0x368] sm:$0xff] }
 0x21c   : > { %v1963_v26 = vmax.f32 %v1913_v17, 0.0  ;;  %v1929_v35 = vpop.f32.mrf.mxu2  ;;  %v1948_v39 = vpop.f32.mrf.mxu3  ;;  %2182 = vmatmul.bf16.vlgmr.msrb.gmra.mxu0 %v1974_v30  ;;  %2581 = vmatpush.bf16.msra.mxu3 %v3932_v5  ;;  %v3879_v17 = vld [vmem:[%s6035_s1 + $0x38] sm:$0xf]  ;;  %v3884_v33 = vor.u32 %v4320_v24, %v3881_v25  ;;  %v4363_v24 = vld [vmem:[%s6037_s3 + $0x360] sm:$0xff] }
 0x21d   : > { %v1896_v46 = vpop.f32.mrf.mxu0  ;;  %v1930_v19 = vadd.f32 %v1929_v35, %v5831_v54  ;;  %v1949_v10 = vadd.f32 %v1948_v39, %v1717_v63  ;;  %2546 = vmatpush.bf16.msra.mxu1 %v3876_v4  ;;  %v3880_v30 = vor.u32 %v4322_v23, %v3879_v17  ;;  %v4355_v23 = vld [vmem:[%s6037_s3 + $0x320] sm:$0xff]  ;;  %v4382_v25 = vld [vmem:[%s6037_s3 + $0x3f8] sm:$0xff] }
 0x21e   : > { %v1975_v31 = vpack.c.bf16 %v1963_v26, %v1959_v2  ;;  %v3895_v2 = vld [vmem:[%s6035_s1 + $0xb8] sm:$0xf]  ;;  %v1897_v21 = vadd.f32 %v1896_v46, %v5701_v14 }
 0x21f   : > { %v3896_v12 = vor.u32 %v4326_v8, %v3895_v2  ;;  %v1960_v35 = vmax.f32 %v1930_v19, 0.0  ;;  %v1961_v38 = vmax.f32 %v1949_v10, 0.0  ;;  %v4373_v10 = vld [vmem:[%s6037_s3 + $0x3b0] sm:$0xff] }
 0x220   : > { %2201 = vmatmul.bf16.vlgmr.msrb.gmra.mxu1 %v1975_v31  ;;  %2582 = vmatpush.bf16.msra.mxu3 %v3916_v56  ;;  %v1966_v5 = vmax.f32 %v1897_v21, 0.0  ;;  %v4374_v21 = vld [vmem:[%s6037_s3 + $0x3b8] sm:$0xff] }
 0x221   : > { %v1915_v55 = vpop.f32.mrf.mxu1  ;;  %2564 = vmatpush.bf16.msra.mxu2 %v3896_v12  ;;  %v4365_v12 = vld [vmem:[%s6037_s3 + $0x370] sm:$0xff] }
 0x222   : > { %v1916_v28 = vadd.f32 %v1915_v55, %v5717_v27 }
 0x224   : > { %v1931_v26 = vpop.f32.mrf.mxu2  ;;  %v1950_v58 = vpop.f32.mrf.mxu3  ;;  %2583 = vmatpush.bf16.msra.mxu3 %v3900_v22  ;;  %v1967_v41 = vmax.f32 %v1916_v28, 0.0  ;;  %v4362_v28 = vld [vmem:[%s6037_s3 + $0x358] sm:$0xff] }
 0x225   : > { %v1932_v7 = vadd.f32 %v1931_v26, %v5831_v54  ;;  %v1951_v32 = vadd.f32 %v1950_v58, %v1717_v63  ;;  %v1898_v47 = vpop.f32.mrf.mxu0  ;;  %2565 = vmatpush.bf16.msra.mxu2 %v3880_v30  ;;  %v4354_v26 = vld [vmem:[%s6037_s3 + $0x318] sm:$0xff]  ;;  %v4381_v58 = vld [vmem:[%s6037_s3 + $0x3f0] sm:$0xff] }
 0x226   : > { %v1899_v16 = vadd.f32 %v1898_v47, %v5701_v14 }
 0x227   : > { %v1964_v31 = vmax.f32 %v1932_v7, 0.0  ;;  %v1965_v39 = vmax.f32 %v1951_v32, 0.0  ;;  %v4372_v32 = vld [vmem:[%s6037_s3 + $0x3a8] sm:$0xff] }
 0x228   : > { %v1970_v45 = vmax.f32 %v1899_v16, 0.0  ;;  %2584 = vmatpush.bf16.msra.mxu3 %v3884_v33  ;;  %v4353_v33 = vld [vmem:[%s6037_s3 + $0x310] sm:$0xff]  ;;  %v4352_v16 = vld [vmem:[%s6037_s3 + $0x308] sm:$0xff] }
 0x229   : > { %v1917_v37 = vpop.f32.mrf.mxu1  ;;  %v1976_v42 = vpack.c.bf16 %v1964_v31, %v1960_v35  ;;  %v1977_v46 = vpack.c.bf16 %v1965_v39, %v1961_v38  ;;  %v4361_v35 = vld [vmem:[%s6037_s3 + $0x350] sm:$0xff]  ;;  %v4380_v31 = vld [vmem:[%s6037_s3 + $0x3e8] sm:$0xff]  ;;  %v4379_v39 = vld [vmem:[%s6037_s3 + $0x3e0] sm:$0xff] }
 0x22a   : > { %v1918_v43 = vadd.f32 %v1917_v37, %v5717_v27  ;;  %v1978_v49 = vpack.c.bf16 %v1970_v45, %v1966_v5  ;;  %v4371_v5 = vld [vmem:[%s6037_s3 + $0x3a0] sm:$0xff]  ;;  %v4360_v37 = vld [vmem:[%s6037_s3 + $0x348] sm:$0xff] }
 0x22b   : > { %2220 = vmatmul.bf16.vlgmr.msrb.gmra.mxu2 %v1976_v42  ;;  %2239 = vmatmul.bf16.vlgmr.msrb.gmra.mxu3 %v1977_v46  ;;  %v4370_v42 = vld [vmem:[%s6037_s3 + $0x398] sm:$0xff]  ;;  %v4351_v46 = vld [vmem:[%s6037_s3 + $0x300] sm:$0xff] }
 0x22c   : > { %v1971_v48 = vmax.f32 %v1918_v43, 0.0  ;;  %v1934_v50 = vpop.f32.mrf.mxu2  ;;  %v1953_v53 = vpop.f32.mrf.mxu3  ;;  %2187 = vmatmul.bf16.gmra.mxu0 %v1978_v49  ;;  %2850 = vmatpush.bf16.msrb.mxu2 %v4374_v21 }
 0x22d   : > { %v1935_v14 = vadd.f32 %v1934_v50, %v5831_v54  ;;  %v1954_v55 = vadd.f32 %v1953_v53, %v1717_v63  ;;  %2869 = vmatpush.bf16.msrb.mxu3 %v4382_v25 }
 0x22e   : > { %v1979_v51 = vpack.c.bf16 %v1971_v48, %v1967_v41  ;;  %v929_v41 = vadd.f32 %v5248_v6, %v5246_v3  ;;  %v4359_v48 = vld [vmem:[%s6037_s3 + $0x340] sm:$0xff]  ;;  %v4378_v3 = vld [vmem:[%s6037_s3 + $0x3d8] sm:$0xff] }
 0x22f   : > { %v1968_v0 = vmax.f32 %v1935_v14, 0.0  ;;  %v1969_v2 = vmax.f32 %v1954_v55, 0.0  ;;  %v4369_v14 = vld [vmem:[%s6037_s3 + $0x390] sm:$0xff] }
 0x230   : > { %2206 = vmatmul.bf16.gmra.mxu1 %v1979_v51  ;;  %2851 = vmatpush.bf16.msrb.mxu2 %v4373_v10  ;;  %v948_v49 = vadd.f32 %v5276_v18, %v929_v41  ;;  %v4377_v55 = vld [vmem:[%s6037_s3 + $0x3d0] sm:$0xff] }
 0x231   : > { %2870 = vmatpush.bf16.msrb.mxu3 %v4381_v58  ;;  %v4439_v58 = vld [vmem:[%s4809_s27 + $0x18] sm:$0xff] }
 0x232   : > { %v967_v18 = vadd.f32 %v5278_v20, %v948_v49  ;;  %v2286_v20 = vld [vmem:[%s6036_s2 + $0xc] sm:$0xf] }
 0x233   : > { %v2352_v21 = vperm.slane %v2286_v20, 0 }
 0x234   : > { %v1936_v56 = vpop.f32.mrf.mxu2  ;;  %v1955_v60 = vpop.f32.mrf.mxu3  ;;  %2852 = vmatpush.bf16.msrb.mxu2 %v4372_v32 }
 0x235   : > { %v1937_v27 = vadd.f32 %v1936_v56, %v5831_v54  ;;  %v1956_v62 = vadd.f32 %v1955_v60, %v1717_v63  ;;  %v4358_v54 = vld [vmem:[%s6037_s3 + $0x338] sm:$0xff]  ;;  %2871 = vmatpush.bf16.msrb.mxu3 %v4380_v31 }
 0x236   : > { %v4366_v63 = vld [vmem:[%s6037_s3 + $0x378] sm:$0xff]  ;;  %2812 = vmatpush.bf16.msrb.mxu0 %v4358_v54 }
 0x237   : > { %v1972_v11 = vmax.f32 %v1937_v27, 0.0  ;;  %v1973_v4 = vmax.f32 %v1956_v62, 0.0  ;;  %2831 = vmatpush.bf16.msrb.mxu1 %v4366_v63  ;;  %v4438_v27 = vld [vmem:[%s4809_s27 + $0x8] sm:$0xff] }
 0x238   : > { %2853 = vmatpush.bf16.msrb.mxu2 %v4371_v5  ;;  %v337_v60 = vadd.f32 %v4438_v27, %v5589_v57 }
 0x239   : > { %v1980_v8 = vpack.c.bf16 %v1972_v11, %v1968_v0  ;;  %v1981_v61 = vpack.c.bf16 %v1973_v4, %v1969_v2  ;;  %2872 = vmatpush.bf16.msrb.mxu3 %v4379_v39  ;;  %v4368_v11 = vld [vmem:[%s6037_s3 + $0x388] sm:$0xff] }
 0x23a   : > { %v4376_v4 = vld [vmem:[%s6037_s3 + $0x3c8] sm:$0xff] }
 0x23b   : > { %2225 = vmatmul.bf16.gmra.mxu2 %v1980_v8  ;;  %2244 = vmatmul.bf16.gmra.mxu3 %v1981_v61  ;;  %v975_v61 = vadd.f32 %v967_v18, %v337_v60 }
 0x23c   : > { %2528 = vmatmul.bf16.vlgmr.msra.gmra.mxu0 %v4849_v34  ;;  %2832 = vmatpush.bf16.msrb.mxu1 %v4365_v12  ;;  %v4367_v12 = vld [vmem:[%s6037_s3 + $0x380] sm:$0xff] }
 0x23d   : > { %2854 = vmatpush.bf16.msrb.mxu2 %v4370_v42  ;;  %2873 = vmatpush.bf16.msrb.mxu3 %v4378_v3 }
 0x240   : > { %2547 = vmatmul.bf16.vlgmr.msra.gmra.mxu1 %v4849_v34 }
 0x241   : > { %2833 = vmatpush.bf16.msrb.mxu1 %v4364_v13  ;;  %2855 = vmatpush.bf16.msrb.mxu2 %v4369_v14 }
 0x242   : > { %2874 = vmatpush.bf16.msrb.mxu3 %v4377_v55 }
 0x245   : > { %2834 = vmatpush.bf16.msrb.mxu1 %v4363_v24  ;;  %2856 = vmatpush.bf16.msrb.mxu2 %v4368_v11 }
 0x246   : > { %2875 = vmatpush.bf16.msrb.mxu3 %v4376_v4 }
 0x249   : > { %2835 = vmatpush.bf16.msrb.mxu1 %v4362_v28  ;;  %2857 = vmatpush.bf16.msrb.mxu2 %v4367_v12 }
 0x24b   : > { %2566 = vmatmul.bf16.vlgmr.msra.gmra.mxu2 %v4849_v34  ;;  %2585 = vmatmul.bf16.vlgmr.msra.gmra.mxu3 %v4849_v34  ;;  %v4357_v34 = vld [vmem:[%s6037_s3 + $0x330] sm:$0xff] }
 0x24c   : > { %2533 = vmatmul.bf16.gmra.mxu0 %v4896_v52 }
 0x24d   : > { %2813 = vmatpush.bf16.msrb.mxu0 %v4357_v34  ;;  %2836 = vmatpush.bf16.msrb.mxu1 %v4361_v35 }
 0x250   : > { %2552 = vmatmul.bf16.gmra.mxu1 %v4896_v52 }
 0x251   : > { %2837 = vmatpush.bf16.msrb.mxu1 %v4360_v37 }
 0x255   : > { %2838 = vmatpush.bf16.msrb.mxu1 %v4359_v48 }
 0x25b   : > { %2571 = vmatmul.bf16.gmra.mxu2 %v4896_v52  ;;  %2590 = vmatmul.bf16.gmra.mxu3 %v4896_v52  ;;  %v4356_v52 = vld [vmem:[%s6037_s3 + $0x328] sm:$0xff] }
 0x25c   : > { %2814 = vmatpush.bf16.msrb.mxu0 %v4356_v52  ;;  %v4375_v52 = vld [vmem:[%s6037_s3 + $0x3c0] sm:$0xff] }
 0x25d   : > { %2876 = vmatpush.bf16.msrb.mxu3 %v4375_v52 }
 0x260   : > { %2815 = vmatpush.bf16.msrb.mxu0 %v4355_v23 }
 0x264   : > { %2816 = vmatpush.bf16.msrb.mxu0 %v4354_v26 }
 0x268   : > { %2817 = vmatpush.bf16.msrb.mxu0 %v4353_v33 }
 0x26c   : > { %2818 = vmatpush.bf16.msrb.mxu0 %v4352_v16 }
 0x270   : > { %2819 = vmatpush.bf16.msrb.mxu0 %v4351_v46 }
 0x299   : > { %v2183_v17 = vpop.f32.mrf.mxu0 }
 0x29d   : > { %v2202_v19 = vpop.f32.mrf.mxu1 }
 0x29e   : > { %v2203_v22 = vadd.f32 %v2202_v19, %v2183_v17  ;;  %v934_v17 = vadd.f32 %v5318_v44, %v5310_v36 }
 0x2a0   : > { %v953_v24 = vadd.f32 %v5381_v9, %v934_v17 }
 0x2a1   : > { %v2185_v7 = vpop.f32.mrf.mxu0 }
 0x2a2   : > { %v972_v36 = vadd.f32 %v5383_v15, %v953_v24 }
 0x2a5   : > { %v2204_v30 = vpop.f32.mrf.mxu1 }
 0x2a6   : > { %v2205_v47 = vadd.f32 %v2204_v30, %v2185_v7  ;;  %v339_v30 = vadd.f32 %v4439_v58, %v5589_v57 }
 0x2a9   : > { %v2188_v38 = vpop.f32.mrf.mxu0 }
 0x2ad   : > { %v2207_v43 = vpop.f32.mrf.mxu1 }
 0x2ae   : > { %v2208_v45 = vadd.f32 %v2207_v43, %v2188_v38  ;;  %v2221_v6 = vpop.f32.mrf.mxu2  ;;  %v2240_v51 = vpop.f32.mrf.mxu3  ;;  %v977_v38 = vadd.f32 %v972_v36, %v339_v30 }
 0x2af   : > { %v2222_v50 = vadd.f32 %v2221_v6, %v2203_v22 }
 0x2b0   : > { %v1615_v57 = vadd.f32 %v5772_v1, %v977_v38 }
 0x2b1   : > { %v2241_v53 = vadd.f32 %v2240_v51, %v2222_v50  ;;  %v2190_v56 = vpop.f32.mrf.mxu0  ;;  %v2354_v50 = vperm.slane %v2286_v20, 2  ;;  %v2355_v51 = vperm.slane %v2286_v20, 3 }
 0x2b3   : > { %v5974_v62 = vadd.f32 %v2241_v53, %v5630_v29  ;;  %v1613_v29 = vadd.f32 %v5650_v40, %v975_v61  ;;  %v2353_v40 = vperm.slane %v2286_v20, 1 }
 0x2b5   : > { %v2209_v0 = vpop.f32.mrf.mxu1 }
 0x2b6   : > { %v2210_v2 = vadd.f32 %v2209_v0, %v2190_v56  ;;  %v2223_v8 = vpop.f32.mrf.mxu2  ;;  %v2242_v63 = vpop.f32.mrf.mxu3 }
 0x2b7   : > { %v2224_v54 = vadd.f32 %v2223_v8, %v2205_v47 }
 0x2b9   : > { %v2243_v34 = vadd.f32 %v2242_v63, %v2224_v54  ;;  %v2529_v13 = vpop.f32.mrf.mxu0 }
 0x2ba   : > { %v2530_v26 = vadd.f32 %v2529_v13, %v2352_v21 }
 0x2bb   : > { %v5994_v19 = vadd.f32 %v2243_v34, %v1613_v29 }
 0x2bc   : > { %v2596_v47 = vmax.f32 %v2530_v26, 0.0 }
 0x2bd   : > { %v2548_v22 = vpop.f32.mrf.mxu1 }
 0x2be   : > { %v2226_v23 = vpop.f32.mrf.mxu2  ;;  %v2245_v10 = vpop.f32.mrf.mxu3  ;;  %v2549_v28 = vadd.f32 %v2548_v22, %v2353_v40 }
 0x2bf   : > { %v2227_v25 = vadd.f32 %v2226_v23, %v2208_v45 }
 0x2c0   : > { %v2597_v31 = vmax.f32 %v2549_v28, 0.0 }
 0x2c1   : > { %v2246_v7 = vadd.f32 %v2245_v10, %v2227_v25  ;;  %v2531_v32 = vpop.f32.mrf.mxu0 }
 0x2c2   : > { %v2532_v33 = vadd.f32 %v2531_v32, %v2352_v21 }
 0x2c3   : > { %v6001_v44 = vadd.f32 %v2246_v7, %v5731_v59 }
 0x2c4   : > { %v2600_v9 = vmax.f32 %v2532_v33, 0.0 }
 0x2c5   : > { %v2550_v35 = vpop.f32.mrf.mxu1 }
 0x2c6   : > { %v2551_v5 = vadd.f32 %v2550_v35, %v2353_v40  ;;  %v2228_v16 = vpop.f32.mrf.mxu2  ;;  %v2247_v41 = vpop.f32.mrf.mxu3  ;;  %v2612_v43 = vpack.c.bf16 %v2600_v9, %v2596_v47 }
 0x2c7   : > { %v2229_v39 = vadd.f32 %v2228_v16, %v2210_v2 }
 0x2c8   : > { %v2601_v37 = vmax.f32 %v2551_v5, 0.0  ;;  %2820 = vmatmul.bf16.vlgmr.msrb.gmra.mxu0 %v2612_v43 }
 0x2c9   : > { %v2248_v45 = vadd.f32 %v2247_v41, %v2229_v39  ;;  %v2534_v15 = vpop.f32.mrf.mxu0 }
 0x2ca   : > { %v2613_v42 = vpack.c.bf16 %v2601_v37, %v2597_v31  ;;  %v2535_v6 = vadd.f32 %v2534_v15, %v2352_v21 }
 0x2cb   : > { %v6004_v59 = vadd.f32 %v2248_v45, %v1615_v57 }
 0x2cc   : > { %2839 = vmatmul.bf16.vlgmr.msrb.gmra.mxu1 %v2613_v42  ;;  %v2604_v14 = vmax.f32 %v2535_v6, 0.0 }
 0x2cd   : > { %v2553_v46 = vpop.f32.mrf.mxu1 }
 0x2ce   : > { %v2567_v48 = vpop.f32.mrf.mxu2  ;;  %v2586_v3 = vpop.f32.mrf.mxu3  ;;  %v2554_v49 = vadd.f32 %v2553_v46, %v2353_v40 }
 0x2cf   : > { %v2568_v1 = vadd.f32 %v2567_v48, %v2354_v50  ;;  %v2587_v0 = vadd.f32 %v2586_v3, %v2355_v51 }
 0x2d0   : > { %v2605_v27 = vmax.f32 %v2554_v49, 0.0 }
 0x2d1   : > { %v2536_v53 = vpop.f32.mrf.mxu0  ;;  %v2598_v29 = vmax.f32 %v2568_v1, 0.0  ;;  %v2599_v20 = vmax.f32 %v2587_v0, 0.0 }
 0x2d2   : > { %v2537_v55 = vadd.f32 %v2536_v53, %v2352_v21 }
 0x2d4   : > { %v2608_v18 = vmax.f32 %v2537_v55, 0.0 }
 0x2d5   : > { %v2555_v56 = vpop.f32.mrf.mxu1 }
 0x2d6   : > { %v2556_v60 = vadd.f32 %v2555_v56, %v2353_v40  ;;  %v2569_v11 = vpop.f32.mrf.mxu2  ;;  %v2588_v8 = vpop.f32.mrf.mxu3  ;;  %v2616_v61 = vpack.c.bf16 %v2608_v18, %v2604_v14 }
 0x2d7   : > { %v2570_v4 = vadd.f32 %v2569_v11, %v2354_v50  ;;  %v2589_v54 = vadd.f32 %v2588_v8, %v2355_v51 }
 0x2d8   : > { %v2609_v2 = vmax.f32 %v2556_v60, 0.0  ;;  %2825 = vmatmul.bf16.gmra.mxu0 %v2616_v61 }
 0x2d9   : > { %v2602_v34 = vmax.f32 %v2570_v4, 0.0  ;;  %v2603_v12 = vmax.f32 %v2589_v54, 0.0 }
 0x2da   : > { %v2617_v63 = vpack.c.bf16 %v2609_v2, %v2605_v27 }
 0x2db   : > { %v2614_v52 = vpack.c.bf16 %v2602_v34, %v2598_v29  ;;  %v2615_v13 = vpack.c.bf16 %v2603_v12, %v2599_v20 }
 0x2dc   : > { %2844 = vmatmul.bf16.gmra.mxu1 %v2617_v63 }
 0x2dd   : > { %2858 = vmatmul.bf16.vlgmr.msrb.gmra.mxu2 %v2614_v52  ;;  %2877 = vmatmul.bf16.vlgmr.msrb.gmra.mxu3 %v2615_v13 }
 0x2de   : > { %v2572_v17 = vpop.f32.mrf.mxu2  ;;  %v2591_v21 = vpop.f32.mrf.mxu3 }
 0x2df   : > { %v2573_v22 = vadd.f32 %v2572_v17, %v2354_v50  ;;  %v2592_v40 = vadd.f32 %v2591_v21, %v2355_v51 }
 0x2e1   : > { %v2606_v26 = vmax.f32 %v2573_v22, 0.0  ;;  %v2607_v7 = vmax.f32 %v2592_v40, 0.0 }
 0x2e6   : > { %v2574_v23 = vpop.f32.mrf.mxu2  ;;  %v2593_v25 = vpop.f32.mrf.mxu3 }
 0x2e7   : > { %v2575_v24 = vadd.f32 %v2574_v23, %v2354_v50  ;;  %v2594_v10 = vadd.f32 %v2593_v25, %v2355_v51 }
 0x2e9   : > { %v2610_v28 = vmax.f32 %v2575_v24, 0.0  ;;  %v2611_v58 = vmax.f32 %v2594_v10, 0.0 }
 0x2eb   : > { %v2618_v30 = vpack.c.bf16 %v2610_v28, %v2606_v26  ;;  %v2619_v32 = vpack.c.bf16 %v2611_v58, %v2607_v7 }
 0x2ed   : > { %2863 = vmatmul.bf16.gmra.mxu2 %v2618_v30  ;;  %2882 = vmatmul.bf16.gmra.mxu3 %v2619_v32 }
 0x345   : > { %v2821_v36 = vpop.f32.mrf.mxu0 }
 0x349   : > { %v2840_v47 = vpop.f32.mrf.mxu1 }
 0x34a   : > { %v2841_v33 = vadd.f32 %v2840_v47, %v2821_v36 }
 0x34d   : > { %v2823_v35 = vpop.f32.mrf.mxu0 }
 0x351   : > { %v2842_v31 = vpop.f32.mrf.mxu1 }
 0x352   : > { %v2843_v39 = vadd.f32 %v2842_v31, %v2823_v35 }
 0x355   : > { %v2826_v57 = vpop.f32.mrf.mxu0 }
 0x359   : > { %v2845_v45 = vpop.f32.mrf.mxu1 }
 0x35a   : > { %v2846_v48 = vadd.f32 %v2845_v45, %v2826_v57 }
 0x35d   : > { %v2828_v51 = vpop.f32.mrf.mxu0 }
 0x360   : > { %v2859_v5 = vpop.f32.mrf.mxu2  ;;  %v2878_v16 = vpop.f32.mrf.mxu3 }
 0x361   : > { %v2860_v9 = vadd.f32 %v2859_v5, %v2841_v33  ;;  %v2847_v53 = vpop.f32.mrf.mxu1 }
 0x362   : > { %v2848_v14 = vadd.f32 %v2847_v53, %v2828_v51 }
 0x363   : > { %v2879_v37 = vadd.f32 %v2878_v16, %v2860_v9 }
 0x365   : > { %v2888_v38 = vadd.f32 %v2879_v37, %v5974_v62  ;;  %v4424_v37 = vld [vmem:[#allocation4] ss:$0 sm:$0xff] }
 0x367   : > { %2892 = vadd.xlane.f32.xlu0 %v2888_v38 }
 0x368   : > { %v2861_v41 = vpop.f32.mrf.mxu2  ;;  %v2880_v42 = vpop.f32.mrf.mxu3 }
 0x369   : > { %v2862_v43 = vadd.f32 %v2861_v41, %v2843_v39  ;;  %v4425_v41 = vld [vmem:[#allocation6] ss:$0 sm:$0xff] }
 0x36b   : > { %v2881_v15 = vadd.f32 %v2880_v42, %v2862_v43 }
 0x36d   : > { %v2889_v46 = vadd.f32 %v2881_v15, %v5994_v19  ;;  %v4549_v19 = vmov 128.0  }
 0x36e   : > { %4426 = vrcp.f32 %v4549_v19 }
 0x36f   : > { %2894 = vadd.xlane.f32.xlu0 %v2889_v46 }
 0x370   : > { %v2864_v3 = vpop.f32.mrf.mxu2  ;;  %v2883_v49 = vpop.f32.mrf.mxu3 }
 0x371   : > { %v2865_v6 = vadd.f32 %v2864_v3, %v2846_v48 }
 0x373   : > { %v2884_v50 = vadd.f32 %v2883_v49, %v2865_v6 }
 0x374   : > { %v4427_v18 = vpop.eup %4426 }
 0x375   : > { %v2890_v62 = vadd.f32 %v2884_v50, %v6001_v44  ;;  %v2901_v0 = vmul.f32 128.0, %v4427_v18  ;;  %vm2905_vm0 = vweird.f32 %v4427_v18 }
 0x377   : > { %2896 = vadd.xlane.f32.xlu1 %v2890_v62  ;;  %v2902_v11 = vsub.f32 1.0, %v2901_v0 }
 0x378   : > { %v2866_v55 = vpop.f32.mrf.mxu2  ;;  %v2885_v27 = vpop.f32.mrf.mxu3 }
 0x379   : > { %v2867_v56 = vadd.f32 %v2866_v55, %v2848_v14  ;;  %v2903_v2 = vmul.f32 %v4427_v18, %v2902_v11 }
 0x37b   : > { %v2886_v60 = vadd.f32 %v2885_v27, %v2867_v56  ;;  %v2904_v4 = vadd.f32 %v4427_v18, %v2903_v2 }
 0x37d   : > { %v2891_v1 = vadd.f32 %v2886_v60, %v6004_v59  ;;  %v2906_v8 = vsel %vm2905_vm0, %v4427_v18, %v2904_v4 }
 0x37f   : > { %2898 = vadd.xlane.f32.xlu1 %v2891_v1 }
 0x3da   : > { %v2893_v61 = vpop.xlane.xlu0 %2892 }
 0x3db   : > { %v2907_v44 = vmul.f32 %v2906_v8, %v2893_v61 }
 0x3dd   : > { %v2911_v54 = vsub.f32 %v2888_v38, %v2907_v44 }
 0x3df   : > { %v2915_v63 = vmul.f32 %v2911_v54, %v2911_v54 }
 0x3e1   : > { %2919 = vadd.xlane.f32.xlu2 %v2915_v63 }
 0x3e2   : > { %v2895_v29 = vpop.xlane.xlu0 %2894 }
 0x3e3   : > { %v2908_v34 = vmul.f32 %v2906_v8, %v2895_v29 }
 0x3e5   : > { %v2912_v20 = vsub.f32 %v2889_v46, %v2908_v34 }
 0x3e7   : > { %v2916_v12 = vmul.f32 %v2912_v20, %v2912_v20 }
 0x3e9   : > { %2921 = vadd.xlane.f32.xlu2 %v2916_v12 }
 0x3ea   : > { %v2897_v59 = vpop.xlane.xlu1 %2896 }
 0x3eb   : > { %v2909_v52 = vmul.f32 %v2906_v8, %v2897_v59 }
 0x3ed   : > { %v6010_v13 = vsub.f32 %v2890_v62, %v2909_v52 }
 0x3ef   : > { %v2917_v17 = vmul.f32 %v6010_v13, %v6010_v13 }
 0x3f1   : > { %2923 = vadd.xlane.f32.xlu0 %v2917_v17 }
 0x3f2   : > { %v2899_v21 = vpop.xlane.xlu1 %2898 }
 0x3f3   : > { %v2910_v22 = vmul.f32 %v2906_v8, %v2899_v21 }
 0x3f5   : > { %v6014_v40 = vsub.f32 %v2891_v1, %v2910_v22 }
 0x3f7   : > { %v2918_v23 = vmul.f32 %v6014_v40, %v6014_v40 }
 0x3f9   : > { %2925 = vadd.xlane.f32.xlu1 %v2918_v23 }
 0x454   : > { %v2920_v24 = vpop.xlane.xlu2 %2919 }
 0x455   : > { %v2927_v25 = vmul.f32 %v2920_v24, %v2906_v8 }
 0x457   : > { %v2931_v10 = vadd.f32 1e-05, %v2927_v25 }
 0x459   : > { %4428 = vrsqrt.f32 %v2931_v10  ;;  %vm2941_vm2 = vweird.f32 %v2931_v10 }
 0x45c   : > { %v2922_v26 = vpop.xlane.xlu2 %2921 }
 0x45d   : > { %v2928_v28 = vmul.f32 %v2922_v26, %v2906_v8 }
 0x45f   : > { %v4429_v7 = vpop.eup %4428  ;;  %v2932_v58 = vadd.f32 1e-05, %v2928_v28 }
 0x460   : > { %v2936_v30 = vmul.f32 %v4429_v7, %v2931_v10  ;;  %vm2942_vm1 = vweird.f32 %v4429_v7 }
 0x461   : > { %4430 = vrsqrt.f32 %v2932_v58  ;;  %vm2943_vm3 = vmor %vm2941_vm2, %vm2942_vm1  ;;  %vm2951_vm5 = vweird.f32 %v2932_v58 }
 0x462   : > { %v2937_v32 = vmul.f32 %v4429_v7, %v2936_v30 }
 0x464   : > { %v2938_v36 = vmul.f32 0.5, %v2937_v32  ;;  %v2924_v47 = vpop.xlane.xlu0 %2923 }
 0x465   : > { %v2929_v33 = vmul.f32 %v2924_v47, %v2906_v8 }
 0x466   : > { %v2939_v35 = vsub.f32 1.5, %v2938_v36 }
 0x467   : > { %v4431_v31 = vpop.eup %4430  ;;  %v2933_v5 = vadd.f32 1e-05, %v2929_v33 }
 0x468   : > { %v2940_v9 = vmul.f32 %v4429_v7, %v2939_v35  ;;  %v2946_v16 = vmul.f32 %v4431_v31, %v2932_v58  ;;  %vm2952_vm4 = vweird.f32 %v4431_v31 }
 0x469   : > { %4432 = vrsqrt.f32 %v2933_v5  ;;  %vm2953_vm6 = vmor %vm2951_vm5, %vm2952_vm4  ;;  %vm2961_vm8 = vweird.f32 %v2933_v5 }
 0x46a   : > { %v2944_v38 = vsel %vm2943_vm3, %v4429_v7, %v2940_v9  ;;  %v2947_v39 = vmul.f32 %v4431_v31, %v2946_v16 }
 0x46b   : > { %v2975_v43 = vmul.f32 %v2944_v38, %v2911_v54 }
 0x46c   : > { %v2948_v42 = vmul.f32 0.5, %v2947_v39  ;;  %v2926_v57 = vpop.xlane.xlu1 %2925 }
 0x46d   : > { %v2983_v45 = vmul.f32 %v4424_v37, %v2975_v43  ;;  %v2930_v15 = vmul.f32 %v2926_v57, %v2906_v8 }
 0x46e   : > { %v2949_v46 = vsub.f32 1.5, %v2948_v42 }
 0x46f   : > { %v4433_v48 = vpop.eup %4432  ;;  %v2991_v3 = vadd.f32 %v4425_v41, %v2983_v45  ;;  %v2934_v6 = vadd.f32 1e-05, %v2930_v15 }
 0x470   : > { %v2950_v49 = vmul.f32 %v4431_v31, %v2949_v46  ;;  %v2956_v50 = vmul.f32 %v4433_v48, %v2933_v5  ;;  %vm2962_vm7 = vweird.f32 %v4433_v48 }
 0x471   : > { %2995 = vst [vmem:[%s6023_s11] sm:$0xff] %v2991_v3  ;;  %4434 = vrsqrt.f32 %v2934_v6  ;;  %vm2963_vm9 = vmor %vm2961_vm8, %vm2962_vm7  ;;  %vm2971_vm11 = vweird.f32 %v2934_v6 }
 0x472   : > { %v2954_v51 = vsel %vm2953_vm6, %v4431_v31, %v2950_v49  ;;  %v2957_v53 = vmul.f32 %v4433_v48, %v2956_v50 }
 0x473   : > { %v2976_v62 = vmul.f32 %v2954_v51, %v2912_v20 }
 0x474   : > { %v2958_v14 = vmul.f32 0.5, %v2957_v53 }
 0x475   : > { %v2984_v55 = vmul.f32 %v4424_v37, %v2976_v62 }
 0x476   : > { %v2959_v56 = vsub.f32 1.5, %v2958_v14 }
 0x477   : > { %v4435_v27 = vpop.eup %4434  ;;  %v2992_v60 = vadd.f32 %v4425_v41, %v2984_v55 }
 0x478   : > { %v2960_v1 = vmul.f32 %v4433_v48, %v2959_v56  ;;  %v2966_v19 = vmul.f32 %v4435_v27, %v2934_v6  ;;  %vm2972_vm10 = vweird.f32 %v4435_v27 }
 0x479   : > { %2996 = vst [vmem:[%s6023_s11 + $0x8] sm:$0xff] %v2992_v60  ;;  %vm2973_vm12 = vmor %vm2971_vm11, %vm2972_vm10 }
 0x47a   : > { %v2964_v18 = vsel %vm2963_vm9, %v4433_v48, %v2960_v1  ;;  %v2967_v0 = vmul.f32 %v4435_v27, %v2966_v19 }
 0x47b   : > { %v2977_v11 = vmul.f32 %v2964_v18, %v6010_v13 }
 0x47c   : > { %v2968_v2 = vmul.f32 0.5, %v2967_v0 }
 0x47d   : > { %v2985_v4 = vmul.f32 %v4424_v37, %v2977_v11 }
 0x47e   : > { %v2969_v8 = vsub.f32 1.5, %v2968_v2 }
 0x47f   : > { %v2993_v61 = vadd.f32 %v4425_v41, %v2985_v4 }
 0x480   : > { %v2970_v44 = vmul.f32 %v4435_v27, %v2969_v8 }
 0x481   : > { %2997 = vst [vmem:[%s6023_s11 + $0x10] sm:$0xff] %v2993_v61 }
 0x482   : > { %v2974_v54 = vsel %vm2973_vm12, %v4435_v27, %v2970_v44 }
 0x483   : > { %v2978_v63 = vmul.f32 %v2974_v54, %v6014_v40 }
 0x485   : > { %v2986_v29 = vmul.f32 %v4424_v37, %v2978_v63 }
 0x487   : > { %v2994_v34 = vadd.f32 %v4425_v41, %v2986_v29 }
 0x489   : > { %2998 = vst [vmem:[%s6023_s11 + $0x18] sm:$0xff] %v2994_v34 }
 0x48a PF: > { %s19_s24 = sadd.s32 1, %s4544_s24  }
 0x48b   : > { %p16_p7 = scmp.ge.s32.totalorder %s19_s24, 4  }
 0x48d   :  { %18 = sbr.rel (!%p16_p7) target bundleno = 2 (0x2), region = 91 }
 0x492   :  { %3021 = vsyncpa [#allocation3], 1 }
 0x493   :  { %3023 = vsyncpa [#allocation3 + $0x1], 1 }
 0x494   :  { %3024 = vsyncpa [#allocation5], 1 }

// kernel: mtr2_forward.52
= control target key start
LH: loop header
LB: loop body
LE: loop exit
PB: predicated region body
PF: predicated region fallthrough
CT: control target
= control target key end

     0   :  { %12 = vsyncpa [#allocation3], 0  ;;  %s5968_s0 = inlined_call_operand.vmem [shape: f32[64,128], index: 0, kind: input, shape index: {}]   ;;  %s5969_s1 = inlined_call_operand.vmem [shape: bf16[128,2048], index: 1, kind: input, shape index: {}]   ;;  %s5970_s2 = inlined_call_operand.vmem [shape: f32[1,2048], index: 2, kind: input, shape index: {}]   ;;  %s5971_s3 = inlined_call_operand.vmem [shape: bf16[2048,128], index: 3, kind: input, shape index: {}]   ;;  %s5972_s4 = inlined_call_operand.vmem [shape: f32[1,128], index: 4, kind: input, shape index: {}]   ;;  %s5973_s5 = inlined_call_operand.hbm [shape: f32[1,128], index: 5, kind: input, shape index: {}]   ;;  %s5974_s6 = inlined_call_operand.hbm [shape: f32[1,128], index: 6, kind: input, shape index: {}]   ;;  %s5975_s7 = inlined_call_operand.vmem [shape: f32[64,128], index: 7, kind: output, shape index: {}]  }
   0x1   :  { %13 = vsyncpa [#allocation5], 0  ;;  %s4524_s24 = smov 0  }
   0x2 LB: > { %s226_s27 = sshll.u32 %s5973_s5, 4  ;;  %s3063_s28 = sadd.s32 4294967295, %s4479_s24   ;;  %s4479_s24 = sphi %s4524_s24, %s19_s24   ;;  %s227_s27 = int_to_ptr.hbm [resolvable:$true] %s226_s27 }
   0x3   : > { %p3065_p0 = scmp.ge.s32.totalorder %s4479_s24, 1  ;;  %p202_p1 = scmp.lt.s32.totalorder %s4479_s24, 3 }
   0x4   : > { %p4537_p2 = scmp.eq.s32.totalorder %s3063_s28, 0  ;;  %s4481_s8 = smov [#allocation2]  }
   0x5   : > { %p4541_p3 = pnand %p3065_p0, %p202_p1  ;;  %s228_s9 = sshll.u32 %s4481_s8, 4  ;;  %s229_s9 = int_to_ptr.vmem [resolvable:$true] %s228_s9 }
   0x6   : > { %s238_s12 = sshll.u32 %s5974_s6, 4  ;;  %s4482_s13 = smov [#allocation4]   ;;  %s239_s12 = int_to_ptr.hbm [resolvable:$true] %s238_s12 }
   0x7   : > { %p4366_p4 = pneg %p4541_p3  ;;  %s240_s14 = sshll.u32 %s4482_s13, 4  ;;  %s241_s14 = int_to_ptr.vmem [resolvable:$true] %s240_s14 }
   0x8   : > { %262 = sbr.rel (%p4541_p3) target bundleno = 1160 (0x488), region = 48 }
   0x9   : > { %p4367_p5 = pnand %p4537_p2, %p4366_p4 }
   0xb   : > { %4369 = dma.hbm_to_vmem [thread:$0]  (!%p4367_p5), %s227_s27, 16, %s229_s9, [#allocation3]  }
   0xc   : > { %4372 = dma.hbm_to_vmem [thread:$0]  (!%p4367_p5), %s239_s12, 16, %s241_s14, [#allocation5]  }
   0xd   : > { %4470 = dma.done.wait (%p4537_p2), [#allocation3], 16  }
   0xe   : > { %4472 = vsyncadd (%p4537_p2), [#allocation3], 4294967280 }
   0xf   : > { %4474 = dma.done.wait (%p4537_p2), [#allocation5], 16  }
  0x10   : > { %4476 = vsyncadd (%p4537_p2), [#allocation5], 4294967280  ;;  %v3198_v0 = vld [vmem:[%s5969_s1 + $0x388] sm:$0xf]  ;;  %v4131_v2 = vld [vmem:[%s5969_s1 + $0x38c] sm:$0xf] }
  0x11   : > { %v4133_v1 = vld [vmem:[%s5969_s1 + $0x3c4] sm:$0xf0]  ;;  %v3200_v4 = vld [vmem:[%s5969_s1 + $0x3c8] sm:$0xf0]  ;;  %v3190_v14 = vld [vmem:[%s5969_s1 + $0x380] sm:$0xf] }
  0x12   : > { %v3199_v3 = vor.u32 %v4133_v1, %v3198_v0  ;;  %v3182_v5 = vld [vmem:[%s5969_s1 + $0x308] sm:$0xf]  ;;  %v3203_v7 = vor.u32 %v4131_v2, %v3200_v4  ;;  %v4127_v8 = vld [vmem:[%s5969_s1 + $0x30c] sm:$0xf]  ;;  %v4132_v15 = vld [vmem:[%s5969_s1 + $0x3bc] sm:$0xf0] }
  0x13   : > { %v4129_v6 = vld [vmem:[%s5969_s1 + $0x344] sm:$0xf0]  ;;  %v3184_v9 = vld [vmem:[%s5969_s1 + $0x348] sm:$0xf0]  ;;  %v4130_v16 = vld [vmem:[%s5969_s1 + $0x384] sm:$0xf]  ;;  %v3191_v19 = vor.u32 %v4132_v15, %v3190_v14 }
  0x14   : > { %630 = vmatpush.bf16.msra.mxu2 %v3199_v3  ;;  %v3183_v10 = vor.u32 %v4129_v6, %v3182_v5  ;;  %v3166_v11 = vld [vmem:[%s5969_s1 + $0x288] sm:$0xf]  ;;  %649 = vmatpush.bf16.msra.mxu3 %v3203_v7  ;;  %v3187_v13 = vor.u32 %v4127_v8, %v3184_v9  ;;  %v4123_v17 = vld [vmem:[%s5969_s1 + $0x28c] sm:$0xf]  ;;  %v3192_v20 = vld [vmem:[%s5969_s1 + $0x3c0] sm:$0xf0] }
  0x15   : > { %v4125_v12 = vld [vmem:[%s5969_s1 + $0x2c4] sm:$0xf0]  ;;  %v3168_v18 = vld [vmem:[%s5969_s1 + $0x2c8] sm:$0xf0]  ;;  %v3195_v21 = vor.u32 %v4130_v16, %v3192_v20  ;;  %v3174_v22 = vld [vmem:[%s5969_s1 + $0x300] sm:$0xf]  ;;  %592 = vmatpush.bf16.msra.mxu0 %v3191_v19 }
  0x16   : > { %s4615_s30 = sshll.u32 %s3063_s28, 2  ;;  %v3167_v23 = vor.u32 %v4125_v12, %v3166_v11  ;;  %v4128_v24 = vld [vmem:[%s5969_s1 + $0x33c] sm:$0xf0]  ;;  %v4126_v25 = vld [vmem:[%s5969_s1 + $0x304] sm:$0xf]  ;;  %v3171_v27 = vor.u32 %v4123_v17, %v3168_v18 }
  0x17   : > { %v3176_v26 = vld [vmem:[%s5969_s1 + $0x340] sm:$0xf0]  ;;  %611 = vmatpush.bf16.msra.mxu1 %v3195_v21  ;;  %v3150_v28 = vld [vmem:[%s5969_s1 + $0x208] sm:$0xf]  ;;  %v4119_v30 = vld [vmem:[%s5969_s1 + $0x20c] sm:$0xf]  ;;  %v3175_v31 = vor.u32 %v4128_v24, %v3174_v22 }
  0x18   : > { %631 = vmatpush.bf16.msra.mxu2 %v3183_v10  ;;  %650 = vmatpush.bf16.msra.mxu3 %v3187_v13  ;;  %v4121_v29 = vld [vmem:[%s5969_s1 + $0x244] sm:$0xf0]  ;;  %v3179_v32 = vor.u32 %v4126_v25, %v3176_v26  ;;  %v3152_v33 = vld [vmem:[%s5969_s1 + $0x248] sm:$0xf0]  ;;  %v3158_v34 = vld [vmem:[%s5969_s1 + $0x280] sm:$0xf] }
  0x19   : > { %v4124_v35 = vld [vmem:[%s5969_s1 + $0x2bc] sm:$0xf0]  ;;  %v4122_v36 = vld [vmem:[%s5969_s1 + $0x284] sm:$0xf]  ;;  %v3151_v38 = vor.u32 %v4121_v29, %v3150_v28  ;;  %593 = vmatpush.bf16.msra.mxu0 %v3175_v31  ;;  %v3134_v39 = vld [vmem:[%s5969_s1 + $0x188] sm:$0xf]  ;;  %v3155_v42 = vor.u32 %v4119_v30, %v3152_v33 }
  0x1a   : > { %v3160_v37 = vld [vmem:[%s5969_s1 + $0x2c0] sm:$0xf0]  ;;  %v4117_v40 = vld [vmem:[%s5969_s1 + $0x1c4] sm:$0xf0]  ;;  %v3159_v41 = vor.u32 %v4124_v35, %v3158_v34  ;;  %p301_p6 = scmp.lt.s32.totalorder %s4615_s30, 7  ;;  %v4165_v33 = vld [vmem:[%s5971_s3 + $0xf8] sm:$0xff] }
  0x1b   : > { %612 = vmatpush.bf16.msra.mxu1 %v3179_v32  ;;  %v4115_v43 = vld [vmem:[%s5969_s1 + $0x18c] sm:$0xf]  ;;  %v3163_v44 = vor.u32 %v4122_v36, %v3160_v37  ;;  %v3142_v45 = vld [vmem:[%s5969_s1 + $0x200] sm:$0xf]  ;;  %v4118_v48 = vld [vmem:[%s5969_s1 + $0x204] sm:$0xf]  ;;  %v3135_v50 = vor.u32 %v4117_v40, %v3134_v39 }
  0x1c   : > { %632 = vmatpush.bf16.msra.mxu2 %v3167_v23  ;;  %651 = vmatpush.bf16.msra.mxu3 %v3171_v27  ;;  %v4120_v46 = vld [vmem:[%s5969_s1 + $0x23c] sm:$0xf0]  ;;  %v3136_v47 = vld [vmem:[%s5969_s1 + $0x1c8] sm:$0xf0]  ;;  %v3144_v49 = vld [vmem:[%s5969_s1 + $0x240] sm:$0xf0] }
  0x1d   : > { %594 = vmatpush.bf16.msra.mxu0 %v3159_v41  ;;  %v3118_v51 = vld [vmem:[%s5969_s1 + $0x108] sm:$0xf]  ;;  %v3143_v53 = vor.u32 %v4120_v46, %v3142_v45  ;;  %s5979_s30 = smov (!%p301_p6, %s4615_s30), 7  ;;  %v3139_v54 = vor.u32 %v4115_v43, %v3136_v47  ;;  %v4111_v55 = vld [vmem:[%s5969_s1 + $0x10c] sm:$0xf]  ;;  %v3147_v56 = vor.u32 %v4118_v48, %v3144_v49  ;;  %v4157_v32 = vld [vmem:[%s5971_s3 + $0xb8] sm:$0xff] }
  0x1e   : > { %v4113_v52 = vld [vmem:[%s5969_s1 + $0x144] sm:$0xf0]  ;;  %v3126_v57 = vld [vmem:[%s5969_s1 + $0x180] sm:$0xf]  ;;  %v3120_v59 = vld [vmem:[%s5969_s1 + $0x148] sm:$0xf0] }
  0x1f   : > { %613 = vmatpush.bf16.msra.mxu1 %v3163_v44  ;;  %v4116_v58 = vld [vmem:[%s5969_s1 + $0x1bc] sm:$0xf0]  ;;  %v4114_v60 = vld [vmem:[%s5969_s1 + $0x184] sm:$0xf]  ;;  %v3119_v62 = vor.u32 %v4113_v52, %v3118_v51  ;;  %v3102_v63 = vld [vmem:[%s5969_s1 + $0x88] sm:$0xf]  ;;  %v3123_v2 = vor.u32 %v4111_v55, %v3120_v59 }
  0x20   : > { %633 = vmatpush.bf16.msra.mxu2 %v3151_v38  ;;  %652 = vmatpush.bf16.msra.mxu3 %v3155_v42  ;;  %v3128_v61 = vld [vmem:[%s5969_s1 + $0x1c0] sm:$0xf0]  ;;  %v4109_v0 = vld [vmem:[%s5969_s1 + $0xc4] sm:$0xf0]  ;;  %v3127_v1 = vor.u32 %v4116_v58, %v3126_v57  ;;  %s3073_s23 = sshll.u32 %s5979_s30, 3  ;;  %v4141_v37 = vld [vmem:[%s5971_s3 + $0x38] sm:$0xff] }
  0x21   : > { %595 = vmatpush.bf16.msra.mxu0 %v3143_v53  ;;  %v4107_v3 = vld [vmem:[%s5969_s1 + $0x8c] sm:$0xf]  ;;  %v3131_v4 = vor.u32 %v4114_v60, %v3128_v61  ;;  %v3110_v5 = vld [vmem:[%s5969_s1 + $0x100] sm:$0xf]  ;;  %v4110_v8 = vld [vmem:[%s5969_s1 + $0x104] sm:$0xf]  ;;  %v3103_v10 = vor.u32 %v4109_v0, %v3102_v63  ;;  %s4740_s21 = scalar_lea.vmem %s5968_s0, %s3073_s23  ;;  %s5957_s9 = scalar_lea.vmem %s5975_s7, %s3073_s23 }
  0x22   : > { %v4112_v6 = vld [vmem:[%s5969_s1 + $0x13c] sm:$0xf0]  ;;  %v3104_v7 = vld [vmem:[%s5969_s1 + $0xc8] sm:$0xf0]  ;;  %v3112_v9 = vld [vmem:[%s5969_s1 + $0x140] sm:$0xf0] }
  0x23   : > { %614 = vmatpush.bf16.msra.mxu1 %v3147_v56  ;;  %v3086_v11 = vld [vmem:[%s5969_s1 + $0x8] sm:$0xf]  ;;  %v3111_v13 = vor.u32 %v4112_v6, %v3110_v5  ;;  %v3107_v14 = vor.u32 %v4107_v3, %v3104_v7  ;;  %v4103_v15 = vld [vmem:[%s5969_s1 + $0xc] sm:$0xf]  ;;  %v3115_v16 = vor.u32 %v4110_v8, %v3112_v9  ;;  %v3094_v17 = vld [vmem:[%s5969_s1 + $0x80] sm:$0xf] }
  0x24   : > { %634 = vmatpush.bf16.msra.mxu2 %v3135_v50  ;;  %653 = vmatpush.bf16.msra.mxu3 %v3139_v54  ;;  %v4105_v12 = vld [vmem:[%s5969_s1 + $0x44] sm:$0xf0]  ;;  %v4108_v18 = vld [vmem:[%s5969_s1 + $0xbc] sm:$0xf0]  ;;  %v3088_v19 = vld [vmem:[%s5969_s1 + $0x48] sm:$0xf0] }
  0x25   : > { %596 = vmatpush.bf16.msra.mxu0 %v3127_v1  ;;  %v4106_v20 = vld [vmem:[%s5969_s1 + $0x84] sm:$0xf]  ;;  %v3087_v23 = vor.u32 %v4105_v12, %v3086_v11  ;;  %v313_v24 = vld [vmem:[%s4740_s21 + $0x8] sm:$0xff]  ;;  %v3095_v25 = vor.u32 %v4108_v18, %v3094_v17  ;;  %v3078_v26 = vld [vmem:[%s5969_s1] sm:$0xf]  ;;  %v3091_v28 = vor.u32 %v4103_v15, %v3088_v19 }
  0x26   : > { %v3096_v21 = vld [vmem:[%s5969_s1 + $0xc0] sm:$0xf0]  ;;  %v4104_v27 = vld [vmem:[%s5969_s1 + $0x3c] sm:$0xf0]  ;;  %v4156_v38 = vld [vmem:[%s5971_s3 + $0xb0] sm:$0xff] }
  0x27   : > { %615 = vmatpush.bf16.msra.mxu1 %v3131_v4  ;;  %v312_v22 = vld [vmem:[%s4740_s21] sm:$0xff]  ;;  %v3099_v29 = vor.u32 %v4106_v20, %v3096_v21  ;;  %v3079_v35 = vor.u32 %v4104_v27, %v3078_v26  ;;  %v4149_v39 = vld [vmem:[%s5971_s3 + $0x78] sm:$0xff]  ;;  %v4164_v40 = vld [vmem:[%s5971_s3 + $0xf0] sm:$0xff] }
  0x28   : > { %635 = vmatpush.bf16.msra.mxu2 %v3119_v62  ;;  %654 = vmatpush.bf16.msra.mxu3 %v3123_v2  ;;  %v4102_v30 = vld [vmem:[%s5969_s1 + $0x4] sm:$0xf]  ;;  %v4780_v34 = vpack.c.bf16 %v313_v24, %v312_v22  ;;  %v4140_v41 = vld [vmem:[%s5971_s3 + $0x30] sm:$0xff]  ;;  %v4155_v42 = vld [vmem:[%s5971_s3 + $0xa8] sm:$0xff] }
  0x29   : > { %597 = vmatpush.bf16.msra.mxu0 %v3111_v13  ;;  %v3080_v31 = vld [vmem:[%s5969_s1 + $0x40] sm:$0xf0]  ;;  %v4148_v43 = vld [vmem:[%s5971_s3 + $0x70] sm:$0xff]  ;;  %v4163_v44 = vld [vmem:[%s5971_s3 + $0xe8] sm:$0xff] }
  0x2a   : > { %v3083_v36 = vor.u32 %v4102_v30, %v3080_v31  ;;  %v4139_v45 = vld [vmem:[%s5971_s3 + $0x28] sm:$0xff]  ;;  %v4154_v46 = vld [vmem:[%s5971_s3 + $0xa0] sm:$0xff]  ;;  %v314_v49 = vld [vmem:[%s4740_s21 + $0x10] sm:$0xff] }
  0x2b   : > { %616 = vmatpush.bf16.msra.mxu1 %v3115_v16  ;;  %v4147_v47 = vld [vmem:[%s5971_s3 + $0x68] sm:$0xff]  ;;  %v4162_v48 = vld [vmem:[%s5971_s3 + $0xe0] sm:$0xff]  ;;  %v315_v50 = vld [vmem:[%s4740_s21 + $0x18] sm:$0xff] }
  0x2c   : > { %636 = vmatpush.bf16.msra.mxu2 %v3103_v10  ;;  %655 = vmatpush.bf16.msra.mxu3 %v3107_v14  ;;  %v4153_v51 = vld [vmem:[%s5971_s3 + $0x98] sm:$0xff]  ;;  %v4827_v52 = vpack.c.bf16 %v315_v50, %v314_v49  ;;  %v4138_v53 = vld [vmem:[%s5971_s3 + $0x20] sm:$0xff]  ;;  %v4152_v56 = vld [vmem:[%s5971_s3 + $0x90] sm:$0xff] }
  0x2d   : > { %598 = vmatpush.bf16.msra.mxu0 %v3095_v25  ;;  %v4146_v54 = vld [vmem:[%s5971_s3 + $0x60] sm:$0xff]  ;;  %v4161_v55 = vld [vmem:[%s5971_s3 + $0xd8] sm:$0xff]  ;;  %v4160_v59 = vld [vmem:[%s5971_s3 + $0xd0] sm:$0xff] }
  0x2e   : > { %v4137_v57 = vld [vmem:[%s5971_s3 + $0x18] sm:$0xff]  ;;  %v4151_v60 = vld [vmem:[%s5971_s3 + $0x88] sm:$0xff]  ;;  %v4136_v61 = vld [vmem:[%s5971_s3 + $0x10] sm:$0xff] }
  0x2f   : > { %617 = vmatpush.bf16.msra.mxu1 %v3099_v29  ;;  %v4145_v58 = vld [vmem:[%s5971_s3 + $0x58] sm:$0xff]  ;;  %v4144_v62 = vld [vmem:[%s5971_s3 + $0x50] sm:$0xff]  ;;  %v4159_v63 = vld [vmem:[%s5971_s3 + $0xc8] sm:$0xff] }
  0x30   : > { %637 = vmatpush.bf16.msra.mxu2 %v3087_v23  ;;  %656 = vmatpush.bf16.msra.mxu3 %v3091_v28  ;;  %v4150_v0 = vld [vmem:[%s5971_s3 + $0x80] sm:$0xff]  ;;  %v4135_v1 = vld [vmem:[%s5971_s3 + $0x8] sm:$0xff]  ;;  %v3454_v4 = vld [vmem:[%s5969_s1 + $0x398] sm:$0xf] }
  0x31   : > { %599 = vmatpush.bf16.msra.mxu0 %v3079_v35  ;;  %v4143_v2 = vld [vmem:[%s5971_s3 + $0x48] sm:$0xff]  ;;  %v4158_v3 = vld [vmem:[%s5971_s3 + $0xc0] sm:$0xff]  ;;  %v4197_v5 = vld [vmem:[%s5969_s1 + $0x3d4] sm:$0xf0] }
  0x32   : > { %v4195_v6 = vld [vmem:[%s5969_s1 + $0x39c] sm:$0xf]  ;;  %v3455_v7 = vor.u32 %v4197_v5, %v3454_v4  ;;  %v4134_v8 = vld [vmem:[%s5971_s3] sm:$0xff]  ;;  %v3438_v12 = vld [vmem:[%s5969_s1 + $0x318] sm:$0xf] }
  0x33   : > { %638 = vmatmul.bf16.vlgmr.msra.gmra.mxu2 %v4780_v34  ;;  %657 = vmatmul.bf16.vlgmr.msra.gmra.mxu3 %v4780_v34  ;;  %v4142_v9 = vld [vmem:[%s5971_s3 + $0x40] sm:$0xff]  ;;  %v3456_v10 = vld [vmem:[%s5969_s1 + $0x3d8] sm:$0xf0]  ;;  %v4193_v13 = vld [vmem:[%s5969_s1 + $0x354] sm:$0xf0] }
  0x34   : > { %922 = vmatpush.bf16.msrb.mxu2 %v4157_v32  ;;  %941 = vmatpush.bf16.msrb.mxu3 %v4165_v33  ;;  %v3459_v11 = vor.u32 %v4195_v6, %v3456_v10  ;;  %v4191_v14 = vld [vmem:[%s5969_s1 + $0x31c] sm:$0xf]  ;;  %v3439_v15 = vor.u32 %v4193_v13, %v3438_v12  ;;  %v3446_v18 = vld [vmem:[%s5969_s1 + $0x390] sm:$0xf]  ;;  %v4194_v20 = vld [vmem:[%s5969_s1 + $0x394] sm:$0xf] }
  0x35   : > { %618 = vmatpush.bf16.msra.mxu1 %v3083_v36  ;;  %884 = vmatpush.bf16.msrb.mxu0 %v4141_v37  ;;  %v3440_v16 = vld [vmem:[%s5969_s1 + $0x358] sm:$0xf0]  ;;  %v4196_v19 = vld [vmem:[%s5969_s1 + $0x3cc] sm:$0xf0]  ;;  %v3448_v22 = vld [vmem:[%s5969_s1 + $0x3d0] sm:$0xf0] }
  0x36   : > { %600 = vmatmul.bf16.vlgmr.msra.gmra.mxu0 %v4780_v34  ;;  %v3443_v17 = vor.u32 %v4191_v14, %v3440_v16  ;;  %v3447_v21 = vor.u32 %v4196_v19, %v3446_v18  ;;  %v3422_v23 = vld [vmem:[%s5969_s1 + $0x298] sm:$0xf]  ;;  %v3451_v25 = vor.u32 %v4194_v20, %v3448_v22  ;;  %v4187_v27 = vld [vmem:[%s5969_s1 + $0x29c] sm:$0xf]  ;;  %v3430_v30 = vld [vmem:[%s5969_s1 + $0x310] sm:$0xf] }
  0x37   : > { %v4189_v24 = vld [vmem:[%s5969_s1 + $0x2d4] sm:$0xf0]  ;;  %v3424_v28 = vld [vmem:[%s5969_s1 + $0x2d8] sm:$0xf0]  ;;  %v4192_v31 = vld [vmem:[%s5969_s1 + $0x34c] sm:$0xf0] }
  0x38   : > { %923 = vmatpush.bf16.msrb.mxu2 %v4156_v38  ;;  %942 = vmatpush.bf16.msrb.mxu3 %v4164_v40  ;;  %v3423_v26 = vor.u32 %v4189_v24, %v3422_v23  ;;  %v3427_v29 = vor.u32 %v4187_v27, %v3424_v28  ;;  %v4190_v32 = vld [vmem:[%s5969_s1 + $0x314] sm:$0xf]  ;;  %v358_v33 = vld [vmem:[%s5970_s2] sm:$0xf]  ;;  %v3431_v35 = vor.u32 %v4192_v31, %v3430_v30  ;;  %v3406_v38 = vld [vmem:[%s5969_s1 + $0x218] sm:$0xf] }
  0x39   : > { %903 = vmatpush.bf16.msrb.mxu1 %v4149_v39  ;;  %885 = vmatpush.bf16.msrb.mxu0 %v4140_v41  ;;  %v3432_v36 = vld [vmem:[%s5969_s1 + $0x350] sm:$0xf0]  ;;  %v4185_v39 = vld [vmem:[%s5969_s1 + $0x254] sm:$0xf0]  ;;  %v4183_v40 = vld [vmem:[%s5969_s1 + $0x21c] sm:$0xf] }
  0x3a   : > { %619 = vmatmul.bf16.vlgmr.msra.gmra.mxu1 %v4780_v34  ;;  %v3435_v37 = vor.u32 %v4190_v32, %v3432_v36  ;;  %v4956_v41 = vperm.slane %v358_v33, 0  ;;  %v3416_v50 = vld [vmem:[%s5969_s1 + $0x2d0] sm:$0xf0]  ;;  %v3374_v6 = vld [vmem:[%s5969_s1 + $0x118] sm:$0xf]  ;;  %v5014_v10 = vperm.slane %v358_v33, 2 }
  0x3b   : > { %v3400_v5 = vld [vmem:[%s5969_s1 + $0x250] sm:$0xf0]  ;;  %v3376_v13 = vld [vmem:[%s5969_s1 + $0x158] sm:$0xf0]  ;;  %v3382_v14 = vld [vmem:[%s5969_s1 + $0x190] sm:$0xf] }
  0x3c   : > { %924 = vmatpush.bf16.msrb.mxu2 %v4155_v42  ;;  %943 = vmatpush.bf16.msrb.mxu3 %v4163_v44  ;;  %v4958_v42 = vperm.slane %v358_v33, 1  ;;  %v3408_v44 = vld [vmem:[%s5969_s1 + $0x258] sm:$0xf0]  ;;  %v4180_v18 = vld [vmem:[%s5969_s1 + $0x1cc] sm:$0xf0] }
  0x3d   : > { %904 = vmatpush.bf16.msrb.mxu1 %v4148_v43  ;;  %886 = vmatpush.bf16.msrb.mxu0 %v4139_v45  ;;  %v3407_v43 = vor.u32 %v4185_v39, %v3406_v38  ;;  %v3411_v45 = vor.u32 %v4183_v40, %v3408_v44  ;;  %v4178_v19 = vld [vmem:[%s5969_s1 + $0x194] sm:$0xf]  ;;  %v3383_v20 = vor.u32 %v4180_v18, %v3382_v14  ;;  %v3358_v22 = vld [vmem:[%s5969_s1 + $0x98] sm:$0xf]  ;;  %v4171_v27 = vld [vmem:[%s5969_s1 + $0x9c] sm:$0xf] }
  0x3e   : > { %v4173_v23 = vld [vmem:[%s5969_s1 + $0xd4] sm:$0xf0]  ;;  %v3360_v28 = vld [vmem:[%s5969_s1 + $0xd8] sm:$0xf0]  ;;  %v4174_v36 = vld [vmem:[%s5969_s1 + $0x114] sm:$0xf] }
  0x3f   : > { %v4166_v14 = vld [vmem:[%s5969_s1 + $0x14] sm:$0xf] }
  0x40   : > { %925 = vmatpush.bf16.msrb.mxu2 %v4154_v46  ;;  %944 = vmatpush.bf16.msrb.mxu3 %v4162_v48  ;;  %v3414_v46 = vld [vmem:[%s5969_s1 + $0x290] sm:$0xf]  ;;  %v4186_v48 = vld [vmem:[%s5969_s1 + $0x294] sm:$0xf] }
  0x41   : > { %905 = vmatpush.bf16.msrb.mxu1 %v4147_v47  ;;  %887 = vmatpush.bf16.msrb.mxu0 %v4138_v53  ;;  %v4188_v47 = vld [vmem:[%s5969_s1 + $0x2cc] sm:$0xf0]  ;;  %v3419_v53 = vor.u32 %v4186_v48, %v3416_v50 }
  0x42   : > { %v3415_v49 = vor.u32 %v4188_v47, %v3414_v46  ;;  %v4169_v46 = vld [vmem:[%s5969_s1 + $0x54] sm:$0xf0]  ;;  %v4167_v47 = vld [vmem:[%s5969_s1 + $0x1c] sm:$0xf] }
  0x43   : > { %643 = vmatmul.bf16.gmra.mxu2 %v4827_v52  ;;  %662 = vmatmul.bf16.gmra.mxu3 %v4827_v52 }
  0x44   : > { %926 = vmatpush.bf16.msrb.mxu2 %v4153_v51  ;;  %945 = vmatpush.bf16.msrb.mxu3 %v4161_v55  ;;  %v4181_v55 = vld [vmem:[%s5969_s1 + $0x1d4] sm:$0xf0] }
  0x45   : > { %906 = vmatpush.bf16.msrb.mxu1 %v4146_v54  ;;  %888 = vmatpush.bf16.msrb.mxu0 %v4137_v57  ;;  %v3390_v54 = vld [vmem:[%s5969_s1 + $0x198] sm:$0xf] }
  0x46   : > { %605 = vmatmul.bf16.gmra.mxu0 %v4827_v52 }
  0x48   : > { %927 = vmatpush.bf16.msrb.mxu2 %v4152_v56  ;;  %946 = vmatpush.bf16.msrb.mxu3 %v4160_v59  ;;  %v4179_v56 = vld [vmem:[%s5969_s1 + $0x19c] sm:$0xf] }
  0x49   : > { %907 = vmatpush.bf16.msrb.mxu1 %v4145_v58  ;;  %889 = vmatpush.bf16.msrb.mxu0 %v4136_v61  ;;  %v3391_v58 = vor.u32 %v4181_v55, %v3390_v54  ;;  %v3392_v59 = vld [vmem:[%s5969_s1 + $0x1d8] sm:$0xf0]  ;;  %v3350_v54 = vld [vmem:[%s5969_s1 + $0x90] sm:$0xf] }
  0x4a   : > { %624 = vmatmul.bf16.gmra.mxu1 %v4827_v52 }
  0x4c   : > { %928 = vmatpush.bf16.msrb.mxu2 %v4151_v60  ;;  %947 = vmatpush.bf16.msrb.mxu3 %v4159_v63  ;;  %v3395_v63 = vor.u32 %v4179_v56, %v3392_v59  ;;  %v4170_v59 = vld [vmem:[%s5969_s1 + $0x94] sm:$0xf] }
  0x4d   : > { %908 = vmatpush.bf16.msrb.mxu1 %v4144_v62  ;;  %890 = vmatpush.bf16.msrb.mxu0 %v4135_v1  ;;  %v4184_v1 = vld [vmem:[%s5969_s1 + $0x24c] sm:$0xf0] }
  0x50   : > { %929 = vmatpush.bf16.msrb.mxu2 %v4150_v0  ;;  %948 = vmatpush.bf16.msrb.mxu3 %v4158_v3  ;;  %v3398_v0 = vld [vmem:[%s5969_s1 + $0x210] sm:$0xf] }
  0x51   : > { %909 = vmatpush.bf16.msrb.mxu1 %v4143_v2  ;;  %891 = vmatpush.bf16.msrb.mxu0 %v4134_v8  ;;  %v4182_v2 = vld [vmem:[%s5969_s1 + $0x214] sm:$0xf]  ;;  %v3399_v4 = vor.u32 %v4184_v1, %v3398_v0  ;;  %v4177_v8 = vld [vmem:[%s5969_s1 + $0x154] sm:$0xf0] }
  0x52   : > { %v3375_v12 = vor.u32 %v4177_v8, %v3374_v6  ;;  %v3352_v0 = vld [vmem:[%s5969_s1 + $0xd0] sm:$0xf0] }
  0x54   : > { %1268 = vmatpush.bf16.msra.mxu2 %v3455_v7  ;;  %1287 = vmatpush.bf16.msra.mxu3 %v3459_v11  ;;  %v3403_v7 = vor.u32 %v4182_v2, %v3400_v5  ;;  %v5016_v11 = vperm.slane %v358_v33, 3  ;;  %v3363_v33 = vor.u32 %v4171_v27, %v3360_v28 }
  0x55   : > { %910 = vmatpush.bf16.msrb.mxu1 %v4142_v9  ;;  %1230 = vmatpush.bf16.msra.mxu0 %v3447_v21  ;;  %v4175_v9 = vld [vmem:[%s5969_s1 + $0x11c] sm:$0xf]  ;;  %v3384_v21 = vld [vmem:[%s5969_s1 + $0x1d0] sm:$0xf0] }
  0x58   : > { %1269 = vmatpush.bf16.msra.mxu2 %v3439_v15  ;;  %1288 = vmatpush.bf16.msra.mxu3 %v3443_v17  ;;  %v3379_v17 = vor.u32 %v4175_v9, %v3376_v13  ;;  %v4168_v13 = vld [vmem:[%s5969_s1 + $0x4c] sm:$0xf0] }
  0x59   : > { %1249 = vmatpush.bf16.msra.mxu1 %v3451_v25  ;;  %1231 = vmatpush.bf16.msra.mxu0 %v3431_v35  ;;  %v3387_v25 = vor.u32 %v4178_v19, %v3384_v21  ;;  %v4176_v35 = vld [vmem:[%s5969_s1 + $0x14c] sm:$0xf0] }
  0x5c   : > { %1270 = vmatpush.bf16.msra.mxu2 %v3423_v26  ;;  %1289 = vmatpush.bf16.msra.mxu3 %v3427_v29  ;;  %v3359_v26 = vor.u32 %v4173_v23, %v3358_v22  ;;  %v3366_v29 = vld [vmem:[%s5969_s1 + $0x110] sm:$0xf] }
  0x5d   : > { %1250 = vmatpush.bf16.msra.mxu1 %v3435_v37  ;;  %1232 = vmatpush.bf16.msra.mxu0 %v3415_v49  ;;  %v3368_v37 = vld [vmem:[%s5969_s1 + $0x150] sm:$0xf0] }
  0x5e   : > { %v3371_v44 = vor.u32 %v4174_v36, %v3368_v37 }
  0x60   : > { %1271 = vmatpush.bf16.msra.mxu2 %v3407_v43  ;;  %1290 = vmatpush.bf16.msra.mxu3 %v3411_v45  ;;  %v3367_v43 = vor.u32 %v4176_v35, %v3366_v29  ;;  %v3342_v45 = vld [vmem:[%s5969_s1 + $0x18] sm:$0xf] }
  0x61   : > { %1251 = vmatpush.bf16.msra.mxu1 %v3419_v53  ;;  %1233 = vmatpush.bf16.msra.mxu0 %v3399_v4  ;;  %v3344_v53 = vld [vmem:[%s5969_s1 + $0x58] sm:$0xf0]  ;;  %v3355_v4 = vor.u32 %v4170_v59, %v3352_v0  ;;  %v4202_v59 = vld [vmem:[%s5971_s3 + $0x120] sm:$0xff] }
  0x62   : > { %v4209_v0 = vld [vmem:[%s5971_s3 + $0x158] sm:$0xff] }
  0x64   : > { %1272 = vmatpush.bf16.msra.mxu2 %v3391_v58  ;;  %1291 = vmatpush.bf16.msra.mxu3 %v3395_v63  ;;  %v4172_v58 = vld [vmem:[%s5969_s1 + $0xcc] sm:$0xf0] }
  0x65   : > { %1252 = vmatpush.bf16.msra.mxu1 %v3403_v7  ;;  %1234 = vmatpush.bf16.msra.mxu0 %v3383_v20  ;;  %v3351_v63 = vor.u32 %v4172_v58, %v3350_v54  ;;  %v4227_v54 = vld [vmem:[%s5971_s3 + $0x1e8] sm:$0xff]  ;;  %v4218_v58 = vld [vmem:[%s5971_s3 + $0x1a0] sm:$0xff] }
  0x68   : > { %1273 = vmatpush.bf16.msra.mxu2 %v3375_v12  ;;  %1292 = vmatpush.bf16.msra.mxu3 %v3379_v17  ;;  %v3334_v12 = vld [vmem:[%s5969_s1 + $0x10] sm:$0xf]  ;;  %v3336_v17 = vld [vmem:[%s5969_s1 + $0x50] sm:$0xf0] }
  0x69   : > { %1253 = vmatpush.bf16.msra.mxu1 %v3387_v25  ;;  %1235 = vmatpush.bf16.msra.mxu0 %v3367_v43  ;;  %v3339_v18 = vor.u32 %v4166_v14, %v3336_v17  ;;  %v4215_v14 = vld [vmem:[%s5971_s3 + $0x188] sm:$0xff] }
  0x6a   : > { %v4223_v17 = vld [vmem:[%s5971_s3 + $0x1c8] sm:$0xff] }
  0x6c   : > { %1274 = vmatpush.bf16.msra.mxu2 %v3359_v26  ;;  %1293 = vmatpush.bf16.msra.mxu3 %v3363_v33 }
  0x6d   : > { %1254 = vmatpush.bf16.msra.mxu1 %v3371_v44  ;;  %1236 = vmatpush.bf16.msra.mxu0 %v3351_v63  ;;  %v4201_v63 = vld [vmem:[%s5971_s3 + $0x118] sm:$0xff] }
  0x71   : > { %1255 = vmatpush.bf16.msra.mxu1 %v3355_v4 }
  0x75   : > { %1256 = vmatpush.bf16.msra.mxu1 %v3339_v18 }
  0xb3   : > { %v601_v51 = vpop.f32.mrf.mxu0 }
  0xb4   : > { %v4988_v61 = vadd.f32 %v601_v51, %v4956_v41  ;;  %v3343_v51 = vor.u32 %v4169_v46, %v3342_v45  ;;  %v4229_v45 = vld [vmem:[%s5971_s3 + $0x1f8] sm:$0xff]  ;;  %v4220_v46 = vld [vmem:[%s5971_s3 + $0x1b0] sm:$0xff] }
  0xb6   : > { %v639_v60 = vpop.f32.mrf.mxu2  ;;  %v658_v3 = vpop.f32.mrf.mxu3  ;;  %v668_v15 = vmax.f32 %v4988_v61, 0.0  ;;  %1275 = vmatpush.bf16.msra.mxu2 %v3343_v51  ;;  %v4203_v51 = vld [vmem:[%s5971_s3 + $0x128] sm:$0xff] }
  0xb7   : > { %v620_v57 = vpop.f32.mrf.mxu1  ;;  %v640_v30 = vadd.f32 %v639_v60, %v5014_v10  ;;  %v659_v38 = vadd.f32 %v658_v3, %v5016_v11 }
  0xb8   : > { %v4991_v62 = vadd.f32 %v620_v57, %v4958_v42  ;;  %v3347_v57 = vor.u32 %v4167_v47, %v3344_v53  ;;  %v4204_v47 = vld [vmem:[%s5971_s3 + $0x130] sm:$0xff]  ;;  %v4211_v53 = vld [vmem:[%s5971_s3 + $0x168] sm:$0xff] }
  0xb9   : > { %v670_v60 = vmax.f32 %v640_v30, 0.0  ;;  %v671_v1 = vmax.f32 %v659_v38, 0.0 }
  0xba   : > { %v669_v16 = vmax.f32 %v4991_v62, 0.0  ;;  %1294 = vmatpush.bf16.msra.mxu3 %v3347_v57 }
  0xbb   : > { %v603_v24 = vpop.f32.mrf.mxu0 }
  0xbc   : > { %v604_v31 = vadd.f32 %v603_v24, %v4956_v41 }
  0xbe   : > { %v641_v39 = vpop.f32.mrf.mxu2  ;;  %v660_v49 = vpop.f32.mrf.mxu3  ;;  %v672_v50 = vmax.f32 %v604_v31, 0.0 }
  0xbf   : > { %v622_v32 = vpop.f32.mrf.mxu1  ;;  %v642_v48 = vadd.f32 %v641_v39, %v5014_v10  ;;  %v661_v55 = vadd.f32 %v660_v49, %v5016_v11  ;;  %v4228_v49 = vld [vmem:[%s5971_s3 + $0x1f0] sm:$0xff] }
  0xc0   : > { %v623_v40 = vadd.f32 %v622_v32, %v4958_v42  ;;  %v684_v62 = vpack.c.bf16 %v672_v50, %v668_v15  ;;  %v4219_v50 = vld [vmem:[%s5971_s3 + $0x1a8] sm:$0xff] }
  0xc1   : > { %v674_v61 = vmax.f32 %v642_v48, 0.0  ;;  %v675_v2 = vmax.f32 %v661_v55, 0.0  ;;  %v4212_v48 = vld [vmem:[%s5971_s3 + $0x170] sm:$0xff] }
  0xc2   : > { %v673_v56 = vmax.f32 %v623_v40, 0.0  ;;  %892 = vmatmul.bf16.vlgmr.msrb.gmra.mxu0 %v684_v62  ;;  %v4217_v62 = vld [vmem:[%s5971_s3 + $0x198] sm:$0xff] }
  0xc3   : > { %v686_v5 = vpack.c.bf16 %v674_v61, %v670_v60  ;;  %v687_v6 = vpack.c.bf16 %v675_v2, %v671_v1  ;;  %v606_v7 = vpop.f32.mrf.mxu0  ;;  %v4210_v60 = vld [vmem:[%s5971_s3 + $0x160] sm:$0xff]  ;;  %v4225_v1 = vld [vmem:[%s5971_s3 + $0x1d8] sm:$0xff] }
  0xc4   : > { %v685_v3 = vpack.c.bf16 %v673_v56, %v669_v16  ;;  %v3335_v16 = vor.u32 %v4168_v13, %v3334_v12  ;;  %v607_v19 = vadd.f32 %v606_v7, %v4956_v41  ;;  %v4226_v61 = vld [vmem:[%s5971_s3 + $0x1e0] sm:$0xff]  ;;  %v4208_v12 = vld [vmem:[%s5971_s3 + $0x150] sm:$0xff] }
  0xc5   : > { %930 = vmatmul.bf16.vlgmr.msrb.gmra.mxu2 %v686_v5  ;;  %949 = vmatmul.bf16.vlgmr.msrb.gmra.mxu3 %v687_v6  ;;  %v4224_v13 = vld [vmem:[%s5971_s3 + $0x1d0] sm:$0xff] }
  0xc6   : > { %911 = vmatmul.bf16.vlgmr.msrb.gmra.mxu1 %v685_v3  ;;  %v644_v9 = vpop.f32.mrf.mxu2  ;;  %v663_v15 = vpop.f32.mrf.mxu3  ;;  %1237 = vmatpush.bf16.msra.mxu0 %v3335_v16  ;;  %v676_v23 = vmax.f32 %v607_v19, 0.0  ;;  %v4207_v16 = vld [vmem:[%s5971_s3 + $0x148] sm:$0xff] }
  0xc7   : > { %v625_v8 = vpop.f32.mrf.mxu1  ;;  %v645_v22 = vadd.f32 %v644_v9, %v5014_v10  ;;  %v664_v26 = vadd.f32 %v663_v15, %v5016_v11  ;;  %1579 = vmatpush.bf16.msrb.mxu3 %v4229_v45  ;;  %v4200_v9 = vld [vmem:[%s5971_s3 + $0x110] sm:$0xff]  ;;  %v4199_v15 = vld [vmem:[%s5971_s3 + $0x108] sm:$0xff] }
  0xc8   : > { %v626_v20 = vadd.f32 %v625_v8, %v4958_v42  ;;  %v4216_v8 = vld [vmem:[%s5971_s3 + $0x190] sm:$0xff]  ;;  %v4257_v45 = vld [vmem:[%s5969_s1 + $0x364] sm:$0xf0] }
  0xc9   : > { %v678_v36 = vmax.f32 %v645_v22, 0.0  ;;  %v679_v39 = vmax.f32 %v664_v26, 0.0  ;;  %v4222_v26 = vld [vmem:[%s5971_s3 + $0x1c0] sm:$0xff] }
  0xca   : > { %v677_v27 = vmax.f32 %v626_v20, 0.0 }
  0xcb   : > { %v608_v21 = vpop.f32.mrf.mxu0  ;;  %1580 = vmatpush.bf16.msrb.mxu3 %v4228_v49  ;;  %v4256_v49 = vld [vmem:[%s5969_s1 + $0x35c] sm:$0xf0] }
  0xcc   : > { %v609_v24 = vadd.f32 %v608_v21, %v4956_v41 }
  0xce   : > { %v646_v28 = vpop.f32.mrf.mxu2  ;;  %v665_v31 = vpop.f32.mrf.mxu3  ;;  %v680_v32 = vmax.f32 %v609_v24, 0.0  ;;  %v4198_v24 = vld [vmem:[%s5971_s3 + $0x100] sm:$0xff] }
  0xcf   : > { %v627_v25 = vpop.f32.mrf.mxu1  ;;  %v647_v30 = vadd.f32 %v646_v28, %v5014_v10  ;;  %v666_v33 = vadd.f32 %v665_v31, %v5016_v11  ;;  %v4205_v10 = vld [vmem:[%s5971_s3 + $0x138] sm:$0xff]  ;;  %1581 = vmatpush.bf16.msrb.mxu3 %v4227_v54  ;;  %v4261_v28 = vld [vmem:[%s5969_s1 + $0x3e4] sm:$0xf0]  ;;  %v4260_v31 = vld [vmem:[%s5969_s1 + $0x3dc] sm:$0xf0] }
  0xd0   : > { %v628_v29 = vadd.f32 %v627_v25, %v4958_v42  ;;  %v688_v38 = vpack.c.bf16 %v680_v32, %v676_v23  ;;  %v4221_v42 = vld [vmem:[%s5971_s3 + $0x1b8] sm:$0xff]  ;;  %1522 = vmatpush.bf16.msrb.mxu0 %v4205_v10  ;;  %v4214_v23 = vld [vmem:[%s5971_s3 + $0x180] sm:$0xff] }
  0xd1   : > { %v682_v37 = vmax.f32 %v647_v30, 0.0  ;;  %v683_v40 = vmax.f32 %v666_v33, 0.0  ;;  %1560 = vmatpush.bf16.msrb.mxu2 %v4221_v42  ;;  %v4213_v11 = vld [vmem:[%s5971_s3 + $0x178] sm:$0xff]  ;;  %v4206_v25 = vld [vmem:[%s5971_s3 + $0x140] sm:$0xff] }
  0xd2   : > { %v681_v35 = vmax.f32 %v628_v29, 0.0  ;;  %897 = vmatmul.bf16.gmra.mxu0 %v688_v38  ;;  %1541 = vmatpush.bf16.msrb.mxu1 %v4213_v11  ;;  %v3702_v29 = vld [vmem:[%s5969_s1 + $0x3a0] sm:$0xf]  ;;  %v4258_v32 = vld [vmem:[%s5969_s1 + $0x3a4] sm:$0xf] }
  0xd3   : > { %v690_v43 = vpack.c.bf16 %v682_v37, %v678_v36  ;;  %v691_v44 = vpack.c.bf16 %v683_v40, %v679_v39  ;;  %1582 = vmatpush.bf16.msrb.mxu3 %v4226_v61  ;;  %v3704_v33 = vld [vmem:[%s5969_s1 + $0x3e0] sm:$0xf0]  ;;  %v3703_v37 = vor.u32 %v4260_v31, %v3702_v29  ;;  %v4259_v39 = vld [vmem:[%s5969_s1 + $0x3ac] sm:$0xf]  ;;  %v3694_v11 = vld [vmem:[%s5969_s1 + $0x328] sm:$0xf] }
  0xd4   : > { %v689_v41 = vpack.c.bf16 %v681_v35, %v677_v27  ;;  %1523 = vmatpush.bf16.msrb.mxu0 %v4204_v47  ;;  %v3710_v27 = vld [vmem:[%s5969_s1 + $0x3a8] sm:$0xf]  ;;  %v3707_v38 = vor.u32 %v4258_v32, %v3704_v33  ;;  %v3712_v40 = vld [vmem:[%s5969_s1 + $0x3e8] sm:$0xf0]  ;;  %v5254_v10 = vld [vmem:[%s5970_s2 + $0x4] sm:$0xf] }
  0xd5   : > { %935 = vmatmul.bf16.gmra.mxu2 %v690_v43  ;;  %954 = vmatmul.bf16.gmra.mxu3 %v691_v44  ;;  %v3711_v30 = vor.u32 %v4261_v28, %v3710_v27  ;;  %v3715_v42 = vor.u32 %v4259_v39, %v3712_v40  ;;  %v4253_v61 = vld [vmem:[%s5969_s1 + $0x2e4] sm:$0xf0]  ;;  %v3656_v28 = vld [vmem:[%s5969_s1 + $0x260] sm:$0xf0]  ;;  %v4247_v29 = vld [vmem:[%s5969_s1 + $0x22c] sm:$0xf] }
  0xd6   : > { %916 = vmatmul.bf16.gmra.mxu1 %v689_v41  ;;  %1561 = vmatpush.bf16.msrb.mxu2 %v4220_v46  ;;  %v3686_v46 = vld [vmem:[%s5969_s1 + $0x320] sm:$0xf]  ;;  %v3664_v33 = vld [vmem:[%s5969_s1 + $0x268] sm:$0xf0] }
  0xd7   : > { %1542 = vmatpush.bf16.msrb.mxu1 %v4212_v48  ;;  %1583 = vmatpush.bf16.msrb.mxu3 %v4225_v1  ;;  %v3695_v48 = vor.u32 %v4257_v45, %v3694_v11  ;;  %v4250_v1 = vld [vmem:[%s5969_s1 + $0x2a4] sm:$0xf]  ;;  %v3638_v39 = vld [vmem:[%s5969_s1 + $0x1a0] sm:$0xf] }
  0xd8   : > { %1524 = vmatpush.bf16.msrb.mxu0 %v4203_v51  ;;  %v3688_v51 = vld [vmem:[%s5969_s1 + $0x360] sm:$0xf0] }
  0xda   : > { %1562 = vmatpush.bf16.msrb.mxu2 %v4219_v50  ;;  %v4254_v50 = vld [vmem:[%s5969_s1 + $0x324] sm:$0xf] }
  0xdb   : > { %1543 = vmatpush.bf16.msrb.mxu1 %v4211_v53  ;;  %1584 = vmatpush.bf16.msrb.mxu3 %v4224_v13  ;;  %v3687_v53 = vor.u32 %v4256_v49, %v3686_v46  ;;  %v3691_v54 = vor.u32 %v4254_v50, %v3688_v51  ;;  %v4243_v49 = vld [vmem:[%s5969_s1 + $0x1ac] sm:$0xf]  ;;  %v3630_v51 = vld [vmem:[%s5969_s1 + $0x128] sm:$0xf] }
  0xdc   : > { %1525 = vmatpush.bf16.msrb.mxu0 %v4202_v59  ;;  %v5289_v59 = vperm.slane %v5254_v10, 1  ;;  %v3648_v50 = vld [vmem:[%s5969_s1 + $0x1e8] sm:$0xf0] }
  0xde   : > { %1563 = vmatpush.bf16.msrb.mxu2 %v4218_v58  ;;  %v5286_v58 = vperm.slane %v5254_v10, 0 }
  0xdf   : > { %1544 = vmatpush.bf16.msrb.mxu1 %v4210_v60  ;;  %1585 = vmatpush.bf16.msrb.mxu3 %v4223_v17 }
  0xe0   : > { %1526 = vmatpush.bf16.msrb.mxu0 %v4201_v63  ;;  %v3670_v63 = vld [vmem:[%s5969_s1 + $0x2a0] sm:$0xf] }
  0xe2   : > { %1238 = vmatmul.bf16.vlgmr.msra.gmra.mxu0 %v4780_v34  ;;  %1564 = vmatpush.bf16.msrb.mxu2 %v4217_v62 }
  0xe3   : > { %1545 = vmatpush.bf16.msrb.mxu1 %v4209_v0  ;;  %1586 = vmatpush.bf16.msrb.mxu3 %v4222_v26  ;;  %v4252_v0 = vld [vmem:[%s5969_s1 + $0x2dc] sm:$0xf0]  ;;  %v4246_v26 = vld [vmem:[%s5969_s1 + $0x224] sm:$0xf] }
  0xe4   : > { %1527 = vmatpush.bf16.msrb.mxu0 %v4200_v9  ;;  %v3659_v32 = vor.u32 %v4246_v26, %v3656_v28  ;;  %v3608_v26 = vld [vmem:[%s5969_s1 + $0xe0] sm:$0xf0] }
  0xe5   : > { %1276 = vmatmul.bf16.vlgmr.msra.gmra.mxu2 %v4780_v34  ;;  %1295 = vmatmul.bf16.vlgmr.msra.gmra.mxu3 %v4780_v34 }
  0xe6   : > { %1257 = vmatmul.bf16.vlgmr.msra.gmra.mxu1 %v4780_v34  ;;  %1565 = vmatpush.bf16.msrb.mxu2 %v4216_v8  ;;  %v3680_v8 = vld [vmem:[%s5969_s1 + $0x2e8] sm:$0xf0] }
  0xe7   : > { %1546 = vmatpush.bf16.msrb.mxu1 %v4208_v12  ;;  %1925 = vmatpush.bf16.msra.mxu3 %v3715_v42  ;;  %v3640_v42 = vld [vmem:[%s5969_s1 + $0x1e0] sm:$0xf0] }
  0xe8   : > { %1528 = vmatpush.bf16.msrb.mxu0 %v4199_v15 }
  0xea   : > { %1566 = vmatpush.bf16.msrb.mxu2 %v4215_v14 }
  0xeb   : > { %1547 = vmatpush.bf16.msrb.mxu1 %v4207_v16 }
  0xec   : > { %1529 = vmatpush.bf16.msrb.mxu0 %v4198_v24 }
  0xee   : > { %1567 = vmatpush.bf16.msrb.mxu2 %v4214_v23  ;;  %v3654_v23 = vld [vmem:[%s5969_s1 + $0x220] sm:$0xf] }
  0xef   : > { %1548 = vmatpush.bf16.msrb.mxu1 %v4206_v25  ;;  %v4248_v25 = vld [vmem:[%s5969_s1 + $0x25c] sm:$0xf0] }
  0xf0   : > { %1868 = vmatpush.bf16.msra.mxu0 %v3703_v37  ;;  %v3655_v27 = vor.u32 %v4248_v25, %v3654_v23  ;;  %v3646_v37 = vld [vmem:[%s5969_s1 + $0x1a8] sm:$0xf]  ;;  %v4236_v25 = vld [vmem:[%s5969_s1 + $0xdc] sm:$0xf0] }
  0xf2   : > { %1243 = vmatmul.bf16.gmra.mxu0 %v4827_v52  ;;  %1906 = vmatpush.bf16.msra.mxu2 %v3711_v30 }
  0xf3   : > { %1887 = vmatpush.bf16.msra.mxu1 %v3707_v38  ;;  %v4245_v38 = vld [vmem:[%s5969_s1 + $0x1e4] sm:$0xf0] }
  0xf4   : > { %1869 = vmatpush.bf16.msra.mxu0 %v3687_v53  ;;  %v3647_v40 = vor.u32 %v4245_v38, %v3646_v37  ;;  %v3590_v37 = vld [vmem:[%s5969_s1 + $0x20] sm:$0xf] }
  0xf5   : > { %1281 = vmatmul.bf16.gmra.mxu2 %v4827_v52  ;;  %1300 = vmatmul.bf16.gmra.mxu3 %v4827_v52  ;;  %v4232_v38 = vld [vmem:[%s5969_s1 + $0x5c] sm:$0xf0] }
  0xf6   : > { %1262 = vmatmul.bf16.gmra.mxu1 %v4827_v52  ;;  %1907 = vmatpush.bf16.msra.mxu2 %v3695_v48 }
  0xf7   : > { %1888 = vmatpush.bf16.msra.mxu1 %v3691_v54 }
 0x13f   : > { %v893_v55 = vpop.f32.mrf.mxu0 }
 0x143   : > { %v912_v56 = vpop.f32.mrf.mxu1 }
 0x144   : > { %v913_v57 = vadd.f32 %v912_v56, %v893_v55  ;;  %v4255_v55 = vld [vmem:[%s5969_s1 + $0x32c] sm:$0xf] }
 0x145   : > { %v3696_v56 = vld [vmem:[%s5969_s1 + $0x368] sm:$0xf0] }
 0x146   : > { %v3699_v60 = vor.u32 %v4255_v55, %v3696_v56  ;;  %v3651_v56 = vor.u32 %v4243_v49, %v3648_v50 }
 0x147   : > { %v5177_v3 = vpop.f32.mrf.mxu0 }
 0x148   : > { %v931_v2 = vpop.f32.mrf.mxu2  ;;  %v950_v5 = vpop.f32.mrf.mxu3  ;;  %1926 = vmatpush.bf16.msra.mxu3 %v3699_v60  ;;  %v3622_v60 = vld [vmem:[%s5969_s1 + $0x120] sm:$0xf] }
 0x149   : > { %v932_v4 = vadd.f32 %v931_v2, %v913_v57  ;;  %v3678_v57 = vld [vmem:[%s5969_s1 + $0x2a8] sm:$0xf]  ;;  %v3671_v2 = vor.u32 %v4252_v0, %v3670_v63 }
 0x14a   : > { %v3679_v62 = vor.u32 %v4253_v61, %v3678_v57  ;;  %v4241_v57 = vld [vmem:[%s5969_s1 + $0x164] sm:$0xf0]  ;;  %v4240_v61 = vld [vmem:[%s5969_s1 + $0x15c] sm:$0xf0] }
 0x14b   : > { %v5179_v6 = vpop.f32.mrf.mxu1  ;;  %v5181_v7 = vadd.f32 %v950_v5, %v932_v4  ;;  %v3672_v4 = vld [vmem:[%s5969_s1 + $0x2e0] sm:$0xf0]  ;;  %v4251_v5 = vld [vmem:[%s5969_s1 + $0x2ac] sm:$0xf]  ;;  %1870 = vmatpush.bf16.msra.mxu0 %v3671_v2  ;;  %v3631_v63 = vor.u32 %v4241_v57, %v3630_v51  ;;  %v3623_v0 = vor.u32 %v4240_v61, %v3622_v60  ;;  %v3591_v51 = vor.u32 %v4232_v38, %v3590_v37  ;;  %v4268_v37 = vld [vmem:[%s5971_s3 + $0x230] sm:$0xff] }
 0x14c   : > { %v3675_v13 = vor.u32 %v4250_v1, %v3672_v4  ;;  %v3683_v14 = vor.u32 %v4251_v5, %v3680_v8  ;;  %1908 = vmatpush.bf16.msra.mxu2 %v3679_v62  ;;  %v4238_v1 = vld [vmem:[%s5969_s1 + $0x124] sm:$0xf]  ;;  %v4239_v4 = vld [vmem:[%s5969_s1 + $0x12c] sm:$0xf]  ;;  %v5396_v5 = vperm.slane %v5254_v10, 2  ;;  %v4276_v38 = vld [vmem:[%s5971_s3 + $0x270] sm:$0xff] }
 0x14d   : > { %v3624_v2 = vld [vmem:[%s5969_s1 + $0x160] sm:$0xf0] }
 0x14e   : > { %1889 = vmatpush.bf16.msra.mxu1 %v3675_v13  ;;  %1927 = vmatpush.bf16.msra.mxu3 %v3683_v14  ;;  %v3632_v13 = vld [vmem:[%s5969_s1 + $0x168] sm:$0xf0]  ;;  %v3614_v14 = vld [vmem:[%s5969_s1 + $0xa8] sm:$0xf] }
 0x14f   : > { %v898_v19 = vpop.f32.mrf.mxu0  ;;  %1871 = vmatpush.bf16.msra.mxu0 %v3655_v27 }
 0x150   : > { %v5207_v18 = vpop.f32.mrf.mxu2  ;;  %v5209_v20 = vpop.f32.mrf.mxu3 }
 0x152   : > { %1890 = vmatpush.bf16.msra.mxu1 %v3659_v32  ;;  %v3598_v32 = vld [vmem:[%s5969_s1 + $0x28] sm:$0xf] }
 0x153   : > { %v917_v21 = vpop.f32.mrf.mxu1 }
 0x154   : > { %v918_v22 = vadd.f32 %v917_v21, %v898_v19  ;;  %v3662_v21 = vld [vmem:[%s5969_s1 + $0x228] sm:$0xf] }
 0x157   : > { %v5241_v36 = vpop.f32.mrf.mxu0 }
 0x158   : > { %v936_v35 = vpop.f32.mrf.mxu2  ;;  %v955_v43 = vpop.f32.mrf.mxu3 }
 0x159   : > { %v937_v41 = vadd.f32 %v936_v35, %v918_v22  ;;  %v4249_v22 = vld [vmem:[%s5969_s1 + $0x264] sm:$0xf0]  ;;  %v3667_v35 = vor.u32 %v4247_v29, %v3664_v33  ;;  %v4235_v29 = vld [vmem:[%s5969_s1 + $0xac] sm:$0xf] }
 0x15a   : > { %v3663_v24 = vor.u32 %v4249_v22, %v3662_v21  ;;  %v4237_v21 = vld [vmem:[%s5969_s1 + $0xe4] sm:$0xf0]  ;;  %v3606_v22 = vld [vmem:[%s5969_s1 + $0xa0] sm:$0xf] }
 0x15b   : > { %v5249_v44 = vpop.f32.mrf.mxu1  ;;  %v5265_v47 = vadd.f32 %v955_v43, %v937_v41  ;;  %v4244_v41 = vld [vmem:[%s5969_s1 + $0x1dc] sm:$0xf0]  ;;  %v4242_v43 = vld [vmem:[%s5969_s1 + $0x1a4] sm:$0xf]  ;;  %1928 = vmatpush.bf16.msra.mxu3 %v3667_v35  ;;  %v3607_v28 = vor.u32 %v4236_v25, %v3606_v22 }
 0x15c   : > { %1909 = vmatpush.bf16.msra.mxu2 %v3663_v24  ;;  %v3639_v46 = vor.u32 %v4244_v41, %v3638_v39  ;;  %v3643_v48 = vor.u32 %v4242_v43, %v3640_v42  ;;  %v3615_v24 = vor.u32 %v4237_v21, %v3614_v14  ;;  %v4230_v42 = vld [vmem:[%s5969_s1 + $0x24] sm:$0xf] }
 0x15e   : > { %1872 = vmatpush.bf16.msra.mxu0 %v3639_v46  ;;  %1891 = vmatpush.bf16.msra.mxu1 %v3643_v48 }
 0x15f   : > { %v1239_v12 = vpop.f32.mrf.mxu0  ;;  %1929 = vmatpush.bf16.msra.mxu3 %v3651_v56 }
 0x160   : > { %v5312_v9 = vpop.f32.mrf.mxu2  ;;  %v5314_v15 = vpop.f32.mrf.mxu3  ;;  %v5317_v16 = vadd.f32 %v1239_v12, %v5286_v58  ;;  %1910 = vmatpush.bf16.msra.mxu2 %v3647_v40  ;;  %v3627_v12 = vor.u32 %v4238_v1, %v3624_v2 }
 0x162   : > { %v1306_v30 = vmax.f32 %v5317_v16, 0.0  ;;  %v5405_v16 = vperm.slane %v5254_v10, 3  ;;  %v4234_v10 = vld [vmem:[%s5969_s1 + $0xa4] sm:$0xf]  ;;  %1873 = vmatpush.bf16.msra.mxu0 %v3623_v0  ;;  %1892 = vmatpush.bf16.msra.mxu1 %v3627_v12 }
 0x163   : > { %v1258_v17 = vpop.f32.mrf.mxu1  ;;  %v3611_v35 = vor.u32 %v4234_v10, %v3608_v26 }
 0x164   : > { %v5320_v19 = vadd.f32 %v1258_v17, %v5289_v59  ;;  %1911 = vmatpush.bf16.msra.mxu2 %v3631_v63 }
 0x166   : > { %v1307_v31 = vmax.f32 %v5320_v19, 0.0  ;;  %v3635_v19 = vor.u32 %v4239_v4, %v3632_v13  ;;  %1874 = vmatpush.bf16.msra.mxu0 %v3607_v28  ;;  %1893 = vmatpush.bf16.msra.mxu1 %v3611_v35 }
 0x167   : > { %v1241_v45 = vpop.f32.mrf.mxu0 }
 0x168   : > { %v1277_v11 = vpop.f32.mrf.mxu2  ;;  %v1296_v53 = vpop.f32.mrf.mxu3  ;;  %v1242_v54 = vadd.f32 %v1241_v45, %v5286_v58  ;;  %1930 = vmatpush.bf16.msra.mxu3 %v3635_v19  ;;  %1912 = vmatpush.bf16.msra.mxu2 %v3615_v24 }
 0x169   : > { %v1278_v33 = vadd.f32 %v1277_v11, %v5396_v5  ;;  %v1297_v39 = vadd.f32 %v1296_v53, %v5405_v16  ;;  %v3592_v11 = vld [vmem:[%s5969_s1 + $0x60] sm:$0xf0]  ;;  %v4231_v53 = vld [vmem:[%s5969_s1 + $0x2c] sm:$0xf] }
 0x16a   : > { %v1310_v8 = vmax.f32 %v1242_v54, 0.0  ;;  %v3600_v54 = vld [vmem:[%s5969_s1 + $0x68] sm:$0xf0]  ;;  %v3595_v57 = vor.u32 %v4230_v42, %v3592_v11  ;;  %1875 = vmatpush.bf16.msra.mxu0 %v3591_v51 }
 0x16b   : > { %v1260_v55 = vpop.f32.mrf.mxu1  ;;  %v1309_v60 = vmax.f32 %v1297_v39, 0.0  ;;  %v3603_v0 = vor.u32 %v4231_v53, %v3600_v54  ;;  %v4285_v39 = vld [vmem:[%s5971_s3 + $0x2b8] sm:$0xff]  ;;  %v4283_v51 = vld [vmem:[%s5971_s3 + $0x2a8] sm:$0xff] }
 0x16c   : > { %v1261_v62 = vadd.f32 %v1260_v55, %v5289_v59  ;;  %v1322_v23 = vpack.c.bf16 %v1310_v8, %v1306_v30  ;;  %v3616_v30 = vld [vmem:[%s5969_s1 + $0xe8] sm:$0xf0]  ;;  %v1308_v55 = vmax.f32 %v1278_v33, 0.0  ;;  %1894 = vmatpush.bf16.msra.mxu1 %v3595_v57  ;;  %v4265_v54 = vld [vmem:[%s5971_s3 + $0x218] sm:$0xff]  ;;  %v5523_v57 = vld [vmem:[%s5972_s4] ss:$0 sm:$0xff] }
 0x16d   : > { %v3619_v43 = vor.u32 %v4235_v29, %v3616_v30  ;;  %v4291_v53 = vld [vmem:[%s5971_s3 + $0x2e8] sm:$0xff] }
 0x16e   : > { %v1311_v17 = vmax.f32 %v1261_v62, 0.0  ;;  %1530 = vmatmul.bf16.vlgmr.msrb.gmra.mxu0 %v1322_v23 }
 0x16f   : > { %v1244_v41 = vpop.f32.mrf.mxu0  ;;  %1931 = vmatpush.bf16.msra.mxu3 %v3619_v43  ;;  %v4275_v43 = vld [vmem:[%s5971_s3 + $0x268] sm:$0xff] }
 0x170   : > { %v1323_v27 = vpack.c.bf16 %v1311_v17, %v1307_v31  ;;  %v4233_v31 = vld [vmem:[%s5969_s1 + $0x64] sm:$0xf0]  ;;  %v1279_v40 = vpop.f32.mrf.mxu2  ;;  %v1298_v46 = vpop.f32.mrf.mxu3  ;;  %v1245_v63 = vadd.f32 %v1244_v41, %v5286_v58 }
 0x171   : > { %v1280_v45 = vadd.f32 %v1279_v40, %v5396_v5  ;;  %v3599_v49 = vor.u32 %v4233_v31, %v3598_v32  ;;  %v1299_v50 = vadd.f32 %v1298_v46, %v5405_v16  ;;  %v4293_v40 = vld [vmem:[%s5971_s3 + $0x2f8] sm:$0xff]  ;;  %v4267_v41 = vld [vmem:[%s5971_s3 + $0x228] sm:$0xff]  ;;  %v4292_v46 = vld [vmem:[%s5971_s3 + $0x2f0] sm:$0xff] }
 0x172   : > { %1549 = vmatmul.bf16.vlgmr.msrb.gmra.mxu1 %v1323_v27  ;;  %v1314_v12 = vmax.f32 %v1245_v63, 0.0 }
 0x173   : > { %v1263_v48 = vpop.f32.mrf.mxu1  ;;  %v1312_v56 = vmax.f32 %v1280_v45, 0.0  ;;  %v1313_v61 = vmax.f32 %v1299_v50, 0.0  ;;  %1913 = vmatpush.bf16.msra.mxu2 %v3599_v49  ;;  %1932 = vmatpush.bf16.msra.mxu3 %v3603_v0  ;;  %v4284_v45 = vld [vmem:[%s5971_s3 + $0x2b0] sm:$0xff]  ;;  %v4266_v49 = vld [vmem:[%s5971_s3 + $0x220] sm:$0xff] }
 0x174   : > { %v1264_v2 = vadd.f32 %v1263_v48, %v5289_v59  ;;  %v4274_v50 = vld [vmem:[%s5971_s3 + $0x260] sm:$0xff]  ;;  %v4264_v0 = vld [vmem:[%s5971_s3 + $0x210] sm:$0xff] }
 0x175   : > { %v1324_v62 = vpack.c.bf16 %v1312_v56, %v1308_v55  ;;  %v1325_v1 = vpack.c.bf16 %v1313_v61, %v1309_v60  ;;  %v4273_v55 = vld [vmem:[%s5971_s3 + $0x258] sm:$0xff]  ;;  %v4282_v61 = vld [vmem:[%s5971_s3 + $0x2a0] sm:$0xff] }
 0x176   : > { %v1315_v19 = vmax.f32 %v1264_v2, 0.0  ;;  %v4281_v2 = vld [vmem:[%s5971_s3 + $0x298] sm:$0xff] }
 0x177   : > { %1568 = vmatmul.bf16.vlgmr.msrb.gmra.mxu2 %v1324_v62  ;;  %1587 = vmatmul.bf16.vlgmr.msrb.gmra.mxu3 %v1325_v1  ;;  %v1246_v8 = vpop.f32.mrf.mxu0  ;;  %v4290_v62 = vld [vmem:[%s5971_s3 + $0x2e0] sm:$0xff]  ;;  %v4272_v1 = vld [vmem:[%s5971_s3 + $0x250] sm:$0xff] }
 0x178   : > { %v1282_v4 = vpop.f32.mrf.mxu2  ;;  %v1301_v13 = vpop.f32.mrf.mxu3  ;;  %v1247_v14 = vadd.f32 %v1246_v8, %v5286_v58  ;;  %2198 = vmatpush.bf16.msrb.mxu2 %v4285_v39  ;;  %2217 = vmatpush.bf16.msrb.mxu3 %v4293_v40 }
 0x179   : > { %v1283_v10 = vadd.f32 %v1282_v4, %v5396_v5  ;;  %v1302_v26 = vadd.f32 %v1301_v13, %v5405_v16  ;;  %v4401_v4 = vld [vmem:[%s4740_s21] sm:$0xff] }
 0x17a   : > { %v1318_v22 = vmax.f32 %v1247_v14, 0.0  ;;  %v322_v8 = vadd.f32 %v4401_v4, %v5523_v57  ;;  %v4316_v4 = vld [vmem:[%s5969_s1 + $0x2ec] sm:$0xf0] }
 0x17b   : > { %v1265_v17 = vpop.f32.mrf.mxu1  ;;  %v1316_v30 = vmax.f32 %v1283_v10, 0.0  ;;  %v1317_v33 = vmax.f32 %v1302_v26, 0.0  ;;  %v4280_v10 = vld [vmem:[%s5971_s3 + $0x290] sm:$0xff] }
 0x17c   : > { %v1266_v21 = vadd.f32 %v1265_v17, %v5289_v59  ;;  %v1326_v24 = vpack.c.bf16 %v1318_v22, %v1314_v12  ;;  %2199 = vmatpush.bf16.msrb.mxu2 %v4284_v45  ;;  %2218 = vmatpush.bf16.msrb.mxu3 %v4292_v46  ;;  %v4289_v12 = vld [vmem:[%s5971_s3 + $0x2d8] sm:$0xff]  ;;  %v4288_v26 = vld [vmem:[%s5971_s3 + $0x2d0] sm:$0xff] }
 0x17d   : > { %v3942_v45 = vld [vmem:[%s5969_s1 + $0x330] sm:$0xf] }
 0x17e   : > { %v1319_v23 = vmax.f32 %v1266_v21, 0.0  ;;  %1535 = vmatmul.bf16.gmra.mxu0 %v1326_v24  ;;  %v4271_v21 = vld [vmem:[%s5971_s3 + $0x248] sm:$0xff]  ;;  %v4320_v46 = vld [vmem:[%s5969_s1 + $0x36c] sm:$0xf0] }
 0x180   : > { %v1327_v25 = vpack.c.bf16 %v1319_v23, %v1315_v19  ;;  %v1284_v27 = vpop.f32.mrf.mxu2  ;;  %v1303_v29 = vpop.f32.mrf.mxu3  ;;  %2200 = vmatpush.bf16.msrb.mxu2 %v4283_v51  ;;  %2219 = vmatpush.bf16.msrb.mxu3 %v4291_v53  ;;  %v4263_v19 = vld [vmem:[%s5971_s3 + $0x208] sm:$0xff]  ;;  %v960_v23 = vadd.f32 %v5181_v7, %v322_v8  ;;  %v4270_v7 = vld [vmem:[%s5971_s3 + $0x240] sm:$0xff]  ;;  %v3966_v53 = vld [vmem:[%s5969_s1 + $0x3b8] sm:$0xf] }
 0x181   : > { %v1285_v28 = vadd.f32 %v1284_v27, %v5396_v5  ;;  %v1304_v58 = vadd.f32 %v1303_v29, %v5405_v16  ;;  %v4269_v5 = vld [vmem:[%s5971_s3 + $0x238] sm:$0xff]  ;;  %v4314_v8 = vld [vmem:[%s5969_s1 + $0x2b4] sm:$0xf] }
 0x182   : > { %1554 = vmatmul.bf16.gmra.mxu1 %v1327_v25  ;;  %v4277_v16 = vld [vmem:[%s5971_s3 + $0x278] sm:$0xff]  ;;  %2160 = vmatpush.bf16.msrb.mxu0 %v4269_v5 }
 0x183   : > { %v1320_v32 = vmax.f32 %v1285_v28, 0.0  ;;  %v1321_v59 = vmax.f32 %v1304_v58, 0.0  ;;  %2179 = vmatpush.bf16.msrb.mxu1 %v4277_v16  ;;  %v4262_v28 = vld [vmem:[%s5971_s3 + $0x200] sm:$0xff]  ;;  %v4279_v58 = vld [vmem:[%s5971_s3 + $0x288] sm:$0xff] }
 0x184   : > { %2201 = vmatpush.bf16.msrb.mxu2 %v4282_v61  ;;  %2220 = vmatpush.bf16.msrb.mxu3 %v4290_v62  ;;  %v5620_v61 = vld [vmem:[%s5970_s2 + $0x8] sm:$0xf] }
 0x185   : > { %v1328_v35 = vpack.c.bf16 %v1320_v32, %v1316_v30  ;;  %v1329_v31 = vpack.c.bf16 %v1321_v59, %v1317_v33  ;;  %v4287_v30 = vld [vmem:[%s5971_s3 + $0x2c8] sm:$0xff]  ;;  %v3958_v33 = vld [vmem:[%s5969_s1 + $0x3b0] sm:$0xf] }
 0x186   : > { %2161 = vmatpush.bf16.msrb.mxu0 %v4268_v37  ;;  %v4324_v59 = vld [vmem:[%s5969_s1 + $0x3ec] sm:$0xf0]  ;;  %v3960_v37 = vld [vmem:[%s5969_s1 + $0x3f0] sm:$0xf0] }
 0x187   : > { %1573 = vmatmul.bf16.gmra.mxu2 %v1328_v35  ;;  %1592 = vmatmul.bf16.gmra.mxu3 %v1329_v31  ;;  %v4322_v35 = vld [vmem:[%s5969_s1 + $0x3b4] sm:$0xf]  ;;  %v3959_v16 = vor.u32 %v4324_v59, %v3958_v33 }
 0x188   : > { %2180 = vmatpush.bf16.msrb.mxu1 %v4276_v38  ;;  %2202 = vmatpush.bf16.msrb.mxu2 %v4281_v2  ;;  %v3963_v39 = vor.u32 %v4322_v35, %v3960_v37  ;;  %v3926_v2 = vld [vmem:[%s5969_s1 + $0x2b0] sm:$0xf]  ;;  %v4310_v33 = vld [vmem:[%s5969_s1 + $0x234] sm:$0xf] }
 0x189   : > { %2221 = vmatpush.bf16.msrb.mxu3 %v4289_v12 }
 0x18a   : > { %2162 = vmatpush.bf16.msrb.mxu0 %v4267_v41 }
 0x18c   : > { %2181 = vmatpush.bf16.msrb.mxu1 %v4275_v43  ;;  %2203 = vmatpush.bf16.msrb.mxu2 %v4280_v10  ;;  %v4278_v43 = vld [vmem:[%s5971_s3 + $0x280] sm:$0xff] }
 0x18d   : > { %2222 = vmatpush.bf16.msrb.mxu3 %v4288_v26 }
 0x18e   : > { %1876 = vmatmul.bf16.vlgmr.msra.gmra.mxu0 %v4780_v34 }
 0x18f   : > { %2163 = vmatpush.bf16.msrb.mxu0 %v4266_v49  ;;  %v3943_v49 = vor.u32 %v4320_v46, %v3942_v45 }
 0x190   : > { %2182 = vmatpush.bf16.msrb.mxu1 %v4274_v50  ;;  %2204 = vmatpush.bf16.msrb.mxu2 %v4279_v58  ;;  %v3944_v50 = vld [vmem:[%s5969_s1 + $0x370] sm:$0xf0]  ;;  %v3952_v58 = vld [vmem:[%s5969_s1 + $0x378] sm:$0xf0] }
 0x191   : > { %2223 = vmatpush.bf16.msrb.mxu3 %v4287_v30 }
 0x192   : > { %1895 = vmatmul.bf16.vlgmr.msra.gmra.mxu1 %v4780_v34 }
 0x193   : > { %2164 = vmatpush.bf16.msrb.mxu0 %v4265_v54  ;;  %v4325_v54 = vld [vmem:[%s5969_s1 + $0x3f4] sm:$0xf0] }
 0x194   : > { %2183 = vmatpush.bf16.msrb.mxu1 %v4273_v55  ;;  %2205 = vmatpush.bf16.msrb.mxu2 %v4278_v43  ;;  %v4323_v55 = vld [vmem:[%s5969_s1 + $0x3bc] sm:$0xf]  ;;  %v3967_v62 = vor.u32 %v4325_v54, %v3966_v53 }
 0x197   : > { %1914 = vmatmul.bf16.vlgmr.msra.gmra.mxu2 %v4780_v34  ;;  %1933 = vmatmul.bf16.vlgmr.msra.gmra.mxu3 %v4780_v34 }
 0x198   : > { %2165 = vmatpush.bf16.msrb.mxu0 %v4264_v0  ;;  %2184 = vmatpush.bf16.msrb.mxu1 %v4272_v1 }
 0x199   : > { %2544 = vmatpush.bf16.msra.mxu2 %v3967_v62 }
 0x19c   : > { %2166 = vmatpush.bf16.msrb.mxu0 %v4263_v19  ;;  %2185 = vmatpush.bf16.msrb.mxu1 %v4271_v21  ;;  %v3928_v19 = vld [vmem:[%s5969_s1 + $0x2f0] sm:$0xf0] }
 0x19e   : > { %1881 = vmatmul.bf16.gmra.mxu0 %v4827_v52 }
 0x1a0   : > { %2167 = vmatpush.bf16.msrb.mxu0 %v4262_v28  ;;  %2186 = vmatpush.bf16.msrb.mxu1 %v4270_v7 }
 0x1a2   : > { %1900 = vmatmul.bf16.gmra.mxu1 %v4827_v52 }
 0x1a4   : > { %2506 = vmatpush.bf16.msra.mxu0 %v3959_v16  ;;  %2525 = vmatpush.bf16.msra.mxu1 %v3963_v39  ;;  %v3934_v16 = vld [vmem:[%s5969_s1 + $0x2b8] sm:$0xf]  ;;  %v4315_v39 = vld [vmem:[%s5969_s1 + $0x2bc] sm:$0xf] }
 0x1a7   : > { %1919 = vmatmul.bf16.gmra.mxu2 %v4827_v52  ;;  %1938 = vmatmul.bf16.gmra.mxu3 %v4827_v52 }
 0x1a8   : > { %2507 = vmatpush.bf16.msra.mxu0 %v3943_v49  ;;  %v4308_v49 = vld [vmem:[%s5969_s1 + $0x1ec] sm:$0xf0] }
 0x1eb   : > { %v1531_v42 = vpop.f32.mrf.mxu0 }
 0x1ef   : > { %v1550_v11 = vpop.f32.mrf.mxu1 }
 0x1f0   : > { %v1551_v48 = vadd.f32 %v1550_v11, %v1531_v42  ;;  %v4286_v42 = vld [vmem:[%s5971_s3 + $0x2c0] sm:$0xff] }
 0x1f1   : > { %2224 = vmatpush.bf16.msrb.mxu3 %v4286_v42  ;;  %v3936_v42 = vld [vmem:[%s5969_s1 + $0x2f8] sm:$0xf0] }
 0x1f2   : > { %v3939_v46 = vor.u32 %v4315_v39, %v3936_v42  ;;  %v3886_v42 = vld [vmem:[%s5969_s1 + $0x138] sm:$0xf] }
 0x1f3   : > { %v1533_v56 = vpop.f32.mrf.mxu0 }
 0x1f7   : > { %v1552_v60 = vpop.f32.mrf.mxu1 }
 0x1f8   : > { %v1553_v63 = vadd.f32 %v1552_v60, %v1533_v56  ;;  %v4402_v56 = vld [vmem:[%s4740_s21 + $0x10] sm:$0xff] }
 0x1f9   : > { %v324_v60 = vadd.f32 %v4402_v56, %v5523_v57  ;;  %v3896_v56 = vld [vmem:[%s5969_s1 + $0x1f0] sm:$0xf0] }
 0x1fa   : > { %v1569_v13 = vpop.f32.mrf.mxu2  ;;  %v1588_v17 = vpop.f32.mrf.mxu3 }
 0x1fb   : > { %v1570_v14 = vadd.f32 %v1569_v13, %v1551_v48  ;;  %v1536_v22 = vpop.f32.mrf.mxu0  ;;  %v4318_v48 = vld [vmem:[%s5969_s1 + $0x334] sm:$0xf]  ;;  %v962_v10 = vadd.f32 %v5265_v47, %v324_v60  ;;  %v4312_v47 = vld [vmem:[%s5969_s1 + $0x26c] sm:$0xf0] }
 0x1fc   : > { %v3947_v51 = vor.u32 %v4318_v48, %v3944_v50  ;;  %v3894_v48 = vld [vmem:[%s5969_s1 + $0x1b0] sm:$0xf]  ;;  %v4306_v50 = vld [vmem:[%s5969_s1 + $0x1b4] sm:$0xf] }
 0x1fd   : > { %v1589_v24 = vadd.f32 %v1588_v17, %v1570_v14  ;;  %v5635_v14 = vperm.slane %v5620_v61, 0  ;;  %v3927_v17 = vor.u32 %v4316_v4, %v3926_v2  ;;  %v3899_v62 = vor.u32 %v4306_v50, %v3896_v56  ;;  %v4303_v50 = vld [vmem:[%s5969_s1 + $0x13c] sm:$0xf] }
 0x1fe   : > { %2526 = vmatpush.bf16.msra.mxu1 %v3947_v51 }
 0x1ff   : > { %v1555_v25 = vpop.f32.mrf.mxu1  ;;  %v5564_v29 = vadd.f32 %v1589_v24, %v960_v23  ;;  %v3950_v23 = vld [vmem:[%s5969_s1 + $0x338] sm:$0xf]  ;;  %2508 = vmatpush.bf16.msra.mxu0 %v3927_v17 }
 0x200   : > { %v1556_v27 = vadd.f32 %v1555_v25, %v1536_v22  ;;  %v3931_v22 = vor.u32 %v4314_v8, %v3928_v19  ;;  %v4321_v24 = vld [vmem:[%s5969_s1 + $0x374] sm:$0xf0]  ;;  %v4319_v25 = vld [vmem:[%s5969_s1 + $0x33c] sm:$0xf] }
 0x201   : > { %v3951_v7 = vor.u32 %v4321_v24, %v3950_v23  ;;  %v3955_v30 = vor.u32 %v4319_v25, %v3952_v58  ;;  %v4302_v23 = vld [vmem:[%s5969_s1 + $0x134] sm:$0xf]  ;;  %v4309_v58 = vld [vmem:[%s5969_s1 + $0x1f4] sm:$0xf0] }
 0x202   : > { %v1571_v32 = vpop.f32.mrf.mxu2  ;;  %v1590_v5 = vpop.f32.mrf.mxu3  ;;  %2527 = vmatpush.bf16.msra.mxu1 %v3931_v22  ;;  %v4304_v22 = vld [vmem:[%s5969_s1 + $0x16c] sm:$0xf0] }
 0x203   : > { %v1572_v31 = vadd.f32 %v1571_v32, %v1553_v63  ;;  %v1538_v38 = vpop.f32.mrf.mxu0  ;;  %v3968_v63 = vld [vmem:[%s5969_s1 + $0x3f8] sm:$0xf0]  ;;  %v3910_v32 = vld [vmem:[%s5969_s1 + $0x230] sm:$0xf]  ;;  %2545 = vmatpush.bf16.msra.mxu2 %v3951_v7  ;;  %v3902_v7 = vld [vmem:[%s5969_s1 + $0x1b8] sm:$0xf] }
 0x204   : > { %v3971_v1 = vor.u32 %v4323_v55, %v3968_v63  ;;  %v3895_v55 = vor.u32 %v4308_v49, %v3894_v48  ;;  %v3918_v63 = vld [vmem:[%s5969_s1 + $0x238] sm:$0xf] }
 0x205   : > { %v5584_v40 = vadd.f32 %v1590_v5, %v1572_v31  ;;  %v3911_v31 = vor.u32 %v4312_v47, %v3910_v32  ;;  %v3912_v5 = vld [vmem:[%s5969_s1 + $0x270] sm:$0xf0]  ;;  %v3903_v32 = vor.u32 %v4309_v58, %v3902_v7  ;;  %v4307_v47 = vld [vmem:[%s5969_s1 + $0x1bc] sm:$0xf] }
 0x206   : > { %2563 = vmatpush.bf16.msra.mxu3 %v3971_v1  ;;  %v3915_v37 = vor.u32 %v4310_v33, %v3912_v5  ;;  %v3904_v33 = vld [vmem:[%s5969_s1 + $0x1f8] sm:$0xf0] }
 0x207   : > { %v1557_v41 = vpop.f32.mrf.mxu1  ;;  %2509 = vmatpush.bf16.msra.mxu0 %v3911_v31  ;;  %v3907_v5 = vor.u32 %v4307_v47, %v3904_v33 }
 0x208   : > { %v5592_v11 = vadd.f32 %v1557_v41, %v1538_v38  ;;  %v4317_v38 = vld [vmem:[%s5969_s1 + $0x2f4] sm:$0xf0]  ;;  %2528 = vmatpush.bf16.msra.mxu1 %v3915_v37  ;;  %v4300_v37 = vld [vmem:[%s5969_s1 + $0xec] sm:$0xf0] }
 0x209   : > { %v3935_v43 = vor.u32 %v4317_v38, %v3934_v16  ;;  %v3862_v16 = vld [vmem:[%s5969_s1 + $0xb0] sm:$0xf]  ;;  %v4298_v38 = vld [vmem:[%s5969_s1 + $0xb4] sm:$0xf] }
 0x20a   : > { %v1574_v0 = vpop.f32.mrf.mxu2  ;;  %v1593_v13 = vpop.f32.mrf.mxu3  ;;  %2564 = vmatpush.bf16.msra.mxu3 %v3955_v30 }
 0x20b   : > { %v1575_v12 = vadd.f32 %v1574_v0, %v1556_v27  ;;  %v1877_v21 = vpop.f32.mrf.mxu0  ;;  %v5651_v27 = vperm.slane %v5620_v61, 1  ;;  %2546 = vmatpush.bf16.msra.mxu2 %v3935_v43  ;;  %v4313_v0 = vld [vmem:[%s5969_s1 + $0x274] sm:$0xf0]  ;;  %2510 = vmatpush.bf16.msra.mxu0 %v3895_v55  ;;  %v3864_v43 = vld [vmem:[%s5969_s1 + $0xf0] sm:$0xf0] }
 0x20c   : > { %v1878_v35 = vadd.f32 %v1877_v21, %v5635_v14  ;;  %2529 = vmatpush.bf16.msra.mxu1 %v3899_v62  ;;  %v3878_v21 = vld [vmem:[%s5969_s1 + $0x130] sm:$0xf]  ;;  %v3867_v48 = vor.u32 %v4298_v38, %v3864_v43  ;;  %v4294_v62 = vld [vmem:[%s5969_s1 + $0x34] sm:$0xf] }
 0x20d   : > { %v1594_v26 = vadd.f32 %v1593_v13, %v1575_v12  ;;  %v3919_v12 = vor.u32 %v4313_v0, %v3918_v63  ;;  %v3920_v13 = vld [vmem:[%s5969_s1 + $0x278] sm:$0xf0]  ;;  %v3879_v25 = vor.u32 %v4304_v22, %v3878_v21  ;;  %v1703_v63 = vperm.slane %v5620_v61, 3 }
 0x20e   : > { %v1944_v54 = vmax.f32 %v1878_v35, 0.0  ;;  %2565 = vmatpush.bf16.msra.mxu3 %v3939_v46 }
 0x20f   : > { %v1896_v28 = vpop.f32.mrf.mxu1  ;;  %v5665_v59 = vadd.f32 %v1594_v26, %v962_v10  ;;  %2547 = vmatpush.bf16.msra.mxu2 %v3919_v12  ;;  %v3880_v10 = vld [vmem:[%s5969_s1 + $0x170] sm:$0xf0]  ;;  %2511 = vmatpush.bf16.msra.mxu0 %v3879_v25  ;;  %v3856_v25 = vld [vmem:[%s5969_s1 + $0x78] sm:$0xf0] }
 0x210   : > { %v1897_v41 = vadd.f32 %v1896_v28, %v5651_v27  ;;  %v3883_v28 = vor.u32 %v4302_v23, %v3880_v10  ;;  %v4297_v23 = vld [vmem:[%s5969_s1 + $0x74] sm:$0xf0] }
 0x212   : > { %v1576_v45 = vpop.f32.mrf.mxu2  ;;  %v1595_v53 = vpop.f32.mrf.mxu3  ;;  %v1945_v2 = vmax.f32 %v1897_v41, 0.0  ;;  %2530 = vmatpush.bf16.msra.mxu1 %v3883_v28  ;;  %v3863_v41 = vor.u32 %v4300_v37, %v3862_v16 }
 0x213   : > { %v1577_v51 = vadd.f32 %v1576_v45, %v5592_v11  ;;  %v1879_v60 = vpop.f32.mrf.mxu0  ;;  %v4311_v11 = vld [vmem:[%s5969_s1 + $0x23c] sm:$0xf]  ;;  %2548 = vmatpush.bf16.msra.mxu2 %v3903_v32  ;;  %v4305_v45 = vld [vmem:[%s5969_s1 + $0x174] sm:$0xf0] }
 0x214   : > { %v1880_v4 = vadd.f32 %v1879_v60, %v5635_v14  ;;  %v3923_v19 = vor.u32 %v4311_v11, %v3920_v13  ;;  %v3887_v49 = vor.u32 %v4305_v45, %v3886_v42  ;;  %2512 = vmatpush.bf16.msra.mxu0 %v3863_v41  ;;  %v4296_v60 = vld [vmem:[%s5969_s1 + $0x6c] sm:$0xf0]  ;;  %v3848_v11 = vld [vmem:[%s5969_s1 + $0x70] sm:$0xf0]  ;;  %v3872_v13 = vld [vmem:[%s5969_s1 + $0xf8] sm:$0xf0] }
 0x215   : > { %v5706_v1 = vadd.f32 %v1595_v53, %v1577_v51  ;;  %v3888_v51 = vld [vmem:[%s5969_s1 + $0x178] sm:$0xf0]  ;;  %v3846_v53 = vld [vmem:[%s5969_s1 + $0x30] sm:$0xf] }
 0x216   : > { %v1948_v24 = vmax.f32 %v1880_v4, 0.0  ;;  %2566 = vmatpush.bf16.msra.mxu3 %v3923_v19  ;;  %v3891_v56 = vor.u32 %v4303_v50, %v3888_v51  ;;  %2531 = vmatpush.bf16.msra.mxu1 %v3867_v48  ;;  %v3847_v0 = vor.u32 %v4296_v60, %v3846_v53  ;;  %v3851_v4 = vor.u32 %v4294_v62, %v3848_v11 }
 0x217   : > { %v1898_v8 = vpop.f32.mrf.mxu1  ;;  %2549 = vmatpush.bf16.msra.mxu2 %v3887_v49 }
 0x218   : > { %v1899_v17 = vadd.f32 %v1898_v8, %v5651_v27  ;;  %v1960_v30 = vpack.c.bf16 %v1948_v24, %v1944_v54  ;;  %v5765_v54 = vperm.slane %v5620_v61, 2  ;;  %v4301_v8 = vld [vmem:[%s5969_s1 + $0xf4] sm:$0xf0]  ;;  %v4299_v61 = vld [vmem:[%s5969_s1 + $0xbc] sm:$0xf]  ;;  %2513 = vmatpush.bf16.msra.mxu0 %v3847_v0 }
 0x219   : > { %v3875_v22 = vor.u32 %v4299_v61, %v3872_v13  ;;  %v4295_v24 = vld [vmem:[%s5969_s1 + $0x3c] sm:$0xf]  ;;  %v4339_v13 = vld [vmem:[%s5971_s3 + $0x368] sm:$0xff] }
 0x21a   : > { %v1949_v26 = vmax.f32 %v1899_v17, 0.0  ;;  %v1915_v35 = vpop.f32.mrf.mxu2  ;;  %v1934_v39 = vpop.f32.mrf.mxu3  ;;  %2168 = vmatmul.bf16.vlgmr.msrb.gmra.mxu0 %v1960_v30  ;;  %2567 = vmatpush.bf16.msra.mxu3 %v3907_v5  ;;  %v3854_v17 = vld [vmem:[%s5969_s1 + $0x38] sm:$0xf]  ;;  %v3859_v33 = vor.u32 %v4295_v24, %v3856_v25  ;;  %v4338_v24 = vld [vmem:[%s5971_s3 + $0x360] sm:$0xff] }
 0x21b   : > { %v1882_v46 = vpop.f32.mrf.mxu0  ;;  %v1916_v19 = vadd.f32 %v1915_v35, %v5765_v54  ;;  %v1935_v10 = vadd.f32 %v1934_v39, %v1703_v63  ;;  %2532 = vmatpush.bf16.msra.mxu1 %v3851_v4  ;;  %v3855_v30 = vor.u32 %v4297_v23, %v3854_v17  ;;  %v4330_v23 = vld [vmem:[%s5971_s3 + $0x320] sm:$0xff]  ;;  %v4357_v25 = vld [vmem:[%s5971_s3 + $0x3f8] sm:$0xff] }
 0x21c   : > { %v1961_v31 = vpack.c.bf16 %v1949_v26, %v1945_v2  ;;  %v3870_v2 = vld [vmem:[%s5969_s1 + $0xb8] sm:$0xf]  ;;  %v1883_v21 = vadd.f32 %v1882_v46, %v5635_v14 }
 0x21d   : > { %v3871_v12 = vor.u32 %v4301_v8, %v3870_v2  ;;  %v1946_v35 = vmax.f32 %v1916_v19, 0.0  ;;  %v1947_v38 = vmax.f32 %v1935_v10, 0.0  ;;  %v4348_v10 = vld [vmem:[%s5971_s3 + $0x3b0] sm:$0xff] }
 0x21e   : > { %2187 = vmatmul.bf16.vlgmr.msrb.gmra.mxu1 %v1961_v31  ;;  %2568 = vmatpush.bf16.msra.mxu3 %v3891_v56  ;;  %v1952_v5 = vmax.f32 %v1883_v21, 0.0  ;;  %v4349_v21 = vld [vmem:[%s5971_s3 + $0x3b8] sm:$0xff] }
 0x21f   : > { %v1901_v55 = vpop.f32.mrf.mxu1  ;;  %2550 = vmatpush.bf16.msra.mxu2 %v3871_v12  ;;  %v4340_v12 = vld [vmem:[%s5971_s3 + $0x370] sm:$0xff] }
 0x220   : > { %v1902_v28 = vadd.f32 %v1901_v55, %v5651_v27 }
 0x222   : > { %v1917_v26 = vpop.f32.mrf.mxu2  ;;  %v1936_v58 = vpop.f32.mrf.mxu3  ;;  %2569 = vmatpush.bf16.msra.mxu3 %v3875_v22  ;;  %v1953_v41 = vmax.f32 %v1902_v28, 0.0  ;;  %v4337_v28 = vld [vmem:[%s5971_s3 + $0x358] sm:$0xff] }
 0x223   : > { %v1918_v7 = vadd.f32 %v1917_v26, %v5765_v54  ;;  %v1937_v32 = vadd.f32 %v1936_v58, %v1703_v63  ;;  %v1884_v47 = vpop.f32.mrf.mxu0  ;;  %2551 = vmatpush.bf16.msra.mxu2 %v3855_v30  ;;  %v4329_v26 = vld [vmem:[%s5971_s3 + $0x318] sm:$0xff]  ;;  %v4356_v58 = vld [vmem:[%s5971_s3 + $0x3f0] sm:$0xff] }
 0x224   : > { %v1885_v16 = vadd.f32 %v1884_v47, %v5635_v14 }
 0x225   : > { %v1950_v31 = vmax.f32 %v1918_v7, 0.0  ;;  %v1951_v39 = vmax.f32 %v1937_v32, 0.0  ;;  %v4347_v32 = vld [vmem:[%s5971_s3 + $0x3a8] sm:$0xff] }
 0x226   : > { %v1956_v45 = vmax.f32 %v1885_v16, 0.0  ;;  %2570 = vmatpush.bf16.msra.mxu3 %v3859_v33  ;;  %v4328_v33 = vld [vmem:[%s5971_s3 + $0x310] sm:$0xff]  ;;  %v4327_v16 = vld [vmem:[%s5971_s3 + $0x308] sm:$0xff] }
 0x227   : > { %v1903_v37 = vpop.f32.mrf.mxu1  ;;  %v1962_v42 = vpack.c.bf16 %v1950_v31, %v1946_v35  ;;  %v1963_v46 = vpack.c.bf16 %v1951_v39, %v1947_v38  ;;  %v4336_v35 = vld [vmem:[%s5971_s3 + $0x350] sm:$0xff]  ;;  %v4355_v31 = vld [vmem:[%s5971_s3 + $0x3e8] sm:$0xff]  ;;  %v4354_v39 = vld [vmem:[%s5971_s3 + $0x3e0] sm:$0xff] }
 0x228   : > { %v1904_v43 = vadd.f32 %v1903_v37, %v5651_v27  ;;  %v1964_v49 = vpack.c.bf16 %v1956_v45, %v1952_v5  ;;  %v4346_v5 = vld [vmem:[%s5971_s3 + $0x3a0] sm:$0xff]  ;;  %v4335_v37 = vld [vmem:[%s5971_s3 + $0x348] sm:$0xff] }
 0x229   : > { %2206 = vmatmul.bf16.vlgmr.msrb.gmra.mxu2 %v1962_v42  ;;  %2225 = vmatmul.bf16.vlgmr.msrb.gmra.mxu3 %v1963_v46  ;;  %v4345_v42 = vld [vmem:[%s5971_s3 + $0x398] sm:$0xff]  ;;  %v4326_v46 = vld [vmem:[%s5971_s3 + $0x300] sm:$0xff] }
 0x22a   : > { %v1957_v48 = vmax.f32 %v1904_v43, 0.0  ;;  %v1920_v50 = vpop.f32.mrf.mxu2  ;;  %v1939_v53 = vpop.f32.mrf.mxu3  ;;  %2173 = vmatmul.bf16.gmra.mxu0 %v1964_v49  ;;  %2836 = vmatpush.bf16.msrb.mxu2 %v4349_v21 }
 0x22b   : > { %v1921_v14 = vadd.f32 %v1920_v50, %v5765_v54  ;;  %v1940_v55 = vadd.f32 %v1939_v53, %v1703_v63  ;;  %2855 = vmatpush.bf16.msrb.mxu3 %v4357_v25 }
 0x22c   : > { %v1965_v51 = vpack.c.bf16 %v1957_v48, %v1953_v41  ;;  %v915_v41 = vadd.f32 %v5179_v6, %v5177_v3  ;;  %v4334_v48 = vld [vmem:[%s5971_s3 + $0x340] sm:$0xff]  ;;  %v4353_v3 = vld [vmem:[%s5971_s3 + $0x3d8] sm:$0xff] }
 0x22d   : > { %v1954_v0 = vmax.f32 %v1921_v14, 0.0  ;;  %v1955_v2 = vmax.f32 %v1940_v55, 0.0  ;;  %v4344_v14 = vld [vmem:[%s5971_s3 + $0x390] sm:$0xff] }
 0x22e   : > { %2192 = vmatmul.bf16.gmra.mxu1 %v1965_v51  ;;  %2837 = vmatpush.bf16.msrb.mxu2 %v4348_v10  ;;  %v934_v49 = vadd.f32 %v5207_v18, %v915_v41  ;;  %v4352_v55 = vld [vmem:[%s5971_s3 + $0x3d0] sm:$0xff] }
 0x22f   : > { %2856 = vmatpush.bf16.msrb.mxu3 %v4356_v58  ;;  %v4404_v58 = vld [vmem:[%s4740_s21 + $0x18] sm:$0xff] }
 0x230   : > { %v953_v18 = vadd.f32 %v5209_v20, %v934_v49  ;;  %v2272_v20 = vld [vmem:[%s5970_s2 + $0xc] sm:$0xf] }
 0x231   : > { %v2338_v21 = vperm.slane %v2272_v20, 0 }
 0x232   : > { %v1922_v56 = vpop.f32.mrf.mxu2  ;;  %v1941_v60 = vpop.f32.mrf.mxu3  ;;  %2838 = vmatpush.bf16.msrb.mxu2 %v4347_v32 }
 0x233   : > { %v1923_v27 = vadd.f32 %v1922_v56, %v5765_v54  ;;  %v1942_v62 = vadd.f32 %v1941_v60, %v1703_v63  ;;  %v4333_v54 = vld [vmem:[%s5971_s3 + $0x338] sm:$0xff]  ;;  %2857 = vmatpush.bf16.msrb.mxu3 %v4355_v31 }
 0x234   : > { %v4341_v63 = vld [vmem:[%s5971_s3 + $0x378] sm:$0xff]  ;;  %2798 = vmatpush.bf16.msrb.mxu0 %v4333_v54 }
 0x235   : > { %v1958_v11 = vmax.f32 %v1923_v27, 0.0  ;;  %v1959_v4 = vmax.f32 %v1942_v62, 0.0  ;;  %2817 = vmatpush.bf16.msrb.mxu1 %v4341_v63  ;;  %v4403_v27 = vld [vmem:[%s4740_s21 + $0x8] sm:$0xff] }
 0x236   : > { %2839 = vmatpush.bf16.msrb.mxu2 %v4346_v5  ;;  %v323_v60 = vadd.f32 %v4403_v27, %v5523_v57 }
 0x237   : > { %v1966_v8 = vpack.c.bf16 %v1958_v11, %v1954_v0  ;;  %v1967_v61 = vpack.c.bf16 %v1959_v4, %v1955_v2  ;;  %2858 = vmatpush.bf16.msrb.mxu3 %v4354_v39  ;;  %v4343_v11 = vld [vmem:[%s5971_s3 + $0x388] sm:$0xff] }
 0x238   : > { %v4351_v4 = vld [vmem:[%s5971_s3 + $0x3c8] sm:$0xff] }
 0x239   : > { %2211 = vmatmul.bf16.gmra.mxu2 %v1966_v8  ;;  %2230 = vmatmul.bf16.gmra.mxu3 %v1967_v61  ;;  %v961_v61 = vadd.f32 %v953_v18, %v323_v60 }
 0x23a   : > { %2514 = vmatmul.bf16.vlgmr.msra.gmra.mxu0 %v4780_v34  ;;  %2818 = vmatpush.bf16.msrb.mxu1 %v4340_v12  ;;  %v4342_v12 = vld [vmem:[%s5971_s3 + $0x380] sm:$0xff] }
 0x23b   : > { %2840 = vmatpush.bf16.msrb.mxu2 %v4345_v42  ;;  %2859 = vmatpush.bf16.msrb.mxu3 %v4353_v3 }
 0x23e   : > { %2533 = vmatmul.bf16.vlgmr.msra.gmra.mxu1 %v4780_v34 }
 0x23f   : > { %2819 = vmatpush.bf16.msrb.mxu1 %v4339_v13  ;;  %2841 = vmatpush.bf16.msrb.mxu2 %v4344_v14 }
 0x240   : > { %2860 = vmatpush.bf16.msrb.mxu3 %v4352_v55 }
 0x243   : > { %2820 = vmatpush.bf16.msrb.mxu1 %v4338_v24  ;;  %2842 = vmatpush.bf16.msrb.mxu2 %v4343_v11 }
 0x244   : > { %2861 = vmatpush.bf16.msrb.mxu3 %v4351_v4 }
 0x247   : > { %2821 = vmatpush.bf16.msrb.mxu1 %v4337_v28  ;;  %2843 = vmatpush.bf16.msrb.mxu2 %v4342_v12 }
 0x249   : > { %2552 = vmatmul.bf16.vlgmr.msra.gmra.mxu2 %v4780_v34  ;;  %2571 = vmatmul.bf16.vlgmr.msra.gmra.mxu3 %v4780_v34  ;;  %v4332_v34 = vld [vmem:[%s5971_s3 + $0x330] sm:$0xff] }
 0x24a   : > { %2519 = vmatmul.bf16.gmra.mxu0 %v4827_v52 }
 0x24b   : > { %2799 = vmatpush.bf16.msrb.mxu0 %v4332_v34  ;;  %2822 = vmatpush.bf16.msrb.mxu1 %v4336_v35 }
 0x24e   : > { %2538 = vmatmul.bf16.gmra.mxu1 %v4827_v52 }
 0x24f   : > { %2823 = vmatpush.bf16.msrb.mxu1 %v4335_v37 }
 0x253   : > { %2824 = vmatpush.bf16.msrb.mxu1 %v4334_v48 }
 0x259   : > { %2557 = vmatmul.bf16.gmra.mxu2 %v4827_v52  ;;  %2576 = vmatmul.bf16.gmra.mxu3 %v4827_v52  ;;  %v4331_v52 = vld [vmem:[%s5971_s3 + $0x328] sm:$0xff] }
 0x25a   : > { %2800 = vmatpush.bf16.msrb.mxu0 %v4331_v52  ;;  %v4350_v52 = vld [vmem:[%s5971_s3 + $0x3c0] sm:$0xff] }
 0x25b   : > { %2862 = vmatpush.bf16.msrb.mxu3 %v4350_v52 }
 0x25e   : > { %2801 = vmatpush.bf16.msrb.mxu0 %v4330_v23 }
 0x262   : > { %2802 = vmatpush.bf16.msrb.mxu0 %v4329_v26 }
 0x266   : > { %2803 = vmatpush.bf16.msrb.mxu0 %v4328_v33 }
 0x26a   : > { %2804 = vmatpush.bf16.msrb.mxu0 %v4327_v16 }
 0x26e   : > { %2805 = vmatpush.bf16.msrb.mxu0 %v4326_v46 }
 0x297   : > { %v2169_v17 = vpop.f32.mrf.mxu0 }
 0x29b   : > { %v2188_v19 = vpop.f32.mrf.mxu1 }
 0x29c   : > { %v2189_v22 = vadd.f32 %v2188_v19, %v2169_v17  ;;  %v920_v17 = vadd.f32 %v5249_v44, %v5241_v36 }
 0x29e   : > { %v939_v24 = vadd.f32 %v5312_v9, %v920_v17 }
 0x29f   : > { %v2171_v7 = vpop.f32.mrf.mxu0 }
 0x2a0   : > { %v958_v36 = vadd.f32 %v5314_v15, %v939_v24 }
 0x2a3   : > { %v2190_v30 = vpop.f32.mrf.mxu1 }
 0x2a4   : > { %v2191_v47 = vadd.f32 %v2190_v30, %v2171_v7  ;;  %v325_v30 = vadd.f32 %v4404_v58, %v5523_v57 }
 0x2a7   : > { %v2174_v38 = vpop.f32.mrf.mxu0 }
 0x2ab   : > { %v2193_v43 = vpop.f32.mrf.mxu1 }
 0x2ac   : > { %v2194_v45 = vadd.f32 %v2193_v43, %v2174_v38  ;;  %v2207_v6 = vpop.f32.mrf.mxu2  ;;  %v2226_v51 = vpop.f32.mrf.mxu3  ;;  %v963_v38 = vadd.f32 %v958_v36, %v325_v30 }
 0x2ad   : > { %v2208_v50 = vadd.f32 %v2207_v6, %v2189_v22 }
 0x2ae   : > { %v1601_v57 = vadd.f32 %v5706_v1, %v963_v38 }
 0x2af   : > { %v2227_v53 = vadd.f32 %v2226_v51, %v2208_v50  ;;  %v2176_v56 = vpop.f32.mrf.mxu0  ;;  %v2340_v50 = vperm.slane %v2272_v20, 2  ;;  %v2341_v51 = vperm.slane %v2272_v20, 3 }
 0x2b1   : > { %v5908_v62 = vadd.f32 %v2227_v53, %v5564_v29  ;;  %v1599_v29 = vadd.f32 %v5584_v40, %v961_v61  ;;  %v2339_v40 = vperm.slane %v2272_v20, 1 }
 0x2b3   : > { %v2195_v0 = vpop.f32.mrf.mxu1 }
 0x2b4   : > { %v2196_v2 = vadd.f32 %v2195_v0, %v2176_v56  ;;  %v2209_v8 = vpop.f32.mrf.mxu2  ;;  %v2228_v63 = vpop.f32.mrf.mxu3 }
 0x2b5   : > { %v2210_v54 = vadd.f32 %v2209_v8, %v2191_v47 }
 0x2b7   : > { %v2229_v34 = vadd.f32 %v2228_v63, %v2210_v54  ;;  %v2515_v13 = vpop.f32.mrf.mxu0 }
 0x2b8   : > { %v2516_v26 = vadd.f32 %v2515_v13, %v2338_v21 }
 0x2b9   : > { %v5928_v19 = vadd.f32 %v2229_v34, %v1599_v29 }
 0x2ba   : > { %v2582_v47 = vmax.f32 %v2516_v26, 0.0 }
 0x2bb   : > { %v2534_v22 = vpop.f32.mrf.mxu1 }
 0x2bc   : > { %v2212_v23 = vpop.f32.mrf.mxu2  ;;  %v2231_v10 = vpop.f32.mrf.mxu3  ;;  %v2535_v28 = vadd.f32 %v2534_v22, %v2339_v40 }
 0x2bd   : > { %v2213_v25 = vadd.f32 %v2212_v23, %v2194_v45 }
 0x2be   : > { %v2583_v31 = vmax.f32 %v2535_v28, 0.0 }
 0x2bf   : > { %v2232_v7 = vadd.f32 %v2231_v10, %v2213_v25  ;;  %v2517_v32 = vpop.f32.mrf.mxu0 }
 0x2c0   : > { %v2518_v33 = vadd.f32 %v2517_v32, %v2338_v21 }
 0x2c1   : > { %v5935_v44 = vadd.f32 %v2232_v7, %v5665_v59 }
 0x2c2   : > { %v2586_v9 = vmax.f32 %v2518_v33, 0.0 }
 0x2c3   : > { %v2536_v35 = vpop.f32.mrf.mxu1 }
 0x2c4   : > { %v2537_v5 = vadd.f32 %v2536_v35, %v2339_v40  ;;  %v2214_v16 = vpop.f32.mrf.mxu2  ;;  %v2233_v41 = vpop.f32.mrf.mxu3  ;;  %v2598_v43 = vpack.c.bf16 %v2586_v9, %v2582_v47 }
 0x2c5   : > { %v2215_v39 = vadd.f32 %v2214_v16, %v2196_v2 }
 0x2c6   : > { %v2587_v37 = vmax.f32 %v2537_v5, 0.0  ;;  %2806 = vmatmul.bf16.vlgmr.msrb.gmra.mxu0 %v2598_v43 }
 0x2c7   : > { %v2234_v45 = vadd.f32 %v2233_v41, %v2215_v39  ;;  %v2520_v15 = vpop.f32.mrf.mxu0 }
 0x2c8   : > { %v2599_v42 = vpack.c.bf16 %v2587_v37, %v2583_v31  ;;  %v2521_v6 = vadd.f32 %v2520_v15, %v2338_v21 }
 0x2c9   : > { %v5938_v59 = vadd.f32 %v2234_v45, %v1601_v57 }
 0x2ca   : > { %2825 = vmatmul.bf16.vlgmr.msrb.gmra.mxu1 %v2599_v42  ;;  %v2590_v14 = vmax.f32 %v2521_v6, 0.0 }
 0x2cb   : > { %v2539_v46 = vpop.f32.mrf.mxu1 }
 0x2cc   : > { %v2553_v48 = vpop.f32.mrf.mxu2  ;;  %v2572_v3 = vpop.f32.mrf.mxu3  ;;  %v2540_v49 = vadd.f32 %v2539_v46, %v2339_v40 }
 0x2cd   : > { %v2554_v1 = vadd.f32 %v2553_v48, %v2340_v50  ;;  %v2573_v0 = vadd.f32 %v2572_v3, %v2341_v51 }
 0x2ce   : > { %v2591_v27 = vmax.f32 %v2540_v49, 0.0 }
 0x2cf   : > { %v2522_v53 = vpop.f32.mrf.mxu0  ;;  %v2584_v29 = vmax.f32 %v2554_v1, 0.0  ;;  %v2585_v20 = vmax.f32 %v2573_v0, 0.0 }
 0x2d0   : > { %v2523_v55 = vadd.f32 %v2522_v53, %v2338_v21 }
 0x2d2   : > { %v2594_v18 = vmax.f32 %v2523_v55, 0.0 }
 0x2d3   : > { %v2541_v56 = vpop.f32.mrf.mxu1 }
 0x2d4   : > { %v2542_v60 = vadd.f32 %v2541_v56, %v2339_v40  ;;  %v2555_v11 = vpop.f32.mrf.mxu2  ;;  %v2574_v8 = vpop.f32.mrf.mxu3  ;;  %v2602_v61 = vpack.c.bf16 %v2594_v18, %v2590_v14 }
 0x2d5   : > { %v2556_v4 = vadd.f32 %v2555_v11, %v2340_v50  ;;  %v2575_v54 = vadd.f32 %v2574_v8, %v2341_v51 }
 0x2d6   : > { %v2595_v2 = vmax.f32 %v2542_v60, 0.0  ;;  %2811 = vmatmul.bf16.gmra.mxu0 %v2602_v61 }
 0x2d7   : > { %v2588_v34 = vmax.f32 %v2556_v4, 0.0  ;;  %v2589_v12 = vmax.f32 %v2575_v54, 0.0 }
 0x2d8   : > { %v2603_v63 = vpack.c.bf16 %v2595_v2, %v2591_v27 }
 0x2d9   : > { %v2600_v52 = vpack.c.bf16 %v2588_v34, %v2584_v29  ;;  %v2601_v13 = vpack.c.bf16 %v2589_v12, %v2585_v20 }
 0x2da   : > { %2830 = vmatmul.bf16.gmra.mxu1 %v2603_v63 }
 0x2db   : > { %2844 = vmatmul.bf16.vlgmr.msrb.gmra.mxu2 %v2600_v52  ;;  %2863 = vmatmul.bf16.vlgmr.msrb.gmra.mxu3 %v2601_v13 }
 0x2dc   : > { %v2558_v17 = vpop.f32.mrf.mxu2  ;;  %v2577_v21 = vpop.f32.mrf.mxu3 }
 0x2dd   : > { %v2559_v22 = vadd.f32 %v2558_v17, %v2340_v50  ;;  %v2578_v40 = vadd.f32 %v2577_v21, %v2341_v51 }
 0x2df   : > { %v2592_v26 = vmax.f32 %v2559_v22, 0.0  ;;  %v2593_v7 = vmax.f32 %v2578_v40, 0.0 }
 0x2e4   : > { %v2560_v23 = vpop.f32.mrf.mxu2  ;;  %v2579_v25 = vpop.f32.mrf.mxu3 }
 0x2e5   : > { %v2561_v24 = vadd.f32 %v2560_v23, %v2340_v50  ;;  %v2580_v10 = vadd.f32 %v2579_v25, %v2341_v51 }
 0x2e7   : > { %v2596_v28 = vmax.f32 %v2561_v24, 0.0  ;;  %v2597_v58 = vmax.f32 %v2580_v10, 0.0 }
 0x2e9   : > { %v2604_v30 = vpack.c.bf16 %v2596_v28, %v2592_v26  ;;  %v2605_v32 = vpack.c.bf16 %v2597_v58, %v2593_v7 }
 0x2eb   : > { %2849 = vmatmul.bf16.gmra.mxu2 %v2604_v30  ;;  %2868 = vmatmul.bf16.gmra.mxu3 %v2605_v32 }
 0x343   : > { %v2807_v36 = vpop.f32.mrf.mxu0 }
 0x347   : > { %v2826_v47 = vpop.f32.mrf.mxu1 }
 0x348   : > { %v2827_v33 = vadd.f32 %v2826_v47, %v2807_v36 }
 0x34b   : > { %v2809_v35 = vpop.f32.mrf.mxu0 }
 0x34f   : > { %v2828_v31 = vpop.f32.mrf.mxu1 }
 0x350   : > { %v2829_v39 = vadd.f32 %v2828_v31, %v2809_v35 }
 0x353   : > { %v2812_v57 = vpop.f32.mrf.mxu0 }
 0x357   : > { %v2831_v45 = vpop.f32.mrf.mxu1 }
 0x358   : > { %v2832_v48 = vadd.f32 %v2831_v45, %v2812_v57 }
 0x35b   : > { %v2814_v51 = vpop.f32.mrf.mxu0 }
 0x35e   : > { %v2845_v5 = vpop.f32.mrf.mxu2  ;;  %v2864_v16 = vpop.f32.mrf.mxu3 }
 0x35f   : > { %v2846_v9 = vadd.f32 %v2845_v5, %v2827_v33  ;;  %v2833_v53 = vpop.f32.mrf.mxu1 }
 0x360   : > { %v2834_v14 = vadd.f32 %v2833_v53, %v2814_v51 }
 0x361   : > { %v2865_v37 = vadd.f32 %v2864_v16, %v2846_v9 }
 0x363   : > { %v2874_v38 = vadd.f32 %v2865_v37, %v5908_v62  ;;  %v4389_v37 = vld [vmem:[#allocation2] ss:$0 sm:$0xff] }
 0x365   : > { %2878 = vadd.xlane.f32.xlu0 %v2874_v38 }
 0x366   : > { %v2847_v41 = vpop.f32.mrf.mxu2  ;;  %v2866_v42 = vpop.f32.mrf.mxu3 }
 0x367   : > { %v2848_v43 = vadd.f32 %v2847_v41, %v2829_v39  ;;  %v4390_v41 = vld [vmem:[#allocation4] ss:$0 sm:$0xff] }
 0x369   : > { %v2867_v15 = vadd.f32 %v2866_v42, %v2848_v43 }
 0x36b   : > { %v2875_v46 = vadd.f32 %v2867_v15, %v5928_v19  ;;  %v4483_v19 = vmov 128.0  }
 0x36c   : > { %4391 = vrcp.f32 %v4483_v19 }
 0x36d   : > { %2880 = vadd.xlane.f32.xlu0 %v2875_v46 }
 0x36e   : > { %v2850_v3 = vpop.f32.mrf.mxu2  ;;  %v2869_v49 = vpop.f32.mrf.mxu3 }
 0x36f   : > { %v2851_v6 = vadd.f32 %v2850_v3, %v2832_v48 }
 0x371   : > { %v2870_v50 = vadd.f32 %v2869_v49, %v2851_v6 }
 0x372   : > { %v4392_v18 = vpop.eup %4391 }
 0x373   : > { %v2876_v62 = vadd.f32 %v2870_v50, %v5935_v44  ;;  %v2887_v0 = vmul.f32 128.0, %v4392_v18  ;;  %vm2891_vm0 = vweird.f32 %v4392_v18 }
 0x375   : > { %2882 = vadd.xlane.f32.xlu1 %v2876_v62  ;;  %v2888_v11 = vsub.f32 1.0, %v2887_v0 }
 0x376   : > { %v2852_v55 = vpop.f32.mrf.mxu2  ;;  %v2871_v27 = vpop.f32.mrf.mxu3 }
 0x377   : > { %v2853_v56 = vadd.f32 %v2852_v55, %v2834_v14  ;;  %v2889_v2 = vmul.f32 %v4392_v18, %v2888_v11 }
 0x379   : > { %v2872_v60 = vadd.f32 %v2871_v27, %v2853_v56  ;;  %v2890_v4 = vadd.f32 %v4392_v18, %v2889_v2 }
 0x37b   : > { %v2877_v1 = vadd.f32 %v2872_v60, %v5938_v59  ;;  %v2892_v8 = vsel %vm2891_vm0, %v4392_v18, %v2890_v4 }
 0x37d   : > { %2884 = vadd.xlane.f32.xlu1 %v2877_v1 }
 0x3d8   : > { %v2879_v61 = vpop.xlane.xlu0 %2878 }
 0x3d9   : > { %v2893_v44 = vmul.f32 %v2892_v8, %v2879_v61 }
 0x3db   : > { %v2897_v54 = vsub.f32 %v2874_v38, %v2893_v44 }
 0x3dd   : > { %v2901_v63 = vmul.f32 %v2897_v54, %v2897_v54 }
 0x3df   : > { %2905 = vadd.xlane.f32.xlu2 %v2901_v63 }
 0x3e0   : > { %v2881_v29 = vpop.xlane.xlu0 %2880 }
 0x3e1   : > { %v2894_v34 = vmul.f32 %v2892_v8, %v2881_v29 }
 0x3e3   : > { %v2898_v20 = vsub.f32 %v2875_v46, %v2894_v34 }
 0x3e5   : > { %v2902_v12 = vmul.f32 %v2898_v20, %v2898_v20 }
 0x3e7   : > { %2907 = vadd.xlane.f32.xlu2 %v2902_v12 }
 0x3e8   : > { %v2883_v59 = vpop.xlane.xlu1 %2882 }
 0x3e9   : > { %v2895_v52 = vmul.f32 %v2892_v8, %v2883_v59 }
 0x3eb   : > { %v5944_v13 = vsub.f32 %v2876_v62, %v2895_v52 }
 0x3ed   : > { %v2903_v17 = vmul.f32 %v5944_v13, %v5944_v13 }
 0x3ef   : > { %2909 = vadd.xlane.f32.xlu0 %v2903_v17 }
 0x3f0   : > { %v2885_v21 = vpop.xlane.xlu1 %2884 }
 0x3f1   : > { %v2896_v22 = vmul.f32 %v2892_v8, %v2885_v21 }
 0x3f3   : > { %v5948_v40 = vsub.f32 %v2877_v1, %v2896_v22 }
 0x3f5   : > { %v2904_v23 = vmul.f32 %v5948_v40, %v5948_v40 }
 0x3f7   : > { %2911 = vadd.xlane.f32.xlu1 %v2904_v23 }
 0x452   : > { %v2906_v24 = vpop.xlane.xlu2 %2905 }
 0x453   : > { %v2913_v25 = vmul.f32 %v2906_v24, %v2892_v8 }
 0x455   : > { %v2917_v10 = vadd.f32 1e-05, %v2913_v25 }
 0x457   : > { %4393 = vrsqrt.f32 %v2917_v10  ;;  %vm2927_vm2 = vweird.f32 %v2917_v10 }
 0x45a   : > { %v2908_v26 = vpop.xlane.xlu2 %2907 }
 0x45b   : > { %v2914_v28 = vmul.f32 %v2908_v26, %v2892_v8 }
 0x45d   : > { %v4394_v7 = vpop.eup %4393  ;;  %v2918_v58 = vadd.f32 1e-05, %v2914_v28 }
 0x45e   : > { %v2922_v30 = vmul.f32 %v4394_v7, %v2917_v10  ;;  %vm2928_vm1 = vweird.f32 %v4394_v7 }
 0x45f   : > { %4395 = vrsqrt.f32 %v2918_v58  ;;  %vm2929_vm3 = vmor %vm2927_vm2, %vm2928_vm1  ;;  %vm2937_vm5 = vweird.f32 %v2918_v58 }
 0x460   : > { %v2923_v32 = vmul.f32 %v4394_v7, %v2922_v30 }
 0x462   : > { %v2924_v36 = vmul.f32 0.5, %v2923_v32  ;;  %v2910_v47 = vpop.xlane.xlu0 %2909 }
 0x463   : > { %v2915_v33 = vmul.f32 %v2910_v47, %v2892_v8 }
 0x464   : > { %v2925_v35 = vsub.f32 1.5, %v2924_v36 }
 0x465   : > { %v4396_v31 = vpop.eup %4395  ;;  %v2919_v5 = vadd.f32 1e-05, %v2915_v33 }
 0x466   : > { %v2926_v9 = vmul.f32 %v4394_v7, %v2925_v35  ;;  %v2932_v16 = vmul.f32 %v4396_v31, %v2918_v58  ;;  %vm2938_vm4 = vweird.f32 %v4396_v31 }
 0x467   : > { %4397 = vrsqrt.f32 %v2919_v5  ;;  %vm2939_vm6 = vmor %vm2937_vm5, %vm2938_vm4  ;;  %vm2947_vm8 = vweird.f32 %v2919_v5 }
 0x468   : > { %v2930_v38 = vsel %vm2929_vm3, %v4394_v7, %v2926_v9  ;;  %v2933_v39 = vmul.f32 %v4396_v31, %v2932_v16 }
 0x469   : > { %v2961_v43 = vmul.f32 %v2930_v38, %v2897_v54 }
 0x46a   : > { %v2934_v42 = vmul.f32 0.5, %v2933_v39  ;;  %v2912_v57 = vpop.xlane.xlu1 %2911 }
 0x46b   : > { %v2969_v45 = vmul.f32 %v4389_v37, %v2961_v43  ;;  %v2916_v15 = vmul.f32 %v2912_v57, %v2892_v8 }
 0x46c   : > { %v2935_v46 = vsub.f32 1.5, %v2934_v42 }
 0x46d   : > { %v4398_v48 = vpop.eup %4397  ;;  %v2977_v3 = vadd.f32 %v4390_v41, %v2969_v45  ;;  %v2920_v6 = vadd.f32 1e-05, %v2916_v15 }
 0x46e   : > { %v2936_v49 = vmul.f32 %v4396_v31, %v2935_v46  ;;  %v2942_v50 = vmul.f32 %v4398_v48, %v2919_v5  ;;  %vm2948_vm7 = vweird.f32 %v4398_v48 }
 0x46f   : > { %2981 = vst [vmem:[%s5957_s9] sm:$0xff] %v2977_v3  ;;  %4399 = vrsqrt.f32 %v2920_v6  ;;  %vm2949_vm9 = vmor %vm2947_vm8, %vm2948_vm7  ;;  %vm2957_vm11 = vweird.f32 %v2920_v6 }
 0x470   : > { %v2940_v51 = vsel %vm2939_vm6, %v4396_v31, %v2936_v49  ;;  %v2943_v53 = vmul.f32 %v4398_v48, %v2942_v50 }
 0x471   : > { %v2962_v62 = vmul.f32 %v2940_v51, %v2898_v20 }
 0x472   : > { %v2944_v14 = vmul.f32 0.5, %v2943_v53 }
 0x473   : > { %v2970_v55 = vmul.f32 %v4389_v37, %v2962_v62 }
 0x474   : > { %v2945_v56 = vsub.f32 1.5, %v2944_v14 }
 0x475   : > { %v4400_v27 = vpop.eup %4399  ;;  %v2978_v60 = vadd.f32 %v4390_v41, %v2970_v55 }
 0x476   : > { %v2946_v1 = vmul.f32 %v4398_v48, %v2945_v56  ;;  %v2952_v19 = vmul.f32 %v4400_v27, %v2920_v6  ;;  %vm2958_vm10 = vweird.f32 %v4400_v27 }
 0x477   : > { %2982 = vst [vmem:[%s5957_s9 + $0x8] sm:$0xff] %v2978_v60  ;;  %vm2959_vm12 = vmor %vm2957_vm11, %vm2958_vm10 }
 0x478   : > { %v2950_v18 = vsel %vm2949_vm9, %v4398_v48, %v2946_v1  ;;  %v2953_v0 = vmul.f32 %v4400_v27, %v2952_v19 }
 0x479   : > { %v2963_v11 = vmul.f32 %v2950_v18, %v5944_v13 }
 0x47a   : > { %v2954_v2 = vmul.f32 0.5, %v2953_v0 }
 0x47b   : > { %v2971_v4 = vmul.f32 %v4389_v37, %v2963_v11 }
 0x47c   : > { %v2955_v8 = vsub.f32 1.5, %v2954_v2 }
 0x47d   : > { %v2979_v61 = vadd.f32 %v4390_v41, %v2971_v4 }
 0x47e   : > { %v2956_v44 = vmul.f32 %v4400_v27, %v2955_v8 }
 0x47f   : > { %2983 = vst [vmem:[%s5957_s9 + $0x10] sm:$0xff] %v2979_v61 }
 0x480   : > { %v2960_v54 = vsel %vm2959_vm12, %v4400_v27, %v2956_v44 }
 0x481   : > { %v2964_v63 = vmul.f32 %v2960_v54, %v5948_v40 }
 0x483   : > { %v2972_v29 = vmul.f32 %v4389_v37, %v2964_v63 }
 0x485   : > { %v2980_v34 = vadd.f32 %v4390_v41, %v2972_v29 }
 0x487   : > { %2984 = vst [vmem:[%s5957_s9 + $0x18] sm:$0xff] %v2980_v34 }
 0x488 PF: > { %s19_s24 = sadd.s32 1, %s4479_s24  }
 0x489   : > { %p16_p7 = scmp.ge.s32.totalorder %s19_s24, 4  }
 0x48b   :  { %18 = sbr.rel (!%p16_p7) target bundleno = 2 (0x2), region = 87 }
 0x490   :  { %3007 = vsyncpa [#allocation3], 1 }
 0x491   :  { %3009 = vsyncpa [#allocation3 + $0x1], 1 }
 0x492   :  { %3010 = vsyncpa [#allocation5], 1 }

</bundles_post_ra>
